<compile_context>
chip_gen: v7x
topology: tpu7x:2x2x1
jax: 0.10.0
libtpu: 0.0.40
codegen_flags: <defaults>
</compile_context>

<pallas_src>
import functools

import numpy as np
import jax
import jax.numpy as jnp
from jax.experimental import pallas as pl
from jax.experimental.pallas import tpu as pltpu

_SELU_ALPHA = 1.6732632423543772
_SELU_SCALE = 1.0507009873554805
_LANE = 128
_VMEM_LIMIT = 32 * 1024 * 1024  # safe on v5e/v6e/v7x (v7x physical VMEM is 64 MiB)


def _selu(x):
    # exp only on the non-positive branch so low-precision variants cannot overflow.
    return _SELU_SCALE * jnp.where(x > 0, x, _SELU_ALPHA * (jnp.exp(jnp.minimum(x, 0.0)) - 1.0))


def _round_up(x, m):
    return ((x + m - 1) // m) * m


def _cparams(sem):
    return pltpu.CompilerParams(dimension_semantics=sem, vmem_limit_bytes=_VMEM_LIMIT)


# ----------------------------------------------------------------------------
# Pallas kernels
# ----------------------------------------------------------------------------
def _mm_bias_act_kernel(a_ref, w_ref, b_ref, s_ref, t_ref, o_ref, *, act):
    # o = act((a @ w + bias) * scale + shift); bf16 inputs, f32 accumulation.
    acc = jnp.dot(a_ref[...], w_ref[...], preferred_element_type=jnp.float32)
    acc = (acc + b_ref[...]) * s_ref[...] + t_ref[...]
    if act == "selu":
        acc = _selu(acc)
    elif act == "relu":
        acc = jnp.maximum(acc, 0.0)
    o_ref[...] = acc


def matmul_fused(a, w, b=None, scale=None, shift=None, act="none", tile_m=512):
    """Tiled fused matmul: grid over (M tiles, 128-lane N tiles), weights M-resident."""
    M, K = a.shape
    N = w.shape[1]
    Np = _round_up(N, _LANE)
    tm = min(tile_m, _round_up(M, 8))
    Mp = _round_up(M, tm)

    a_p = jnp.pad(a, ((0, Mp - M), (0, 0))).astype(jnp.bfloat16)
    w_p = jnp.pad(w.astype(jnp.float32), ((0, 0), (0, Np - N))).astype(jnp.bfloat16)
    b_v = jnp.zeros((N,), jnp.float32) if b is None else b.astype(jnp.float32)
    s_v = jnp.ones((N,), jnp.float32) if scale is None else scale.astype(jnp.float32)
    t_v = jnp.zeros((N,), jnp.float32) if shift is None else shift.astype(jnp.float32)
    b_p = jnp.pad(b_v, (0, Np - N)).reshape(1, Np)
    s_p = jnp.pad(s_v, (0, Np - N), constant_values=1.0).reshape(1, Np)
    t_p = jnp.pad(t_v, (0, Np - N)).reshape(1, Np)

    grid = (Mp // tm, Np // _LANE)
    out = pl.pallas_call(
        functools.partial(_mm_bias_act_kernel, act=act),
        grid=grid,
        in_specs=[
            pl.BlockSpec((tm, K), lambda i, j: (i, 0)),
            pl.BlockSpec((K, _LANE), lambda i, j: (0, j)),     # weight resident across M
            pl.BlockSpec((1, _LANE), lambda i, j: (0, j)),
            pl.BlockSpec((1, _LANE), lambda i, j: (0, j)),
            pl.BlockSpec((1, _LANE), lambda i, j: (0, j)),
        ],
        out_specs=pl.BlockSpec((tm, _LANE), lambda i, j: (i, j)),
        out_shape=jax.ShapeDtypeStruct((Mp, Np), jnp.float32),
        compiler_params=_cparams(("parallel", "parallel")),
    )(a_p, w_p, b_p, s_p, t_p)
    return out[:M, :N]


def _mm_res_ln_kernel(a_ref, w_ref, b_ref, r_ref, g_ref, bb_ref, o_ref, *, d_valid, eps):
    # x = a @ w + bias + residual ; LayerNorm over the first d_valid (=64) features.
    x = jnp.dot(a_ref[...], w_ref[...], preferred_element_type=jnp.float32)
    x = x + b_ref[...] + r_ref[...]
    dp = x.shape[-1]
    mask = (jax.lax.broadcasted_iota(jnp.int32, (1, dp), 1) < d_valid).astype(jnp.float32)
    inv_d = 1.0 / float(d_valid)
    mu = jnp.sum(x * mask, axis=-1, keepdims=True) * inv_d
    xc = (x - mu) * mask
    var = jnp.sum(xc * xc, axis=-1, keepdims=True) * inv_d
    y = xc * jax.lax.rsqrt(var + eps)
    o_ref[...] = y * g_ref[...] + bb_ref[...]


def matmul_res_layernorm(a, w, b, res, gamma, beta, d_valid, eps=1e-5, tile_m=512):
    """Fused: LayerNorm((a @ w + b) + res) over the real feature width d_valid."""
    M, K = a.shape
    Dp = w.shape[1]
    tm = min(tile_m, _round_up(M, 8))
    Mp = _round_up(M, tm)
    a_p = jnp.pad(a, ((0, Mp - M), (0, 0))).astype(jnp.bfloat16)
    r_p = jnp.pad(res.astype(jnp.float32), ((0, Mp - M), (0, 0)))
    out = pl.pallas_call(
        functools.partial(_mm_res_ln_kernel, d_valid=d_valid, eps=eps),
        grid=(Mp // tm,),
        in_specs=[
            pl.BlockSpec((tm, K), lambda i: (i, 0)),
            pl.BlockSpec((K, Dp), lambda i: (0, 0)),
            pl.BlockSpec((1, Dp), lambda i: (0, 0)),
            pl.BlockSpec((tm, Dp), lambda i: (i, 0)),
            pl.BlockSpec((1, Dp), lambda i: (0, 0)),
            pl.BlockSpec((1, Dp), lambda i: (0, 0)),
        ],
        out_specs=pl.BlockSpec((tm, Dp), lambda i: (i, 0)),
        out_shape=jax.ShapeDtypeStruct((Mp, Dp), jnp.float32),
        compiler_params=_cparams(("parallel",)),
    )(a_p, w.astype(jnp.bfloat16), b.reshape(1, Dp), r_p,
      gamma.reshape(1, Dp), beta.reshape(1, Dp))
    return out[:M]


def _sinc_kernel(p_ref, f_ref, s_ref, t_ref, o_ref):
    # sinc conv matmul + |.| + MaxPool1d(3) + BN affine + SELU, all in one epilogue.
    tt = o_ref.shape[1]
    cp = o_ref.shape[2]
    y = jnp.dot(p_ref[0], f_ref[...], preferred_element_type=jnp.float32)   # (3*tt, cp)
    y = jnp.abs(y)
    y = jnp.max(y.reshape(tt, 3, cp), axis=1)                               # MaxPool1d(3)
    y = y * s_ref[...] + t_ref[...]
    o_ref[0] = _selu(y)


def sinc_frontend(patches, filt, scale, shift, tile_t):
    # patches: (B, T1p*3, 128) bf16;  filt: (128, 128) bf16 (70 real output channels).
    B, T3p, K = patches.shape
    T1p = T3p // 3
    Cp = filt.shape[1]
    return pl.pallas_call(
        _sinc_kernel,
        grid=(B, T1p // tile_t),
        in_specs=[
            pl.BlockSpec((1, tile_t * 3, K), lambda b, t: (b, t, 0)),
            pl.BlockSpec((K, Cp), lambda b, t: (0, 0)),
            pl.BlockSpec((1, Cp), lambda b, t: (0, 0)),
            pl.BlockSpec((1, Cp), lambda b, t: (0, 0)),
        ],
        out_specs=pl.BlockSpec((1, tile_t, Cp), lambda b, t: (b, t, 0)),
        out_shape=jax.ShapeDtypeStruct((B, T1p, Cp), jnp.float32),
        compiler_params=_cparams(("parallel", "parallel")),
    )(patches, filt, scale, shift)


def _conv3x3_kernel(x0_ref, x1_ref, x2_ref, w_ref, b_ref, s_ref, t_ref, o_ref):
    # One output row per program: 9 shifted matmuls + bias + BN + SELU (no im2col).
    wd = o_ref.shape[2]
    rows = (x0_ref[0, 0], x1_ref[0, 0], x2_ref[0, 0])   # each (W+2, Cin_p), bf16
    acc = None
    for di in range(3):
        for dj in range(3):
            term = jnp.dot(rows[di][dj:dj + wd, :], w_ref[di * 3 + dj],
                           preferred_element_type=jnp.float32)
            acc = term if acc is None else acc + term
    acc = (acc + b_ref[...]) * s_ref[...] + t_ref[...]
    o_ref[0, 0] = _selu(acc)


def conv3x3_bn_selu(x, w9, bias, gamma, beta):
    # x: (B, H, W, Cin_p) NHWC; w9: (9, Cin_p, 128); output: (B, H, W, 128) f32.
    B, H, Wd, Cp = x.shape
    Coutp = w9.shape[-1]
    xp = jnp.pad(x, ((0, 0), (1, 1), (1, 1), (0, 0))).astype(jnp.bfloat16)

    def row_spec(di):
        return pl.BlockSpec((1, 1, Wd + 2, Cp), lambda b, h, di=di: (b, h + di, 0, 0))

    return pl.pallas_call(
        _conv3x3_kernel,
        grid=(B, H),
        in_specs=[
            row_spec(0), row_spec(1), row_spec(2),
            pl.BlockSpec((9, Cp, Coutp), lambda b, h: (0, 0, 0)),   # weights resident
            pl.BlockSpec((1, Coutp), lambda b, h: (0, 0)),
            pl.BlockSpec((1, Coutp), lambda b, h: (0, 0)),
            pl.BlockSpec((1, Coutp), lambda b, h: (0, 0)),
        ],
        out_specs=pl.BlockSpec((1, 1, Wd, Coutp), lambda b, h: (b, h, 0, 0)),
        out_shape=jax.ShapeDtypeStruct((B, H, Wd, Coutp), jnp.float32),
        compiler_params=_cparams(("parallel", "parallel")),
    )(xp, xp, xp, w9.astype(jnp.bfloat16), bias, gamma, beta)


def _mha_kernel(q_ref, k_ref, v_ref, o_ref, *, s_valid, scale):
    # One batch element per program, all heads inside; padded keys are masked.
    q = q_ref[0]          # (nh, Sp, dh) bf16
    k = k_ref[0]
    v = v_ref[0]
    s = jnp.einsum('hqd,hkd->hqk', q, k, preferred_element_type=jnp.float32) * scale
    kmask = jax.lax.broadcasted_iota(jnp.int32, s.shape, 2) < s_valid
    s = jnp.where(kmask, s, -1e30)
    m = jnp.max(s, axis=-1, keepdims=True)
    p = jnp.exp(s - m)
    p = p / jnp.sum(p, axis=-1, keepdims=True)
    o = jnp.einsum('hqk,hkd->hqd', p.astype(v.dtype), v, preferred_element_type=jnp.float32)
    nh, sp, dh = o.shape
    heads = [o[h] for h in range(nh)]
    heads.append(jnp.zeros((sp, o_ref.shape[-1] - nh * dh), jnp.float32))
    o_ref[0] = jnp.concatenate(heads, axis=-1)          # lane-dense (Sp, 128) store


def multihead_attention(q, k, v, s_valid, d_model_pad=_LANE):
    # q, k, v: (B, nh, Sp, dh) bf16 -> (B, Sp, 128) f32 (heads merged, zero-padded lanes).
    B, nh, Sp, dh = q.shape
    qspec = pl.BlockSpec((1, nh, Sp, dh), lambda b: (b, 0, 0, 0))
    return pl.pallas_call(
        functools.partial(_mha_kernel, s_valid=s_valid, scale=1.0 / float(np.sqrt(dh))),
        grid=(B,),
        in_specs=[qspec, qspec, qspec],
        out_specs=pl.BlockSpec((1, Sp, d_model_pad), lambda b: (b, 0, 0)),
        out_shape=jax.ShapeDtypeStruct((B, Sp, d_model_pad), jnp.float32),
        compiler_params=_cparams(("parallel",)),
    )(q, k, v)


# ----------------------------------------------------------------------------
# Plain-JAX glue (sinc filter bank, max-pools, parameter init / padding)
# ----------------------------------------------------------------------------
def make_sinc_filters(out_channels=70, kernel_size=128, sample_rate=16000):
    def hz2mel(hz):
        return 2595.0 * np.log10(1.0 + hz / 700.0)

    def mel2hz(mel):
        return 700.0 * (10.0 ** (mel / 2595.0) - 1.0)

    low_hz, high_hz = 30.0, sample_rate / 2.0 - 50.0
    mel = np.linspace(hz2mel(low_hz), hz2mel(high_hz), out_channels + 1)
    hz = mel2hz(mel)
    f1, f2 = hz[:-1], hz[1:]
    t = (np.arange(kernel_size) - (kernel_size - 1) / 2.0) / sample_rate
    window = np.hamming(kernel_size)
    filt = []
    for lo, hi in zip(f1, f2):
        band = 2.0 * hi * np.sinc(2.0 * hi * t) - 2.0 * lo * np.sinc(2.0 * lo * t)
        band = band / (2.0 * (hi - lo))
        filt.append(band * window)
    return jnp.asarray(np.stack(filt), dtype=jnp.float32)


def maxpool_nhwc(x, kh, kw):
    # PyTorch MaxPool2d((kh, kw)) with default stride = kernel, no padding, NHWC layout.
    B, H, W, C = x.shape
    Ho, Wo = H // kh, W // kw
    x = x[:, : Ho * kh, : Wo * kw, :].reshape(B, Ho, kh, Wo, kw, C)
    return x.max(axis=(2, 4))


def init_params(key):
    def nrm(k, shape, scale=0.02):
        return scale * jax.random.normal(k, shape, dtype=jnp.float32)

    ki = iter(jax.random.split(key, 32))
    p = {}
    # Frontend_S: sinc conv (kernel 128) + 2 conv blocks -> (B, 64, 23, T)
    p["sinc_filt"] = make_sinc_filters(70, 128, 16000)
    p["sinc_bn_g"] = jnp.ones((70,), jnp.float32)
    p["sinc_bn_b"] = jnp.zeros((70,), jnp.float32)
    for name, cin, cout in [("b1c1", 1, 32), ("b1c2", 32, 32),
                            ("b2c1", 32, 64), ("b2c2", 64, 64)]:
        p[f"{name}_w"] = nrm(next(ki), (cout, cin, 3, 3))
        p[f"{name}_b"] = jnp.zeros((cout,), jnp.float32)
        p[f"{name}_bn_g"] = jnp.ones((cout,), jnp.float32)   # BN folded (running stats = init)
        p[f"{name}_bn_b"] = jnp.zeros((cout,), jnp.float32)
    # PositionalAggregator1D(max_C=64, max_ft=23*16)
    p["pos_emb"] = nrm(next(ki), (64, 23 * 16))
    # RawformerClassifier(C=64, n_encoder=2, transformer_hidden=64), nhead=4
    for l in range(2):
        p[f"enc{l}_wqkv"] = nrm(next(ki), (64, 3 * 64))
        p[f"enc{l}_bqkv"] = jnp.zeros((3 * 64,), jnp.float32)
        p[f"enc{l}_wo"] = nrm(next(ki), (64, 64))
        p[f"enc{l}_bo"] = jnp.zeros((64,), jnp.float32)
        p[f"enc{l}_ln1_g"] = jnp.ones((64,), jnp.float32)
        p[f"enc{l}_ln1_b"] = jnp.zeros((64,), jnp.float32)
        p[f"enc{l}_w1"] = nrm(next(ki), (64, 64))            # dim_feedforward = transformer_hidden
        p[f"enc{l}_b1"] = jnp.zeros((64,), jnp.float32)
        p[f"enc{l}_w2"] = nrm(next(ki), (64, 64))
        p[f"enc{l}_b2"] = jnp.zeros((64,), jnp.float32)
        p[f"enc{l}_ln2_g"] = jnp.ones((64,), jnp.float32)
        p[f"enc{l}_ln2_b"] = jnp.zeros((64,), jnp.float32)
    p["cls_w"] = nrm(next(ki), (64, 2))
    p["cls_b"] = jnp.zeros((2,), jnp.float32)
    return p


def _pad_to(x, shape):
    pads = [(0, s - d) for d, s in zip(x.shape, shape)]
    return jnp.pad(x, pads)


def prepare_padded_params(p):
    """One-time conversion to 128-lane-padded, kernel-friendly layouts."""
    pp = {}
    pp["sinc_w"] = _pad_to(p["sinc_filt"].T, (128, _LANE)).astype(jnp.bfloat16)     # (K=128, 128)
    pp["sinc_scale"] = _pad_to(p["sinc_bn_g"], (_LANE,)).reshape(1, _LANE)
    pp["sinc_shift"] = _pad_to(p["sinc_bn_b"], (_LANE,)).reshape(1, _LANE)

    def conv_pack(name, cin_p):
        w = jnp.transpose(p[f"{name}_w"], (2, 3, 1, 0))                              # (3,3,Cin,Cout)
        pp[f"{name}_w9"] = _pad_to(w, (3, 3, cin_p, _LANE)).reshape(9, cin_p, _LANE)
        pp[f"{name}_b"] = _pad_to(p[f"{name}_b"], (_LANE,)).reshape(1, _LANE)
        pp[f"{name}_g"] = _pad_to(p[f"{name}_bn_g"], (_LANE,)).reshape(1, _LANE)
        pp[f"{name}_s"] = _pad_to(p[f"{name}_bn_b"], (_LANE,)).reshape(1, _LANE)

    conv_pack("b1c1", 8)
    conv_pack("b1c2", _LANE)
    conv_pack("b2c1", _LANE)
    conv_pack("b2c2", _LANE)

    for l in range(2):
        pp[f"enc{l}_wqkv"] = _pad_to(p[f"enc{l}_wqkv"], (_LANE, 192))
        pp[f"enc{l}_wo"] = _pad_to(p[f"enc{l}_wo"], (_LANE, _LANE))
        pp[f"enc{l}_bo"] = _pad_to(p[f"enc{l}_bo"], (_LANE,))
        pp[f"enc{l}_ln1_g"] = _pad_to(p[f"enc{l}_ln1_g"], (_LANE,))
        pp[f"enc{l}_ln1_b"] = _pad_to(p[f"enc{l}_ln1_b"], (_LANE,))
        pp[f"enc{l}_w1"] = _pad_to(p[f"enc{l}_w1"], (_LANE, _LANE))
        pp[f"enc{l}_b1"] = _pad_to(p[f"enc{l}_b1"], (_LANE,))
        pp[f"enc{l}_w2"] = _pad_to(p[f"enc{l}_w2"], (_LANE, _LANE))
        pp[f"enc{l}_b2"] = _pad_to(p[f"enc{l}_b2"], (_LANE,))
        pp[f"enc{l}_ln2_g"] = _pad_to(p[f"enc{l}_ln2_g"], (_LANE,))
        pp[f"enc{l}_ln2_b"] = _pad_to(p[f"enc{l}_ln2_b"], (_LANE,))
    return pp


# ----------------------------------------------------------------------------
# Forward pass
# ----------------------------------------------------------------------------
def rawformer_s_forward(params, x):
    pp = prepare_padded_params(params)
    B, L = x.shape

    # ---------------- Frontend_S: sinc conv + |.| + MaxPool1d(3) + BN + SELU --------
    K = 128
    T0 = L - K + 1
    T1 = T0 // 3
    Teff = T1 * 3
    # TODO(synk): 128x patch expansion still materialized in HBM (JAX gather).
    idx = jnp.arange(Teff)[:, None] + jnp.arange(K)[None, :]
    patches = x[:, idx]                                                  # (B, Teff, 128)
    tile_t = min(128, _round_up(T1, 8))
    T1p = _round_up(T1, tile_t)
    patches = jnp.pad(patches, ((0, 0), (0, (T1p - T1) * 3), (0, 0))).astype(jnp.bfloat16)
    y = sinc_frontend(patches, pp["sinc_w"], pp["sinc_scale"], pp["sinc_shift"], tile_t)
    y = y[:, :T1, :70]                                                   # (B, T1, 70)

    # (B, 70, T1, 1) single-channel image in NHWC, channel padded to 8.
    img = jnp.transpose(y, (0, 2, 1))[..., None]
    img = jnp.pad(img, ((0, 0), (0, 0), (0, 0), (0, 7)))

    # ---------------- conv blocks (NHWC, 128-padded channels) ----------------
    img = conv3x3_bn_selu(img, pp["b1c1_w9"], pp["b1c1_b"], pp["b1c1_g"], pp["b1c1_s"])
    img = conv3x3_bn_selu(img, pp["b1c2_w9"], pp["b1c2_b"], pp["b1c2_g"], pp["b1c2_s"])
    img = maxpool_nhwc(img, 3, 2)                                        # (B, 23, T1//2, 128)
    img = conv3x3_bn_selu(img, pp["b2c1_w9"], pp["b2c1_b"], pp["b2c1_g"], pp["b2c1_s"])
    img = conv3x3_bn_selu(img, pp["b2c2_w9"], pp["b2c2_b"], pp["b2c2_g"], pp["b2c2_s"])
    img = maxpool_nhwc(img, 1, 2)                                        # (B, 23, T1//4, 128)

    # ---------------- PositionalAggregator1D ----------------
    Bc, F, T, Cp = img.shape
    D, nh = 64, 4
    dh = D // nh
    S = F * T
    seq = img.reshape(Bc, S, Cp)
    pos = jnp.pad(params["pos_emb"][:D, :S].T, ((0, 0), (0, Cp - D)))    # (S, 128)
    seq = seq + pos[None]

    # ---------------- RawformerClassifier (2 transformer encoder layers) ------------
    Sp = _round_up(S, 8)
    seq = jnp.pad(seq, ((0, 0), (0, Sp - S), (0, 0)))
    h = seq.reshape(B * Sp, Cp)                                          # f32, padded D=128 layout

    for l in range(2):
        qkv = matmul_fused(h, pp[f"enc{l}_wqkv"], params[f"enc{l}_bqkv"])        # (B*Sp, 192)
        qkv = qkv.reshape(B, Sp, 3, nh, dh).transpose(2, 0, 3, 1, 4)             # (3, B, nh, Sp, dh)
        q = qkv[0].astype(jnp.bfloat16)
        k = qkv[1].astype(jnp.bfloat16)
        v = qkv[2].astype(jnp.bfloat16)
        a = multihead_attention(q, k, v, s_valid=S)                              # (B, Sp, 128)
        a2 = a.reshape(B * Sp, Cp)
        h = matmul_res_layernorm(a2, pp[f"enc{l}_wo"], pp[f"enc{l}_bo"], h,
                                 pp[f"enc{l}_ln1_g"], pp[f"enc{l}_ln1_b"], d_valid=D)
        ff = matmul_fused(h, pp[f"enc{l}_w1"], pp[f"enc{l}_b1"], act="relu")     # (B*Sp, 128)
        h = matmul_res_layernorm(ff, pp[f"enc{l}_w2"], pp[f"enc{l}_b2"], h,
                                 pp[f"enc{l}_ln2_g"], pp[f"enc{l}_ln2_b"], d_valid=D)

    # mean-pool over the real sequence + tiny 64x2 classifier head (plain JAX).
    h = h.reshape(B, Sp, Cp)[:, :S, :D]
    pooled = jnp.mean(h, axis=1)
    logits = pooled @ params["cls_w"] + params["cls_b"]
    return logits


if __name__ == "__main__":
    key = jax.random.PRNGKey(0)
    params = init_params(key)
    # Small waveform: L=175 -> sinc T0=48 -> T1=16 -> feature map (B, 64, 23, 4), seq len 92 <= 23*16.
    x = jax.random.normal(jax.random.fold_in(key, 123), (2, 175), dtype=jnp.float32)
    fwd = jax.jit(rawformer_s_forward)
    out = jax.block_until_ready(fwd(params, x))
    assert out.shape == (2, 2)
    assert bool(jnp.all(jnp.isfinite(out)))
    print("KERNEL_OK")
</pallas_src>

<mosaic_0001>
module attributes {stable_mosaic.version = 11 : i64} {
  func.func @_sinc_kernel(%arg0: i32, %arg1: i32, %arg2: memref<1x48x128xbf16, #tpu.memory_space<vmem>>, %arg3: memref<128x128xbf16, #tpu.memory_space<vmem>>, %arg4: memref<1x128xf32, #tpu.memory_space<vmem>>, %arg5: memref<1x128xf32, #tpu.memory_space<vmem>>, %arg6: memref<1x16x128xf32, #tpu.memory_space<vmem>>) attributes {dimension_semantics = [#tpu.dimension_semantics<parallel>, #tpu.dimension_semantics<parallel>], iteration_bounds = array<i64: 2, 1>, scalar_prefetch = 0 : i64, scratch_operands = 0 : i64, tpu.core_type = #tpu.core_type<tc>, window_params = [{transform_indices = @transform_0, window_bounds = array<i64: 1, 48, 128>}, {pipeline_mode = #tpu.pipeline_mode<synchronous>, transform_indices = @transform_1, window_bounds = array<i64: 128, 128>}, {pipeline_mode = #tpu.pipeline_mode<synchronous>, transform_indices = @transform_2, window_bounds = array<i64: 1, 128>}, {pipeline_mode = #tpu.pipeline_mode<synchronous>, transform_indices = @transform_3, window_bounds = array<i64: 1, 128>}, {transform_indices = @transform_4, window_bounds = array<i64: 1, 16, 128>}]} {
    %c0 = arith.constant 0 : index
    %c0_0 = arith.constant 0 : index
    %c0_1 = arith.constant 0 : index
    %0 = vector.load %arg2[%c0, %c0_0, %c0_1] : memref<1x48x128xbf16, #tpu.memory_space<vmem>>, vector<1x48x128xbf16>
    %1 = vector.shape_cast %0 : vector<1x48x128xbf16> to vector<48x128xbf16>
    %c0_2 = arith.constant 0 : index
    %c0_3 = arith.constant 0 : index
    %2 = vector.load %arg3[%c0_2, %c0_3] : memref<128x128xbf16, #tpu.memory_space<vmem>>, vector<128x128xbf16>
    %cst = arith.constant dense<0.000000e+00> : vector<48x128xf32>
    %3 = tpu.matmul %1, %2, %cst {dimension_numbers = #tpu.dot_dimension_numbers<[1], [0], [0], [1], [0, 0, 1, 1], [], []>} : vector<48x128xbf16>, vector<128x128xbf16>, vector<48x128xf32> -> vector<48x128xf32>
    %4 = math.absf %3 : vector<48x128xf32>
    %5 = vector.shape_cast %4 : vector<48x128xf32> to vector<16x3x128xf32>
    %cst_4 = arith.constant dense<0xFF800000> : vector<16x128xf32>
    %6 = vector.multi_reduction <maximumf>, %5, %cst_4 [1] : vector<16x3x128xf32> to vector<16x128xf32>
    %c0_5 = arith.constant 0 : index
    %c0_6 = arith.constant 0 : index
    %7 = vector.load %arg4[%c0_5, %c0_6] : memref<1x128xf32, #tpu.memory_space<vmem>>, vector<1x128xf32>
    %8 = vector.broadcast %7 : vector<1x128xf32> to vector<16x128xf32>
    %9 = arith.mulf %6, %8 : vector<16x128xf32>
    %c0_7 = arith.constant 0 : index
    %c0_8 = arith.constant 0 : index
    %10 = vector.load %arg5[%c0_7, %c0_8] : memref<1x128xf32, #tpu.memory_space<vmem>>, vector<1x128xf32>
    %11 = vector.broadcast %10 : vector<1x128xf32> to vector<16x128xf32>
    %12 = arith.addf %9, %11 : vector<16x128xf32>
    %cst_9 = arith.constant 0.000000e+00 : f32
    %13 = vector.broadcast %cst_9 : f32 to vector<16x128xf32>
    %14 = arith.cmpf ogt, %12, %13 : vector<16x128xf32>
    %cst_10 = arith.constant 0.000000e+00 : f32
    %15 = vector.broadcast %cst_10 : f32 to vector<16x128xf32>
    %16 = arith.minimumf %12, %15 : vector<16x128xf32>
    %17 = math.exp %16 : vector<16x128xf32>
    %cst_11 = arith.constant 1.000000e+00 : f32
    %18 = vector.broadcast %cst_11 : f32 to vector<16x128xf32>
    %19 = arith.subf %17, %18 : vector<16x128xf32>
    %cst_12 = arith.constant 1.67326319 : f32
    %20 = vector.broadcast %cst_12 : f32 to vector<16x128xf32>
    %21 = arith.mulf %20, %19 : vector<16x128xf32>
    %22 = arith.select %14, %12, %21 : vector<16x128xi1>, vector<16x128xf32>
    %cst_13 = arith.constant 1.05070102 : f32
    %23 = vector.broadcast %cst_13 : f32 to vector<16x128xf32>
    %24 = arith.mulf %23, %22 : vector<16x128xf32>
    %c0_14 = arith.constant 0 : index
    %c0_15 = arith.constant 0 : index
    %c0_16 = arith.constant 0 : index
    %25 = vector.load %arg6[%c0_14, %c0_15, %c0_16] : memref<1x16x128xf32, #tpu.memory_space<vmem>>, vector<1x16x128xf32>
    %26 = vector.shape_cast %25 : vector<1x16x128xf32> to vector<16x128xf32>
    %27 = vector.shape_cast %24 : vector<16x128xf32> to vector<1x16x128xf32>
    tpu.vector_store %arg6[%c0_14, %c0_15, %c0_16], %27 {strides = array<i32>} : memref<1x16x128xf32, #tpu.memory_space<vmem>>, vector<1x16x128xf32>,
    return
  }
  func.func @transform_0(%arg0: i32, %arg1: i32) -> (i32, i32, i32) {
    %c0_i32 = arith.constant 0 : i32
    %c0_i32_0 = arith.constant 0 : i32
    return %arg0, %arg1, %c0_i32 : i32, i32, i32
  }
  func.func @transform_1(%arg0: i32, %arg1: i32) -> (i32, i32) {
    %c0_i32 = arith.constant 0 : i32
    %c0_i32_0 = arith.constant 0 : i32
    %c0_i32_1 = arith.constant 0 : i32
    return %c0_i32, %c0_i32_0 : i32, i32
  }
  func.func @transform_2(%arg0: i32, %arg1: i32) -> (i32, i32) {
    %c0_i32 = arith.constant 0 : i32
    %c0_i32_0 = arith.constant 0 : i32
    %c0_i32_1 = arith.constant 0 : i32
    return %c0_i32, %c0_i32_0 : i32, i32
  }
  func.func @transform_3(%arg0: i32, %arg1: i32) -> (i32, i32) {
    %c0_i32 = arith.constant 0 : i32
    %c0_i32_0 = arith.constant 0 : i32
    %c0_i32_1 = arith.constant 0 : i32
    return %c0_i32, %c0_i32_0 : i32, i32
  }
  func.func @transform_4(%arg0: i32, %arg1: i32) -> (i32, i32, i32) {
    %c0_i32 = arith.constant 0 : i32
    %c0_i32_0 = arith.constant 0 : i32
    return %arg0, %arg1, %c0_i32 : i32, i32, i32
  }
}

module attributes {stable_mosaic.version = 11 : i64} {
  func.func @_conv3x3_kernel(%arg0: i32, %arg1: i32, %arg2: memref<1x1x18x8xbf16, #tpu.memory_space<vmem>>, %arg3: memref<1x1x18x8xbf16, #tpu.memory_space<vmem>>, %arg4: memref<1x1x18x8xbf16, #tpu.memory_space<vmem>>, %arg5: memref<9x8x128xbf16, #tpu.memory_space<vmem>>, %arg6: memref<1x128xf32, #tpu.memory_space<vmem>>, %arg7: memref<1x128xf32, #tpu.memory_space<vmem>>, %arg8: memref<1x128xf32, #tpu.memory_space<vmem>>, %arg9: memref<1x1x16x128xf32, #tpu.memory_space<vmem>>) attributes {dimension_semantics = [#tpu.dimension_semantics<parallel>, #tpu.dimension_semantics<parallel>], iteration_bounds = array<i64: 2, 70>, scalar_prefetch = 0 : i64, scratch_operands = 0 : i64, tpu.core_type = #tpu.core_type<tc>, window_params = [{transform_indices = @transform_0, window_bounds = array<i64: 1, 1, 18, 8>}, {transform_indices = @transform_1, window_bounds = array<i64: 1, 1, 18, 8>}, {transform_indices = @transform_2, window_bounds = array<i64: 1, 1, 18, 8>}, {pipeline_mode = #tpu.pipeline_mode<synchronous>, transform_indices = @transform_3, window_bounds = array<i64: 9, 8, 128>}, {pipeline_mode = #tpu.pipeline_mode<synchronous>, transform_indices = @transform_4, window_bounds = array<i64: 1, 128>}, {pipeline_mode = #tpu.pipeline_mode<synchronous>, transform_indices = @transform_5, window_bounds = array<i64: 1, 128>}, {pipeline_mode = #tpu.pipeline_mode<synchronous>, transform_indices = @transform_6, window_bounds = array<i64: 1, 128>}, {transform_indices = @transform_7, window_bounds = array<i64: 1, 1, 16, 128>}]} {
    %c0 = arith.constant 0 : index
    %c0_0 = arith.constant 0 : index
    %c0_1 = arith.constant 0 : index
    %c0_2 = arith.constant 0 : index
    %0 = vector.load %arg2[%c0, %c0_0, %c0_1, %c0_2] : memref<1x1x18x8xbf16, #tpu.memory_space<vmem>>, vector<1x1x18x8xbf16>
    %1 = vector.shape_cast %0 : vector<1x1x18x8xbf16> to vector<18x8xbf16>
    %c0_3 = arith.constant 0 : index
    %c0_4 = arith.constant 0 : index
    %c0_5 = arith.constant 0 : index
    %c0_6 = arith.constant 0 : index
    %2 = vector.load %arg3[%c0_3, %c0_4, %c0_5, %c0_6] : memref<1x1x18x8xbf16, #tpu.memory_space<vmem>>, vector<1x1x18x8xbf16>
    %3 = vector.shape_cast %2 : vector<1x1x18x8xbf16> to vector<18x8xbf16>
    %c0_7 = arith.constant 0 : index
    %c0_8 = arith.constant 0 : index
    %c0_9 = arith.constant 0 : index
    %c0_10 = arith.constant 0 : index
    %4 = vector.load %arg4[%c0_7, %c0_8, %c0_9, %c0_10] : memref<1x1x18x8xbf16, #tpu.memory_space<vmem>>, vector<1x1x18x8xbf16>
    %5 = vector.shape_cast %4 : vector<1x1x18x8xbf16> to vector<18x8xbf16>
    %6 = vector.extract_strided_slice %1 {offsets = [0, 0], sizes = [16, 8], strides = [1, 1]} : vector<18x8xbf16> to vector<16x8xbf16>
    %c0_11 = arith.constant 0 : index
    %c0_12 = arith.constant 0 : index
    %c0_13 = arith.constant 0 : index
    %7 = vector.load %arg5[%c0_11, %c0_12, %c0_13] : memref<9x8x128xbf16, #tpu.memory_space<vmem>>, vector<1x8x128xbf16>
    %8 = vector.shape_cast %7 : vector<1x8x128xbf16> to vector<8x128xbf16>
    %cst = arith.constant dense<0.000000e+00> : vector<16x128xf32>
    %9 = tpu.matmul %6, %8, %cst {dimension_numbers = #tpu.dot_dimension_numbers<[1], [0], [0], [1], [0, 0, 1, 1], [], []>} : vector<16x8xbf16>, vector<8x128xbf16>, vector<16x128xf32> -> vector<16x128xf32>
    %10 = vector.extract_strided_slice %1 {offsets = [1, 0], sizes = [16, 8], strides = [1, 1]} : vector<18x8xbf16> to vector<16x8xbf16>
    %c1 = arith.constant 1 : index
    %c0_14 = arith.constant 0 : index
    %c0_15 = arith.constant 0 : index
    %11 = vector.load %arg5[%c1, %c0_14, %c0_15] : memref<9x8x128xbf16, #tpu.memory_space<vmem>>, vector<1x8x128xbf16>
    %12 = vector.shape_cast %11 : vector<1x8x128xbf16> to vector<8x128xbf16>
    %cst_16 = arith.constant dense<0.000000e+00> : vector<16x128xf32>
    %13 = tpu.matmul %10, %12, %cst_16 {dimension_numbers = #tpu.dot_dimension_numbers<[1], [0], [0], [1], [0, 0, 1, 1], [], []>} : vector<16x8xbf16>, vector<8x128xbf16>, vector<16x128xf32> -> vector<16x128xf32>
    %14 = arith.addf %9, %13 : vector<16x128xf32>
    %15 = vector.extract_strided_slice %1 {offsets = [2, 0], sizes = [16, 8], strides = [1, 1]} : vector<18x8xbf16> to vector<16x8xbf16>
    %c2 = arith.constant 2 : index
    %c0_17 = arith.constant 0 : index
    %c0_18 = arith.constant 0 : index
    %16 = vector.load %arg5[%c2, %c0_17, %c0_18] : memref<9x8x128xbf16, #tpu.memory_space<vmem>>, vector<1x8x128xbf16>
    %17 = vector.shape_cast %16 : vector<1x8x128xbf16> to vector<8x128xbf16>
    %cst_19 = arith.constant dense<0.000000e+00> : vector<16x128xf32>
    %18 = tpu.matmul %15, %17, %cst_19 {dimension_numbers = #tpu.dot_dimension_numbers<[1], [0], [0], [1], [0, 0, 1, 1], [], []>} : vector<16x8xbf16>, vector<8x128xbf16>, vector<16x128xf32> -> vector<16x128xf32>
    %19 = arith.addf %14, %18 : vector<16x128xf32>
    %20 = vector.extract_strided_slice %3 {offsets = [0, 0], sizes = [16, 8], strides = [1, 1]} : vector<18x8xbf16> to vector<16x8xbf16>
    %c3 = arith.constant 3 : index
    %c0_20 = arith.constant 0 : index
    %c0_21 = arith.constant 0 : index
    %21 = vector.load %arg5[%c3, %c0_20, %c0_21] : memref<9x8x128xbf16, #tpu.memory_space<vmem>>, vector<1x8x128xbf16>
    %22 = vector.shape_cast %21 : vector<1x8x128xbf16> to vector<8x128xbf16>
    %cst_22 = arith.constant dense<0.000000e+00> : vector<16x128xf32>
    %23 = tpu.matmul %20, %22, %cst_22 {dimension_numbers = #tpu.dot_dimension_numbers<[1], [0], [0], [1], [0, 0, 1, 1], [], []>} : vector<16x8xbf16>, vector<8x128xbf16>, vector<16x128xf32> -> vector<16x128xf32>
    %24 = arith.addf %19, %23 : vector<16x128xf32>
    %25 = vector.extract_strided_slice %3 {offsets = [1, 0], sizes = [16, 8], strides = [1, 1]} : vector<18x8xbf16> to vector<16x8xbf16>
    %c4 = arith.constant 4 : index
    %c0_23 = arith.constant 0 : index
    %c0_24 = arith.constant 0 : index
    %26 = vector.load %arg5[%c4, %c0_23, %c0_24] : memref<9x8x128xbf16, #tpu.memory_space<vmem>>, vector<1x8x128xbf16>
    %27 = vector.shape_cast %26 : vector<1x8x128xbf16> to vector<8x128xbf16>
    %cst_25 = arith.constant dense<0.000000e+00> : vector<16x128xf32>
    %28 = tpu.matmul %25, %27, %cst_25 {dimension_numbers = #tpu.dot_dimension_numbers<[1], [0], [0], [1], [0, 0, 1, 1], [], []>} : vector<16x8xbf16>, vector<8x128xbf16>, vector<16x128xf32> -> vector<16x128xf32>
    %29 = arith.addf %24, %28 : vector<16x128xf32>
    %30 = vector.extract_strided_slice %3 {offsets = [2, 0], sizes = [16, 8], strides = [1, 1]} : vector<18x8xbf16> to vector<16x8xbf16>
    %c5 = arith.constant 5 : index
    %c0_26 = arith.constant 0 : index
    %c0_27 = arith.constant 0 : index
    %31 = vector.load %arg5[%c5, %c0_26, %c0_27] : memref<9x8x128xbf16, #tpu.memory_space<vmem>>, vector<1x8x128xbf16>
    %32 = vector.shape_cast %31 : vector<1x8x128xbf16> to vector<8x128xbf16>
    %cst_28 = arith.constant dense<0.000000e+00> : vector<16x128xf32>
    %33 = tpu.matmul %30, %32, %cst_28 {dimension_numbers = #tpu.dot_dimension_numbers<[1], [0], [0], [1], [0, 0, 1, 1], [], []>} : vector<16x8xbf16>, vector<8x128xbf16>, vector<16x128xf32> -> vector<16x128xf32>
    %34 = arith.addf %29, %33 : vector<16x128xf32>
    %35 = vector.extract_strided_slice %5 {offsets = [0, 0], sizes = [16, 8], strides = [1, 1]} : vector<18x8xbf16> to vector<16x8xbf16>
    %c6 = arith.constant 6 : index
    %c0_29 = arith.constant 0 : index
    %c0_30 = arith.constant 0 : index
    %36 = vector.load %arg5[%c6, %c0_29, %c0_30] : memref<9x8x128xbf16, #tpu.memory_space<vmem>>, vector<1x8x128xbf16>
    %37 = vector.shape_cast %36 : vector<1x8x128xbf16> to vector<8x128xbf16>
    %cst_31 = arith.constant dense<0.000000e+00> : vector<16x128xf32>
    %38 = tpu.matmul %35, %37, %cst_31 {dimension_numbers = #tpu.dot_dimension_numbers<[1], [0], [0], [1], [0, 0, 1, 1], [], []>} : vector<16x8xbf16>, vector<8x128xbf16>, vector<16x128xf32> -> vector<16x128xf32>
    %39 = arith.addf %34, %38 : vector<16x128xf32>
    %40 = vector.extract_strided_slice %5 {offsets = [1, 0], sizes = [16, 8], strides = [1, 1]} : vector<18x8xbf16> to vector<16x8xbf16>
    %c7 = arith.constant 7 : index
    %c0_32 = arith.constant 0 : index
    %c0_33 = arith.constant 0 : index
    %41 = vector.load %arg5[%c7, %c0_32, %c0_33] : memref<9x8x128xbf16, #tpu.memory_space<vmem>>, vector<1x8x128xbf16>
    %42 = vector.shape_cast %41 : vector<1x8x128xbf16> to vector<8x128xbf16>
    %cst_34 = arith.constant dense<0.000000e+00> : vector<16x128xf32>
    %43 = tpu.matmul %40, %42, %cst_34 {dimension_numbers = #tpu.dot_dimension_numbers<[1], [0], [0], [1], [0, 0, 1, 1], [], []>} : vector<16x8xbf16>, vector<8x128xbf16>, vector<16x128xf32> -> vector<16x128xf32>
    %44 = arith.addf %39, %43 : vector<16x128xf32>
    %45 = vector.extract_strided_slice %5 {offsets = [2, 0], sizes = [16, 8], strides = [1, 1]} : vector<18x8xbf16> to vector<16x8xbf16>
    %c8 = arith.constant 8 : index
    %c0_35 = arith.constant 0 : index
    %c0_36 = arith.constant 0 : index
    %46 = vector.load %arg5[%c8, %c0_35, %c0_36] : memref<9x8x128xbf16, #tpu.memory_space<vmem>>, vector<1x8x128xbf16>
    %47 = vector.shape_cast %46 : vector<1x8x128xbf16> to vector<8x128xbf16>
    %cst_37 = arith.constant dense<0.000000e+00> : vector<16x128xf32>
    %48 = tpu.matmul %45, %47, %cst_37 {dimension_numbers = #tpu.dot_dimension_numbers<[1], [0], [0], [1], [0, 0, 1, 1], [], []>} : vector<16x8xbf16>, vector<8x128xbf16>, vector<16x128xf32> -> vector<16x128xf32>
    %49 = arith.addf %44, %48 : vector<16x128xf32>
    %c0_38 = arith.constant 0 : index
    %c0_39 = arith.constant 0 : index
    %50 = vector.load %arg6[%c0_38, %c0_39] : memref<1x128xf32, #tpu.memory_space<vmem>>, vector<1x128xf32>
    %51 = vector.broadcast %50 : vector<1x128xf32> to vector<16x128xf32>
    %52 = arith.addf %49, %51 : vector<16x128xf32>
    %c0_40 = arith.constant 0 : index
    %c0_41 = arith.constant 0 : index
    %53 = vector.load %arg7[%c0_40, %c0_41] : memref<1x128xf32, #tpu.memory_space<vmem>>, vector<1x128xf32>
    %54 = vector.broadcast %53 : vector<1x128xf32> to vector<16x128xf32>
    %55 = arith.mulf %52, %54 : vector<16x128xf32>
    %c0_42 = arith.constant 0 : index
    %c0_43 = arith.constant 0 : index
    %56 = vector.load %arg8[%c0_42, %c0_43] : memref<1x128xf32, #tpu.memory_space<vmem>>, vector<1x128xf32>
    %57 = vector.broadcast %56 : vector<1x128xf32> to vector<16x128xf32>
    %58 = arith.addf %55, %57 : vector<16x128xf32>
    %cst_44 = arith.constant 0.000000e+00 : f32
    %59 = vector.broadcast %cst_44 : f32 to vector<16x128xf32>
    %60 = arith.cmpf ogt, %58, %59 : vector<16x128xf32>
    %cst_45 = arith.constant 0.000000e+00 : f32
    %61 = vector.broadcast %cst_45 : f32 to vector<16x128xf32>
    %62 = arith.minimumf %58, %61 : vector<16x128xf32>
    %63 = math.exp %62 : vector<16x128xf32>
    %cst_46 = arith.constant 1.000000e+00 : f32
    %64 = vector.broadcast %cst_46 : f32 to vector<16x128xf32>
    %65 = arith.subf %63, %64 : vector<16x128xf32>
    %cst_47 = arith.constant 1.67326319 : f32
    %66 = vector.broadcast %cst_47 : f32 to vector<16x128xf32>
    %67 = arith.mulf %66, %65 : vector<16x128xf32>
    %68 = arith.select %60, %58, %67 : vector<16x128xi1>, vector<16x128xf32>
    %cst_48 = arith.constant 1.05070102 : f32
    %69 = vector.broadcast %cst_48 : f32 to vector<16x128xf32>
    %70 = arith.mulf %69, %68 : vector<16x128xf32>
    %c0_49 = arith.constant 0 : index
    %c0_50 = arith.constant 0 : index
    %c0_51 = arith.constant 0 : index
    %c0_52 = arith.constant 0 : index
    %71 = vector.load %arg9[%c0_49, %c0_50, %c0_51, %c0_52] : memref<1x1x16x128xf32, #tpu.memory_space<vmem>>, vector<1x1x16x128xf32>
    %72 = vector.shape_cast %71 : vector<1x1x16x128xf32> to vector<16x128xf32>
    %73 = vector.shape_cast %70 : vector<16x128xf32> to vector<1x1x16x128xf32>
    tpu.vector_store %arg9[%c0_49, %c0_50, %c0_51, %c0_52], %73 {strides = array<i32>} : memref<1x1x16x128xf32, #tpu.memory_space<vmem>>, vector<1x1x16x128xf32>,
    return
  }
  func.func @transform_0(%arg0: i32, %arg1: i32) -> (i32, i32, i32, i32) {
    %c0_i32 = arith.constant 0 : i32
    %0 = arith.addi %arg1, %c0_i32 : i32
    %c0_i32_0 = arith.constant 0 : i32
    %c0_i32_1 = arith.constant 0 : i32
    %c0_i32_2 = arith.constant 0 : i32
    return %arg0, %0, %c0_i32_0, %c0_i32_1 : i32, i32, i32, i32
  }
  func.func @transform_1(%arg0: i32, %arg1: i32) -> (i32, i32, i32, i32) {
    %c1_i32 = arith.constant 1 : i32
    %0 = arith.addi %arg1, %c1_i32 : i32
    %c0_i32 = arith.constant 0 : i32
    %c0_i32_0 = arith.constant 0 : i32
    %c0_i32_1 = arith.constant 0 : i32
    return %arg0, %0, %c0_i32, %c0_i32_0 : i32, i32, i32, i32
  }
  func.func @transform_2(%arg0: i32, %arg1: i32) -> (i32, i32, i32, i32) {
    %c2_i32 = arith.constant 2 : i32
    %0 = arith.addi %arg1, %c2_i32 : i32
    %c0_i32 = arith.constant 0 : i32
    %c0_i32_0 = arith.constant 0 : i32
    %c0_i32_1 = arith.constant 0 : i32
    return %arg0, %0, %c0_i32, %c0_i32_0 : i32, i32, i32, i32
  }
  func.func @transform_3(%arg0: i32, %arg1: i32) -> (i32, i32, i32) {
    %c0_i32 = arith.constant 0 : i32
    %c0_i32_0 = arith.constant 0 : i32
    %c0_i32_1 = arith.constant 0 : i32
    %c0_i32_2 = arith.constant 0 : i32
    return %c0_i32, %c0_i32_0, %c0_i32_1 : i32, i32, i32
  }
  func.func @transform_4(%arg0: i32, %arg1: i32) -> (i32, i32) {
    %c0_i32 = arith.constant 0 : i32
    %c0_i32_0 = arith.constant 0 : i32
    %c0_i32_1 = arith.constant 0 : i32
    return %c0_i32, %c0_i32_0 : i32, i32
  }
  func.func @transform_5(%arg0: i32, %arg1: i32) -> (i32, i32) {
    %c0_i32 = arith.constant 0 : i32
    %c0_i32_0 = arith.constant 0 : i32
    %c0_i32_1 = arith.constant 0 : i32
    return %c0_i32, %c0_i32_0 : i32, i32
  }
  func.func @transform_6(%arg0: i32, %arg1: i32) -> (i32, i32) {
    %c0_i32 = arith.constant 0 : i32
    %c0_i32_0 = arith.constant 0 : i32
    %c0_i32_1 = arith.constant 0 : i32
    return %c0_i32, %c0_i32_0 : i32, i32
  }
  func.func @transform_7(%arg0: i32, %arg1: i32) -> (i32, i32, i32, i32) {
    %c0_i32 = arith.constant 0 : i32
    %c0_i32_0 = arith.constant 0 : i32
    %c0_i32_1 = arith.constant 0 : i32
    return %arg0, %arg1, %c0_i32, %c0_i32_0 : i32, i32, i32, i32
  }
}

module attributes {stable_mosaic.version = 11 : i64} {
  func.func @_conv3x3_kernel(%arg0: i32, %arg1: i32, %arg2: memref<1x1x18x128xbf16, #tpu.memory_space<vmem>>, %arg3: memref<1x1x18x128xbf16, #tpu.memory_space<vmem>>, %arg4: memref<1x1x18x128xbf16, #tpu.memory_space<vmem>>, %arg5: memref<9x128x128xbf16, #tpu.memory_space<vmem>>, %arg6: memref<1x128xf32, #tpu.memory_space<vmem>>, %arg7: memref<1x128xf32, #tpu.memory_space<vmem>>, %arg8: memref<1x128xf32, #tpu.memory_space<vmem>>, %arg9: memref<1x1x16x128xf32, #tpu.memory_space<vmem>>) attributes {dimension_semantics = [#tpu.dimension_semantics<parallel>, #tpu.dimension_semantics<parallel>], iteration_bounds = array<i64: 2, 70>, scalar_prefetch = 0 : i64, scratch_operands = 0 : i64, tpu.core_type = #tpu.core_type<tc>, window_params = [{transform_indices = @transform_0, window_bounds = array<i64: 1, 1, 18, 128>}, {transform_indices = @transform_1, window_bounds = array<i64: 1, 1, 18, 128>}, {transform_indices = @transform_2, window_bounds = array<i64: 1, 1, 18, 128>}, {pipeline_mode = #tpu.pipeline_mode<synchronous>, transform_indices = @transform_3, window_bounds = array<i64: 9, 128, 128>}, {pipeline_mode = #tpu.pipeline_mode<synchronous>, transform_indices = @transform_4, window_bounds = array<i64: 1, 128>}, {pipeline_mode = #tpu.pipeline_mode<synchronous>, transform_indices = @transform_5, window_bounds = array<i64: 1, 128>}, {pipeline_mode = #tpu.pipeline_mode<synchronous>, transform_indices = @transform_6, window_bounds = array<i64: 1, 128>}, {transform_indices = @transform_7, window_bounds = array<i64: 1, 1, 16, 128>}]} {
    %c0 = arith.constant 0 : index
    %c0_0 = arith.constant 0 : index
    %c0_1 = arith.constant 0 : index
    %c0_2 = arith.constant 0 : index
    %0 = vector.load %arg2[%c0, %c0_0, %c0_1, %c0_2] : memref<1x1x18x128xbf16, #tpu.memory_space<vmem>>, vector<1x1x18x128xbf16>
    %1 = vector.shape_cast %0 : vector<1x1x18x128xbf16> to vector<18x128xbf16>
    %c0_3 = arith.constant 0 : index
    %c0_4 = arith.constant 0 : index
    %c0_5 = arith.constant 0 : index
    %c0_6 = arith.constant 0 : index
    %2 = vector.load %arg3[%c0_3, %c0_4, %c0_5, %c0_6] : memref<1x1x18x128xbf16, #tpu.memory_space<vmem>>, vector<1x1x18x128xbf16>
    %3 = vector.shape_cast %2 : vector<1x1x18x128xbf16> to vector<18x128xbf16>
    %c0_7 = arith.constant 0 : index
    %c0_8 = arith.constant 0 : index
    %c0_9 = arith.constant 0 : index
    %c0_10 = arith.constant 0 : index
    %4 = vector.load %arg4[%c0_7, %c0_8, %c0_9, %c0_10] : memref<1x1x18x128xbf16, #tpu.memory_space<vmem>>, vector<1x1x18x128xbf16>
    %5 = vector.shape_cast %4 : vector<1x1x18x128xbf16> to vector<18x128xbf16>
    %6 = vector.extract_strided_slice %1 {offsets = [0, 0], sizes = [16, 128], strides = [1, 1]} : vector<18x128xbf16> to vector<16x128xbf16>
    %c0_11 = arith.constant 0 : index
    %c0_12 = arith.constant 0 : index
    %c0_13 = arith.constant 0 : index
    %7 = vector.load %arg5[%c0_11, %c0_12, %c0_13] : memref<9x128x128xbf16, #tpu.memory_space<vmem>>, vector<1x128x128xbf16>
    %8 = vector.shape_cast %7 : vector<1x128x128xbf16> to vector<128x128xbf16>
    %cst = arith.constant dense<0.000000e+00> : vector<16x128xf32>
    %9 = tpu.matmul %6, %8, %cst {dimension_numbers = #tpu.dot_dimension_numbers<[1], [0], [0], [1], [0, 0, 1, 1], [], []>} : vector<16x128xbf16>, vector<128x128xbf16>, vector<16x128xf32> -> vector<16x128xf32>
    %10 = vector.extract_strided_slice %1 {offsets = [1, 0], sizes = [16, 128], strides = [1, 1]} : vector<18x128xbf16> to vector<16x128xbf16>
    %c1 = arith.constant 1 : index
    %c0_14 = arith.constant 0 : index
    %c0_15 = arith.constant 0 : index
    %11 = vector.load %arg5[%c1, %c0_14, %c0_15] : memref<9x128x128xbf16, #tpu.memory_space<vmem>>, vector<1x128x128xbf16>
    %12 = vector.shape_cast %11 : vector<1x128x128xbf16> to vector<128x128xbf16>
    %cst_16 = arith.constant dense<0.000000e+00> : vector<16x128xf32>
    %13 = tpu.matmul %10, %12, %cst_16 {dimension_numbers = #tpu.dot_dimension_numbers<[1], [0], [0], [1], [0, 0, 1, 1], [], []>} : vector<16x128xbf16>, vector<128x128xbf16>, vector<16x128xf32> -> vector<16x128xf32>
    %14 = arith.addf %9, %13 : vector<16x128xf32>
    %15 = vector.extract_strided_slice %1 {offsets = [2, 0], sizes = [16, 128], strides = [1, 1]} : vector<18x128xbf16> to vector<16x128xbf16>
    %c2 = arith.constant 2 : index
    %c0_17 = arith.constant 0 : index
    %c0_18 = arith.constant 0 : index
    %16 = vector.load %arg5[%c2, %c0_17, %c0_18] : memref<9x128x128xbf16, #tpu.memory_space<vmem>>, vector<1x128x128xbf16>
    %17 = vector.shape_cast %16 : vector<1x128x128xbf16> to vector<128x128xbf16>
    %cst_19 = arith.constant dense<0.000000e+00> : vector<16x128xf32>
    %18 = tpu.matmul %15, %17, %cst_19 {dimension_numbers = #tpu.dot_dimension_numbers<[1], [0], [0], [1], [0, 0, 1, 1], [], []>} : vector<16x128xbf16>, vector<128x128xbf16>, vector<16x128xf32> -> vector<16x128xf32>
    %19 = arith.addf %14, %18 : vector<16x128xf32>
    %20 = vector.extract_strided_slice %3 {offsets = [0, 0], sizes = [16, 128], strides = [1, 1]} : vector<18x128xbf16> to vector<16x128xbf16>
    %c3 = arith.constant 3 : index
    %c0_20 = arith.constant 0 : index
    %c0_21 = arith.constant 0 : index
    %21 = vector.load %arg5[%c3, %c0_20, %c0_21] : memref<9x128x128xbf16, #tpu.memory_space<vmem>>, vector<1x128x128xbf16>
    %22 = vector.shape_cast %21 : vector<1x128x128xbf16> to vector<128x128xbf16>
    %cst_22 = arith.constant dense<0.000000e+00> : vector<16x128xf32>
    %23 = tpu.matmul %20, %22, %cst_22 {dimension_numbers = #tpu.dot_dimension_numbers<[1], [0], [0], [1], [0, 0, 1, 1], [], []>} : vector<16x128xbf16>, vector<128x128xbf16>, vector<16x128xf32> -> vector<16x128xf32>
    %24 = arith.addf %19, %23 : vector<16x128xf32>
    %25 = vector.extract_strided_slice %3 {offsets = [1, 0], sizes = [16, 128], strides = [1, 1]} : vector<18x128xbf16> to vector<16x128xbf16>
    %c4 = arith.constant 4 : index
    %c0_23 = arith.constant 0 : index
    %c0_24 = arith.constant 0 : index
    %26 = vector.load %arg5[%c4, %c0_23, %c0_24] : memref<9x128x128xbf16, #tpu.memory_space<vmem>>, vector<1x128x128xbf16>
    %27 = vector.shape_cast %26 : vector<1x128x128xbf16> to vector<128x128xbf16>
    %cst_25 = arith.constant dense<0.000000e+00> : vector<16x128xf32>
    %28 = tpu.matmul %25, %27, %cst_25 {dimension_numbers = #tpu.dot_dimension_numbers<[1], [0], [0], [1], [0, 0, 1, 1], [], []>} : vector<16x128xbf16>, vector<128x128xbf16>, vector<16x128xf32> -> vector<16x128xf32>
    %29 = arith.addf %24, %28 : vector<16x128xf32>
    %30 = vector.extract_strided_slice %3 {offsets = [2, 0], sizes = [16, 128], strides = [1, 1]} : vector<18x128xbf16> to vector<16x128xbf16>
    %c5 = arith.constant 5 : index
    %c0_26 = arith.constant 0 : index
    %c0_27 = arith.constant 0 : index
    %31 = vector.load %arg5[%c5, %c0_26, %c0_27] : memref<9x128x128xbf16, #tpu.memory_space<vmem>>, vector<1x128x128xbf16>
    %32 = vector.shape_cast %31 : vector<1x128x128xbf16> to vector<128x128xbf16>
    %cst_28 = arith.constant dense<0.000000e+00> : vector<16x128xf32>
    %33 = tpu.matmul %30, %32, %cst_28 {dimension_numbers = #tpu.dot_dimension_numbers<[1], [0], [0], [1], [0, 0, 1, 1], [], []>} : vector<16x128xbf16>, vector<128x128xbf16>, vector<16x128xf32> -> vector<16x128xf32>
    %34 = arith.addf %29, %33 : vector<16x128xf32>
    %35 = vector.extract_strided_slice %5 {offsets = [0, 0], sizes = [16, 128], strides = [1, 1]} : vector<18x128xbf16> to vector<16x128xbf16>
    %c6 = arith.constant 6 : index
    %c0_29 = arith.constant 0 : index
    %c0_30 = arith.constant 0 : index
    %36 = vector.load %arg5[%c6, %c0_29, %c0_30] : memref<9x128x128xbf16, #tpu.memory_space<vmem>>, vector<1x128x128xbf16>
    %37 = vector.shape_cast %36 : vector<1x128x128xbf16> to vector<128x128xbf16>
    %cst_31 = arith.constant dense<0.000000e+00> : vector<16x128xf32>
    %38 = tpu.matmul %35, %37, %cst_31 {dimension_numbers = #tpu.dot_dimension_numbers<[1], [0], [0], [1], [0, 0, 1, 1], [], []>} : vector<16x128xbf16>, vector<128x128xbf16>, vector<16x128xf32> -> vector<16x128xf32>
    %39 = arith.addf %34, %38 : vector<16x128xf32>
    %40 = vector.extract_strided_slice %5 {offsets = [1, 0], sizes = [16, 128], strides = [1, 1]} : vector<18x128xbf16> to vector<16x128xbf16>
    %c7 = arith.constant 7 : index
    %c0_32 = arith.constant 0 : index
    %c0_33 = arith.constant 0 : index
    %41 = vector.load %arg5[%c7, %c0_32, %c0_33] : memref<9x128x128xbf16, #tpu.memory_space<vmem>>, vector<1x128x128xbf16>
    %42 = vector.shape_cast %41 : vector<1x128x128xbf16> to vector<128x128xbf16>
    %cst_34 = arith.constant dense<0.000000e+00> : vector<16x128xf32>
    %43 = tpu.matmul %40, %42, %cst_34 {dimension_numbers = #tpu.dot_dimension_numbers<[1], [0], [0], [1], [0, 0, 1, 1], [], []>} : vector<16x128xbf16>, vector<128x128xbf16>, vector<16x128xf32> -> vector<16x128xf32>
    %44 = arith.addf %39, %43 : vector<16x128xf32>
    %45 = vector.extract_strided_slice %5 {offsets = [2, 0], sizes = [16, 128], strides = [1, 1]} : vector<18x128xbf16> to vector<16x128xbf16>
    %c8 = arith.constant 8 : index
    %c0_35 = arith.constant 0 : index
    %c0_36 = arith.constant 0 : index
    %46 = vector.load %arg5[%c8, %c0_35, %c0_36] : memref<9x128x128xbf16, #tpu.memory_space<vmem>>, vector<1x128x128xbf16>
    %47 = vector.shape_cast %46 : vector<1x128x128xbf16> to vector<128x128xbf16>
    %cst_37 = arith.constant dense<0.000000e+00> : vector<16x128xf32>
    %48 = tpu.matmul %45, %47, %cst_37 {dimension_numbers = #tpu.dot_dimension_numbers<[1], [0], [0], [1], [0, 0, 1, 1], [], []>} : vector<16x128xbf16>, vector<128x128xbf16>, vector<16x128xf32> -> vector<16x128xf32>
    %49 = arith.addf %44, %48 : vector<16x128xf32>
    %c0_38 = arith.constant 0 : index
    %c0_39 = arith.constant 0 : index
    %50 = vector.load %arg6[%c0_38, %c0_39] : memref<1x128xf32, #tpu.memory_space<vmem>>, vector<1x128xf32>
    %51 = vector.broadcast %50 : vector<1x128xf32> to vector<16x128xf32>
    %52 = arith.addf %49, %51 : vector<16x128xf32>
    %c0_40 = arith.constant 0 : index
    %c0_41 = arith.constant 0 : index
    %53 = vector.load %arg7[%c0_40, %c0_41] : memref<1x128xf32, #tpu.memory_space<vmem>>, vector<1x128xf32>
    %54 = vector.broadcast %53 : vector<1x128xf32> to vector<16x128xf32>
    %55 = arith.mulf %52, %54 : vector<16x128xf32>
    %c0_42 = arith.constant 0 : index
    %c0_43 = arith.constant 0 : index
    %56 = vector.load %arg8[%c0_42, %c0_43] : memref<1x128xf32, #tpu.memory_space<vmem>>, vector<1x128xf32>
    %57 = vector.broadcast %56 : vector<1x128xf32> to vector<16x128xf32>
    %58 = arith.addf %55, %57 : vector<16x128xf32>
    %cst_44 = arith.constant 0.000000e+00 : f32
    %59 = vector.broadcast %cst_44 : f32 to vector<16x128xf32>
    %60 = arith.cmpf ogt, %58, %59 : vector<16x128xf32>
    %cst_45 = arith.constant 0.000000e+00 : f32
    %61 = vector.broadcast %cst_45 : f32 to vector<16x128xf32>
    %62 = arith.minimumf %58, %61 : vector<16x128xf32>
    %63 = math.exp %62 : vector<16x128xf32>
    %cst_46 = arith.constant 1.000000e+00 : f32
    %64 = vector.broadcast %cst_46 : f32 to vector<16x128xf32>
    %65 = arith.subf %63, %64 : vector<16x128xf32>
    %cst_47 = arith.constant 1.67326319 : f32
    %66 = vector.broadcast %cst_47 : f32 to vector<16x128xf32>
    %67 = arith.mulf %66, %65 : vector<16x128xf32>
    %68 = arith.select %60, %58, %67 : vector<16x128xi1>, vector<16x128xf32>
    %cst_48 = arith.constant 1.05070102 : f32
    %69 = vector.broadcast %cst_48 : f32 to vector<16x128xf32>
    %70 = arith.mulf %69, %68 : vector<16x128xf32>
    %c0_49 = arith.constant 0 : index
    %c0_50 = arith.constant 0 : index
    %c0_51 = arith.constant 0 : index
    %c0_52 = arith.constant 0 : index
    %71 = vector.load %arg9[%c0_49, %c0_50, %c0_51, %c0_52] : memref<1x1x16x128xf32, #tpu.memory_space<vmem>>, vector<1x1x16x128xf32>
    %72 = vector.shape_cast %71 : vector<1x1x16x128xf32> to vector<16x128xf32>
    %73 = vector.shape_cast %70 : vector<16x128xf32> to vector<1x1x16x128xf32>
    tpu.vector_store %arg9[%c0_49, %c0_50, %c0_51, %c0_52], %73 {strides = array<i32>} : memref<1x1x16x128xf32, #tpu.memory_space<vmem>>, vector<1x1x16x128xf32>,
    return
  }
  func.func @transform_0(%arg0: i32, %arg1: i32) -> (i32, i32, i32, i32) {
    %c0_i32 = arith.constant 0 : i32
    %0 = arith.addi %arg1, %c0_i32 : i32
    %c0_i32_0 = arith.constant 0 : i32
    %c0_i32_1 = arith.constant 0 : i32
    %c0_i32_2 = arith.constant 0 : i32
    return %arg0, %0, %c0_i32_0, %c0_i32_1 : i32, i32, i32, i32
  }
  func.func @transform_1(%arg0: i32, %arg1: i32) -> (i32, i32, i32, i32) {
    %c1_i32 = arith.constant 1 : i32
    %0 = arith.addi %arg1, %c1_i32 : i32
    %c0_i32 = arith.constant 0 : i32
    %c0_i32_0 = arith.constant 0 : i32
    %c0_i32_1 = arith.constant 0 : i32
    return %arg0, %0, %c0_i32, %c0_i32_0 : i32, i32, i32, i32
  }
  func.func @transform_2(%arg0: i32, %arg1: i32) -> (i32, i32, i32, i32) {
    %c2_i32 = arith.constant 2 : i32
    %0 = arith.addi %arg1, %c2_i32 : i32
    %c0_i32 = arith.constant 0 : i32
    %c0_i32_0 = arith.constant 0 : i32
    %c0_i32_1 = arith.constant 0 : i32
    return %arg0, %0, %c0_i32, %c0_i32_0 : i32, i32, i32, i32
  }
  func.func @transform_3(%arg0: i32, %arg1: i32) -> (i32, i32, i32) {
    %c0_i32 = arith.constant 0 : i32
    %c0_i32_0 = arith.constant 0 : i32
    %c0_i32_1 = arith.constant 0 : i32
    %c0_i32_2 = arith.constant 0 : i32
    return %c0_i32, %c0_i32_0, %c0_i32_1 : i32, i32, i32
  }
  func.func @transform_4(%arg0: i32, %arg1: i32) -> (i32, i32) {
    %c0_i32 = arith.constant 0 : i32
    %c0_i32_0 = arith.constant 0 : i32
    %c0_i32_1 = arith.constant 0 : i32
    return %c0_i32, %c0_i32_0 : i32, i32
  }
  func.func @transform_5(%arg0: i32, %arg1: i32) -> (i32, i32) {
    %c0_i32 = arith.constant 0 : i32
    %c0_i32_0 = arith.constant 0 : i32
    %c0_i32_1 = arith.constant 0 : i32
    return %c0_i32, %c0_i32_0 : i32, i32
  }
  func.func @transform_6(%arg0: i32, %arg1: i32) -> (i32, i32) {
    %c0_i32 = arith.constant 0 : i32
    %c0_i32_0 = arith.constant 0 : i32
    %c0_i32_1 = arith.constant 0 : i32
    return %c0_i32, %c0_i32_0 : i32, i32
  }
  func.func @transform_7(%arg0: i32, %arg1: i32) -> (i32, i32, i32, i32) {
    %c0_i32 = arith.constant 0 : i32
    %c0_i32_0 = arith.constant 0 : i32
    %c0_i32_1 = arith.constant 0 : i32
    return %arg0, %arg1, %c0_i32, %c0_i32_0 : i32, i32, i32, i32
  }
}

module attributes {stable_mosaic.version = 11 : i64} {
  func.func @_conv3x3_kernel(%arg0: i32, %arg1: i32, %arg2: memref<1x1x10x128xbf16, #tpu.memory_space<vmem>>, %arg3: memref<1x1x10x128xbf16, #tpu.memory_space<vmem>>, %arg4: memref<1x1x10x128xbf16, #tpu.memory_space<vmem>>, %arg5: memref<9x128x128xbf16, #tpu.memory_space<vmem>>, %arg6: memref<1x128xf32, #tpu.memory_space<vmem>>, %arg7: memref<1x128xf32, #tpu.memory_space<vmem>>, %arg8: memref<1x128xf32, #tpu.memory_space<vmem>>, %arg9: memref<1x1x8x128xf32, #tpu.memory_space<vmem>>) attributes {dimension_semantics = [#tpu.dimension_semantics<parallel>, #tpu.dimension_semantics<parallel>], iteration_bounds = array<i64: 2, 23>, scalar_prefetch = 0 : i64, scratch_operands = 0 : i64, tpu.core_type = #tpu.core_type<tc>, window_params = [{transform_indices = @transform_0, window_bounds = array<i64: 1, 1, 10, 128>}, {transform_indices = @transform_1, window_bounds = array<i64: 1, 1, 10, 128>}, {transform_indices = @transform_2, window_bounds = array<i64: 1, 1, 10, 128>}, {pipeline_mode = #tpu.pipeline_mode<synchronous>, transform_indices = @transform_3, window_bounds = array<i64: 9, 128, 128>}, {pipeline_mode = #tpu.pipeline_mode<synchronous>, transform_indices = @transform_4, window_bounds = array<i64: 1, 128>}, {pipeline_mode = #tpu.pipeline_mode<synchronous>, transform_indices = @transform_5, window_bounds = array<i64: 1, 128>}, {pipeline_mode = #tpu.pipeline_mode<synchronous>, transform_indices = @transform_6, window_bounds = array<i64: 1, 128>}, {transform_indices = @transform_7, window_bounds = array<i64: 1, 1, 8, 128>}]} {
    %c0 = arith.constant 0 : index
    %c0_0 = arith.constant 0 : index
    %c0_1 = arith.constant 0 : index
    %c0_2 = arith.constant 0 : index
    %0 = vector.load %arg2[%c0, %c0_0, %c0_1, %c0_2] : memref<1x1x10x128xbf16, #tpu.memory_space<vmem>>, vector<1x1x10x128xbf16>
    %1 = vector.shape_cast %0 : vector<1x1x10x128xbf16> to vector<10x128xbf16>
    %c0_3 = arith.constant 0 : index
    %c0_4 = arith.constant 0 : index
    %c0_5 = arith.constant 0 : index
    %c0_6 = arith.constant 0 : index
    %2 = vector.load %arg3[%c0_3, %c0_4, %c0_5, %c0_6] : memref<1x1x10x128xbf16, #tpu.memory_space<vmem>>, vector<1x1x10x128xbf16>
    %3 = vector.shape_cast %2 : vector<1x1x10x128xbf16> to vector<10x128xbf16>
    %c0_7 = arith.constant 0 : index
    %c0_8 = arith.constant 0 : index
    %c0_9 = arith.constant 0 : index
    %c0_10 = arith.constant 0 : index
    %4 = vector.load %arg4[%c0_7, %c0_8, %c0_9, %c0_10] : memref<1x1x10x128xbf16, #tpu.memory_space<vmem>>, vector<1x1x10x128xbf16>
    %5 = vector.shape_cast %4 : vector<1x1x10x128xbf16> to vector<10x128xbf16>
    %6 = vector.extract_strided_slice %1 {offsets = [0, 0], sizes = [8, 128], strides = [1, 1]} : vector<10x128xbf16> to vector<8x128xbf16>
    %c0_11 = arith.constant 0 : index
    %c0_12 = arith.constant 0 : index
    %c0_13 = arith.constant 0 : index
    %7 = vector.load %arg5[%c0_11, %c0_12, %c0_13] : memref<9x128x128xbf16, #tpu.memory_space<vmem>>, vector<1x128x128xbf16>
    %8 = vector.shape_cast %7 : vector<1x128x128xbf16> to vector<128x128xbf16>
    %cst = arith.constant dense<0.000000e+00> : vector<8x128xf32>
    %9 = tpu.matmul %6, %8, %cst {dimension_numbers = #tpu.dot_dimension_numbers<[1], [0], [0], [1], [0, 0, 1, 1], [], []>} : vector<8x128xbf16>, vector<128x128xbf16>, vector<8x128xf32> -> vector<8x128xf32>
    %10 = vector.extract_strided_slice %1 {offsets = [1, 0], sizes = [8, 128], strides = [1, 1]} : vector<10x128xbf16> to vector<8x128xbf16>
    %c1 = arith.constant 1 : index
    %c0_14 = arith.constant 0 : index
    %c0_15 = arith.constant 0 : index
    %11 = vector.load %arg5[%c1, %c0_14, %c0_15] : memref<9x128x128xbf16, #tpu.memory_space<vmem>>, vector<1x128x128xbf16>
    %12 = vector.shape_cast %11 : vector<1x128x128xbf16> to vector<128x128xbf16>
    %cst_16 = arith.constant dense<0.000000e+00> : vector<8x128xf32>
    %13 = tpu.matmul %10, %12, %cst_16 {dimension_numbers = #tpu.dot_dimension_numbers<[1], [0], [0], [1], [0, 0, 1, 1], [], []>} : vector<8x128xbf16>, vector<128x128xbf16>, vector<8x128xf32> -> vector<8x128xf32>
    %14 = arith.addf %9, %13 : vector<8x128xf32>
    %15 = vector.extract_strided_slice %1 {offsets = [2, 0], sizes = [8, 128], strides = [1, 1]} : vector<10x128xbf16> to vector<8x128xbf16>
    %c2 = arith.constant 2 : index
    %c0_17 = arith.constant 0 : index
    %c0_18 = arith.constant 0 : index
    %16 = vector.load %arg5[%c2, %c0_17, %c0_18] : memref<9x128x128xbf16, #tpu.memory_space<vmem>>, vector<1x128x128xbf16>
    %17 = vector.shape_cast %16 : vector<1x128x128xbf16> to vector<128x128xbf16>
    %cst_19 = arith.constant dense<0.000000e+00> : vector<8x128xf32>
    %18 = tpu.matmul %15, %17, %cst_19 {dimension_numbers = #tpu.dot_dimension_numbers<[1], [0], [0], [1], [0, 0, 1, 1], [], []>} : vector<8x128xbf16>, vector<128x128xbf16>, vector<8x128xf32> -> vector<8x128xf32>
    %19 = arith.addf %14, %18 : vector<8x128xf32>
    %20 = vector.extract_strided_slice %3 {offsets = [0, 0], sizes = [8, 128], strides = [1, 1]} : vector<10x128xbf16> to vector<8x128xbf16>
    %c3 = arith.constant 3 : index
    %c0_20 = arith.constant 0 : index
    %c0_21 = arith.constant 0 : index
    %21 = vector.load %arg5[%c3, %c0_20, %c0_21] : memref<9x128x128xbf16, #tpu.memory_space<vmem>>, vector<1x128x128xbf16>
    %22 = vector.shape_cast %21 : vector<1x128x128xbf16> to vector<128x128xbf16>
    %cst_22 = arith.constant dense<0.000000e+00> : vector<8x128xf32>
    %23 = tpu.matmul %20, %22, %cst_22 {dimension_numbers = #tpu.dot_dimension_numbers<[1], [0], [0], [1], [0, 0, 1, 1], [], []>} : vector<8x128xbf16>, vector<128x128xbf16>, vector<8x128xf32> -> vector<8x128xf32>
    %24 = arith.addf %19, %23 : vector<8x128xf32>
    %25 = vector.extract_strided_slice %3 {offsets = [1, 0], sizes = [8, 128], strides = [1, 1]} : vector<10x128xbf16> to vector<8x128xbf16>
    %c4 = arith.constant 4 : index
    %c0_23 = arith.constant 0 : index
    %c0_24 = arith.constant 0 : index
    %26 = vector.load %arg5[%c4, %c0_23, %c0_24] : memref<9x128x128xbf16, #tpu.memory_space<vmem>>, vector<1x128x128xbf16>
    %27 = vector.shape_cast %26 : vector<1x128x128xbf16> to vector<128x128xbf16>
    %cst_25 = arith.constant dense<0.000000e+00> : vector<8x128xf32>
    %28 = tpu.matmul %25, %27, %cst_25 {dimension_numbers = #tpu.dot_dimension_numbers<[1], [0], [0], [1], [0, 0, 1, 1], [], []>} : vector<8x128xbf16>, vector<128x128xbf16>, vector<8x128xf32> -> vector<8x128xf32>
    %29 = arith.addf %24, %28 : vector<8x128xf32>
    %30 = vector.extract_strided_slice %3 {offsets = [2, 0], sizes = [8, 128], strides = [1, 1]} : vector<10x128xbf16> to vector<8x128xbf16>
    %c5 = arith.constant 5 : index
    %c0_26 = arith.constant 0 : index
    %c0_27 = arith.constant 0 : index
    %31 = vector.load %arg5[%c5, %c0_26, %c0_27] : memref<9x128x128xbf16, #tpu.memory_space<vmem>>, vector<1x128x128xbf16>
    %32 = vector.shape_cast %31 : vector<1x128x128xbf16> to vector<128x128xbf16>
    %cst_28 = arith.constant dense<0.000000e+00> : vector<8x128xf32>
    %33 = tpu.matmul %30, %32, %cst_28 {dimension_numbers = #tpu.dot_dimension_numbers<[1], [0], [0], [1], [0, 0, 1, 1], [], []>} : vector<8x128xbf16>, vector<128x128xbf16>, vector<8x128xf32> -> vector<8x128xf32>
    %34 = arith.addf %29, %33 : vector<8x128xf32>
    %35 = vector.extract_strided_slice %5 {offsets = [0, 0], sizes = [8, 128], strides = [1, 1]} : vector<10x128xbf16> to vector<8x128xbf16>
    %c6 = arith.constant 6 : index
    %c0_29 = arith.constant 0 : index
    %c0_30 = arith.constant 0 : index
    %36 = vector.load %arg5[%c6, %c0_29, %c0_30] : memref<9x128x128xbf16, #tpu.memory_space<vmem>>, vector<1x128x128xbf16>
    %37 = vector.shape_cast %36 : vector<1x128x128xbf16> to vector<128x128xbf16>
    %cst_31 = arith.constant dense<0.000000e+00> : vector<8x128xf32>
    %38 = tpu.matmul %35, %37, %cst_31 {dimension_numbers = #tpu.dot_dimension_numbers<[1], [0], [0], [1], [0, 0, 1, 1], [], []>} : vector<8x128xbf16>, vector<128x128xbf16>, vector<8x128xf32> -> vector<8x128xf32>
    %39 = arith.addf %34, %38 : vector<8x128xf32>
    %40 = vector.extract_strided_slice %5 {offsets = [1, 0], sizes = [8, 128], strides = [1, 1]} : vector<10x128xbf16> to vector<8x128xbf16>
    %c7 = arith.constant 7 : index
    %c0_32 = arith.constant 0 : index
    %c0_33 = arith.constant 0 : index
    %41 = vector.load %arg5[%c7, %c0_32, %c0_33] : memref<9x128x128xbf16, #tpu.memory_space<vmem>>, vector<1x128x128xbf16>
    %42 = vector.shape_cast %41 : vector<1x128x128xbf16> to vector<128x128xbf16>
    %cst_34 = arith.constant dense<0.000000e+00> : vector<8x128xf32>
    %43 = tpu.matmul %40, %42, %cst_34 {dimension_numbers = #tpu.dot_dimension_numbers<[1], [0], [0], [1], [0, 0, 1, 1], [], []>} : vector<8x128xbf16>, vector<128x128xbf16>, vector<8x128xf32> -> vector<8x128xf32>
    %44 = arith.addf %39, %43 : vector<8x128xf32>
    %45 = vector.extract_strided_slice %5 {offsets = [2, 0], sizes = [8, 128], strides = [1, 1]} : vector<10x128xbf16> to vector<8x128xbf16>
    %c8 = arith.constant 8 : index
    %c0_35 = arith.constant 0 : index
    %c0_36 = arith.constant 0 : index
    %46 = vector.load %arg5[%c8, %c0_35, %c0_36] : memref<9x128x128xbf16, #tpu.memory_space<vmem>>, vector<1x128x128xbf16>
    %47 = vector.shape_cast %46 : vector<1x128x128xbf16> to vector<128x128xbf16>
    %cst_37 = arith.constant dense<0.000000e+00> : vector<8x128xf32>
    %48 = tpu.matmul %45, %47, %cst_37 {dimension_numbers = #tpu.dot_dimension_numbers<[1], [0], [0], [1], [0, 0, 1, 1], [], []>} : vector<8x128xbf16>, vector<128x128xbf16>, vector<8x128xf32> -> vector<8x128xf32>
    %49 = arith.addf %44, %48 : vector<8x128xf32>
    %c0_38 = arith.constant 0 : index
    %c0_39 = arith.constant 0 : index
    %50 = vector.load %arg6[%c0_38, %c0_39] : memref<1x128xf32, #tpu.memory_space<vmem>>, vector<1x128xf32>
    %51 = vector.broadcast %50 : vector<1x128xf32> to vector<8x128xf32>
    %52 = arith.addf %49, %51 : vector<8x128xf32>
    %c0_40 = arith.constant 0 : index
    %c0_41 = arith.constant 0 : index
    %53 = vector.load %arg7[%c0_40, %c0_41] : memref<1x128xf32, #tpu.memory_space<vmem>>, vector<1x128xf32>
    %54 = vector.broadcast %53 : vector<1x128xf32> to vector<8x128xf32>
    %55 = arith.mulf %52, %54 : vector<8x128xf32>
    %c0_42 = arith.constant 0 : index
    %c0_43 = arith.constant 0 : index
    %56 = vector.load %arg8[%c0_42, %c0_43] : memref<1x128xf32, #tpu.memory_space<vmem>>, vector<1x128xf32>
    %57 = vector.broadcast %56 : vector<1x128xf32> to vector<8x128xf32>
    %58 = arith.addf %55, %57 : vector<8x128xf32>
    %cst_44 = arith.constant 0.000000e+00 : f32
    %59 = vector.broadcast %cst_44 : f32 to vector<8x128xf32>
    %60 = arith.cmpf ogt, %58, %59 : vector<8x128xf32>
    %cst_45 = arith.constant 0.000000e+00 : f32
    %61 = vector.broadcast %cst_45 : f32 to vector<8x128xf32>
    %62 = arith.minimumf %58, %61 : vector<8x128xf32>
    %63 = math.exp %62 : vector<8x128xf32>
    %cst_46 = arith.constant 1.000000e+00 : f32
    %64 = vector.broadcast %cst_46 : f32 to vector<8x128xf32>
    %65 = arith.subf %63, %64 : vector<8x128xf32>
    %cst_47 = arith.constant 1.67326319 : f32
    %66 = vector.broadcast %cst_47 : f32 to vector<8x128xf32>
    %67 = arith.mulf %66, %65 : vector<8x128xf32>
    %68 = arith.select %60, %58, %67 : vector<8x128xi1>, vector<8x128xf32>
    %cst_48 = arith.constant 1.05070102 : f32
    %69 = vector.broadcast %cst_48 : f32 to vector<8x128xf32>
    %70 = arith.mulf %69, %68 : vector<8x128xf32>
    %c0_49 = arith.constant 0 : index
    %c0_50 = arith.constant 0 : index
    %c0_51 = arith.constant 0 : index
    %c0_52 = arith.constant 0 : index
    %71 = vector.load %arg9[%c0_49, %c0_50, %c0_51, %c0_52] : memref<1x1x8x128xf32, #tpu.memory_space<vmem>>, vector<1x1x8x128xf32>
    %72 = vector.shape_cast %71 : vector<1x1x8x128xf32> to vector<8x128xf32>
    %73 = vector.shape_cast %70 : vector<8x128xf32> to vector<1x1x8x128xf32>
    tpu.vector_store %arg9[%c0_49, %c0_50, %c0_51, %c0_52], %73 {strides = array<i32>} : memref<1x1x8x128xf32, #tpu.memory_space<vmem>>, vector<1x1x8x128xf32>,
    return
  }
  func.func @transform_0(%arg0: i32, %arg1: i32) -> (i32, i32, i32, i32) {
    %c0_i32 = arith.constant 0 : i32
    %0 = arith.addi %arg1, %c0_i32 : i32
    %c0_i32_0 = arith.constant 0 : i32
    %c0_i32_1 = arith.constant 0 : i32
    %c0_i32_2 = arith.constant 0 : i32
    return %arg0, %0, %c0_i32_0, %c0_i32_1 : i32, i32, i32, i32
  }
  func.func @transform_1(%arg0: i32, %arg1: i32) -> (i32, i32, i32, i32) {
    %c1_i32 = arith.constant 1 : i32
    %0 = arith.addi %arg1, %c1_i32 : i32
    %c0_i32 = arith.constant 0 : i32
    %c0_i32_0 = arith.constant 0 : i32
    %c0_i32_1 = arith.constant 0 : i32
    return %arg0, %0, %c0_i32, %c0_i32_0 : i32, i32, i32, i32
  }
  func.func @transform_2(%arg0: i32, %arg1: i32) -> (i32, i32, i32, i32) {
    %c2_i32 = arith.constant 2 : i32
    %0 = arith.addi %arg1, %c2_i32 : i32
    %c0_i32 = arith.constant 0 : i32
    %c0_i32_0 = arith.constant 0 : i32
    %c0_i32_1 = arith.constant 0 : i32
    return %arg0, %0, %c0_i32, %c0_i32_0 : i32, i32, i32, i32
  }
  func.func @transform_3(%arg0: i32, %arg1: i32) -> (i32, i32, i32) {
    %c0_i32 = arith.constant 0 : i32
    %c0_i32_0 = arith.constant 0 : i32
    %c0_i32_1 = arith.constant 0 : i32
    %c0_i32_2 = arith.constant 0 : i32
    return %c0_i32, %c0_i32_0, %c0_i32_1 : i32, i32, i32
  }
  func.func @transform_4(%arg0: i32, %arg1: i32) -> (i32, i32) {
    %c0_i32 = arith.constant 0 : i32
    %c0_i32_0 = arith.constant 0 : i32
    %c0_i32_1 = arith.constant 0 : i32
    return %c0_i32, %c0_i32_0 : i32, i32
  }
  func.func @transform_5(%arg0: i32, %arg1: i32) -> (i32, i32) {
    %c0_i32 = arith.constant 0 : i32
    %c0_i32_0 = arith.constant 0 : i32
    %c0_i32_1 = arith.constant 0 : i32
    return %c0_i32, %c0_i32_0 : i32, i32
  }
  func.func @transform_6(%arg0: i32, %arg1: i32) -> (i32, i32) {
    %c0_i32 = arith.constant 0 : i32
    %c0_i32_0 = arith.constant 0 : i32
    %c0_i32_1 = arith.constant 0 : i32
    return %c0_i32, %c0_i32_0 : i32, i32
  }
  func.func @transform_7(%arg0: i32, %arg1: i32) -> (i32, i32, i32, i32) {
    %c0_i32 = arith.constant 0 : i32
    %c0_i32_0 = arith.constant 0 : i32
    %c0_i32_1 = arith.constant 0 : i32
    return %arg0, %arg1, %c0_i32, %c0_i32_0 : i32, i32, i32, i32
  }
}

module attributes {stable_mosaic.version = 11 : i64} {
  func.func @_mm_bias_act_kernel(%arg0: i32, %arg1: i32, %arg2: memref<192x128xbf16, #tpu.memory_space<vmem>>, %arg3: memref<128x128xbf16, #tpu.memory_space<vmem>>, %arg4: memref<1x128xf32, #tpu.memory_space<vmem>>, %arg5: memref<1x128xf32, #tpu.memory_space<vmem>>, %arg6: memref<1x128xf32, #tpu.memory_space<vmem>>, %arg7: memref<192x128xf32, #tpu.memory_space<vmem>>) attributes {dimension_semantics = [#tpu.dimension_semantics<parallel>, #tpu.dimension_semantics<parallel>], iteration_bounds = array<i64: 1, 2>, scalar_prefetch = 0 : i64, scratch_operands = 0 : i64, tpu.core_type = #tpu.core_type<tc>, window_params = [{transform_indices = @transform_0, window_bounds = array<i64: 192, 128>}, {transform_indices = @transform_1, window_bounds = array<i64: 128, 128>}, {transform_indices = @transform_2, window_bounds = array<i64: 1, 128>}, {transform_indices = @transform_3, window_bounds = array<i64: 1, 128>}, {transform_indices = @transform_4, window_bounds = array<i64: 1, 128>}, {transform_indices = @transform_5, window_bounds = array<i64: 192, 128>}]} {
    %c0 = arith.constant 0 : index
    %c0_0 = arith.constant 0 : index
    %0 = vector.load %arg2[%c0, %c0_0] : memref<192x128xbf16, #tpu.memory_space<vmem>>, vector<192x128xbf16>
    %c0_1 = arith.constant 0 : index
    %c0_2 = arith.constant 0 : index
    %1 = vector.load %arg3[%c0_1, %c0_2] : memref<128x128xbf16, #tpu.memory_space<vmem>>, vector<128x128xbf16>
    %cst = arith.constant dense<0.000000e+00> : vector<192x128xf32>
    %2 = tpu.matmul %0, %1, %cst {dimension_numbers = #tpu.dot_dimension_numbers<[1], [0], [0], [1], [0, 0, 1, 1], [], []>} : vector<192x128xbf16>, vector<128x128xbf16>, vector<192x128xf32> -> vector<192x128xf32>
    %c0_3 = arith.constant 0 : index
    %c0_4 = arith.constant 0 : index
    %3 = vector.load %arg4[%c0_3, %c0_4] : memref<1x128xf32, #tpu.memory_space<vmem>>, vector<1x128xf32>
    %4 = vector.broadcast %3 : vector<1x128xf32> to vector<192x128xf32>
    %5 = arith.addf %2, %4 : vector<192x128xf32>
    %c0_5 = arith.constant 0 : index
    %c0_6 = arith.constant 0 : index
    %6 = vector.load %arg5[%c0_5, %c0_6] : memref<1x128xf32, #tpu.memory_space<vmem>>, vector<1x128xf32>
    %7 = vector.broadcast %6 : vector<1x128xf32> to vector<192x128xf32>
    %8 = arith.mulf %5, %7 : vector<192x128xf32>
    %c0_7 = arith.constant 0 : index
    %c0_8 = arith.constant 0 : index
    %9 = vector.load %arg6[%c0_7, %c0_8] : memref<1x128xf32, #tpu.memory_space<vmem>>, vector<1x128xf32>
    %10 = vector.broadcast %9 : vector<1x128xf32> to vector<192x128xf32>
    %11 = arith.addf %8, %10 : vector<192x128xf32>
    %c0_9 = arith.constant 0 : index
    %c0_10 = arith.constant 0 : index
    %12 = vector.load %arg7[%c0_9, %c0_10] : memref<192x128xf32, #tpu.memory_space<vmem>>, vector<192x128xf32>
    tpu.vector_store %arg7[%c0_9, %c0_10], %11 {strides = array<i32>} : memref<192x128xf32, #tpu.memory_space<vmem>>, vector<192x128xf32>,
    return
  }
  func.func @transform_0(%arg0: i32, %arg1: i32) -> (i32, i32) {
    %c0_i32 = arith.constant 0 : i32
    %c0_i32_0 = arith.constant 0 : i32
    return %arg0, %c0_i32 : i32, i32
  }
  func.func @transform_1(%arg0: i32, %arg1: i32) -> (i32, i32) {
    %c0_i32 = arith.constant 0 : i32
    %c0_i32_0 = arith.constant 0 : i32
    return %c0_i32, %arg1 : i32, i32
  }
  func.func @transform_2(%arg0: i32, %arg1: i32) -> (i32, i32) {
    %c0_i32 = arith.constant 0 : i32
    %c0_i32_0 = arith.constant 0 : i32
    return %c0_i32, %arg1 : i32, i32
  }
  func.func @transform_3(%arg0: i32, %arg1: i32) -> (i32, i32) {
    %c0_i32 = arith.constant 0 : i32
    %c0_i32_0 = arith.constant 0 : i32
    return %c0_i32, %arg1 : i32, i32
  }
  func.func @transform_4(%arg0: i32, %arg1: i32) -> (i32, i32) {
    %c0_i32 = arith.constant 0 : i32
    %c0_i32_0 = arith.constant 0 : i32
    return %c0_i32, %arg1 : i32, i32
  }
  func.func @transform_5(%arg0: i32, %arg1: i32) -> (i32, i32) {
    %c0_i32 = arith.constant 0 : i32
    return %arg0, %arg1 : i32, i32
  }
}

module attributes {stable_mosaic.version = 11 : i64} {
  func.func @_mha_kernel(%arg0: i32, %arg1: memref<1x4x96x16xbf16, #tpu.memory_space<vmem>>, %arg2: memref<1x4x96x16xbf16, #tpu.memory_space<vmem>>, %arg3: memref<1x4x96x16xbf16, #tpu.memory_space<vmem>>, %arg4: memref<1x96x128xf32, #tpu.memory_space<vmem>>) attributes {dimension_semantics = [#tpu.dimension_semantics<parallel>], iteration_bounds = array<i64: 2>, scalar_prefetch = 0 : i64, scratch_operands = 0 : i64, tpu.core_type = #tpu.core_type<tc>, window_params = [{transform_indices = @transform_0, window_bounds = array<i64: 1, 4, 96, 16>}, {transform_indices = @transform_1, window_bounds = array<i64: 1, 4, 96, 16>}, {transform_indices = @transform_2, window_bounds = array<i64: 1, 4, 96, 16>}, {transform_indices = @transform_3, window_bounds = array<i64: 1, 96, 128>}]} {
    %c0 = arith.constant 0 : index
    %c0_0 = arith.constant 0 : index
    %c0_1 = arith.constant 0 : index
    %c0_2 = arith.constant 0 : index
    %0 = vector.load %arg1[%c0, %c0_0, %c0_1, %c0_2] : memref<1x4x96x16xbf16, #tpu.memory_space<vmem>>, vector<1x4x96x16xbf16>
    %1 = vector.shape_cast %0 : vector<1x4x96x16xbf16> to vector<4x96x16xbf16>
    %c0_3 = arith.constant 0 : index
    %c0_4 = arith.constant 0 : index
    %c0_5 = arith.constant 0 : index
    %c0_6 = arith.constant 0 : index
    %2 = vector.load %arg2[%c0_3, %c0_4, %c0_5, %c0_6] : memref<1x4x96x16xbf16, #tpu.memory_space<vmem>>, vector<1x4x96x16xbf16>
    %3 = vector.shape_cast %2 : vector<1x4x96x16xbf16> to vector<4x96x16xbf16>
    %c0_7 = arith.constant 0 : index
    %c0_8 = arith.constant 0 : index
    %c0_9 = arith.constant 0 : index
    %c0_10 = arith.constant 0 : index
    %4 = vector.load %arg3[%c0_7, %c0_8, %c0_9, %c0_10] : memref<1x4x96x16xbf16, #tpu.memory_space<vmem>>, vector<1x4x96x16xbf16>
    %5 = vector.shape_cast %4 : vector<1x4x96x16xbf16> to vector<4x96x16xbf16>
    "tpu.trace_start"() <{level = 10 : i32, message = "hqd,hkd->hqk"}> : () -> ()
    %cst = arith.constant dense<0.000000e+00> : vector<4x96x96xf32>
    %6 = tpu.matmul %1, %3, %cst {dimension_numbers = #tpu.dot_dimension_numbers<[2], [2], [1], [1], [0, 0, 0, 1, 1, 1], [0], [0]>} : vector<4x96x16xbf16>, vector<4x96x16xbf16>, vector<4x96x96xf32> -> vector<4x96x96xf32>
    "tpu.trace_stop"() : () -> ()
    %cst_11 = arith.constant 2.500000e-01 : f32
    %7 = vector.broadcast %cst_11 : f32 to vector<4x96x96xf32>
    %8 = arith.mulf %6, %7 : vector<4x96x96xf32>
    %9 = tpu.iota {dimensions = array<i32: 2>} : vector<4x96x96xi32>
    %c92_i32 = arith.constant 92 : i32
    %10 = vector.broadcast %c92_i32 : i32 to vector<4x96x96xi32>
    %11 = arith.cmpi slt, %9, %10 : vector<4x96x96xi32>
    %cst_12 = arith.constant -1.000000e+30 : f32
    %12 = vector.broadcast %cst_12 : f32 to vector<4x96x96xf32>
    %13 = arith.select %11, %8, %12 : vector<4x96x96xi1>, vector<4x96x96xf32>
    %cst_13 = arith.constant dense<0xFF800000> : vector<4x96xf32>
    %14 = vector.multi_reduction <maximumf>, %13, %cst_13 [2] : vector<4x96x96xf32> to vector<4x96xf32>
    %15 = vector.shape_cast %14 : vector<4x96xf32> to vector<4x96x1xf32>
    %16 = vector.broadcast %15 : vector<4x96x1xf32> to vector<4x96x96xf32>
    %17 = arith.subf %13, %16 : vector<4x96x96xf32>
    %18 = math.exp %17 : vector<4x96x96xf32>
    %cst_14 = arith.constant dense<0.000000e+00> : vector<4x96xf32>
    %19 = vector.multi_reduction <add>, %18, %cst_14 [2] : vector<4x96x96xf32> to vector<4x96xf32>
    %20 = vector.shape_cast %19 : vector<4x96xf32> to vector<4x96x1xf32>
    %21 = vector.broadcast %20 : vector<4x96x1xf32> to vector<4x96x96xf32>
    %22 = arith.divf %18, %21 : vector<4x96x96xf32>
    %23 = arith.truncf %22 : vector<4x96x96xf32> to vector<4x96x96xbf16>
    "tpu.trace_start"() <{level = 10 : i32, message = "hqk,hkd->hqd"}> : () -> ()
    %cst_15 = arith.constant dense<0.000000e+00> : vector<4x96x16xf32>
    %24 = tpu.matmul %23, %5, %cst_15 {dimension_numbers = #tpu.dot_dimension_numbers<[2], [1], [1], [2], [0, 0, 0, 1, 1, 2], [0], [0]>} : vector<4x96x96xbf16>, vector<4x96x16xbf16>, vector<4x96x16xf32> -> vector<4x96x16xf32>
    "tpu.trace_stop"() : () -> ()
    %25 = vector.extract_strided_slice %24 {offsets = [0, 0, 0], sizes = [1, 96, 16], strides = [1, 1, 1]} : vector<4x96x16xf32> to vector<1x96x16xf32>
    %26 = vector.shape_cast %25 : vector<1x96x16xf32> to vector<96x16xf32>
    %27 = vector.extract_strided_slice %24 {offsets = [1, 0, 0], sizes = [1, 96, 16], strides = [1, 1, 1]} : vector<4x96x16xf32> to vector<1x96x16xf32>
    %28 = vector.shape_cast %27 : vector<1x96x16xf32> to vector<96x16xf32>
    %29 = vector.extract_strided_slice %24 {offsets = [2, 0, 0], sizes = [1, 96, 16], strides = [1, 1, 1]} : vector<4x96x16xf32> to vector<1x96x16xf32>
    %30 = vector.shape_cast %29 : vector<1x96x16xf32> to vector<96x16xf32>
    %31 = vector.extract_strided_slice %24 {offsets = [3, 0, 0], sizes = [1, 96, 16], strides = [1, 1, 1]} : vector<4x96x16xf32> to vector<1x96x16xf32>
    %32 = vector.shape_cast %31 : vector<1x96x16xf32> to vector<96x16xf32>
    %cst_16 = arith.constant 0.000000e+00 : f32
    %33 = vector.broadcast %cst_16 : f32 to vector<96x64xf32>
    %34 = tpu.concatenate %26, %28, %30, %32, %33 in 1 : vector<96x16xf32>, vector<96x16xf32>, vector<96x16xf32>, vector<96x16xf32>, vector<96x64xf32> -> vector<96x128xf32>
    %c0_17 = arith.constant 0 : index
    %c0_18 = arith.constant 0 : index
    %c0_19 = arith.constant 0 : index
    %35 = vector.load %arg4[%c0_17, %c0_18, %c0_19] : memref<1x96x128xf32, #tpu.memory_space<vmem>>, vector<1x96x128xf32>
    %36 = vector.shape_cast %35 : vector<1x96x128xf32> to vector<96x128xf32>
    %37 = vector.shape_cast %34 : vector<96x128xf32> to vector<1x96x128xf32>
    tpu.vector_store %arg4[%c0_17, %c0_18, %c0_19], %37 {strides = array<i32>} : memref<1x96x128xf32, #tpu.memory_space<vmem>>, vector<1x96x128xf32>,
    return
  }
  func.func @transform_0(%arg0: i32) -> (i32, i32, i32, i32) {
    %c0_i32 = arith.constant 0 : i32
    %c0_i32_0 = arith.constant 0 : i32
    %c0_i32_1 = arith.constant 0 : i32
    %c0_i32_2 = arith.constant 0 : i32
    return %arg0, %c0_i32, %c0_i32_0, %c0_i32_1 : i32, i32, i32, i32
  }
  func.func @transform_1(%arg0: i32) -> (i32, i32, i32, i32) {
    %c0_i32 = arith.constant 0 : i32
    %c0_i32_0 = arith.constant 0 : i32
    %c0_i32_1 = arith.constant 0 : i32
    %c0_i32_2 = arith.constant 0 : i32
    return %arg0, %c0_i32, %c0_i32_0, %c0_i32_1 : i32, i32, i32, i32
  }
  func.func @transform_2(%arg0: i32) -> (i32, i32, i32, i32) {
    %c0_i32 = arith.constant 0 : i32
    %c0_i32_0 = arith.constant 0 : i32
    %c0_i32_1 = arith.constant 0 : i32
    %c0_i32_2 = arith.constant 0 : i32
    return %arg0, %c0_i32, %c0_i32_0, %c0_i32_1 : i32, i32, i32, i32
  }
  func.func @transform_3(%arg0: i32) -> (i32, i32, i32) {
    %c0_i32 = arith.constant 0 : i32
    %c0_i32_0 = arith.constant 0 : i32
    %c0_i32_1 = arith.constant 0 : i32
    return %arg0, %c0_i32, %c0_i32_0 : i32, i32, i32
  }
}

module attributes {stable_mosaic.version = 11 : i64} {
  func.func @_mm_res_ln_kernel(%arg0: i32, %arg1: memref<192x128xbf16, #tpu.memory_space<vmem>>, %arg2: memref<128x128xbf16, #tpu.memory_space<vmem>>, %arg3: memref<1x128xf32, #tpu.memory_space<vmem>>, %arg4: memref<192x128xf32, #tpu.memory_space<vmem>>, %arg5: memref<1x128xf32, #tpu.memory_space<vmem>>, %arg6: memref<1x128xf32, #tpu.memory_space<vmem>>, %arg7: memref<192x128xf32, #tpu.memory_space<vmem>>) attributes {dimension_semantics = [#tpu.dimension_semantics<parallel>], iteration_bounds = array<i64: 1>, scalar_prefetch = 0 : i64, scratch_operands = 0 : i64, tpu.core_type = #tpu.core_type<tc>, window_params = [{transform_indices = @transform_0, window_bounds = array<i64: 192, 128>}, {pipeline_mode = #tpu.pipeline_mode<synchronous>, transform_indices = @transform_1, window_bounds = array<i64: 128, 128>}, {pipeline_mode = #tpu.pipeline_mode<synchronous>, transform_indices = @transform_2, window_bounds = array<i64: 1, 128>}, {transform_indices = @transform_3, window_bounds = array<i64: 192, 128>}, {pipeline_mode = #tpu.pipeline_mode<synchronous>, transform_indices = @transform_4, window_bounds = array<i64: 1, 128>}, {pipeline_mode = #tpu.pipeline_mode<synchronous>, transform_indices = @transform_5, window_bounds = array<i64: 1, 128>}, {transform_indices = @transform_6, window_bounds = array<i64: 192, 128>}]} {
    %c0 = arith.constant 0 : index
    %c0_0 = arith.constant 0 : index
    %0 = vector.load %arg1[%c0, %c0_0] : memref<192x128xbf16, #tpu.memory_space<vmem>>, vector<192x128xbf16>
    %c0_1 = arith.constant 0 : index
    %c0_2 = arith.constant 0 : index
    %1 = vector.load %arg2[%c0_1, %c0_2] : memref<128x128xbf16, #tpu.memory_space<vmem>>, vector<128x128xbf16>
    %cst = arith.constant dense<0.000000e+00> : vector<192x128xf32>
    %2 = tpu.matmul %0, %1, %cst {dimension_numbers = #tpu.dot_dimension_numbers<[1], [0], [0], [1], [0, 0, 1, 1], [], []>} : vector<192x128xbf16>, vector<128x128xbf16>, vector<192x128xf32> -> vector<192x128xf32>
    %c0_3 = arith.constant 0 : index
    %c0_4 = arith.constant 0 : index
    %3 = vector.load %arg3[%c0_3, %c0_4] : memref<1x128xf32, #tpu.memory_space<vmem>>, vector<1x128xf32>
    %4 = vector.broadcast %3 : vector<1x128xf32> to vector<192x128xf32>
    %5 = arith.addf %2, %4 : vector<192x128xf32>
    %c0_5 = arith.constant 0 : index
    %c0_6 = arith.constant 0 : index
    %6 = vector.load %arg4[%c0_5, %c0_6] : memref<192x128xf32, #tpu.memory_space<vmem>>, vector<192x128xf32>
    %7 = arith.addf %5, %6 : vector<192x128xf32>
    %8 = tpu.iota {dimensions = array<i32: 1>} : vector<1x128xi32>
    %c64_i32 = arith.constant 64 : i32
    %9 = vector.broadcast %c64_i32 : i32 to vector<1x128xi32>
    %10 = arith.cmpi slt, %8, %9 : vector<1x128xi32>
    %11 = arith.extui %10 : vector<1x128xi1> to vector<1x128xi32>
    %12 = arith.sitofp %11 : vector<1x128xi32> to vector<1x128xf32>
    %13 = vector.broadcast %12 : vector<1x128xf32> to vector<192x128xf32>
    %14 = arith.mulf %7, %13 : vector<192x128xf32>
    %cst_7 = arith.constant dense<0.000000e+00> : vector<192xf32>
    %15 = vector.multi_reduction <add>, %14, %cst_7 [1] : vector<192x128xf32> to vector<192xf32>
    %16 = vector.shape_cast %15 : vector<192xf32> to vector<192x1xf32>
    %cst_8 = arith.constant 1.562500e-02 : f32
    %17 = vector.broadcast %cst_8 : f32 to vector<192x1xf32>
    %18 = arith.mulf %16, %17 : vector<192x1xf32>
    %19 = vector.broadcast %18 : vector<192x1xf32> to vector<192x128xf32>
    %20 = arith.subf %7, %19 : vector<192x128xf32>
    %21 = vector.broadcast %12 : vector<1x128xf32> to vector<192x128xf32>
    %22 = arith.mulf %20, %21 : vector<192x128xf32>
    %23 = arith.mulf %22, %22 : vector<192x128xf32>
    %cst_9 = arith.constant dense<0.000000e+00> : vector<192xf32>
    %24 = vector.multi_reduction <add>, %23, %cst_9 [1] : vector<192x128xf32> to vector<192xf32>
    %25 = vector.shape_cast %24 : vector<192xf32> to vector<192x1xf32>
    %cst_10 = arith.constant 1.562500e-02 : f32
    %26 = vector.broadcast %cst_10 : f32 to vector<192x1xf32>
    %27 = arith.mulf %25, %26 : vector<192x1xf32>
    %cst_11 = arith.constant 9.99999974E-6 : f32
    %28 = vector.broadcast %cst_11 : f32 to vector<192x1xf32>
    %29 = arith.addf %27, %28 : vector<192x1xf32>
    %30 = math.rsqrt %29 : vector<192x1xf32>
    %31 = vector.broadcast %30 : vector<192x1xf32> to vector<192x128xf32>
    %32 = arith.mulf %22, %31 : vector<192x128xf32>
    %c0_12 = arith.constant 0 : index
    %c0_13 = arith.constant 0 : index
    %33 = vector.load %arg5[%c0_12, %c0_13] : memref<1x128xf32, #tpu.memory_space<vmem>>, vector<1x128xf32>
    %34 = vector.broadcast %33 : vector<1x128xf32> to vector<192x128xf32>
    %35 = arith.mulf %32, %34 : vector<192x128xf32>
    %c0_14 = arith.constant 0 : index
    %c0_15 = arith.constant 0 : index
    %36 = vector.load %arg6[%c0_14, %c0_15] : memref<1x128xf32, #tpu.memory_space<vmem>>, vector<1x128xf32>
    %37 = vector.broadcast %36 : vector<1x128xf32> to vector<192x128xf32>
    %38 = arith.addf %35, %37 : vector<192x128xf32>
    %c0_16 = arith.constant 0 : index
    %c0_17 = arith.constant 0 : index
    %39 = vector.load %arg7[%c0_16, %c0_17] : memref<192x128xf32, #tpu.memory_space<vmem>>, vector<192x128xf32>
    tpu.vector_store %arg7[%c0_16, %c0_17], %38 {strides = array<i32>} : memref<192x128xf32, #tpu.memory_space<vmem>>, vector<192x128xf32>,
    return
  }
  func.func @transform_0(%arg0: i32) -> (i32, i32) {
    %c0_i32 = arith.constant 0 : i32
    %c0_i32_0 = arith.constant 0 : i32
    return %arg0, %c0_i32 : i32, i32
  }
  func.func @transform_1(%arg0: i32) -> (i32, i32) {
    %c0_i32 = arith.constant 0 : i32
    %c0_i32_0 = arith.constant 0 : i32
    %c0_i32_1 = arith.constant 0 : i32
    return %c0_i32, %c0_i32_0 : i32, i32
  }
  func.func @transform_2(%arg0: i32) -> (i32, i32) {
    %c0_i32 = arith.constant 0 : i32
    %c0_i32_0 = arith.constant 0 : i32
    %c0_i32_1 = arith.constant 0 : i32
    return %c0_i32, %c0_i32_0 : i32, i32
  }
  func.func @transform_3(%arg0: i32) -> (i32, i32) {
    %c0_i32 = arith.constant 0 : i32
    %c0_i32_0 = arith.constant 0 : i32
    return %arg0, %c0_i32 : i32, i32
  }
  func.func @transform_4(%arg0: i32) -> (i32, i32) {
    %c0_i32 = arith.constant 0 : i32
    %c0_i32_0 = arith.constant 0 : i32
    %c0_i32_1 = arith.constant 0 : i32
    return %c0_i32, %c0_i32_0 : i32, i32
  }
  func.func @transform_5(%arg0: i32) -> (i32, i32) {
    %c0_i32 = arith.constant 0 : i32
    %c0_i32_0 = arith.constant 0 : i32
    %c0_i32_1 = arith.constant 0 : i32
    return %c0_i32, %c0_i32_0 : i32, i32
  }
  func.func @transform_6(%arg0: i32) -> (i32, i32) {
    %c0_i32 = arith.constant 0 : i32
    %c0_i32_0 = arith.constant 0 : i32
    return %arg0, %c0_i32 : i32, i32
  }
}

module attributes {stable_mosaic.version = 11 : i64} {
  func.func @_mm_bias_act_kernel(%arg0: i32, %arg1: i32, %arg2: memref<192x128xbf16, #tpu.memory_space<vmem>>, %arg3: memref<128x128xbf16, #tpu.memory_space<vmem>>, %arg4: memref<1x128xf32, #tpu.memory_space<vmem>>, %arg5: memref<1x128xf32, #tpu.memory_space<vmem>>, %arg6: memref<1x128xf32, #tpu.memory_space<vmem>>, %arg7: memref<192x128xf32, #tpu.memory_space<vmem>>) attributes {dimension_semantics = [#tpu.dimension_semantics<parallel>, #tpu.dimension_semantics<parallel>], iteration_bounds = array<i64: 1, 1>, scalar_prefetch = 0 : i64, scratch_operands = 0 : i64, tpu.core_type = #tpu.core_type<tc>, window_params = [{transform_indices = @transform_0, window_bounds = array<i64: 192, 128>}, {transform_indices = @transform_1, window_bounds = array<i64: 128, 128>}, {transform_indices = @transform_2, window_bounds = array<i64: 1, 128>}, {transform_indices = @transform_3, window_bounds = array<i64: 1, 128>}, {transform_indices = @transform_4, window_bounds = array<i64: 1, 128>}, {transform_indices = @transform_5, window_bounds = array<i64: 192, 128>}]} {
    %c0 = arith.constant 0 : index
    %c0_0 = arith.constant 0 : index
    %0 = vector.load %arg2[%c0, %c0_0] : memref<192x128xbf16, #tpu.memory_space<vmem>>, vector<192x128xbf16>
    %c0_1 = arith.constant 0 : index
    %c0_2 = arith.constant 0 : index
    %1 = vector.load %arg3[%c0_1, %c0_2] : memref<128x128xbf16, #tpu.memory_space<vmem>>, vector<128x128xbf16>
    %cst = arith.constant dense<0.000000e+00> : vector<192x128xf32>
    %2 = tpu.matmul %0, %1, %cst {dimension_numbers = #tpu.dot_dimension_numbers<[1], [0], [0], [1], [0, 0, 1, 1], [], []>} : vector<192x128xbf16>, vector<128x128xbf16>, vector<192x128xf32> -> vector<192x128xf32>
    %c0_3 = arith.constant 0 : index
    %c0_4 = arith.constant 0 : index
    %3 = vector.load %arg4[%c0_3, %c0_4] : memref<1x128xf32, #tpu.memory_space<vmem>>, vector<1x128xf32>
    %4 = vector.broadcast %3 : vector<1x128xf32> to vector<192x128xf32>
    %5 = arith.addf %2, %4 : vector<192x128xf32>
    %c0_5 = arith.constant 0 : index
    %c0_6 = arith.constant 0 : index
    %6 = vector.load %arg5[%c0_5, %c0_6] : memref<1x128xf32, #tpu.memory_space<vmem>>, vector<1x128xf32>
    %7 = vector.broadcast %6 : vector<1x128xf32> to vector<192x128xf32>
    %8 = arith.mulf %5, %7 : vector<192x128xf32>
    %c0_7 = arith.constant 0 : index
    %c0_8 = arith.constant 0 : index
    %9 = vector.load %arg6[%c0_7, %c0_8] : memref<1x128xf32, #tpu.memory_space<vmem>>, vector<1x128xf32>
    %10 = vector.broadcast %9 : vector<1x128xf32> to vector<192x128xf32>
    %11 = arith.addf %8, %10 : vector<192x128xf32>
    %cst_9 = arith.constant 0.000000e+00 : f32
    %12 = vector.broadcast %cst_9 : f32 to vector<192x128xf32>
    %13 = arith.maximumf %11, %12 : vector<192x128xf32>
    %c0_10 = arith.constant 0 : index
    %c0_11 = arith.constant 0 : index
    %14 = vector.load %arg7[%c0_10, %c0_11] : memref<192x128xf32, #tpu.memory_space<vmem>>, vector<192x128xf32>
    tpu.vector_store %arg7[%c0_10, %c0_11], %13 {strides = array<i32>} : memref<192x128xf32, #tpu.memory_space<vmem>>, vector<192x128xf32>,
    return
  }
  func.func @transform_0(%arg0: i32, %arg1: i32) -> (i32, i32) {
    %c0_i32 = arith.constant 0 : i32
    %c0_i32_0 = arith.constant 0 : i32
    return %arg0, %c0_i32 : i32, i32
  }
  func.func @transform_1(%arg0: i32, %arg1: i32) -> (i32, i32) {
    %c0_i32 = arith.constant 0 : i32
    %c0_i32_0 = arith.constant 0 : i32
    return %c0_i32, %arg1 : i32, i32
  }
  func.func @transform_2(%arg0: i32, %arg1: i32) -> (i32, i32) {
    %c0_i32 = arith.constant 0 : i32
    %c0_i32_0 = arith.constant 0 : i32
    return %c0_i32, %arg1 : i32, i32
  }
  func.func @transform_3(%arg0: i32, %arg1: i32) -> (i32, i32) {
    %c0_i32 = arith.constant 0 : i32
    %c0_i32_0 = arith.constant 0 : i32
    return %c0_i32, %arg1 : i32, i32
  }
  func.func @transform_4(%arg0: i32, %arg1: i32) -> (i32, i32) {
    %c0_i32 = arith.constant 0 : i32
    %c0_i32_0 = arith.constant 0 : i32
    return %c0_i32, %arg1 : i32, i32
  }
  func.func @transform_5(%arg0: i32, %arg1: i32) -> (i32, i32) {
    %c0_i32 = arith.constant 0 : i32
    return %arg0, %arg1 : i32, i32
  }
}

</mosaic_0001>

<bundles_post_ra>
// kernel: rawformer_s_forward.15
= control target key start
LH: loop header
LB: loop body
LE: loop exit
PB: predicated region body
PF: predicated region fallthrough
CT: control target
= control target key end

     0   :  { %s1724_s15 = smov 0   ;;  %s1726_s16 = smov 0   ;;  %s2071_s0 = inlined_call_operand.vmem [shape: bf16[2,48,128], index: 0, kind: input, shape index: {}]   ;;  %s2072_s1 = inlined_call_operand.vmem [shape: bf16[128,128], index: 1, kind: input, shape index: {}]   ;;  %s2073_s2 = inlined_call_operand.vmem [shape: f32[1,128], index: 2, kind: input, shape index: {}]   ;;  %s2074_s3 = inlined_call_operand.vmem [shape: f32[1,128], index: 3, kind: input, shape index: {}]   ;;  %s2075_s4 = inlined_call_operand.vmem [shape: f32[2,16,128], index: 4, kind: output, shape index: {}]  }
   0x1   :  { %s1728_s17 = smov 0  }
   0x2 LB: > { %s26_s18 = sadd.s32 1, %s1690_s16  ;;  %p1506_p0 = scmp.ge.s32.totalorder %s1694_s17, 1  ;;  %s1694_s17 = sphi %s1728_s17, %s14_s17   ;;  %s1690_s16 = sphi %s1726_s16, %s2077_s16   ;;  %s1686_s15 = sphi %s1724_s15, %s2076_s15  }
   0x3   : > { %p28_p1 = scmp.ge.s32.totalorder %s26_s18, 2  ;;  %p183_p2 = scmp.lt.s32.totalorder %s1694_s17, 3 }
   0x5   : > { %s2079_s18 = smov (%p28_p1, %s26_s18), 0  ;;  %p184_p3 = pnand %p1506_p0, %p183_p2 }
   0x6   : > { %v1629_v0 = vld [vmem:[%s2072_s1] sm:$0xff] (!%p184_p3)   ;;  %v1696_v1 = vmov (!%p184_p3), 0.0   ;;  %v1630_v2 = vld [vmem:[%s2072_s1 + $0x8] sm:$0xff] (!%p184_p3)   ;;  %p218_p4 = scmp.lt.s32.totalorder (!%p184_p3), %s1686_s15, 1  ;;  %vm1697_vm0 = vmmov (!%p184_p3), 0   ;;  %v1631_v3 = vld [vmem:[%s2072_s1 + $0x10] sm:$0xff] (!%p184_p3)   ;;  %v399_v14 = vlaneseq (!%p184_p3) }
   0x7   : > { %187 = sbr.rel (%p184_p3) target bundleno = 389 (0x185), region = 36  ;;  %1557 = vmatprep.subr.bf16.mxu0 (!%p184_p3), %v1696_v1  ;;  %1585 = vmatprep.subr.bf16.mxu1 (!%p184_p3), %v1696_v1  ;;  %v1632_v4 = vld [vmem:[%s2072_s1 + $0x18] sm:$0xff] (!%p184_p3)   ;;  %v1633_v5 = vld [vmem:[%s2072_s1 + $0x20] sm:$0xff] (!%p184_p3)   ;;  %v1634_v6 = vld [vmem:[%s2072_s1 + $0x28] sm:$0xff] (!%p184_p3)   ;;  %v1698_v12 = vmov (!%p184_p3), 1966171168  }
   0x8   : > { %1558 = vmatpush3.bf16.msra.mxu0 (!%p184_p3), %v1629_v0  ;;  %1593 = vmatpush3.bf16.msra.mxu1 (!%p184_p3), %v1629_v0  ;;  %v1635_v7 = vld [vmem:[%s2072_s1 + $0x30] sm:$0xff] (!%p184_p3)   ;;  %v1636_v8 = vld [vmem:[%s2072_s1 + $0x38] sm:$0xff] (!%p184_p3)   ;;  %v397_v13 = vunpack.c.l.s4 (!%p184_p3), %v1698_v12  ;;  %v400_v16 = vshrl.u32 (!%p184_p3), %v399_v14, 7  ;;  %vm1073_vm1 = vcmask (!%p184_p3), 1042432   ;;  %vm1377_vm6 = vcmask (!%p184_p3), 1041409  }
   0x9   : > { %1559 = vmatprep.subr.bf16.mxu0 (!%p184_p3), %v1696_v1  ;;  %1586 = vmatprep.subr.bf16.mxu1 (!%p184_p3), %v1696_v1  ;;  %vm1380_vm9 = vcmask (!%p184_p3), 1042434   ;;  %vm1383_vm10 = vcmask (!%p184_p3), 1043459   ;;  %vm1386_vm13 = vcmask (!%p184_p3), 1044484   ;;  %vm1389_vm14 = vcmask (!%p184_p3), 1045509  }
   0xa   : > { %1573 = vmatprep.mubr.msk.bf16.mxu0 (!%p184_p3), %vm1697_vm0, %v1696_v1  ;;  %1577 = vmatprep.mubr.msk.bf16.mxu1 (!%p184_p3), %vm1697_vm0, %v1696_v1  ;;  %v398_v15 = vunpack.c.0.s8 (!%p184_p3), %v397_v13  ;;  %vm1392_vm15 = vcmask (!%p184_p3), 1046534  }
   0xc   : > { %1560 = vmatpush3.bf16.msra.mxu0 (!%p184_p3), %v1630_v2  ;;  %1594 = vmatpush3.bf16.msra.mxu1 (!%p184_p3), %v1630_v2  ;;  %v1780_v17 = vsub.s32 (!%p184_p3), %v398_v15, %v400_v16 }
   0xd   : > { %1561 = vmatprep.subr.bf16.mxu0 (!%p184_p3), %v1696_v1  ;;  %1587 = vmatprep.subr.bf16.mxu1 (!%p184_p3), %v1696_v1 }
   0xe   : > { %s2081_s15 = smov (!%p218_p4, %s1686_s15), 1 }
   0xf   : > { %s1601_s25 = smul.u32 24, %s2081_s15  ;;  %s1545_s21 = sshll.u32 %s2081_s15, 4 }
  0x10   : > { %1562 = vmatpush3.bf16.msra.mxu0 %v1631_v3  ;;  %1595 = vmatpush3.bf16.msra.mxu1 %v1631_v3  ;;  %s2012_s23 = scalar_lea.vmem %s2075_s4, %s1545_s21 }
  0x11   : > { %s1759_s28 = scalar_lea.vmem %s2071_s0, %s1601_s25  ;;  %1563 = vmatprep.subr.bf16.mxu0 %v1696_v1  ;;  %1588 = vmatprep.subr.bf16.mxu1 %v1696_v1 }
  0x12   : > { %v1637_v9 = vld [vmem:[%s1759_s28] sm:$0xff]   ;;  %v1638_v10 = vld [vmem:[%s1759_s28 + $0x8] sm:$0xff]   ;;  %v1639_v11 = vld [vmem:[%s1759_s28 + $0x10] sm:$0xff]  }
  0x14   : > { %1564 = vmatpush3.bf16.msra.mxu0 %v1632_v4  ;;  %1596 = vmatpush3.bf16.msra.mxu1 %v1632_v4 }
  0x15   : > { %1565 = vmatprep.subr.bf16.mxu0 %v1696_v1  ;;  %1589 = vmatprep.subr.bf16.mxu1 %v1696_v1 }
  0x18   : > { %1566 = vmatpush3.bf16.msra.mxu0 %v1633_v5  ;;  %1597 = vmatpush3.bf16.msra.mxu1 %v1633_v5 }
  0x19   : > { %1567 = vmatprep.subr.bf16.mxu0 %v1696_v1  ;;  %1590 = vmatprep.subr.bf16.mxu1 %v1696_v1 }
  0x1c   : > { %1568 = vmatpush3.bf16.msra.mxu0 %v1634_v6  ;;  %1598 = vmatpush3.bf16.msra.mxu1 %v1634_v6 }
  0x1d   : > { %1569 = vmatprep.subr.bf16.mxu0 %v1696_v1  ;;  %1591 = vmatprep.subr.bf16.mxu1 %v1696_v1 }
  0x20   : > { %1570 = vmatpush3.bf16.msra.mxu0 %v1635_v7  ;;  %1599 = vmatpush3.bf16.msra.mxu1 %v1635_v7 }
  0x21   : > { %1571 = vmatprep.subr.bf16.mxu0 %v1696_v1  ;;  %1592 = vmatprep.subr.bf16.mxu1 %v1696_v1 }
  0x24   : > { %1572 = vmatpush3.bf16.msra.mxu0 %v1636_v8  ;;  %1600 = vmatpush3.bf16.msra.mxu1 %v1636_v8 }
  0x27   : > { %1574 = vmatmul.mubr.bf16.vlgmr.msra.gmra.mrb[0].mxu0 %v1637_v9  ;;  %1578 = vmatmul.mubr.bf16.vlgmr.msra.gmra.mrb[0].mxu1 %v1638_v10 }
  0x28   : > { %1581 = vmatprep.mubr.msk.bf16.mxu1 %vm1697_vm0, %v1696_v1  ;;  %vm1395_vm0 = vcmask 1047559  }
  0x2f   : > { %1582 = vmatmul.mubr.bf16.gmra.mrb[4].mxu1 %v1639_v11 }
  0xfa   : > { %v360_v18 = vpop.f32.mrb[0].mxu0  ;;  %v368_v19 = vpop.f32.mrb[0].mxu1 }
  0xfb   : > { %v383_v20 = vand.u32 2147483647, %v360_v18  ;;  %v385_v21 = vand.u32 2147483647, %v368_v19  ;;  %v1575_v22 = vpop.f32.mrb[1].mxu0  ;;  %v1579_v23 = vpop.f32.mrb[1].mxu1 }
  0xfc   : > { %v363_v24 = vpop.f32.mrb[2].mxu0  ;;  %v1782_v25 = vpop.f32.mrb[2].mxu1 }
  0xfd   : > { %v395_v26 = vcombine.high %v383_v20, %v383_v20  ;;  %v402_v27 = vrot.slane %v383_v20, %v1780_v17  ;;  %v493_v28 = vcombine.high %v385_v21, %v385_v21  ;;  %v500_v29 = vrot.slane %v385_v21, %v1780_v17  ;;  %v1580_v30 = vpop.f32.mrb[3].mxu1  ;;  %v1576_v31 = vpop.f32.mrb[3].mxu0 }
  0xfe   : > { %v384_v32 = vand.u32 2147483647, %v363_v24 }
  0xff   : > { %v409_v33 = vrot.slane %v395_v26, %v1780_v17  ;;  %v410_v34 = vcombine.high %v402_v27, %v402_v27  ;;  %v418_v35 = vrot.slane %v402_v27, %v1780_v17  ;;  %v507_v36 = vrot.slane %v493_v28, %v1780_v17 }
 0x100   : > { %v508_v37 = vcombine.high %v500_v29, %v500_v29  ;;  %v1790_v38 = vrot.slane %v500_v29, %v1780_v17  ;;  %v444_v39 = vcombine.high %v384_v32, %v384_v32  ;;  %v451_v40 = vrot.slane %v384_v32, %v1780_v17 }
 0x101   : > { %v411_v41 = vcombine.high %v409_v33, %v409_v33  ;;  %v425_v42 = vrot.slane %v409_v33, %v1780_v17  ;;  %v432_v43 = vrot.slane %v410_v34, %v1780_v17  ;;  %v440_v44 = vcombine.high %v418_v35, %v418_v35 }
 0x102   : > { %v509_v45 = vcombine.high %v507_v36, %v507_v36  ;;  %v523_v46 = vrot.slane %v507_v36, %v1780_v17  ;;  %v1797_v47 = vrot.slane %v508_v37, %v1780_v17  ;;  %v458_v48 = vrot.slane %v444_v39, %v1780_v17  ;;  %v1800_v49 = vpop.f32.mrb[4].mxu1 }
 0x103   : > { %v439_v50 = vrot.slane %v411_v41, %v1780_v17  ;;  %v442_v51 = vcombine.high %v432_v43, %v432_v43  ;;  %v689_v52 = vcombine.low %v418_v35, %v432_v43  ;;  %v703_v53 = vrot.slane %v440_v44, %v1780_v17  ;;  %v1583_v54 = vpop.f32.mrb[5].mxu1 }
 0x104   : > { %v537_v55 = vrot.slane %v509_v45, %v1780_v17  ;;  %v539_v56 = vcombine.high %v523_v46, %v523_v46  ;;  %v818_v57 = vrot.slane %v1797_v47, %v1780_v17  ;;  %v1522_v58 = vcombine.high %v1790_v38, %v1797_v47  ;;  %v1809_v59 = vpop.f32.mrb[6].mxu1 }
 0x105   : > { %v696_v60 = vrot.slane %v689_v52, %v1780_v17  ;;  %v712_v61 = vcombine.low %v442_v51, %v425_v42  ;;  %v726_v62 = vrot.slane %v439_v50, %v1780_v17  ;;  %v1521_v63 = vcombine.high %v425_v42, %v439_v50  ;;  %v1584_v0 = vpop.f32.mrb[7].mxu1 }
 0x106   : > { %v541_v1 = vcombine.high %v537_v55, %v537_v55  ;;  %v834_v2 = vrot.slane %v1522_v58, %v1780_v17  ;;  %v841_v3 = vrot.slane %v523_v46, %v1780_v17  ;;  %v850_v4 = vcombine.low %v537_v55, %v539_v56 }
 0x107   : > { %v704_v5 = vcombine.low %v696_v60, %v703_v53  ;;  %v719_v6 = vrot.slane %v712_v61, %v1780_v17  ;;  %v459_v7 = vcombine.high %v451_v40, %v451_v40  ;;  %v460_v8 = vcombine.high %v458_v48, %v458_v48 }
 0x108   : > { %v842_v9 = vcombine.low %v834_v2, %v841_v3  ;;  %v857_v10 = vrot.slane %v850_v4, %v1780_v17  ;;  %v864_v11 = vrot.slane %v541_v1, %v1780_v17  ;;  %v467_v12 = vrot.slane %v451_v40, %v1780_v17  ;;  %v1843_v4 = vld [vmem:[%s2073_s2] ss:$0 sm:$0xff] }
 0x109   : > { %v711_v13 = vrot.slane %v704_v5, %v1780_v17  ;;  %v727_v14 = vcombine.low %v719_v6, %v726_v62  ;;  %v474_v15 = vrot.slane %v458_v48, %v1780_v17  ;;  %v481_v16 = vrot.slane %v459_v7, %v1780_v17 }
 0x10a   : > { %v849_v18 = vrot.slane %v842_v9, %v1780_v17  ;;  %v865_v19 = vcombine.low %v857_v10, %v864_v11  ;;  %v488_v20 = vrot.slane %v460_v8, %v1780_v17  ;;  %v489_v21 = vcombine.high %v467_v12, %v467_v12 }
 0x10b   : > { %v734_v22 = vrot.slane %v727_v14, %v1780_v17  ;;  %v1074_v23 = vsel %vm1073_vm1, %v711_v13, -inf  ;;  %v490_v24 = vcombine.high %v474_v15, %v474_v15  ;;  %v491_v26 = vcombine.high %v481_v16, %v481_v16 }
 0x10c   : > { %v1075_v27 = vrot.slane %v1074_v23, 4  ;;  %v872_v28 = vrot.slane %v865_v19, %v1780_v17  ;;  %v1116_v29 = vsel %vm1073_vm1, %v849_v18, -inf  ;;  %v492_v30 = vcombine.high %v488_v20, %v488_v20 }
 0x10d   : > { %v1081_v31 = vsel %vm1073_vm1, %v734_v22, -inf  ;;  %v1117_v32 = vrot.slane %v1116_v29, 4  ;;  %v742_v33 = vrot.slane %v1521_v63, %v1780_v17  ;;  %v749_v34 = vrot.slane %v467_v12, %v1780_v17  ;;  %v1851_v12 = vld [vmem:[%s2074_s3] ss:$0 sm:$0xff] }
 0x10e   : > { %v1076_v35 = vmax.f32 %v1074_v23, %v1075_v27  ;;  %v1082_v36 = vrot.slane %v1081_v31, 4  ;;  %v1123_v37 = vsel %vm1073_vm1, %v872_v28, -inf  ;;  %v758_v39 = vcombine.low %v481_v16, %v489_v21 }
 0x10f   : > { %v1118_v40 = vmax.f32 %v1116_v29, %v1117_v32  ;;  %v1124_v41 = vrot.slane %v1123_v37, 4  ;;  %v750_v42 = vcombine.low %v742_v33, %v749_v34  ;;  %v772_v43 = vrot.slane %v491_v26, %v1780_v17 }
 0x110   : > { %v1077_v44 = vrot.slane %v1076_v35, 2  ;;  %v1083_v45 = vmax.f32 %v1081_v31, %v1082_v36  ;;  %v765_v46 = vrot.slane %v758_v39, %v1780_v17  ;;  %v781_v48 = vcombine.low %v474_v15, %v488_v20 }
 0x111   : > { %v1119_v50 = vrot.slane %v1118_v40, 2  ;;  %v1125_v51 = vmax.f32 %v1123_v37, %v1124_v41  ;;  %v757_v52 = vrot.slane %v750_v42, %v1780_v17  ;;  %v795_v53 = vrot.slane %v490_v24, %v1780_v17 }
 0x112   : > { %v1078_v54 = vmax.f32 %v1076_v35, %v1077_v44  ;;  %v1084_v55 = vrot.slane %v1083_v45, 2  ;;  %v773_v56 = vcombine.low %v765_v46, %v772_v43  ;;  %v788_v58 = vrot.slane %v781_v48, %v1780_v17 }
 0x113   : > { %v1120_v60 = vmax.f32 %v1118_v40, %v1119_v50  ;;  %v1126_v61 = vrot.slane %v1125_v51, 2  ;;  %v804_v62 = vcombine.low %v492_v30, %v1790_v38  ;;  %v1088_v63 = vsel %vm1073_vm1, %v757_v52, -inf }
 0x114   : > { %v1079_v0 = vrot.slane %v1078_v54, 1  ;;  %v1085_v1 = vmax.f32 %v1083_v45, %v1084_v55  ;;  %v780_v2 = vrot.slane %v773_v56, %v1780_v17  ;;  %v796_v3 = vcombine.low %v788_v58, %v795_v53 }
 0x115   : > { %v1121_v5 = vrot.slane %v1120_v60, 1  ;;  %v1127_v6 = vmax.f32 %v1125_v51, %v1126_v61  ;;  %v811_v7 = vrot.slane %v804_v62, %v1780_v17  ;;  %v1089_v8 = vrot.slane %v1088_v63, 4 }
 0x116   : > { %v1080_v9 = vmax.f32 %v1078_v54, %v1079_v0  ;;  %v1086_v10 = vrot.slane %v1085_v1, 1  ;;  %v803_v38 = vrot.slane %v796_v3, %v1780_v17  ;;  %v1095_v11 = vsel %vm1073_vm1, %v780_v2, -inf }
 0x117   : > { %v1122_v13 = vmax.f32 %v1120_v60, %v1121_v5  ;;  %v1128_v14 = vrot.slane %v1127_v6, 1  ;;  %v819_v15 = vcombine.low %v811_v7, %v818_v57  ;;  %v1090_v16 = vmax.f32 %v1088_v63, %v1089_v8 }
 0x118   : > { %v1087_v18 = vmax.f32 %v1085_v1, %v1086_v10  ;;  %v1193_v19 = vmul.f32 %v1843_v4, %v1080_v9  ;;  %v1096_v20 = vrot.slane %v1095_v11, 4  ;;  %v1102_v24 = vsel %vm1073_vm1, %v803_v38, -inf }
 0x119   : > { %v1129_v21 = vmax.f32 %v1127_v6, %v1128_v14  ;;  %v1199_v22 = vmul.f32 %v1843_v4, %v1122_v13  ;;  %v1091_v23 = vrot.slane %v1090_v16, 2  ;;  %v826_v28 = vrot.slane %v819_v15, %v1780_v17 }
 0x11a   : > { %v1194_v26 = vmul.f32 %v1843_v4, %v1087_v18  ;;  %v1861_v27 = vadd.f32 %v1851_v12, %v1193_v19  ;;  %v1097_v47 = vmax.f32 %v1095_v11, %v1096_v20  ;;  %v1103_v34 = vrot.slane %v1102_v24, 4 }
 0x11b   : > { %v1200_v57 = vmul.f32 %v1843_v4, %v1129_v21  ;;  %v1866_v29 = vadd.f32 %v1851_v12, %v1199_v22  ;;  %v1092_v30 = vmax.f32 %v1090_v16, %v1091_v23  ;;  %v386_v39 = vand.u32 2147483647, %v1782_v25 }
 0x11c   : > { %v1869_v31 = vadd.f32 %v1851_v12, %v1194_v26  ;;  %v1248_v32 = vmin.f32 %v1861_v27, 0.0  ;;  %v1098_v33 = vrot.slane %v1097_v47, 2  ;;  %v1109_v43 = vsel %vm1073_vm1, %v826_v28, -inf }
 0x11d   : > { %v1873_v35 = vadd.f32 %v1851_v12, %v1200_v57  ;;  %v1254_v36 = vmin.f32 %v1866_v29, 0.0  ;;  %v1093_v37 = vrot.slane %v1092_v30, 1  ;;  %v1104_v51 = vmax.f32 %v1102_v24, %v1103_v34 }
 0x11e   : > { %v1249_v40 = vmin.f32 %v1869_v31, 0.0  ;;  %v1264_v41 = vmul.f32 1.442695, %v1248_v32  ;;  %v1099_v42 = vmax.f32 %v1097_v47, %v1098_v33  ;;  %v1110_v53 = vrot.slane %v1109_v43, 4 }
 0x11f   : > { %v1255_v44 = vmin.f32 %v1873_v35, 0.0  ;;  %v1276_v45 = vmul.f32 1.442695, %v1254_v36  ;;  %v1094_v46 = vmax.f32 %v1092_v30, %v1093_v37  ;;  %v1105_v55 = vrot.slane %v1104_v51, 2 }
 0x120   : > { %1640 = vpow2.f32 %v1264_v41  ;;  %v1266_v48 = vmul.f32 1.442695, %v1249_v40  ;;  %v1100_v50 = vrot.slane %v1099_v42, 1  ;;  %v542_v56 = vcombine.high %v386_v39, %v386_v39 }
 0x121   : > { %1642 = vpow2.f32 %v1276_v45  ;;  %v1278_v52 = vmul.f32 1.442695, %v1255_v44  ;;  %v1195_v54 = vmul.f32 %v1843_v4, %v1094_v46  ;;  %v1111_v58 = vmax.f32 %v1109_v43, %v1110_v53 }
 0x122   : > { %1644 = vpow2.f32 %v1266_v48  ;;  %v1101_v25 = vmax.f32 %v1099_v42, %v1100_v50  ;;  %v549_v61 = vrot.slane %v386_v39, %v1780_v17  ;;  %v1106_v62 = vmax.f32 %v1104_v51, %v1105_v55 }
 0x123   : > { %1646 = vpow2.f32 %v1278_v52  ;;  %v1882_v60 = vadd.f32 %v1851_v12, %v1195_v54  ;;  %v556_v0 = vrot.slane %v542_v56, %v1780_v17  ;;  %v1112_v1 = vrot.slane %v1111_v58, 2 }
 0x124   : > { %v1196_v63 = vmul.f32 %v1843_v4, %v1101_v25  ;;  %v557_v3 = vcombine.high %v549_v61, %v549_v61  ;;  %v1107_v5 = vrot.slane %v1106_v62, 1  ;;  %v565_v7 = vrot.slane %v549_v61, %v1780_v17 }
 0x125   : > { %v1250_v2 = vmin.f32 %v1882_v60, 0.0  ;;  %vm1232_vm2 = vcmp.gt.f32.partialorder %v1861_v27, 0.0  ;;  %vm1238_vm3 = vcmp.gt.f32.partialorder %v1866_v29, 0.0  ;;  %v1113_v8 = vmax.f32 %v1111_v58, %v1112_v1 }
 0x126   : > { %v1889_v6 = vadd.f32 %v1851_v12, %v1196_v63  ;;  %v558_v10 = vcombine.high %v556_v0, %v556_v0  ;;  %v579_v38 = vrot.slane %v557_v3, %v1780_v17  ;;  %vm1233_vm4 = vcmp.gt.f32.partialorder %v1869_v31, 0.0 }
 0x127   : > { %v1268_v9 = vmul.f32 1.442695, %v1250_v2  ;;  %v1108_v11 = vmax.f32 %v1106_v62, %v1107_v5  ;;  %v1898_v14 = vrot.slane %v556_v0, %v1780_v17  ;;  %v1114_v15 = vrot.slane %v1113_v8, 1 }
 0x128   : > { %v1251_v13 = vmin.f32 %v1889_v6, 0.0  ;;  %v587_v16 = vcombine.high %v565_v7, %v565_v7  ;;  %v589_v18 = vcombine.high %v579_v38, %v579_v38  ;;  %vm1239_vm5 = vcmp.gt.f32.partialorder %v1873_v35, 0.0 }
 0x129   : > { %1648 = vpow2.f32 %v1268_v9  ;;  %v1197_v20 = vmul.f32 %v1843_v4, %v1108_v11  ;;  %v873_v22 = vcombine.low %v565_v7, %v579_v38  ;;  %v1115_v26 = vmax.f32 %v1113_v8, %v1114_v15 }
 0x12a   : > { %v1641_v19 = vpop.eup %1640  ;;  %v1270_v21 = vmul.f32 1.442695, %v1251_v13  ;;  %v586_v28 = vrot.slane %v558_v10, %v1780_v17  ;;  %v896_v47 = vcombine.low %v589_v18, %v1898_v14  ;;  %v887_v40 = vrot.slane %v587_v16, %v1780_v17 }
 0x12b   : > { %v1643_v23 = vpop.eup %1642  ;;  %v1527_v24 = vadd.f32 -1.0, %v1641_v19  ;;  %v1905_v32 = vadd.f32 %v1851_v12, %v1197_v20  ;;  %v880_v33 = vrot.slane %v873_v22, %v1780_v17  ;;  %v1198_v39 = vmul.f32 %v1843_v4, %v1115_v26 }
 0x12c   : > { %v1645_v57 = vpop.eup %1644  ;;  %v1533_v30 = vadd.f32 -1.0, %v1643_v23  ;;  %1650 = vpow2.f32 %v1270_v21  ;;  %v387_v44 = vand.u32 2147483647, %v1800_v49  ;;  %v903_v50 = vrot.slane %v896_v47, %v1780_v17 }
 0x12d   : > { %v1647_v34 = vpop.eup %1646  ;;  %v1528_v36 = vadd.f32 -1.0, %v1645_v57  ;;  %v1312_v37 = vmul.f32 1.6732632, %v1527_v24  ;;  %v1252_v43 = vmin.f32 %v1905_v32, 0.0  ;;  %v1913_v46 = vadd.f32 %v1851_v12, %v1198_v39 }
 0x12e   : > { %v1534_v41 = vadd.f32 -1.0, %v1647_v34  ;;  %v1318_v42 = vmul.f32 1.6732632, %v1533_v30  ;;  %v888_v48 = vcombine.low %v880_v33, %v887_v40  ;;  %vm1234_vm7 = vcmp.gt.f32.partialorder %v1882_v60, 0.0 }
 0x12f   : > { %v1313_v45 = vmul.f32 1.6732632, %v1528_v36  ;;  %v1328_v51 = vsel %vm1232_vm2, %v1861_v27, %v1312_v37  ;;  %v1272_v54 = vmul.f32 1.442695, %v1252_v43  ;;  %v1253_v25 = vmin.f32 %v1913_v46, 0.0 }
 0x130   : > { %v1319_v52 = vmul.f32 1.6732632, %v1534_v41  ;;  %v1334_v53 = vsel %vm1238_vm3, %v1866_v29, %v1318_v42  ;;  %v910_v55 = vrot.slane %v586_v28, %v1780_v17  ;;  %vm1235_vm8 = vcmp.gt.f32.partialorder %v1889_v6, 0.0 }
 0x131   : > { %v1329_v49 = vsel %vm1233_vm4, %v1869_v31, %v1313_v45  ;;  %1652 = vpow2.f32 %v1272_v54  ;;  %v895_v29 = vrot.slane %v888_v48, %v1780_v17  ;;  %v1344_v61 = vmul.f32 1.050701, %v1328_v51 }
 0x132   : > { %v1345_v56 = vmul.f32 1.050701, %v1329_v49  ;;  %v1335_v27 = vsel %vm1239_vm5, %v1873_v35, %v1319_v52  ;;  %v1933_v31 = vmul.f32 1.050701, %v1334_v53  ;;  %v1274_v62 = vmul.f32 1.442695, %v1253_v25 }
 0x133   : > { %v1649_v58 = vpop.eup %1648  ;;  %v911_v63 = vcombine.low %v903_v50, %v910_v55  ;;  %v1523_v2 = vcombine.high %v1898_v14, %v586_v28  ;;  %v1130_v3 = vsel %vm1073_vm1, %v895_v29, -inf  ;;  %v1937_v5 = vmul.f32 1.050701, %v1335_v27 }
 0x134   : > { %v1376_v0 = vrot.slane %v1345_v56, 7  ;;  %v1529_v1 = vadd.f32 -1.0, %v1649_v58  ;;  %1654 = vpow2.f32 %v1274_v62  ;;  %v1131_v7 = vrot.slane %v1130_v3, 4 }
 0x135   : > { %v918_v35 = vrot.slane %v911_v63, %v1780_v17  ;;  %v591_v38 = vcombine.high %v387_v44, %v387_v44  ;;  %v598_v11 = vrot.slane %v387_v44, %v1780_v17  ;;  %v926_v16 = vrot.slane %v1523_v2, %v1780_v17 }
 0x136   : > { %v1651_v8 = vpop.eup %1650  ;;  %v1378_v9 = vsel %vm1377_vm6, %v1376_v0, %v1344_v61  ;;  %v1314_v10 = vmul.f32 1.6732632, %v1529_v1  ;;  %v1132_v15 = vmax.f32 %v1130_v3, %v1131_v7  ;;  %vm1236_vm11 = vcmp.gt.f32.partialorder %v1905_v32, 0.0 }
 0x137   : > { %v1530_v13 = vadd.f32 -1.0, %v1651_v8  ;;  %v1137_v14 = vsel %vm1073_vm1, %v918_v35, -inf  ;;  %v605_v20 = vrot.slane %v591_v38, %v1780_v17  ;;  %v606_v21 = vcombine.high %v598_v11, %v598_v11 }
 0x138   : > { %v1330_v18 = vsel %vm1234_vm7, %v1882_v60, %v1314_v10  ;;  %v1138_v19 = vrot.slane %v1137_v14, 4  ;;  %v1133_v24 = vrot.slane %v1132_v15, 2  ;;  %v614_v26 = vrot.slane %v598_v11, %v1780_v17 }
 0x139   : > { %v1315_v22 = vmul.f32 1.6732632, %v1530_v13  ;;  %v1346_v23 = vmul.f32 1.050701, %v1330_v18  ;;  %v607_v47 = vcombine.high %v605_v20, %v605_v20  ;;  %v621_v57 = vrot.slane %v605_v20, %v1780_v17 }
 0x13a   : > { %v1139_v28 = vmax.f32 %v1137_v14, %v1138_v19  ;;  %v628_v30 = vrot.slane %v606_v21, %v1780_v17  ;;  %vm1237_vm12 = vcmp.gt.f32.partialorder %v1913_v46, 0.0  ;;  %v1134_v34 = vmax.f32 %v1132_v15, %v1133_v24 }
 0x13b   : > { %v1331_v60 = vsel %vm1235_vm8, %v1889_v6, %v1315_v22  ;;  %v1379_v33 = vrot.slane %v1346_v23, 6  ;;  %v636_v36 = vcombine.high %v614_v26, %v614_v26  ;;  %v1653_v37 = vpop.eup %1652  ;;  %v1957_v41 = vrot.slane %v607_v47, %v1780_v17 }
 0x13c   : > { %v1347_v39 = vmul.f32 1.050701, %v1331_v60  ;;  %v1140_v40 = vrot.slane %v1139_v28, 2  ;;  %v637_v42 = vcombine.high %v621_v57, %v621_v57  ;;  %v1531_v43 = vadd.f32 -1.0, %v1653_v37 }
 0x13d   : > { %v1381_v44 = vsel %vm1380_vm9, %v1379_v33, %v1378_v9  ;;  %v1135_v45 = vrot.slane %v1134_v34, 1  ;;  %v638_v48 = vcombine.high %v628_v30, %v628_v30  ;;  %v933_v6 = vrot.slane %v614_v26, %v1780_v17 }
 0x13e   : > { %v1382_v50 = vrot.slane %v1347_v39, 5  ;;  %v1141_v51 = vmax.f32 %v1139_v28, %v1140_v40  ;;  %v942_v52 = vcombine.low %v628_v30, %v636_v36  ;;  %v1655_v53 = vpop.eup %1654  ;;  %v1316_v54 = vmul.f32 1.6732632, %v1531_v43 }
 0x13f   : > { %v1136_v49 = vmax.f32 %v1134_v34, %v1135_v45  ;;  %v956_v25 = vrot.slane %v638_v48, %v1780_v17  ;;  %v965_v55 = vcombine.low %v621_v57, %v1957_v41  ;;  %v1532_v56 = vadd.f32 -1.0, %v1655_v53 }
 0x140   : > { %v1384_v27 = vsel %vm1383_vm10, %v1382_v50, %v1381_v44  ;;  %v1142_v29 = vrot.slane %v1141_v51, 1  ;;  %v934_v58 = vcombine.low %v926_v16, %v933_v6  ;;  %v1332_v61 = vsel %vm1236_vm11, %v1905_v32, %v1316_v54 }
 0x141   : > { %v1201_v62 = vmul.f32 %v1843_v4, %v1136_v49  ;;  %v949_v63 = vrot.slane %v942_v52, %v1780_v17  ;;  %v972_v0 = vrot.slane %v965_v55, %v1780_v17  ;;  %v1317_v1 = vmul.f32 1.6732632, %v1532_v56 }
 0x142   : > { %v1348_v2 = vmul.f32 1.050701, %v1332_v61  ;;  %v1143_v3 = vmax.f32 %v1141_v51, %v1142_v29  ;;  %v941_v35 = vrot.slane %v934_v58, %v1780_v17  ;;  %v1391_v7 = vrot.slane %v1933_v31, 2 }
 0x143   : > { %v1973_v8 = vadd.f32 %v1851_v12, %v1201_v62  ;;  %v957_v9 = vcombine.low %v949_v63, %v956_v25  ;;  %v979_v10 = vrot.slane %v637_v42, %v1780_v17  ;;  %v1333_v32 = vsel %vm1237_vm12, %v1913_v46, %v1317_v1 }
 0x144   : > { %v1385_v38 = vrot.slane %v1348_v2, 4  ;;  %v1202_v11 = vmul.f32 %v1843_v4, %v1143_v3  ;;  %v1144_v13 = vsel %vm1073_vm1, %v941_v35, -inf  ;;  %v1349_v15 = vmul.f32 1.050701, %v1333_v32 }
 0x145   : > { %v1256_v14 = vmin.f32 %v1973_v8, 0.0  ;;  %v964_v31 = vrot.slane %v957_v9, %v1780_v17  ;;  %v388_v16 = vand.u32 2147483647, %v1809_v59  ;;  %v980_v20 = vcombine.low %v972_v0, %v979_v10 }
 0x146   : > { %v1387_v18 = vsel %vm1386_vm13, %v1385_v38, %v1384_v27  ;;  %v1986_v19 = vadd.f32 %v1851_v12, %v1202_v11  ;;  %v1145_v21 = vrot.slane %v1144_v13, 4  ;;  %v1394_v46 = vrot.slane %v1937_v5, 1 }
 0x147   : > { %v1388_v22 = vrot.slane %v1349_v15, 3  ;;  %v1280_v23 = vmul.f32 1.442695, %v1256_v14  ;;  %v1151_v24 = vsel %vm1073_vm1, %v964_v31, -inf  ;;  %v987_v28 = vrot.slane %v980_v20, %v1780_v17 }
 0x148   : > { %v1257_v26 = vmin.f32 %v1986_v19, 0.0  ;;  %v1146_v47 = vmax.f32 %v1144_v13, %v1145_v21  ;;  %v639_v59 = vcombine.high %v1957_v41, %v1957_v41  ;;  %v1152_v57 = vrot.slane %v1151_v24, 4 }
 0x149   : > { %1656 = vpow2.f32 %v1280_v23  ;;  %v640_v30 = vcombine.high %v388_v16, %v388_v16  ;;  %v647_v60 = vrot.slane %v388_v16, %v1780_v17  ;;  %v1158_v5 = vsel %vm1073_vm1, %v987_v28, -inf }
 0x14a   : > { %v1282_v33 = vmul.f32 1.442695, %v1257_v26  ;;  %v1147_v34 = vrot.slane %v1146_v47, 2  ;;  %v1390_v36 = vsel %vm1389_vm14, %v1388_v22, %v1387_v18  ;;  %v1153_v37 = vmax.f32 %v1151_v24, %v1152_v57 }
 0x14b   : > { %v1159_v39 = vrot.slane %v1158_v5, 4  ;;  %v654_v40 = vrot.slane %v640_v30, %v1780_v17  ;;  %v655_v42 = vcombine.high %v647_v60, %v647_v60  ;;  %v663_v41 = vrot.slane %v647_v60, %v1780_v17 }
 0x14c   : > { %1658 = vpow2.f32 %v1282_v33  ;;  %v1148_v43 = vmax.f32 %v1146_v47, %v1147_v34  ;;  %v1154_v44 = vrot.slane %v1153_v37, 2  ;;  %v1393_v53 = vsel %vm1392_vm15, %v1391_v7, %v1390_v36 }
 0x14d   : > { %v1160_v45 = vmax.f32 %v1158_v5, %v1159_v39  ;;  %v656_v48 = vcombine.high %v654_v40, %v654_v40  ;;  %v670_v50 = vrot.slane %v654_v40, %v1780_v17  ;;  %v677_v6 = vrot.slane %v655_v42, %v1780_v17 }
 0x14e   : > { %v1149_v51 = vrot.slane %v1148_v43, 1  ;;  %v988_v52 = vcombine.low %v639_v59, %v663_v41  ;;  %v1155_v54 = vmax.f32 %v1153_v37, %v1154_v44  ;;  %v1396_v16 = vsel %vm1395_vm0, %v1394_v46, %v1393_v53 }
 0x14f   : > { %v1161_v49 = vrot.slane %v1160_v45, 2  ;;  %v684_v25 = vrot.slane %v656_v48, %v1780_v17  ;;  %v686_v55 = vcombine.high %v670_v50, %v670_v50  ;;  %v1002_v29 = vrot.slane %v677_v6, %v1780_v17  ;;  %1413 = vst [vmem:[%s2012_s23] sm:$0xff] %v1396_v16 }
 0x150   : > { %v1150_v56 = vmax.f32 %v1148_v43, %v1149_v51  ;;  %v995_v27 = vrot.slane %v988_v52, %v1780_v17  ;;  %v1524_v58 = vcombine.high %v663_v41, %v677_v6  ;;  %v1156_v61 = vrot.slane %v1155_v54, 1 }
 0x151   : > { %v1162_v62 = vmax.f32 %v1160_v45, %v1161_v49  ;;  %v688_v63 = vcombine.high %v684_v25, %v684_v25  ;;  %v1025_v0 = vrot.slane %v670_v50, %v1780_v17  ;;  %v1034_v35 = vcombine.low %v684_v25, %v686_v55 }
 0x152   : > { %v1203_v1 = vmul.f32 %v1843_v4, %v1150_v56  ;;  %v1003_v2 = vcombine.low %v995_v27, %v1002_v29  ;;  %v1018_v3 = vrot.slane %v1524_v58, %v1780_v17  ;;  %v1157_v9 = vmax.f32 %v1155_v54, %v1156_v61 }
 0x153   : > { %v1657_v7 = vpop.eup %1656  ;;  %v1163_v10 = vrot.slane %v1162_v62, 1  ;;  %v1048_v32 = vrot.slane %v688_v63, %v1780_v17  ;;  %v1041_v31 = vrot.slane %v1034_v35, %v1780_v17  ;;  %vm1241_vm2 = vcmp.gt.f32.partialorder %v1986_v19, 0.0 }
 0x154   : > { %v2016_v38 = vadd.f32 %v1851_v12, %v1203_v1  ;;  %v1010_v11 = vrot.slane %v1003_v2, %v1780_v17  ;;  %v1026_v13 = vcombine.low %v1018_v3, %v1025_v0  ;;  %v1204_v14 = vmul.f32 %v1843_v4, %v1157_v9 }
 0x155   : > { %v1164_v15 = vmax.f32 %v1162_v62, %v1163_v10  ;;  %v1049_v24 = vcombine.low %v1041_v31, %v1048_v32  ;;  %v1535_v40 = vadd.f32 -1.0, %v1657_v7 }
 0x156   : > { %v1659_v18 = vpop.eup %1658  ;;  %v1258_v20 = vmin.f32 %v2016_v38, 0.0  ;;  %v1033_v21 = vrot.slane %v1026_v13, %v1780_v17  ;;  %v2027_v23 = vadd.f32 %v1851_v12, %v1204_v14  ;;  %v1165_v47 = vsel %vm1073_vm1, %v1010_v11, -inf }
 0x157   : > { %v1205_v22 = vmul.f32 %v1843_v4, %v1164_v15  ;;  %v1536_v26 = vadd.f32 -1.0, %v1659_v18  ;;  %v1056_v30 = vrot.slane %v1049_v24, %v1780_v17  ;;  %v1166_v60 = vrot.slane %v1165_v47, 4 }
 0x158   : > { %v1284_v28 = vmul.f32 1.442695, %v1258_v20  ;;  %v1172_v59 = vsel %vm1073_vm1, %v1033_v21, -inf  ;;  %v1259_v57 = vmin.f32 %v2027_v23, 0.0  ;;  %v1320_v51 = vmul.f32 1.6732632, %v1535_v40 }
 0x159   : > { %v2032_v46 = vadd.f32 %v1851_v12, %v1205_v22  ;;  %v1173_v34 = vrot.slane %v1172_v59, 4  ;;  %v1321_v5 = vmul.f32 1.6732632, %v1536_v26  ;;  %v1167_v37 = vmax.f32 %v1165_v47, %v1166_v60 }
 0x15a   : > { %1660 = vpow2.f32 %v1284_v28  ;;  %v1286_v36 = vmul.f32 1.442695, %v1259_v57  ;;  %v1179_v39 = vsel %vm1073_vm1, %v1056_v30, -inf  ;;  %vm1240_vm1 = vcmp.gt.f32.partialorder %v1973_v8, 0.0 }
 0x15b   : > { %v1260_v33 = vmin.f32 %v2032_v46, 0.0  ;;  %v1174_v43 = vmax.f32 %v1172_v59, %v1173_v34  ;;  %v1180_v41 = vrot.slane %v1179_v39, 4  ;;  %v1168_v44 = vrot.slane %v1167_v37, 2 }
 0x15c   : > { %1662 = vpow2.f32 %v1286_v36  ;;  %v1337_v48 = vsel %vm1241_vm2, %v1986_v19, %v1321_v5  ;;  %v1336_v27 = vsel %vm1240_vm1, %v1973_v8, %v1320_v51  ;;  %vm1242_vm3 = vcmp.gt.f32.partialorder %v2016_v38, 0.0 }
 0x15d   : > { %v1288_v42 = vmul.f32 1.442695, %v1260_v33  ;;  %v1175_v45 = vrot.slane %v1174_v43, 2  ;;  %v1181_v17 = vmax.f32 %v1179_v39, %v1180_v41  ;;  %v1169_v50 = vmax.f32 %v1167_v37, %v1168_v44 }
 0x15e   : > { %v1353_v54 = vmul.f32 1.050701, %v1337_v48  ;;  %v1352_v3 = vmul.f32 1.050701, %v1336_v27  ;;  %vm1243_vm4 = vcmp.gt.f32.partialorder %v2027_v23, 0.0  ;;  %vm1244_vm5 = vcmp.gt.f32.partialorder %v2032_v46, 0.0 }
 0x15f   : > { %1664 = vpow2.f32 %v1288_v42  ;;  %v1176_v6 = vmax.f32 %v1174_v43, %v1175_v45  ;;  %v1182_v52 = vrot.slane %v1181_v17, 2  ;;  %v1170_v53 = vrot.slane %v1169_v50, 1 }
 0x160   : > { %v1397_v19 = vrot.slane %v1353_v54, 7 }
 0x161   : > { %v1177_v49 = vrot.slane %v1176_v6, 1  ;;  %v1183_v25 = vmax.f32 %v1181_v17, %v1182_v52  ;;  %v1171_v56 = vmax.f32 %v1169_v50, %v1170_v53 }
 0x162   : > { %v1398_v14 = vsel %vm1377_vm6, %v1397_v19, %v1352_v3 }
 0x163   : > { %v1178_v58 = vmax.f32 %v1176_v6, %v1177_v49  ;;  %v1184_v61 = vrot.slane %v1183_v25, 1  ;;  %v1206_v62 = vmul.f32 %v1843_v4, %v1171_v56 }
 0x164   : > { %v1661_v55 = vpop.eup %1660 }
 0x165   : > { %v1537_v29 = vadd.f32 -1.0, %v1661_v55  ;;  %v1185_v0 = vmax.f32 %v1183_v25, %v1184_v61  ;;  %v1207_v1 = vmul.f32 %v1843_v4, %v1178_v58  ;;  %v1229_v35 = vadd.f32 %v1851_v12, %v1206_v62 }
 0x166   : > { %v1663_v2 = vpop.eup %1662 }
 0x167   : > { %v1322_v63 = vmul.f32 1.6732632, %v1537_v29  ;;  %v1538_v9 = vadd.f32 -1.0, %v1663_v2  ;;  %v1208_v10 = vmul.f32 %v1843_v4, %v1185_v0  ;;  %v1230_v32 = vadd.f32 %v1851_v12, %v1207_v1 }
 0x168   : > { %v1261_v15 = vmin.f32 %v1229_v35, 0.0  ;;  %vm1245_vm6 = vcmp.gt.f32.partialorder %v1229_v35, 0.0 }
 0x169   : > { %v1665_v7 = vpop.eup %1664  ;;  %v1338_v8 = vsel %vm1242_vm3, %v2016_v38, %v1322_v63  ;;  %v1323_v31 = vmul.f32 1.6732632, %v1538_v9  ;;  %v1231_v16 = vadd.f32 %v1851_v12, %v1208_v10  ;;  %v1262_v18 = vmin.f32 %v1230_v32, 0.0 }
 0x16a   : > { %v1539_v11 = vadd.f32 -1.0, %v1665_v7  ;;  %v1354_v13 = vmul.f32 1.050701, %v1338_v8  ;;  %v1290_v22 = vmul.f32 1.442695, %v1261_v15  ;;  %vm1246_vm7 = vcmp.gt.f32.partialorder %v1230_v32, 0.0 }
 0x16b   : > { %v1339_v4 = vsel %vm1243_vm4, %v2027_v23, %v1323_v31  ;;  %v1263_v38 = vmin.f32 %v1231_v16, 0.0  ;;  %v1292_v24 = vmul.f32 1.442695, %v1262_v18  ;;  %vm1247_vm8 = vcmp.gt.f32.partialorder %v1231_v16, 0.0 }
 0x16c   : > { %v1324_v20 = vmul.f32 1.6732632, %v1539_v11  ;;  %v1399_v21 = vrot.slane %v1354_v13, 6  ;;  %v1355_v28 = vmul.f32 1.050701, %v1339_v4  ;;  %1666 = vpow2.f32 %v1290_v22 }
 0x16d   : > { %1668 = vpow2.f32 %v1292_v24  ;;  %v1294_v12 = vmul.f32 1.442695, %v1263_v38 }
 0x16e   : > { %v1340_v26 = vsel %vm1244_vm5, %v2032_v46, %v1324_v20  ;;  %v1400_v47 = vsel %vm1380_vm9, %v1399_v21, %v1398_v14  ;;  %v1401_v57 = vrot.slane %v1355_v28, 5 }
 0x16f   : > { %v1356_v59 = vmul.f32 1.050701, %v1340_v26  ;;  %1670 = vpow2.f32 %v1294_v12 }
 0x170   : > { %v1402_v60 = vsel %vm1383_vm10, %v1401_v57, %v1400_v47 }
 0x171   : > { %v1403_v30 = vrot.slane %v1356_v59, 4 }
 0x173   : > { %v1404_v33 = vsel %vm1386_vm13, %v1403_v30, %v1402_v60 }
 0x176   : > { %v1667_v34 = vpop.eup %1666 }
 0x177   : > { %v1669_v23 = vpop.eup %1668  ;;  %v1540_v5 = vadd.f32 -1.0, %v1667_v34 }
 0x178   : > { %v1541_v36 = vadd.f32 -1.0, %v1669_v23 }
 0x179   : > { %v1671_v37 = vpop.eup %1670  ;;  %v1325_v46 = vmul.f32 1.6732632, %v1540_v5 }
 0x17a   : > { %v1542_v39 = vadd.f32 -1.0, %v1671_v37  ;;  %v1326_v40 = vmul.f32 1.6732632, %v1541_v36 }
 0x17b   : > { %v1341_v42 = vsel %vm1245_vm6, %v1229_v35, %v1325_v46 }
 0x17c   : > { %v1327_v43 = vmul.f32 1.6732632, %v1542_v39  ;;  %v1342_v41 = vsel %vm1246_vm7, %v1230_v32, %v1326_v40  ;;  %v1357_v44 = vmul.f32 1.050701, %v1341_v42 }
 0x17d   : > { %v1358_v45 = vmul.f32 1.050701, %v1342_v41 }
 0x17e   : > { %v1343_v17 = vsel %vm1247_vm8, %v1231_v16, %v1327_v43  ;;  %v1405_v48 = vrot.slane %v1357_v44, 3 }
 0x17f   : > { %v1359_v50 = vmul.f32 1.050701, %v1343_v17  ;;  %v1407_v51 = vrot.slane %v1358_v45, 2 }
 0x180   : > { %v1406_v6 = vsel %vm1389_vm14, %v1405_v48, %v1404_v33 }
 0x181   : > { %v1408_v52 = vsel %vm1392_vm15, %v1407_v51, %v1406_v6  ;;  %v1409_v53 = vrot.slane %v1359_v50, 1 }
 0x183   : > { %v1410_v54 = vsel %vm1395_vm0, %v1409_v53, %v1408_v52 }
 0x184   : > { %1414 = vst [vmem:[%s2012_s23 + $0x8] sm:$0xff] %v1410_v54 }
 0x185 PF: > { %s14_s17 = sadd.s32 1, %s1694_s17   ;;  %s2076_s15 = smov %s1690_s16 }
 0x186   : > { %p11_p5 = scmp.ge.s32.totalorder %s14_s17, 4   ;;  %s2077_s16 = smov %s2079_s18 }
 0x188   :  { %13 = sbr.rel (!%p11_p5) target bundleno = 2 (0x2), region = 66 }

// kernel: rawformer_s_forward.16
= control target key start
LH: loop header
LB: loop body
LE: loop exit
PB: predicated region body
PF: predicated region fallthrough
CT: control target
= control target key end

     0   :  { %s1364_s24 = smov 0   ;;  %s1366_s25 = smov 0   ;;  %s1529_s0 = inlined_call_operand.vmem [shape: bf16[2,72,18,8], index: 0, kind: input, shape index: {}, may-alias: {0,1,2}]   ;;  %s1530_s1 = inlined_call_operand.vmem [shape: bf16[2,72,18,8], index: 1, kind: input, shape index: {}, may-alias: {0,1,2}]   ;;  %s1531_s2 = inlined_call_operand.vmem [shape: bf16[2,72,18,8], index: 2, kind: input, shape index: {}, may-alias: {0,1,2}]   ;;  %s1532_s3 = inlined_call_operand.vmem [shape: bf16[9,8,128], index: 3, kind: input, shape index: {}]   ;;  %s1533_s4 = inlined_call_operand.vmem [shape: f32[1,128], index: 4, kind: input, shape index: {}]   ;;  %s1534_s5 = inlined_call_operand.vmem [shape: f32[1,128], index: 5, kind: input, shape index: {}]   ;;  %s1535_s6 = inlined_call_operand.vmem [shape: f32[1,128], index: 6, kind: input, shape index: {}]   ;;  %s1536_s7 = inlined_call_operand.vmem [shape: f32[2,70,16,128], index: 7, kind: output, shape index: {}]  }
   0x1   :  { %s1368_s26 = smov 0   ;;  %s1370_s27 = smov 0  }
   0x2   :  { %s1372_s28 = smov 0  }
   0x3 LB: > { %s26_s29 = sadd.s32 1, %s1312_s26  ;;  %s29_s30 = sadd.s32 1, %s1316_s27  ;;  %s1320_s28 = sphi %s1372_s28, %s17_s28   ;;  %s1316_s27 = sphi %s1370_s27, %s1540_s27   ;;  %s1312_s26 = sphi %s1368_s26, %s1539_s26   ;;  %s1308_s25 = sphi %s1366_s25, %s1538_s25   ;;  %s1304_s24 = sphi %s1364_s24, %s1537_s24  }
   0x4   : > { %p27_p0 = scmp.ge.s32.totalorder %s26_s29, 70  ;;  %p1117_p1 = scmp.ge.s32.totalorder %s1320_s28, 1 }
   0x5   : > { %p297_p2 = scmp.lt.s32.totalorder %s1320_s28, 141 }
   0x6   : > { %s1542_s29 = smov (%p27_p0, %s26_s29), 0  ;;  %s1544_s30 = smov (!%p27_p0, %s29_s30), %s1316_s27 }
   0x7   : > { %p298_p3 = pnand %p1117_p1, %p297_p2  ;;  %p31_p4 = scmp.ge.s32.totalorder %s1544_s30, 2 }
   0x8   : > { %v1123_v0 = vld [vmem:[%s1532_s3 + $0x4] sm:$0xf] (!%p298_p3)  ;;  %vm435_vm0 = vcmask (!%p298_p3), 1043456   ;;  %v407_v1 = vld [vmem:[%s1532_s3] sm:$0xf] (!%p298_p3)  ;;  %v1322_v2 = vmov (!%p298_p3), 0.0  }
   0x9   : > { %s1546_s30 = smov (%p31_p4, %s1544_s30), 0  ;;  %301 = sbr.rel (%p298_p3) target bundleno = 309 (0x135), region = 48 }
   0xa   : > { %1171 = vmatprep.subr.bf16.mxu0 (!%p298_p3), %v1322_v2  ;;  %v437_v3 = vsel (!%p298_p3), %vm435_vm0, %v1123_v0, 0  ;;  %1177 = vmatprep.subr.bf16.mxu1 (!%p298_p3), %v1322_v2  ;;  %v483_v4 = vsel (!%p298_p3), %vm435_vm0, %v407_v1, 0  ;;  %p357_p5 = scmp.lt.s32.totalorder (!%p298_p3), %s1308_s25, 1  ;;  %p359_p6 = scmp.lt.s32.totalorder (!%p298_p3), %s1304_s24, 71  ;;  %vm1323_vm1 = vmmov (!%p298_p3), 0   ;;  %vm431_vm2 = vcmask (!%p298_p3), 64512  }
   0xb   : > { %1172 = vmatpush3.bf16.msra.mxu0 (!%p298_p3), %v437_v3  ;;  %1178 = vmatpush3.bf16.msra.mxu1 (!%p298_p3), %v483_v4  ;;  %s366_s14 = sadd.s32 (!%p298_p3), 1, %s1304_s24  ;;  %s377_s16 = sadd.s32 (!%p298_p3), 2, %s1304_s24  ;;  %v1130_v5 = vld [vmem:[%s1532_s3 + $0xc] sm:$0xf] (!%p298_p3)  ;;  %v1128_v14 = vld [vmem:[%s1532_s3 + $0x8] sm:$0xf] (!%p298_p3) }
   0xc   : > { %1173 = vmatprep.mubr.msk.bf16.mxu0 (!%p298_p3), %vm1323_vm1, %v1322_v2  ;;  %1179 = vmatprep.mubr.msk.bf16.mxu1 (!%p298_p3), %vm1323_vm1, %v1322_v2  ;;  %p369_p7 = scmp.lt.s32.totalorder (!%p298_p3), %s366_s14, 71  ;;  %p380_p8 = scmp.lt.s32.totalorder (!%p298_p3), %s377_s16, 71  ;;  %v592_v8 = vsel (!%p298_p3), %vm435_vm0, %v1130_v5, 0  ;;  %vm418_vm3 = vsmask.f32 (!%p298_p3), 7424  ;;  %v536_v17 = vsel (!%p298_p3), %vm435_vm0, %v1128_v14, 0 }
   0xd   : > { %1183 = vmatprep.subr.bf16.mxu0 (!%p298_p3), %v1322_v2  ;;  %1189 = vmatprep.subr.bf16.mxu1 (!%p298_p3), %v1322_v2  ;;  %v1136_v15 = vld [vmem:[%s1532_s3 + $0x14] sm:$0xf] (!%p298_p3)  ;;  %vm528_vm4 = vcmask (!%p298_p3), 1046528   ;;  %v1133_v26 = vld [vmem:[%s1532_s3 + $0x10] sm:$0xf] (!%p298_p3)  ;;  %p390_p9 = scmp.lt.s32.totalorder (!%p298_p3), %s1304_s24, 69 }
   0xe   : > { %v711_v20 = vsel (!%p298_p3), %vm435_vm0, %v1136_v15, 0  ;;  %v1141_v35 = vld [vmem:[%s1532_s3 + $0x1c] sm:$0xf] (!%p298_p3)  ;;  %v657_v36 = vsel (!%p298_p3), %vm435_vm0, %v1133_v26, 0  ;;  %v1138_v44 = vld [vmem:[%s1532_s3 + $0x18] sm:$0xf] (!%p298_p3) }
   0xf   : > { %v832_v41 = vsel (!%p298_p3), %vm435_vm0, %v1141_v35, 0  ;;  %v767_v48 = vsel (!%p298_p3), %vm435_vm0, %v1138_v44, 0  ;;  %v1144_v50 = vld [vmem:[%s1532_s3 + $0x20] sm:$0xf] (!%p298_p3) }
  0x10   : > { %s1548_s25 = smov (!%p357_p5, %s1308_s25), 1  ;;  %s1550_s14 = smov (!%p369_p7, %s366_s14), 71  ;;  %v886_v51 = vsel %vm435_vm0, %v1144_v50, 0 }
  0x11   : > { %s360_s12 = scalar_select %p359_p6, %s1304_s24, 71 }
  0x12   : > { %s1421_s13 = smul.u32 216, %s1548_s25  ;;  %s1552_s16 = smov (!%p380_p8, %s377_s16), 71 }
  0x13   : > { %s1225_s15 = smul.u32 3, %s360_s12  ;;  %s1554_s24 = smov (!%p390_p9, %s1304_s24), 69 }
  0x14   : > { %s1227_s8 = smul.u32 3, %s1550_s14 }
  0x15   : > { %s363_s17 = sadd.s32 %s1421_s13, %s1225_s15  ;;  %s1228_s9 = smul.u32 3, %s1552_s16 }
  0x16   : > { %s1118_s18 = sshll.u32 %s363_s17, 2  ;;  %s373_s12 = sadd.s32 %s1227_s8, %s1421_s13 }
  0x17   : > { %s365_s23 = scalar_lea.vmem %s1529_s0, %s1118_s18  ;;  %s1119_s15 = sshll.u32 %s373_s12, 2 }
  0x18   : > { %v1272_v6 = vld [vmem:[%s365_s23] sm:$0xff]   ;;  %v1273_v7 = vld [vmem:[%s365_s23 + $0x8] ss:$0 sps:$4 sm:$0x11]   ;;  %s384_s14 = sadd.s32 %s1228_s9, %s1421_s13  ;;  %s375_s16 = scalar_lea.vmem %s1530_s1, %s1119_s15 }
  0x19   : > { %v420_v9 = vshrl.u32 %v1272_v6, 16  ;;  %v422_v10 = vshll.u32 %v1272_v6, 16  ;;  %v427_v11 = vshll.u32 %v1273_v7, 16  ;;  %1180 = vmatmul.mubr.msk.bf16.vlgmr.msra.gmra.mrb[0].mxu1 %vm431_vm2, %v1272_v6  ;;  %s1120_s21 = sshll.u32 %s384_s14, 2  ;;  %v1274_v18 = vld [vmem:[%s375_s16] sm:$0xff]   ;;  %v529_v22 = vrot.slane %v1272_v6, 1 }
  0x1a   : > { %1190 = vmatpush3.bf16.msra.mxu1 %v592_v8  ;;  %1191 = vmatprep.mubr.msk.bf16.mxu1 %vm1323_vm1, %v1322_v2  ;;  %s386_s8 = scalar_lea.vmem %s1531_s2, %s1120_s21  ;;  %v1275_v23 = vld [vmem:[%s375_s16 + $0x8] ss:$0 sps:$4 sm:$0x11]   ;;  %v530_v24 = vrot.slane %v1273_v7, 1  ;;  %v644_v25 = vshll.u32 %v1274_v18, 16  ;;  %v704_v27 = vrot.slane %v1274_v18, 1 }
  0x1b   : > { %v424_v12 = vrot.slane %v422_v10, 1  ;;  %v429_v13 = vrot.slane %v427_v11, 1  ;;  %1201 = vmatprep.subr.bf16.mxu1 %v1322_v2  ;;  %v1276_v21 = vld [vmem:[%s386_s8] sm:$0xff]   ;;  %v705_v28 = vrot.slane %v1275_v23, 1  ;;  %v642_v32 = vshrl.u32 %v1274_v18, 16  ;;  %s1229_s23 = smul.u32 140, %s1548_s25 }
  0x1c   : > { %v1277_v29 = vld [vmem:[%s386_s8 + $0x8] ss:$0 sps:$4 sm:$0x11]   ;;  %v819_v30 = vshll.u32 %v1276_v21, 16  ;;  %v531_v31 = vsel %vm528_vm4, %v529_v22, %v530_v24  ;;  %v646_v33 = vrot.slane %v644_v25, 1  ;;  %v649_v34 = vshll.u32 %v1275_v23, 16 }
  0x1d   : > { %v425_v16 = vor.u32 %v424_v12, %v420_v9  ;;  %v706_v37 = vsel %vm528_vm4, %v704_v27, %v705_v28  ;;  %v817_v38 = vshrl.u32 %v1276_v21, 16  ;;  %v824_v40 = vshll.u32 %v1277_v29, 16  ;;  %s1121_s8 = sshll.u32 %s1554_s24, 1 }
  0x1e   : > { %v821_v39 = vrot.slane %v819_v30, 1  ;;  %v647_v42 = vor.u32 %v646_v33, %v642_v32  ;;  %v651_v43 = vrot.slane %v649_v34, 1  ;;  %v879_v52 = vrot.slane %v1276_v21, 1  ;;  %s394_s13 = sadd.s32 %s1229_s23, %s1121_s8 }
  0x1f   : > { %v430_v19 = vsel %vm418_vm3, %v425_v16, %v429_v13  ;;  %v826_v46 = vrot.slane %v824_v40, 1  ;;  %v880_v53 = vrot.slane %v1277_v29, 1  ;;  %s1122_s9 = sshll.u32 %s394_s13, 3 }
  0x20   : > { %1174 = vmatmul.mubr.msk.bf16.vlgmr.msra.gmra.mrb[0].mxu0 %vm431_vm2, %v430_v19  ;;  %v822_v45 = vor.u32 %v821_v39, %v817_v38  ;;  %v652_v47 = vsel %vm418_vm3, %v647_v42, %v651_v43  ;;  %v1146_v38 = vld [vmem:[%s1533_s4] ss:$0 sm:$0xff]  ;;  %s396_s12 = scalar_lea.vmem %s1536_s7, %s1122_s9 }
  0x21   : > { %1184 = vmatpush3.bf16.msra.mxu0 %v536_v17  ;;  %1185 = vmatprep.mubr.msk.bf16.mxu0 %vm1323_vm1, %v1322_v2  ;;  %v881_v54 = vsel %vm528_vm4, %v879_v52, %v880_v53 }
  0x22   : > { %1195 = vmatprep.subr.bf16.mxu0 %v1322_v2  ;;  %1192 = vmatmul.mubr.msk.bf16.vlgmr.msra.gmra.mrb[4].mxu1 %vm431_vm2, %v1274_v18  ;;  %v827_v49 = vsel %vm418_vm3, %v822_v45, %v826_v46  ;;  %v1148_v46 = vld [vmem:[%s1535_s6] ss:$0 sm:$0xff] }
  0x23   : > { %1202 = vmatpush3.bf16.msra.mxu1 %v711_v20  ;;  %1203 = vmatprep.mubr.msk.bf16.mxu1 %vm1323_vm1, %v1322_v2 }
  0x24   : > { %1213 = vmatprep.subr.bf16.mxu1 %v1322_v2 }
  0x28   : > { %1186 = vmatmul.mubr.msk.bf16.vlgmr.msra.gmra.mrb[4].mxu0 %vm431_vm2, %v531_v31 }
  0x29   : > { %1196 = vmatpush3.bf16.msra.mxu0 %v657_v36  ;;  %1197 = vmatprep.mubr.msk.bf16.mxu0 %vm1323_vm1, %v1322_v2 }
  0x2a   : > { %1207 = vmatprep.subr.bf16.mxu0 %v1322_v2  ;;  %1204 = vmatmul.mubr.msk.bf16.vlgmr.msra.gmra.mrb[8].mxu1 %vm431_vm2, %v706_v37 }
  0x2b   : > { %1214 = vmatpush3.bf16.msra.mxu1 %v832_v41  ;;  %1215 = vmatprep.mubr.msk.bf16.mxu1 %vm1323_vm1, %v1322_v2  ;;  %v1147_v41 = vld [vmem:[%s1534_s5] ss:$0 sm:$0xff] }
  0x30   : > { %1198 = vmatmul.mubr.msk.bf16.vlgmr.msra.gmra.mrb[8].mxu0 %vm431_vm2, %v652_v47 }
  0x31   : > { %1208 = vmatpush3.bf16.msra.mxu0 %v767_v48  ;;  %1209 = vmatprep.mubr.msk.bf16.mxu0 %vm1323_vm1, %v1322_v2 }
  0x32   : > { %1219 = vmatprep.subr.bf16.mxu0 %v1322_v2  ;;  %1216 = vmatmul.mubr.msk.bf16.vlgmr.msra.gmra.mrb[12].mxu1 %vm431_vm2, %v827_v49 }
  0x38   : > { %1210 = vmatmul.mubr.msk.bf16.vlgmr.msra.gmra.mrb[12].mxu0 %vm431_vm2, %v1276_v21 }
  0x39   : > { %1220 = vmatpush3.bf16.msra.mxu0 %v886_v51  ;;  %1221 = vmatprep.mubr.msk.bf16.mxu0 %vm1323_vm1, %v1322_v2 }
  0x40   : > { %1222 = vmatmul.mubr.msk.bf16.vlgmr.msra.gmra.mrb[16].mxu0 %vm431_vm2, %v881_v54 }
  0xec   : > { %v519_v55 = vpop.f32.mrb[0].mxu1 }
  0xed   : > { %v1181_v56 = vpop.f32.mrb[1].mxu1 }
  0xee   : > { %v522_v57 = vpop.f32.mrb[2].mxu1 }
  0xef   : > { %v1182_v58 = vpop.f32.mrb[3].mxu1 }
  0xf3   : > { %v473_v59 = vpop.f32.mrb[0].mxu0 }
  0xf4   : > { %v520_v60 = vadd.f32 %v519_v55, %v473_v59  ;;  %v1175_v61 = vpop.f32.mrb[1].mxu0 }
  0xf5   : > { %v476_v62 = vpop.f32.mrb[2].mxu0  ;;  %v628_v63 = vpop.f32.mrb[4].mxu1 }
  0xf6   : > { %v523_v0 = vadd.f32 %v522_v57, %v476_v62  ;;  %v1176_v1 = vpop.f32.mrb[3].mxu0  ;;  %v1193_v3 = vpop.f32.mrb[5].mxu1 }
  0xf7   : > { %v631_v4 = vpop.f32.mrb[6].mxu1 }
  0xf8   : > { %v1194_v2 = vpop.f32.mrb[7].mxu1 }
  0xfb   : > { %v572_v5 = vpop.f32.mrb[4].mxu0 }
  0xfc   : > { %v579_v6 = vadd.f32 %v572_v5, %v520_v60  ;;  %v1187_v7 = vpop.f32.mrb[5].mxu0 }
  0xfd   : > { %v575_v8 = vpop.f32.mrb[6].mxu0  ;;  %v747_v9 = vpop.f32.mrb[8].mxu1 }
  0xfe   : > { %v580_v10 = vadd.f32 %v575_v8, %v523_v0  ;;  %v635_v11 = vadd.f32 %v628_v63, %v579_v6  ;;  %v1188_v12 = vpop.f32.mrb[7].mxu0  ;;  %v1205_v13 = vpop.f32.mrb[9].mxu1 }
  0xff   : > { %v750_v14 = vpop.f32.mrb[10].mxu1 }
 0x100   : > { %v636_v15 = vadd.f32 %v631_v4, %v580_v10  ;;  %v1206_v16 = vpop.f32.mrb[11].mxu1 }
 0x103   : > { %v693_v17 = vpop.f32.mrb[8].mxu0 }
 0x104   : > { %v700_v18 = vadd.f32 %v693_v17, %v635_v11  ;;  %v1199_v19 = vpop.f32.mrb[9].mxu0 }
 0x105   : > { %v696_v20 = vpop.f32.mrb[10].mxu0  ;;  %v868_v21 = vpop.f32.mrb[12].mxu1 }
 0x106   : > { %v701_v22 = vadd.f32 %v696_v20, %v636_v15  ;;  %v754_v23 = vadd.f32 %v747_v9, %v700_v18  ;;  %v1200_v24 = vpop.f32.mrb[11].mxu0  ;;  %v1217_v25 = vpop.f32.mrb[13].mxu1 }
 0x107   : > { %v871_v26 = vpop.f32.mrb[14].mxu1 }
 0x108   : > { %v755_v27 = vadd.f32 %v750_v14, %v701_v22  ;;  %v1218_v28 = vpop.f32.mrb[15].mxu1 }
 0x10b   : > { %v803_v29 = vpop.f32.mrb[12].mxu0 }
 0x10c   : > { %v810_v30 = vadd.f32 %v803_v29, %v754_v23  ;;  %v1211_v31 = vpop.f32.mrb[13].mxu0 }
 0x10d   : > { %v806_v32 = vpop.f32.mrb[14].mxu0 }
 0x10e   : > { %v811_v33 = vadd.f32 %v806_v32, %v755_v27  ;;  %v875_v34 = vadd.f32 %v868_v21, %v810_v30  ;;  %v1212_v35 = vpop.f32.mrb[15].mxu0 }
 0x110   : > { %v876_v36 = vadd.f32 %v871_v26, %v811_v33 }
 0x113   : > { %v922_v37 = vpop.f32.mrb[16].mxu0 }
 0x114   : > { %v929_v39 = vadd.f32 %v922_v37, %v875_v34  ;;  %v1223_v40 = vpop.f32.mrb[17].mxu0 }
 0x115   : > { %v925_v42 = vpop.f32.mrb[18].mxu0 }
 0x116   : > { %v938_v43 = vadd.f32 %v1146_v38, %v929_v39  ;;  %v930_v44 = vadd.f32 %v925_v42, %v876_v36  ;;  %v1224_v45 = vpop.f32.mrb[19].mxu0 }
 0x118   : > { %v947_v47 = vmul.f32 %v1147_v41, %v938_v43  ;;  %v939_v48 = vadd.f32 %v1146_v38, %v930_v44 }
 0x11a   : > { %v956_v49 = vadd.f32 %v1148_v46, %v947_v47  ;;  %v948_v50 = vmul.f32 %v1147_v41, %v939_v48 }
 0x11c   : > { %v960_v51 = vmin.f32 %v956_v49, 0.0  ;;  %v957_v52 = vadd.f32 %v1148_v46, %v948_v50  ;;  %vm958_vm5 = vcmp.gt.f32.partialorder %v956_v49, 0.0 }
 0x11e   : > { %v962_v53 = vmul.f32 1.442695, %v960_v51  ;;  %v961_v54 = vmin.f32 %v957_v52, 0.0  ;;  %vm959_vm6 = vcmp.gt.f32.partialorder %v957_v52, 0.0 }
 0x120   : > { %1278 = vpow2.f32 %v962_v53  ;;  %v964_v55 = vmul.f32 1.442695, %v961_v54 }
 0x122   : > { %1280 = vpow2.f32 %v964_v55 }
 0x12a   : > { %v1279_v56 = vpop.eup %1278 }
 0x12b   : > { %v1149_v57 = vadd.f32 -1.0, %v1279_v56 }
 0x12c   : > { %v1281_v58 = vpop.eup %1280 }
 0x12d   : > { %v968_v59 = vmul.f32 1.6732632, %v1149_v57  ;;  %v1150_v60 = vadd.f32 -1.0, %v1281_v58 }
 0x12f   : > { %v970_v61 = vsel %vm958_vm5, %v956_v49, %v968_v59  ;;  %v969_v62 = vmul.f32 1.6732632, %v1150_v60 }
 0x130   : > { %v972_v63 = vmul.f32 1.050701, %v970_v61 }
 0x131   : > { %v971_v0 = vsel %vm959_vm6, %v957_v52, %v969_v62 }
 0x132   : > { %974 = vst [vmem:[%s396_s12] sm:$0xff] %v972_v63  ;;  %v973_v1 = vmul.f32 1.050701, %v971_v0 }
 0x134   : > { %975 = vst [vmem:[%s396_s12 + $0x8] sm:$0xff] %v973_v1 }
 0x135 PF: > { %s17_s28 = sadd.s32 1, %s1320_s28   ;;  %s1537_s24 = smov %s1312_s26 }
 0x136   : > { %p14_p10 = scmp.ge.s32.totalorder %s17_s28, 142   ;;  %s1538_s25 = smov %s1316_s27 }
 0x137   : > { %s1539_s26 = smov %s1542_s29  ;;  %s1540_s27 = smov %s1546_s30 }
 0x138   :  { %16 = sbr.rel (!%p14_p10) target bundleno = 3 (0x3), region = 92 }

// kernel: rawformer_s_forward.17
= control target key start
LH: loop header
LB: loop body
LE: loop exit
PB: predicated region body
PF: predicated region fallthrough
CT: control target
= control target key end

     0   :  { %s2331_s24 = smov 0   ;;  %s2333_s25 = smov 0   ;;  %s2754_s0 = inlined_call_operand.vmem [shape: bf16[2,72,18,128], index: 0, kind: input, shape index: {}, may-alias: {0,1,2}]   ;;  %s2755_s1 = inlined_call_operand.vmem [shape: bf16[2,72,18,128], index: 1, kind: input, shape index: {}, may-alias: {0,1,2}]   ;;  %s2756_s2 = inlined_call_operand.vmem [shape: bf16[2,72,18,128], index: 2, kind: input, shape index: {}, may-alias: {0,1,2}]   ;;  %s2757_s3 = inlined_call_operand.vmem [shape: bf16[9,128,128], index: 3, kind: input, shape index: {}]   ;;  %s2758_s4 = inlined_call_operand.vmem [shape: f32[1,128], index: 4, kind: input, shape index: {}]   ;;  %s2759_s5 = inlined_call_operand.vmem [shape: f32[1,128], index: 5, kind: input, shape index: {}]   ;;  %s2760_s6 = inlined_call_operand.vmem [shape: f32[1,128], index: 6, kind: input, shape index: {}]   ;;  %s2761_s7 = inlined_call_operand.vmem [shape: f32[2,70,16,128], index: 7, kind: output, shape index: {}]  }
   0x1   :  { %s2335_s26 = smov 0   ;;  %s2337_s27 = smov 0  }
   0x2   :  { %s2339_s28 = smov 0  }
   0x3 LB: > { %s26_s29 = sadd.s32 1, %s2279_s26  ;;  %s29_s30 = sadd.s32 1, %s2283_s27  ;;  %s2287_s28 = sphi %s2339_s28, %s17_s28   ;;  %s2283_s27 = sphi %s2337_s27, %s2765_s27   ;;  %s2279_s26 = sphi %s2335_s26, %s2764_s26   ;;  %s2275_s25 = sphi %s2333_s25, %s2763_s25   ;;  %s2271_s24 = sphi %s2331_s24, %s2762_s24  }
   0x4   : > { %p27_p0 = scmp.ge.s32.totalorder %s26_s29, 70  ;;  %p1640_p1 = scmp.ge.s32.totalorder %s2287_s28, 1 }
   0x5   : > { %p297_p2 = scmp.lt.s32.totalorder %s2287_s28, 141 }
   0x6   : > { %s2767_s29 = smov (%p27_p0, %s26_s29), 0  ;;  %s2769_s30 = smov (!%p27_p0, %s29_s30), %s2283_s27 }
   0x7   : > { %p298_p3 = pnand %p1640_p1, %p297_p2  ;;  %p31_p4 = scmp.ge.s32.totalorder %s2769_s30, 2 }
   0x8   : > { %v2167_v0 = vld [vmem:[%s2757_s3 + $0x40] sm:$0xff] (!%p298_p3)   ;;  %v2289_v1 = vmov (!%p298_p3), 0.0   ;;  %v2169_v3 = vld [vmem:[%s2757_s3 + $0x48] sm:$0xff] (!%p298_p3)   ;;  %vm2290_vm0 = vmmov (!%p298_p3), 0   ;;  %p357_p5 = scmp.lt.s32.totalorder (!%p298_p3), %s2275_s25, 1  ;;  %p359_p6 = scmp.lt.s32.totalorder (!%p298_p3), %s2271_s24, 71 }
   0x9   : > { %s2771_s30 = smov (%p31_p4, %s2769_s30), 0  ;;  %301 = sbr.rel (%p298_p3) target bundleno = 415 (0x19f), region = 48 }
   0xa   : > { %1940 = vmatprep.subr.bf16.mxu0 (!%p298_p3), %v2289_v1  ;;  %1960 = vmatprep.subr.bf16.mxu1 (!%p298_p3), %v2289_v1  ;;  %v2168_v2 = vld [vmem:[%s2757_s3] sm:$0xff] (!%p298_p3)   ;;  %v2170_v4 = vld [vmem:[%s2757_s3 + $0x8] sm:$0xff] (!%p298_p3)   ;;  %v2171_v5 = vld [vmem:[%s2757_s3 + $0x50] sm:$0xff] (!%p298_p3)   ;;  %s366_s13 = sadd.s32 (!%p298_p3), 1, %s2271_s24  ;;  %vm448_vm1 = vsmask.f32 (!%p298_p3), 7424 }
   0xb   : > { %1941 = vmatpush3.bf16.msra.mxu0 (!%p298_p3), %v2167_v0  ;;  %1956 = vmatprep.mubr.msk.bf16.mxu0 (!%p298_p3), %vm2290_vm0, %v2289_v1  ;;  %v2172_v6 = vld [vmem:[%s2757_s3 + $0x10] sm:$0xff] (!%p298_p3)   ;;  %v2173_v7 = vld [vmem:[%s2757_s3 + $0x58] sm:$0xff] (!%p298_p3)   ;;  %v2175_v9 = vld [vmem:[%s2757_s3 + $0x60] sm:$0xff] (!%p298_p3)   ;;  %p369_p7 = scmp.lt.s32.totalorder (!%p298_p3), %s366_s13, 71  ;;  %vm658_vm2 = vcmask (!%p298_p3), 1046528   ;;  %p390_p9 = scmp.lt.s32.totalorder (!%p298_p3), %s2271_s24, 69 }
   0xc   : > { %1961 = vmatpush3.bf16.msra.mxu1 (!%p298_p3), %v2168_v2  ;;  %1942 = vmatprep.subr.bf16.mxu0 (!%p298_p3), %v2289_v1  ;;  %v2174_v8 = vld [vmem:[%s2757_s3 + $0x18] sm:$0xff] (!%p298_p3)   ;;  %v2176_v10 = vld [vmem:[%s2757_s3 + $0x20] sm:$0xff] (!%p298_p3)   ;;  %v2177_v13 = vld [vmem:[%s2757_s3 + $0x68] sm:$0xff] (!%p298_p3)  }
   0xd   : > { %1962 = vmatprep.subr.bf16.mxu1 (!%p298_p3), %v2289_v1  ;;  %1976 = vmatprep.mubr.msk.bf16.mxu1 (!%p298_p3), %vm2290_vm0, %v2289_v1  ;;  %v2178_v14 = vld [vmem:[%s2757_s3 + $0x28] sm:$0xff] (!%p298_p3)   ;;  %v2179_v16 = vld [vmem:[%s2757_s3 + $0x70] sm:$0xff] (!%p298_p3)   ;;  %v2181_v21 = vld [vmem:[%s2757_s3 + $0x78] sm:$0xff] (!%p298_p3)  }
   0xe   : > { %v2180_v20 = vld [vmem:[%s2757_s3 + $0x30] sm:$0xff] (!%p298_p3)   ;;  %v2182_v22 = vld [vmem:[%s2757_s3 + $0x38] sm:$0xff] (!%p298_p3)   ;;  %v2185_v26 = vld [vmem:[%s2757_s3 + $0x80] sm:$0xff] (!%p298_p3)  }
   0xf   : > { %1943 = vmatpush3.bf16.msra.mxu0 (!%p298_p3), %v2169_v3  ;;  %v2186_v27 = vld [vmem:[%s2757_s3 + $0xc0] sm:$0xff] (!%p298_p3)   ;;  %v2187_v28 = vld [vmem:[%s2757_s3 + $0x88] sm:$0xff] (!%p298_p3)   ;;  %v2189_v30 = vld [vmem:[%s2757_s3 + $0x90] sm:$0xff] (!%p298_p3)  }
  0x10   : > { %s2773_s25 = smov (!%p357_p5, %s2275_s25), 1  ;;  %1963 = vmatpush3.bf16.msra.mxu1 %v2170_v4  ;;  %1944 = vmatprep.subr.bf16.mxu0 %v2289_v1  ;;  %s2775_s13 = smov (!%p369_p7, %s366_s13), 71  ;;  %v2188_v29 = vld [vmem:[%s2757_s3 + $0xc8] sm:$0xff]   ;;  %v2190_v31 = vld [vmem:[%s2757_s3 + $0xd0] sm:$0xff]   ;;  %v2191_v32 = vld [vmem:[%s2757_s3 + $0x98] sm:$0xff]  }
  0x11   : > { %s360_s16 = scalar_select %p359_p6, %s2271_s24, 71  ;;  %1964 = vmatprep.subr.bf16.mxu1 %v2289_v1  ;;  %v2192_v33 = vld [vmem:[%s2757_s3 + $0xd8] sm:$0xff]   ;;  %v2193_v34 = vld [vmem:[%s2757_s3 + $0xa0] sm:$0xff]   ;;  %v2195_v36 = vld [vmem:[%s2757_s3 + $0xa8] sm:$0xff]  }
  0x12   : > { %s2395_s19 = smul.u32 216, %s2773_s25  ;;  %v2194_v35 = vld [vmem:[%s2757_s3 + $0xe0] sm:$0xff]   ;;  %v2196_v37 = vld [vmem:[%s2757_s3 + $0xe8] sm:$0xff]   ;;  %v2197_v38 = vld [vmem:[%s2757_s3 + $0xb0] sm:$0xff]  }
  0x13   : > { %s2120_s22 = smul.u32 3, %s360_s16  ;;  %1945 = vmatpush3.bf16.msra.mxu0 %v2171_v5  ;;  %v2198_v39 = vld [vmem:[%s2757_s3 + $0xf0] sm:$0xff]   ;;  %v2199_v41 = vld [vmem:[%s2757_s3 + $0xb8] sm:$0xff]   ;;  %v2201_v44 = vld [vmem:[%s2757_s3 + $0x100] sm:$0xff]  }
  0x14   : > { %1965 = vmatpush3.bf16.msra.mxu1 %v2172_v6  ;;  %1946 = vmatprep.subr.bf16.mxu0 %v2289_v1  ;;  %s2122_s15 = smul.u32 3, %s2775_s13  ;;  %v2200_v43 = vld [vmem:[%s2757_s3 + $0xf8] sm:$0xff]   ;;  %v2203_v47 = vld [vmem:[%s2757_s3 + $0x140] sm:$0xff]   ;;  %v2204_v48 = vld [vmem:[%s2757_s3 + $0x108] sm:$0xff]  }
  0x15   : > { %s363_s23 = sadd.s32 %s2395_s19, %s2120_s22  ;;  %1966 = vmatprep.subr.bf16.mxu1 %v2289_v1  ;;  %v2205_v49 = vld [vmem:[%s2757_s3 + $0x148] sm:$0xff]   ;;  %v2206_v50 = vld [vmem:[%s2757_s3 + $0x110] sm:$0xff]   ;;  %v2208_v52 = vld [vmem:[%s2757_s3 + $0x118] sm:$0xff]   ;;  %s2124_s17 = smul.u32 140, %s2773_s25 }
  0x16   : > { %s1641_s12 = sshll.u32 %s363_s23, 2  ;;  %s373_s21 = sadd.s32 %s2122_s15, %s2395_s19  ;;  %v2207_v51 = vld [vmem:[%s2757_s3 + $0x150] sm:$0xff]   ;;  %v2209_v53 = vld [vmem:[%s2757_s3 + $0x158] sm:$0xff]   ;;  %v2210_v54 = vld [vmem:[%s2757_s3 + $0x120] sm:$0xff]  }
  0x17   : > { %1947 = vmatpush3.bf16.msra.mxu0 %v2173_v7  ;;  %s365_s18 = scalar_lea.vmem %s2754_s0, %s1641_s12  ;;  %s1642_s9 = sshll.u32 %s373_s21, 2  ;;  %v2211_v55 = vld [vmem:[%s2757_s3 + $0x160] sm:$0xff]   ;;  %v2212_v56 = vld [vmem:[%s2757_s3 + $0x128] sm:$0xff]   ;;  %v2214_v60 = vld [vmem:[%s2757_s3 + $0x130] sm:$0xff]  }
  0x18   : > { %1967 = vmatpush3.bf16.msra.mxu1 %v2174_v8  ;;  %1948 = vmatprep.subr.bf16.mxu0 %v2289_v1  ;;  %v2423_v11 = vld [vmem:[%s365_s18] sm:$0xff]   ;;  %v2425_v12 = vld [vmem:[%s365_s18 + $0x8] ss:$0 sps:$4 sm:$0x11]   ;;  %s2471_s15 = scalar_lea.vmem %s2755_s1, %s1642_s9  ;;  %s377_s12 = sadd.s32 2, %s2271_s24  ;;  %v2215_v0 = vld [vmem:[%s2757_s3 + $0x170] sm:$0xff]  }
  0x19   : > { %1968 = vmatprep.subr.bf16.mxu1 %v2289_v1  ;;  %v452_v15 = vshll.u32 %v2423_v11, 16  ;;  %v450_v17 = vshrl.u32 %v2423_v11, 16  ;;  %v457_v19 = vshll.u32 %v2425_v12, 16  ;;  %p380_p8 = scmp.lt.s32.totalorder %s377_s12, 71  ;;  %v659_v40 = vrot.slane %v2423_v11, 1  ;;  %v2539_v46 = vld [vmem:[%s2471_s15] sm:$0xff]  }
  0x1a   : > { %v660_v42 = vrot.slane %v2425_v12, 1  ;;  %v2218_v57 = vld [vmem:[%s2471_s15 + $0x8] ss:$0 sps:$4 sm:$0x11]   ;;  %v891_v58 = vshll.u32 %v2539_v46, 16  ;;  %v889_v61 = vshrl.u32 %v2539_v46, 16 }
  0x1b   : > { %1949 = vmatpush3.bf16.msra.mxu0 %v2175_v9  ;;  %v454_v18 = vrot.slane %v452_v15, 1  ;;  %v459_v24 = vrot.slane %v457_v19, 1  ;;  %s2777_s12 = smov (!%p380_p8, %s377_s12), 71  ;;  %v2213_v59 = vld [vmem:[%s2757_s3 + $0x168] sm:$0xff]   ;;  %v896_v63 = vshll.u32 %v2218_v57, 16  ;;  %v2216_v2 = vld [vmem:[%s2757_s3 + $0x138] sm:$0xff]  }
  0x1c   : > { %1969 = vmatpush3.bf16.msra.mxu1 %v2176_v10  ;;  %1950 = vmatprep.subr.bf16.mxu0 %v2289_v1  ;;  %s2123_s9 = smul.u32 3, %s2777_s12  ;;  %v661_v45 = vsel %vm658_vm2, %v659_v40, %v660_v42  ;;  %v893_v62 = vrot.slane %v891_v58, 1  ;;  %v2217_v5 = vld [vmem:[%s2757_s3 + $0x178] sm:$0xff]   ;;  %v1009_v6 = vrot.slane %v2539_v46, 1  ;;  %v1010_v7 = vrot.slane %v2218_v57, 1  ;;  %v2219_v9 = vld [vmem:[%s2757_s3 + $0x180] sm:$0xff]  }
  0x1d   : > { %1970 = vmatprep.subr.bf16.mxu1 %v2289_v1  ;;  %v455_v23 = vor.u32 %v454_v18, %v450_v17  ;;  %v898_v4 = vrot.slane %v896_v63, 1  ;;  %v2221_v12 = vld [vmem:[%s2757_s3 + $0x188] sm:$0xff]   ;;  %v2224_v15 = vld [vmem:[%s2757_s3 + $0x1d0] sm:$0xff]   ;;  %v2226_v17 = vld [vmem:[%s2757_s3 + $0x1d8] sm:$0xff]   ;;  %s2779_s24 = smov (!%p390_p9, %s2271_s24), 69 }
  0x1e   : > { %s384_s12 = sadd.s32 %s2123_s9, %s2395_s19  ;;  %v894_v3 = vor.u32 %v893_v62, %v889_v61  ;;  %v1011_v10 = vsel %vm658_vm2, %v1009_v6, %v1010_v7  ;;  %v2227_v18 = vld [vmem:[%s2757_s3 + $0x1a0] sm:$0xff]   ;;  %v2242_v40 = vld [vmem:[%s2757_s3 + $0x228] sm:$0xff]   ;;  %v2244_v42 = vld [vmem:[%s2757_s3 + $0x238] sm:$0xff]   ;;  %s1644_s18 = sshll.u32 %s2779_s24, 1 }
  0x1f   : > { %1951 = vmatpush3.bf16.msra.mxu0 %v2177_v13  ;;  %v460_v25 = vsel %vm448_vm1, %v455_v23, %v459_v24  ;;  %s1643_s13 = sshll.u32 %s384_s12, 2  ;;  %v2222_v13 = vld [vmem:[%s2757_s3 + $0x1c8] sm:$0xff]   ;;  %v2228_v19 = vld [vmem:[%s2757_s3 + $0x1e0] sm:$0xff]   ;;  %s394_s15 = sadd.s32 %s2124_s17, %s1644_s18 }
  0x20   : > { %1971 = vmatpush3.bf16.msra.mxu1 %v2178_v14  ;;  %1952 = vmatprep.subr.bf16.mxu0 %v2289_v1  ;;  %s2557_s11 = scalar_lea.vmem %s2756_s2, %s1643_s13  ;;  %v899_v8 = vsel %vm448_vm1, %v894_v3, %v898_v4  ;;  %v2223_v14 = vld [vmem:[%s2757_s3 + $0x190] sm:$0xff]   ;;  %s1645_s12 = sshll.u32 %s394_s15, 3 }
  0x21   : > { %1972 = vmatprep.subr.bf16.mxu1 %v2289_v1  ;;  %v2237_v23 = vld [vmem:[%s2557_s11 + $0x8] ss:$0 sps:$4 sm:$0x11]  }
  0x23   : > { %1953 = vmatpush3.bf16.msra.mxu0 %v2179_v16  ;;  %v2225_v16 = vld [vmem:[%s2757_s3 + $0x198] sm:$0xff]  }
  0x24   : > { %1973 = vmatpush3.bf16.msra.mxu1 %v2180_v20  ;;  %1954 = vmatprep.subr.bf16.mxu0 %v2289_v1  ;;  %v2235_v20 = vld [vmem:[%s2557_s11] sm:$0xff]   ;;  %s396_s11 = scalar_lea.vmem %s2761_s7, %s1645_s12 }
  0x25   : > { %1974 = vmatprep.subr.bf16.mxu1 %v2289_v1  ;;  %v1241_v24 = vshll.u32 %v2235_v20, 16 }
  0x27   : > { %1955 = vmatpush3.bf16.msra.mxu0 %v2181_v21  ;;  %v2229_v21 = vld [vmem:[%s2757_s3 + $0x1a8] sm:$0xff]  }
  0x28   : > { %1975 = vmatpush3.bf16.msra.mxu1 %v2182_v22  ;;  %1980 = vmatprep.subr.bf16.mxu0 %v2289_v1  ;;  %v2230_v22 = vld [vmem:[%s2757_s3 + $0x1e8] sm:$0xff]  }
  0x29   : > { %2000 = vmatprep.subr.bf16.mxu1 %v2289_v1 }
  0x2a   : > { %1957 = vmatmul.mubr.bf16.vlgmr.msra.gmra.mrb[0].mxu0 %v460_v25  ;;  %v2231_v25 = vld [vmem:[%s2757_s3 + $0x1b0] sm:$0xff]  }
  0x2b   : > { %1977 = vmatmul.mubr.bf16.vlgmr.msra.gmra.mrb[0].mxu1 %v2423_v11  ;;  %1981 = vmatpush3.bf16.msra.mxu0 %v2185_v26  ;;  %v2220_v11 = vld [vmem:[%s2757_s3 + $0x1c0] sm:$0xff]   ;;  %v2232_v26 = vld [vmem:[%s2757_s3 + $0x1f0] sm:$0xff]  }
  0x2c   : > { %2001 = vmatpush3.bf16.msra.mxu1 %v2186_v27  ;;  %1982 = vmatprep.subr.bf16.mxu0 %v2289_v1  ;;  %v1239_v27 = vshrl.u32 %v2235_v20, 16 }
  0x2d   : > { %2002 = vmatprep.subr.bf16.mxu1 %v2289_v1  ;;  %1996 = vmatprep.mubr.msk.bf16.mxu0 %vm2290_vm0, %v2289_v1 }
  0x2e   : > { %2016 = vmatprep.mubr.msk.bf16.mxu1 %vm2290_vm0, %v2289_v1 }
  0x2f   : > { %1983 = vmatpush3.bf16.msra.mxu0 %v2187_v28  ;;  %v1243_v28 = vrot.slane %v1241_v24, 1 }
  0x30   : > { %2003 = vmatpush3.bf16.msra.mxu1 %v2188_v29  ;;  %1984 = vmatprep.subr.bf16.mxu0 %v2289_v1  ;;  %v1246_v29 = vshll.u32 %v2237_v23, 16 }
  0x31   : > { %2004 = vmatprep.subr.bf16.mxu1 %v2289_v1 }
  0x33   : > { %1985 = vmatpush3.bf16.msra.mxu0 %v2189_v30  ;;  %v2233_v30 = vld [vmem:[%s2757_s3 + $0x1b8] sm:$0xff]  }
  0x34   : > { %2005 = vmatpush3.bf16.msra.mxu1 %v2190_v31  ;;  %1986 = vmatprep.subr.bf16.mxu0 %v2289_v1  ;;  %v2234_v31 = vld [vmem:[%s2757_s3 + $0x1f8] sm:$0xff]  }
  0x35   : > { %2006 = vmatprep.subr.bf16.mxu1 %v2289_v1 }
  0x37   : > { %1987 = vmatpush3.bf16.msra.mxu0 %v2191_v32  ;;  %v1244_v32 = vor.u32 %v1243_v28, %v1239_v27 }
  0x38   : > { %2007 = vmatpush3.bf16.msra.mxu1 %v2192_v33  ;;  %1988 = vmatprep.subr.bf16.mxu0 %v2289_v1  ;;  %v1248_v33 = vrot.slane %v1246_v29, 1  ;;  %v1852_v29 = vld [vmem:[%s2758_s4] ss:$0 sm:$0xff] }
  0x39   : > { %2008 = vmatprep.subr.bf16.mxu1 %v2289_v1 }
  0x3b   : > { %1989 = vmatpush3.bf16.msra.mxu0 %v2193_v34  ;;  %v2236_v34 = vld [vmem:[%s2757_s3 + $0x200] sm:$0xff]  }
  0x3c   : > { %2009 = vmatpush3.bf16.msra.mxu1 %v2194_v35  ;;  %1990 = vmatprep.subr.bf16.mxu0 %v2289_v1  ;;  %v1249_v35 = vsel %vm448_vm1, %v1244_v32, %v1248_v33  ;;  %v1853_v32 = vld [vmem:[%s2759_s5] ss:$0 sm:$0xff] }
  0x3d   : > { %2010 = vmatprep.subr.bf16.mxu1 %v2289_v1 }
  0x3f   : > { %1991 = vmatpush3.bf16.msra.mxu0 %v2195_v36  ;;  %v2238_v36 = vld [vmem:[%s2757_s3 + $0x208] sm:$0xff]  }
  0x40   : > { %2011 = vmatpush3.bf16.msra.mxu1 %v2196_v37  ;;  %1992 = vmatprep.subr.bf16.mxu0 %v2289_v1  ;;  %v2239_v37 = vld [vmem:[%s2757_s3 + $0x210] sm:$0xff]  }
  0x41   : > { %2012 = vmatprep.subr.bf16.mxu1 %v2289_v1 }
  0x43   : > { %1993 = vmatpush3.bf16.msra.mxu0 %v2197_v38  ;;  %v2240_v38 = vld [vmem:[%s2757_s3 + $0x218] sm:$0xff]  }
  0x44   : > { %2013 = vmatpush3.bf16.msra.mxu1 %v2198_v39  ;;  %1994 = vmatprep.subr.bf16.mxu0 %v2289_v1  ;;  %v2241_v39 = vld [vmem:[%s2757_s3 + $0x220] sm:$0xff]  }
  0x45   : > { %2014 = vmatprep.subr.bf16.mxu1 %v2289_v1 }
  0x47   : > { %1995 = vmatpush3.bf16.msra.mxu0 %v2199_v41  ;;  %v2243_v41 = vld [vmem:[%s2757_s3 + $0x230] sm:$0xff]  }
  0x48   : > { %2015 = vmatpush3.bf16.msra.mxu1 %v2200_v43  ;;  %2020 = vmatprep.subr.bf16.mxu0 %v2289_v1  ;;  %v1359_v43 = vrot.slane %v2235_v20, 1 }
  0x49   : > { %2040 = vmatprep.subr.bf16.mxu1 %v2289_v1 }
  0x4a   : > { %1997 = vmatmul.mubr.bf16.vlgmr.msra.gmra.mrb[4].mxu0 %v661_v45 }
  0x4b   : > { %2021 = vmatpush3.bf16.msra.mxu0 %v2201_v44  ;;  %2017 = vmatmul.mubr.bf16.vlgmr.msra.gmra.mrb[4].mxu1 %v2539_v46  ;;  %v1360_v44 = vrot.slane %v2237_v23, 1 }
  0x4c   : > { %2041 = vmatpush3.bf16.msra.mxu1 %v2203_v47  ;;  %2022 = vmatprep.subr.bf16.mxu0 %v2289_v1 }
  0x4d   : > { %2042 = vmatprep.subr.bf16.mxu1 %v2289_v1  ;;  %2036 = vmatprep.mubr.msk.bf16.mxu0 %vm2290_vm0, %v2289_v1  ;;  %v1361_v45 = vsel %vm658_vm2, %v1359_v43, %v1360_v44 }
  0x4e   : > { %2056 = vmatprep.mubr.msk.bf16.mxu1 %vm2290_vm0, %v2289_v1 }
  0x4f   : > { %2023 = vmatpush3.bf16.msra.mxu0 %v2204_v48 }
  0x50   : > { %2043 = vmatpush3.bf16.msra.mxu1 %v2205_v49  ;;  %2024 = vmatprep.subr.bf16.mxu0 %v2289_v1 }
  0x51   : > { %2044 = vmatprep.subr.bf16.mxu1 %v2289_v1 }
  0x53   : > { %2025 = vmatpush3.bf16.msra.mxu0 %v2206_v50 }
  0x54   : > { %2045 = vmatpush3.bf16.msra.mxu1 %v2207_v51  ;;  %2026 = vmatprep.subr.bf16.mxu0 %v2289_v1 }
  0x55   : > { %2046 = vmatprep.subr.bf16.mxu1 %v2289_v1 }
  0x57   : > { %2027 = vmatpush3.bf16.msra.mxu0 %v2208_v52 }
  0x58   : > { %2047 = vmatpush3.bf16.msra.mxu1 %v2209_v53  ;;  %2028 = vmatprep.subr.bf16.mxu0 %v2289_v1 }
  0x59   : > { %2048 = vmatprep.subr.bf16.mxu1 %v2289_v1 }
  0x5b   : > { %2029 = vmatpush3.bf16.msra.mxu0 %v2210_v54 }
  0x5c   : > { %2049 = vmatpush3.bf16.msra.mxu1 %v2211_v55  ;;  %2030 = vmatprep.subr.bf16.mxu0 %v2289_v1 }
  0x5d   : > { %2050 = vmatprep.subr.bf16.mxu1 %v2289_v1 }
  0x5f   : > { %2031 = vmatpush3.bf16.msra.mxu0 %v2212_v56 }
  0x60   : > { %2051 = vmatpush3.bf16.msra.mxu1 %v2213_v59  ;;  %2032 = vmatprep.subr.bf16.mxu0 %v2289_v1 }
  0x61   : > { %2052 = vmatprep.subr.bf16.mxu1 %v2289_v1 }
  0x63   : > { %2033 = vmatpush3.bf16.msra.mxu0 %v2214_v60 }
  0x64   : > { %2053 = vmatpush3.bf16.msra.mxu1 %v2215_v0  ;;  %2034 = vmatprep.subr.bf16.mxu0 %v2289_v1 }
  0x65   : > { %2054 = vmatprep.subr.bf16.mxu1 %v2289_v1 }
  0x67   : > { %2035 = vmatpush3.bf16.msra.mxu0 %v2216_v2 }
  0x68   : > { %2055 = vmatpush3.bf16.msra.mxu1 %v2217_v5  ;;  %2060 = vmatprep.subr.bf16.mxu0 %v2289_v1 }
  0x69   : > { %2080 = vmatprep.subr.bf16.mxu1 %v2289_v1 }
  0x6a   : > { %2037 = vmatmul.mubr.bf16.vlgmr.msra.gmra.mrb[8].mxu0 %v899_v8 }
  0x6b   : > { %2061 = vmatpush3.bf16.msra.mxu0 %v2219_v9  ;;  %2057 = vmatmul.mubr.bf16.vlgmr.msra.gmra.mrb[8].mxu1 %v1011_v10 }
  0x6c   : > { %2081 = vmatpush3.bf16.msra.mxu1 %v2220_v11  ;;  %2062 = vmatprep.subr.bf16.mxu0 %v2289_v1 }
  0x6d   : > { %2082 = vmatprep.subr.bf16.mxu1 %v2289_v1  ;;  %2076 = vmatprep.mubr.msk.bf16.mxu0 %vm2290_vm0, %v2289_v1 }
  0x6e   : > { %2096 = vmatprep.mubr.msk.bf16.mxu1 %vm2290_vm0, %v2289_v1 }
  0x6f   : > { %2063 = vmatpush3.bf16.msra.mxu0 %v2221_v12 }
  0x70   : > { %2083 = vmatpush3.bf16.msra.mxu1 %v2222_v13  ;;  %2064 = vmatprep.subr.bf16.mxu0 %v2289_v1 }
  0x71   : > { %2084 = vmatprep.subr.bf16.mxu1 %v2289_v1 }
  0x73   : > { %2065 = vmatpush3.bf16.msra.mxu0 %v2223_v14 }
  0x74   : > { %2085 = vmatpush3.bf16.msra.mxu1 %v2224_v15  ;;  %2066 = vmatprep.subr.bf16.mxu0 %v2289_v1 }
  0x75   : > { %2086 = vmatprep.subr.bf16.mxu1 %v2289_v1 }
  0x77   : > { %2067 = vmatpush3.bf16.msra.mxu0 %v2225_v16 }
  0x78   : > { %2087 = vmatpush3.bf16.msra.mxu1 %v2226_v17  ;;  %2068 = vmatprep.subr.bf16.mxu0 %v2289_v1 }
  0x79   : > { %2088 = vmatprep.subr.bf16.mxu1 %v2289_v1 }
  0x7b   : > { %2069 = vmatpush3.bf16.msra.mxu0 %v2227_v18 }
  0x7c   : > { %2089 = vmatpush3.bf16.msra.mxu1 %v2228_v19  ;;  %2070 = vmatprep.subr.bf16.mxu0 %v2289_v1 }
  0x7d   : > { %2090 = vmatprep.subr.bf16.mxu1 %v2289_v1 }
  0x7f   : > { %2071 = vmatpush3.bf16.msra.mxu0 %v2229_v21 }
  0x80   : > { %2091 = vmatpush3.bf16.msra.mxu1 %v2230_v22  ;;  %2072 = vmatprep.subr.bf16.mxu0 %v2289_v1 }
  0x81   : > { %2092 = vmatprep.subr.bf16.mxu1 %v2289_v1 }
  0x83   : > { %2073 = vmatpush3.bf16.msra.mxu0 %v2231_v25 }
  0x84   : > { %2093 = vmatpush3.bf16.msra.mxu1 %v2232_v26  ;;  %2074 = vmatprep.subr.bf16.mxu0 %v2289_v1 }
  0x85   : > { %2094 = vmatprep.subr.bf16.mxu1 %v2289_v1 }
  0x87   : > { %2075 = vmatpush3.bf16.msra.mxu0 %v2233_v30 }
  0x88   : > { %2095 = vmatpush3.bf16.msra.mxu1 %v2234_v31  ;;  %2100 = vmatprep.subr.bf16.mxu0 %v2289_v1 }
  0x8a   : > { %2077 = vmatmul.mubr.bf16.vlgmr.msra.gmra.mrb[12].mxu0 %v2235_v20 }
  0x8b   : > { %2101 = vmatpush3.bf16.msra.mxu0 %v2236_v34  ;;  %2097 = vmatmul.mubr.bf16.vlgmr.msra.gmra.mrb[12].mxu1 %v1249_v35 }
  0x8c   : > { %2102 = vmatprep.subr.bf16.mxu0 %v2289_v1  ;;  %2116 = vmatprep.mubr.msk.bf16.mxu0 %vm2290_vm0, %v2289_v1 }
  0x8f   : > { %2103 = vmatpush3.bf16.msra.mxu0 %v2238_v36 }
  0x90   : > { %2104 = vmatprep.subr.bf16.mxu0 %v2289_v1 }
  0x93   : > { %2105 = vmatpush3.bf16.msra.mxu0 %v2239_v37  ;;  %v1854_v37 = vld [vmem:[%s2760_s6] ss:$0 sm:$0xff] }
  0x94   : > { %2106 = vmatprep.subr.bf16.mxu0 %v2289_v1 }
  0x97   : > { %2107 = vmatpush3.bf16.msra.mxu0 %v2240_v38 }
  0x98   : > { %2108 = vmatprep.subr.bf16.mxu0 %v2289_v1 }
  0x9b   : > { %2109 = vmatpush3.bf16.msra.mxu0 %v2241_v39 }
  0x9c   : > { %2110 = vmatprep.subr.bf16.mxu0 %v2289_v1 }
  0x9f   : > { %2111 = vmatpush3.bf16.msra.mxu0 %v2242_v40 }
  0xa0   : > { %2112 = vmatprep.subr.bf16.mxu0 %v2289_v1 }
  0xa3   : > { %2113 = vmatpush3.bf16.msra.mxu0 %v2243_v41 }
  0xa4   : > { %2114 = vmatprep.subr.bf16.mxu0 %v2289_v1 }
  0xa7   : > { %2115 = vmatpush3.bf16.msra.mxu0 %v2244_v42 }
  0xaa   : > { %2117 = vmatmul.mubr.bf16.vlgmr.msra.gmra.mrb[16].mxu0 %v1361_v45 }
  0xfd   : > { %v544_v46 = vpop.f32.mrb[0].mxu0 }
  0xfe   : > { %v634_v47 = vpop.f32.mrb[0].mxu1  ;;  %v1958_v48 = vpop.f32.mrb[1].mxu0 }
  0xff   : > { %v635_v49 = vadd.f32 %v634_v47, %v544_v46  ;;  %v1978_v50 = vpop.f32.mrb[1].mxu1  ;;  %v547_v51 = vpop.f32.mrb[2].mxu0 }
 0x100   : > { %v637_v52 = vpop.f32.mrb[2].mxu1  ;;  %v1959_v53 = vpop.f32.mrb[3].mxu0 }
 0x101   : > { %v638_v54 = vadd.f32 %v637_v52, %v547_v51  ;;  %v1979_v55 = vpop.f32.mrb[3].mxu1 }
 0x11d   : > { %v745_v56 = vpop.f32.mrb[4].mxu0 }
 0x11e   : > { %v752_v57 = vadd.f32 %v745_v56, %v635_v49  ;;  %v1998_v58 = vpop.f32.mrb[5].mxu0  ;;  %v859_v59 = vpop.f32.mrb[4].mxu1 }
 0x11f   : > { %v748_v60 = vpop.f32.mrb[6].mxu0  ;;  %v2018_v1 = vpop.f32.mrb[5].mxu1 }
 0x120   : > { %v753_v61 = vadd.f32 %v748_v60, %v638_v54  ;;  %v866_v62 = vadd.f32 %v859_v59, %v752_v57  ;;  %v1999_v63 = vpop.f32.mrb[7].mxu0  ;;  %v862_v0 = vpop.f32.mrb[6].mxu1 }
 0x121   : > { %v2019_v2 = vpop.f32.mrb[7].mxu1 }
 0x122   : > { %v867_v3 = vadd.f32 %v862_v0, %v753_v61 }
 0x13d   : > { %v983_v4 = vpop.f32.mrb[8].mxu0 }
 0x13e   : > { %v990_v5 = vadd.f32 %v983_v4, %v866_v62  ;;  %v2038_v6 = vpop.f32.mrb[9].mxu0  ;;  %v1095_v7 = vpop.f32.mrb[8].mxu1 }
 0x13f   : > { %v986_v8 = vpop.f32.mrb[10].mxu0  ;;  %v2058_v9 = vpop.f32.mrb[9].mxu1 }
 0x140   : > { %v991_v10 = vadd.f32 %v986_v8, %v867_v3  ;;  %v1102_v11 = vadd.f32 %v1095_v7, %v990_v5  ;;  %v2039_v12 = vpop.f32.mrb[11].mxu0  ;;  %v1098_v13 = vpop.f32.mrb[10].mxu1 }
 0x141   : > { %v2059_v14 = vpop.f32.mrb[11].mxu1 }
 0x142   : > { %v1103_v15 = vadd.f32 %v1098_v13, %v991_v10 }
 0x15d   : > { %v1209_v16 = vpop.f32.mrb[12].mxu0 }
 0x15e   : > { %v1216_v17 = vadd.f32 %v1209_v16, %v1102_v11  ;;  %v2078_v18 = vpop.f32.mrb[13].mxu0  ;;  %v1333_v19 = vpop.f32.mrb[12].mxu1 }
 0x15f   : > { %v1212_v20 = vpop.f32.mrb[14].mxu0  ;;  %v2098_v21 = vpop.f32.mrb[13].mxu1 }
 0x160   : > { %v1217_v22 = vadd.f32 %v1212_v20, %v1103_v15  ;;  %v1340_v23 = vadd.f32 %v1333_v19, %v1216_v17  ;;  %v2079_v24 = vpop.f32.mrb[15].mxu0  ;;  %v1336_v25 = vpop.f32.mrb[14].mxu1 }
 0x161   : > { %v2099_v26 = vpop.f32.mrb[15].mxu1 }
 0x162   : > { %v1341_v27 = vadd.f32 %v1336_v25, %v1217_v22 }
 0x17d   : > { %v1445_v28 = vpop.f32.mrb[16].mxu0 }
 0x17e   : > { %v1452_v30 = vadd.f32 %v1445_v28, %v1340_v23  ;;  %v2118_v31 = vpop.f32.mrb[17].mxu0 }
 0x17f   : > { %v1448_v33 = vpop.f32.mrb[18].mxu0 }
 0x180   : > { %v1461_v34 = vadd.f32 %v1852_v29, %v1452_v30  ;;  %v1453_v35 = vadd.f32 %v1448_v33, %v1341_v27  ;;  %v2119_v36 = vpop.f32.mrb[19].mxu0 }
 0x182   : > { %v1470_v38 = vmul.f32 %v1853_v32, %v1461_v34  ;;  %v1462_v39 = vadd.f32 %v1852_v29, %v1453_v35 }
 0x184   : > { %v1479_v40 = vadd.f32 %v1854_v37, %v1470_v38  ;;  %v1471_v41 = vmul.f32 %v1853_v32, %v1462_v39 }
 0x186   : > { %v1483_v42 = vmin.f32 %v1479_v40, 0.0  ;;  %v1480_v43 = vadd.f32 %v1854_v37, %v1471_v41  ;;  %vm1481_vm3 = vcmp.gt.f32.partialorder %v1479_v40, 0.0 }
 0x188   : > { %v1485_v44 = vmul.f32 1.442695, %v1483_v42  ;;  %v1484_v45 = vmin.f32 %v1480_v43, 0.0  ;;  %vm1482_vm4 = vcmp.gt.f32.partialorder %v1480_v43, 0.0 }
 0x18a   : > { %2245 = vpow2.f32 %v1485_v44  ;;  %v1487_v46 = vmul.f32 1.442695, %v1484_v45 }
 0x18c   : > { %2247 = vpow2.f32 %v1487_v46 }
 0x194   : > { %v2246_v47 = vpop.eup %2245 }
 0x195   : > { %v1855_v48 = vadd.f32 -1.0, %v2246_v47 }
 0x196   : > { %v2248_v49 = vpop.eup %2247 }
 0x197   : > { %v1491_v50 = vmul.f32 1.6732632, %v1855_v48  ;;  %v1856_v51 = vadd.f32 -1.0, %v2248_v49 }
 0x199   : > { %v1493_v52 = vsel %vm1481_vm3, %v1479_v40, %v1491_v50  ;;  %v1492_v53 = vmul.f32 1.6732632, %v1856_v51 }
 0x19a   : > { %v1495_v54 = vmul.f32 1.050701, %v1493_v52 }
 0x19b   : > { %v1494_v55 = vsel %vm1482_vm4, %v1480_v43, %v1492_v53 }
 0x19c   : > { %1497 = vst [vmem:[%s396_s11] sm:$0xff] %v1495_v54  ;;  %v1496_v56 = vmul.f32 1.050701, %v1494_v55 }
 0x19e   : > { %1498 = vst [vmem:[%s396_s11 + $0x8] sm:$0xff] %v1496_v56 }
 0x19f PF: > { %s17_s28 = sadd.s32 1, %s2287_s28   ;;  %s2762_s24 = smov %s2279_s26 }
 0x1a0   : > { %p14_p10 = scmp.ge.s32.totalorder %s17_s28, 142   ;;  %s2763_s25 = smov %s2283_s27 }
 0x1a1   : > { %s2764_s26 = smov %s2767_s29  ;;  %s2765_s27 = smov %s2771_s30 }
 0x1a2   :  { %16 = sbr.rel (!%p14_p10) target bundleno = 3 (0x3), region = 92 }

// kernel: rawformer_s_forward.18
= control target key start
LH: loop header
LB: loop body
LE: loop exit
PB: predicated region body
PF: predicated region fallthrough
CT: control target
= control target key end

     0   :  { %s2247_s24 = smov 0   ;;  %s2249_s25 = smov 0   ;;  %s2649_s0 = inlined_call_operand.vmem [shape: bf16[2,25,10,128], index: 0, kind: input, shape index: {}, may-alias: {0,1,2}]   ;;  %s2650_s1 = inlined_call_operand.vmem [shape: bf16[2,25,10,128], index: 1, kind: input, shape index: {}, may-alias: {0,1,2}]   ;;  %s2651_s2 = inlined_call_operand.vmem [shape: bf16[2,25,10,128], index: 2, kind: input, shape index: {}, may-alias: {0,1,2}]   ;;  %s2652_s3 = inlined_call_operand.vmem [shape: bf16[9,128,128], index: 3, kind: input, shape index: {}]   ;;  %s2653_s4 = inlined_call_operand.vmem [shape: f32[1,128], index: 4, kind: input, shape index: {}]   ;;  %s2654_s5 = inlined_call_operand.vmem [shape: f32[1,128], index: 5, kind: input, shape index: {}]   ;;  %s2655_s6 = inlined_call_operand.vmem [shape: f32[1,128], index: 6, kind: input, shape index: {}]   ;;  %s2656_s7 = inlined_call_operand.vmem [shape: f32[2,23,8,128], index: 7, kind: output, shape index: {}]  }
   0x1   :  { %s2251_s26 = smov 0   ;;  %s2253_s27 = smov 0  }
   0x2   :  { %s2255_s28 = smov 0  }
   0x3 LB: > { %s26_s29 = sadd.s32 1, %s2195_s26  ;;  %s29_s30 = sadd.s32 1, %s2199_s27  ;;  %s2203_s28 = sphi %s2255_s28, %s17_s28   ;;  %s2199_s27 = sphi %s2253_s27, %s2660_s27   ;;  %s2195_s26 = sphi %s2251_s26, %s2659_s26   ;;  %s2191_s25 = sphi %s2249_s25, %s2658_s25   ;;  %s2187_s24 = sphi %s2247_s24, %s2657_s24  }
   0x4   : > { %p27_p0 = scmp.ge.s32.totalorder %s26_s29, 23  ;;  %p1566_p1 = scmp.ge.s32.totalorder %s2203_s28, 1 }
   0x5   : > { %p297_p2 = scmp.lt.s32.totalorder %s2203_s28, 47 }
   0x6   : > { %s2662_s29 = smov (%p27_p0, %s26_s29), 0  ;;  %s2664_s30 = smov (!%p27_p0, %s29_s30), %s2199_s27 }
   0x7   : > { %p298_p3 = pnand %p1566_p1, %p297_p2  ;;  %p31_p4 = scmp.ge.s32.totalorder %s2664_s30, 2 }
   0x8   : > { %v2088_v0 = vld [vmem:[%s2652_s3 + $0x40] sm:$0xff] (!%p298_p3)   ;;  %v2205_v1 = vmov (!%p298_p3), 0.0   ;;  %v2090_v3 = vld [vmem:[%s2652_s3 + $0x48] sm:$0xff] (!%p298_p3)   ;;  %vm2206_vm0 = vmmov (!%p298_p3), 0   ;;  %p356_p5 = scmp.lt.s32.totalorder (!%p298_p3), %s2191_s25, 1  ;;  %p358_p6 = scmp.lt.s32.totalorder (!%p298_p3), %s2187_s24, 24 }
   0x9   : > { %s2666_s30 = smov (%p31_p4, %s2664_s30), 0  ;;  %301 = sbr.rel (%p298_p3) target bundleno = 413 (0x19d), region = 48 }
   0xa   : > { %1864 = vmatprep.subr.bf16.mxu0 (!%p298_p3), %v2205_v1  ;;  %1884 = vmatprep.subr.bf16.mxu1 (!%p298_p3), %v2205_v1  ;;  %v2089_v2 = vld [vmem:[%s2652_s3] sm:$0xff] (!%p298_p3)   ;;  %v2091_v4 = vld [vmem:[%s2652_s3 + $0x8] sm:$0xff] (!%p298_p3)   ;;  %v2092_v5 = vld [vmem:[%s2652_s3 + $0x50] sm:$0xff] (!%p298_p3)   ;;  %s365_s14 = sadd.s32 (!%p298_p3), 1, %s2187_s24  ;;  %s376_s9 = sadd.s32 (!%p298_p3), 2, %s2187_s24 }
   0xb   : > { %1865 = vmatpush3.bf16.msra.mxu0 (!%p298_p3), %v2088_v0  ;;  %1880 = vmatprep.mubr.msk.bf16.mxu0 (!%p298_p3), %vm2206_vm0, %v2205_v1  ;;  %v2093_v6 = vld [vmem:[%s2652_s3 + $0x10] sm:$0xff] (!%p298_p3)   ;;  %v2094_v7 = vld [vmem:[%s2652_s3 + $0x58] sm:$0xff] (!%p298_p3)   ;;  %v2096_v9 = vld [vmem:[%s2652_s3 + $0x60] sm:$0xff] (!%p298_p3)   ;;  %p368_p7 = scmp.lt.s32.totalorder (!%p298_p3), %s365_s14, 24  ;;  %p379_p8 = scmp.lt.s32.totalorder (!%p298_p3), %s376_s9, 24 }
   0xc   : > { %1885 = vmatpush3.bf16.msra.mxu1 (!%p298_p3), %v2089_v2  ;;  %1866 = vmatprep.subr.bf16.mxu0 (!%p298_p3), %v2205_v1  ;;  %v2095_v8 = vld [vmem:[%s2652_s3 + $0x18] sm:$0xff] (!%p298_p3)   ;;  %v2097_v10 = vld [vmem:[%s2652_s3 + $0x20] sm:$0xff] (!%p298_p3)   ;;  %v2098_v14 = vld [vmem:[%s2652_s3 + $0x68] sm:$0xff] (!%p298_p3)   ;;  %p389_p9 = scmp.lt.s32.totalorder (!%p298_p3), %s2187_s24, 22 }
   0xd   : > { %1886 = vmatprep.subr.bf16.mxu1 (!%p298_p3), %v2205_v1  ;;  %1900 = vmatprep.mubr.msk.bf16.mxu1 (!%p298_p3), %vm2206_vm0, %v2205_v1  ;;  %v2099_v15 = vld [vmem:[%s2652_s3 + $0x28] sm:$0xff] (!%p298_p3)   ;;  %v2100_v17 = vld [vmem:[%s2652_s3 + $0x70] sm:$0xff] (!%p298_p3)   ;;  %v2102_v21 = vld [vmem:[%s2652_s3 + $0x78] sm:$0xff] (!%p298_p3)  }
   0xe   : > { %v2101_v18 = vld [vmem:[%s2652_s3 + $0x30] sm:$0xff] (!%p298_p3)   ;;  %v2103_v22 = vld [vmem:[%s2652_s3 + $0x38] sm:$0xff] (!%p298_p3)   ;;  %v2105_v24 = vld [vmem:[%s2652_s3 + $0x80] sm:$0xff] (!%p298_p3)  }
   0xf   : > { %1867 = vmatpush3.bf16.msra.mxu0 (!%p298_p3), %v2090_v3  ;;  %v2106_v25 = vld [vmem:[%s2652_s3 + $0xc0] sm:$0xff] (!%p298_p3)   ;;  %v2107_v26 = vld [vmem:[%s2652_s3 + $0x88] sm:$0xff] (!%p298_p3)   ;;  %v2109_v28 = vld [vmem:[%s2652_s3 + $0x90] sm:$0xff] (!%p298_p3)  }
  0x10   : > { %s2668_s25 = smov (!%p356_p5, %s2191_s25), 1  ;;  %1887 = vmatpush3.bf16.msra.mxu1 %v2091_v4  ;;  %1868 = vmatprep.subr.bf16.mxu0 %v2205_v1  ;;  %v2108_v27 = vld [vmem:[%s2652_s3 + $0xc8] sm:$0xff]   ;;  %v2110_v29 = vld [vmem:[%s2652_s3 + $0xd0] sm:$0xff]   ;;  %v2111_v30 = vld [vmem:[%s2652_s3 + $0x98] sm:$0xff]   ;;  %s2670_s14 = smov (!%p368_p7, %s365_s14), 24 }
  0x11   : > { %s359_s16 = scalar_select %p358_p6, %s2187_s24, 24  ;;  %1888 = vmatprep.subr.bf16.mxu1 %v2205_v1  ;;  %v2112_v31 = vld [vmem:[%s2652_s3 + $0xd8] sm:$0xff]   ;;  %v2113_v32 = vld [vmem:[%s2652_s3 + $0xa0] sm:$0xff]   ;;  %v2115_v34 = vld [vmem:[%s2652_s3 + $0xa8] sm:$0xff]  }
  0x12   : > { %s2311_s19 = smul.u32 50, %s2668_s25  ;;  %v2114_v33 = vld [vmem:[%s2652_s3 + $0xe0] sm:$0xff]   ;;  %v2116_v35 = vld [vmem:[%s2652_s3 + $0xe8] sm:$0xff]   ;;  %v2117_v36 = vld [vmem:[%s2652_s3 + $0xb0] sm:$0xff]   ;;  %s2672_s9 = smov (!%p379_p8, %s376_s9), 24 }
  0x13   : > { %s1567_s22 = sshll.u32 %s359_s16, 1  ;;  %1869 = vmatpush3.bf16.msra.mxu0 %v2092_v5  ;;  %v2118_v37 = vld [vmem:[%s2652_s3 + $0xf0] sm:$0xff]   ;;  %v2119_v38 = vld [vmem:[%s2652_s3 + $0xb8] sm:$0xff]   ;;  %v2121_v41 = vld [vmem:[%s2652_s3 + $0x100] sm:$0xff]   ;;  %s2674_s24 = smov (!%p389_p9, %s2187_s24), 22 }
  0x14   : > { %s362_s23 = sadd.s32 %s2311_s19, %s1567_s22  ;;  %1889 = vmatpush3.bf16.msra.mxu1 %v2093_v6  ;;  %1870 = vmatprep.subr.bf16.mxu0 %v2205_v1  ;;  %v2120_v39 = vld [vmem:[%s2652_s3 + $0xf8] sm:$0xff]   ;;  %v2123_v43 = vld [vmem:[%s2652_s3 + $0x140] sm:$0xff]   ;;  %v2124_v44 = vld [vmem:[%s2652_s3 + $0x108] sm:$0xff]  }
  0x15   : > { %s1568_s10 = sshll.u32 %s362_s23, 2  ;;  %1890 = vmatprep.subr.bf16.mxu1 %v2205_v1  ;;  %v2125_v45 = vld [vmem:[%s2652_s3 + $0x148] sm:$0xff]   ;;  %v2126_v46 = vld [vmem:[%s2652_s3 + $0x110] sm:$0xff]   ;;  %v2128_v48 = vld [vmem:[%s2652_s3 + $0x118] sm:$0xff]   ;;  %s1571_s23 = sshll.u32 %s2672_s9, 1 }
  0x16   : > { %s364_s15 = scalar_lea.vmem %s2649_s0, %s1568_s10  ;;  %s1569_s10 = sshll.u32 %s2670_s14, 1  ;;  %v2127_v47 = vld [vmem:[%s2652_s3 + $0x150] sm:$0xff]   ;;  %v2129_v49 = vld [vmem:[%s2652_s3 + $0x158] sm:$0xff]   ;;  %v2130_v51 = vld [vmem:[%s2652_s3 + $0x120] sm:$0xff]  }
  0x17   : > { %1871 = vmatpush3.bf16.msra.mxu0 %v2094_v7  ;;  %v396_v11 = vld [vmem:[%s364_s15] sm:$0xf]  ;;  %v397_v12 = vld [vmem:[%s364_s15 + $0x4] sm:$0x1]  ;;  %s372_s13 = sadd.s32 %s2311_s19, %s1569_s10  ;;  %v2132_v54 = vld [vmem:[%s2652_s3 + $0x128] sm:$0xff]   ;;  %s383_s12 = sadd.s32 %s2311_s19, %s1571_s23 }
  0x18   : > { %1891 = vmatpush3.bf16.msra.mxu1 %v2095_v8  ;;  %1872 = vmatprep.subr.bf16.mxu0 %v2205_v1  ;;  %v2338_v13 = vcombine.low %v396_v11, %v397_v12  ;;  %s1570_s18 = sshll.u32 %s372_s13, 2  ;;  %v2131_v52 = vld [vmem:[%s2652_s3 + $0x160] sm:$0xff]   ;;  %v2133_v55 = vld [vmem:[%s2652_s3 + $0x168] sm:$0xff]   ;;  %v2134_v57 = vld [vmem:[%s2652_s3 + $0x130] sm:$0xff]   ;;  %s1572_s9 = sshll.u32 %s383_s12, 2 }
  0x19   : > { %1892 = vmatprep.subr.bf16.mxu1 %v2205_v1  ;;  %s2438_s10 = scalar_lea.vmem %s2650_s1, %s1570_s18  ;;  %v2135_v58 = vld [vmem:[%s2652_s3 + $0x170] sm:$0xff]   ;;  %v2136_v61 = vld [vmem:[%s2652_s3 + $0x138] sm:$0xff]   ;;  %v2138_v0 = vld [vmem:[%s2652_s3 + $0x180] sm:$0xff]   ;;  %s385_s20 = scalar_lea.vmem %s2651_s2, %s1572_s9 }
  0x1a   : > { %v443_v16 = vshll.u32 %v2338_v13, 16  ;;  %v441_v19 = vshrl.u32 %v2338_v13, 16  ;;  %v641_v40 = vrot.slane %v2338_v13, 1  ;;  %v398_v42 = vld [vmem:[%s2438_s10] sm:$0xf]  ;;  %v2137_v62 = vld [vmem:[%s2652_s3 + $0x178] sm:$0xff]  }
  0x1b   : > { %1873 = vmatpush3.bf16.msra.mxu0 %v2096_v9  ;;  %v399_v50 = vld [vmem:[%s2438_s10 + $0x4] sm:$0x1]  ;;  %v2140_v4 = vld [vmem:[%s2652_s3 + $0x188] sm:$0xff]   ;;  %v2142_v6 = vld [vmem:[%s2652_s3 + $0x190] sm:$0xff]   ;;  %s2045_s13 = smul.u32 23, %s2668_s25 }
  0x1c   : > { %1893 = vmatpush3.bf16.msra.mxu1 %v2097_v10  ;;  %1874 = vmatprep.subr.bf16.mxu0 %v2205_v1  ;;  %v445_v20 = vrot.slane %v443_v16, 1  ;;  %v1671_v53 = vcombine.low %v398_v42, %v399_v50  ;;  %v2139_v3 = vld [vmem:[%s2652_s3 + $0x1c0] sm:$0xff]   ;;  %v2141_v5 = vld [vmem:[%s2652_s3 + $0x1c8] sm:$0xff]   ;;  %v2143_v7 = vld [vmem:[%s2652_s3 + $0x1d0] sm:$0xff]  }
  0x1d   : > { %1894 = vmatprep.subr.bf16.mxu1 %v2205_v1  ;;  %v2144_v8 = vld [vmem:[%s2652_s3 + $0x198] sm:$0xff]   ;;  %v2146_v10 = vld [vmem:[%s2652_s3 + $0x1a0] sm:$0xff]   ;;  %v2149_v16 = vld [vmem:[%s2652_s3 + $0x1e8] sm:$0xff]   ;;  %s392_s15 = sadd.s32 %s2045_s13, %s2674_s24 }
  0x1e   : > { %v446_v23 = vor.u32 %v445_v20, %v441_v19  ;;  %v863_v56 = vshll.u32 %v1671_v53, 16  ;;  %v861_v59 = vshrl.u32 %v1671_v53, 16  ;;  %v974_v2 = vrot.slane %v1671_v53, 1  ;;  %v2145_v9 = vld [vmem:[%s2652_s3 + $0x1d8] sm:$0xff]   ;;  %v400_v12 = vld [vmem:[%s385_s20] sm:$0xf] }
  0x1f   : > { %1875 = vmatpush3.bf16.msra.mxu0 %v2098_v14  ;;  %v401_v13 = vld [vmem:[%s385_s20 + $0x4] sm:$0x1]  ;;  %v2148_v14 = vld [vmem:[%s2652_s3 + $0x1a8] sm:$0xff]   ;;  %v2151_v19 = vld [vmem:[%s2652_s3 + $0x1f0] sm:$0xff]   ;;  %s1573_s9 = sshll.u32 %s392_s15, 3 }
  0x20   : > { %1895 = vmatpush3.bf16.msra.mxu1 %v2099_v15  ;;  %1876 = vmatprep.subr.bf16.mxu0 %v2205_v1  ;;  %v865_v60 = vrot.slane %v863_v56, 1  ;;  %v1744_v15 = vcombine.low %v400_v12, %v401_v13  ;;  %v2152_v20 = vld [vmem:[%s2652_s3 + $0x1b8] sm:$0xff]   ;;  %v1778_v13 = vld [vmem:[%s2654_s5] ss:$0 sm:$0xff]  ;;  %s394_s14 = scalar_lea.vmem %s2656_s7, %s1573_s9 }
  0x21   : > { %1896 = vmatprep.subr.bf16.mxu1 %v2205_v1 }
  0x22   : > { %v866_v63 = vor.u32 %v865_v60, %v861_v59 }
  0x23   : > { %1877 = vmatpush3.bf16.msra.mxu0 %v2100_v17  ;;  %v2150_v17 = vld [vmem:[%s2652_s3 + $0x1b0] sm:$0xff]  }
  0x24   : > { %1897 = vmatpush3.bf16.msra.mxu1 %v2101_v18  ;;  %1878 = vmatprep.subr.bf16.mxu0 %v2205_v1  ;;  %v1196_v18 = vshll.u32 %v1744_v15, 16 }
  0x25   : > { %1898 = vmatprep.subr.bf16.mxu1 %v2205_v1 }
  0x27   : > { %1879 = vmatpush3.bf16.msra.mxu0 %v2102_v21  ;;  %v1194_v21 = vshrl.u32 %v1744_v15, 16 }
  0x28   : > { %1899 = vmatpush3.bf16.msra.mxu1 %v2103_v22  ;;  %1904 = vmatprep.subr.bf16.mxu0 %v2205_v1  ;;  %v1198_v22 = vrot.slane %v1196_v18, 1 }
  0x29   : > { %1924 = vmatprep.subr.bf16.mxu1 %v2205_v1 }
  0x2a   : > { %1881 = vmatmul.mubr.bf16.vlgmr.msra.gmra.mrb[0].mxu0 %v446_v23  ;;  %v2153_v23 = vld [vmem:[%s2652_s3 + $0x1f8] sm:$0xff]  }
  0x2b   : > { %1901 = vmatmul.mubr.bf16.vlgmr.msra.gmra.mrb[0].mxu1 %v396_v11  ;;  %1905 = vmatpush3.bf16.msra.mxu0 %v2105_v24  ;;  %v2147_v11 = vld [vmem:[%s2652_s3 + $0x1e0] sm:$0xff]  }
  0x2c   : > { %1925 = vmatpush3.bf16.msra.mxu1 %v2106_v25  ;;  %1906 = vmatprep.subr.bf16.mxu0 %v2205_v1  ;;  %v2155_v24 = vld [vmem:[%s2652_s3 + $0x200] sm:$0xff]   ;;  %v1199_v25 = vor.u32 %v1198_v22, %v1194_v21 }
  0x2d   : > { %1926 = vmatprep.subr.bf16.mxu1 %v2205_v1  ;;  %1920 = vmatprep.mubr.msk.bf16.mxu0 %vm2206_vm0, %v2205_v1 }
  0x2e   : > { %1940 = vmatprep.mubr.msk.bf16.mxu1 %vm2206_vm0, %v2205_v1 }
  0x2f   : > { %1907 = vmatpush3.bf16.msra.mxu0 %v2107_v26  ;;  %v2156_v26 = vld [vmem:[%s2652_s3 + $0x208] sm:$0xff]  }
  0x30   : > { %1927 = vmatpush3.bf16.msra.mxu1 %v2108_v27  ;;  %1908 = vmatprep.subr.bf16.mxu0 %v2205_v1  ;;  %v2157_v27 = vld [vmem:[%s2652_s3 + $0x210] sm:$0xff]  }
  0x31   : > { %1928 = vmatprep.subr.bf16.mxu1 %v2205_v1 }
  0x33   : > { %1909 = vmatpush3.bf16.msra.mxu0 %v2109_v28  ;;  %v2158_v28 = vld [vmem:[%s2652_s3 + $0x218] sm:$0xff]  }
  0x34   : > { %1929 = vmatpush3.bf16.msra.mxu1 %v2110_v29  ;;  %1910 = vmatprep.subr.bf16.mxu0 %v2205_v1  ;;  %v2159_v29 = vld [vmem:[%s2652_s3 + $0x220] sm:$0xff]  }
  0x35   : > { %1930 = vmatprep.subr.bf16.mxu1 %v2205_v1 }
  0x37   : > { %1911 = vmatpush3.bf16.msra.mxu0 %v2111_v30  ;;  %v2160_v30 = vld [vmem:[%s2652_s3 + $0x228] sm:$0xff]  }
  0x38   : > { %1931 = vmatpush3.bf16.msra.mxu1 %v2112_v31  ;;  %1912 = vmatprep.subr.bf16.mxu0 %v2205_v1  ;;  %v2161_v31 = vld [vmem:[%s2652_s3 + $0x230] sm:$0xff]  }
  0x39   : > { %1932 = vmatprep.subr.bf16.mxu1 %v2205_v1 }
  0x3b   : > { %1913 = vmatpush3.bf16.msra.mxu0 %v2113_v32  ;;  %v2162_v32 = vld [vmem:[%s2652_s3 + $0x238] sm:$0xff]  }
  0x3c   : > { %1933 = vmatpush3.bf16.msra.mxu1 %v2114_v33  ;;  %1914 = vmatprep.subr.bf16.mxu0 %v2205_v1  ;;  %v1307_v33 = vrot.slane %v1744_v15, 1 }
  0x3d   : > { %1934 = vmatprep.subr.bf16.mxu1 %v2205_v1 }
  0x3f   : > { %1915 = vmatpush3.bf16.msra.mxu0 %v2115_v34 }
  0x40   : > { %1935 = vmatpush3.bf16.msra.mxu1 %v2116_v35  ;;  %1916 = vmatprep.subr.bf16.mxu0 %v2205_v1 }
  0x41   : > { %1936 = vmatprep.subr.bf16.mxu1 %v2205_v1 }
  0x43   : > { %1917 = vmatpush3.bf16.msra.mxu0 %v2117_v36 }
  0x44   : > { %1937 = vmatpush3.bf16.msra.mxu1 %v2118_v37  ;;  %1918 = vmatprep.subr.bf16.mxu0 %v2205_v1 }
  0x45   : > { %1938 = vmatprep.subr.bf16.mxu1 %v2205_v1 }
  0x47   : > { %1919 = vmatpush3.bf16.msra.mxu0 %v2119_v38 }
  0x48   : > { %1939 = vmatpush3.bf16.msra.mxu1 %v2120_v39  ;;  %1944 = vmatprep.subr.bf16.mxu0 %v2205_v1 }
  0x49   : > { %1964 = vmatprep.subr.bf16.mxu1 %v2205_v1 }
  0x4a   : > { %1921 = vmatmul.mubr.bf16.vlgmr.msra.gmra.mrb[4].mxu0 %v641_v40 }
  0x4b   : > { %1945 = vmatpush3.bf16.msra.mxu0 %v2121_v41  ;;  %1941 = vmatmul.mubr.bf16.vlgmr.msra.gmra.mrb[4].mxu1 %v398_v42 }
  0x4c   : > { %1965 = vmatpush3.bf16.msra.mxu1 %v2123_v43  ;;  %1946 = vmatprep.subr.bf16.mxu0 %v2205_v1 }
  0x4d   : > { %1966 = vmatprep.subr.bf16.mxu1 %v2205_v1  ;;  %1960 = vmatprep.mubr.msk.bf16.mxu0 %vm2206_vm0, %v2205_v1 }
  0x4e   : > { %1980 = vmatprep.mubr.msk.bf16.mxu1 %vm2206_vm0, %v2205_v1 }
  0x4f   : > { %1947 = vmatpush3.bf16.msra.mxu0 %v2124_v44 }
  0x50   : > { %1967 = vmatpush3.bf16.msra.mxu1 %v2125_v45  ;;  %1948 = vmatprep.subr.bf16.mxu0 %v2205_v1 }
  0x51   : > { %1968 = vmatprep.subr.bf16.mxu1 %v2205_v1 }
  0x53   : > { %1949 = vmatpush3.bf16.msra.mxu0 %v2126_v46 }
  0x54   : > { %1969 = vmatpush3.bf16.msra.mxu1 %v2127_v47  ;;  %1950 = vmatprep.subr.bf16.mxu0 %v2205_v1 }
  0x55   : > { %1970 = vmatprep.subr.bf16.mxu1 %v2205_v1 }
  0x57   : > { %1951 = vmatpush3.bf16.msra.mxu0 %v2128_v48 }
  0x58   : > { %1971 = vmatpush3.bf16.msra.mxu1 %v2129_v49  ;;  %1952 = vmatprep.subr.bf16.mxu0 %v2205_v1 }
  0x59   : > { %1972 = vmatprep.subr.bf16.mxu1 %v2205_v1 }
  0x5b   : > { %1953 = vmatpush3.bf16.msra.mxu0 %v2130_v51 }
  0x5c   : > { %1973 = vmatpush3.bf16.msra.mxu1 %v2131_v52  ;;  %1954 = vmatprep.subr.bf16.mxu0 %v2205_v1 }
  0x5d   : > { %1974 = vmatprep.subr.bf16.mxu1 %v2205_v1 }
  0x5f   : > { %1955 = vmatpush3.bf16.msra.mxu0 %v2132_v54 }
  0x60   : > { %1975 = vmatpush3.bf16.msra.mxu1 %v2133_v55  ;;  %1956 = vmatprep.subr.bf16.mxu0 %v2205_v1 }
  0x61   : > { %1976 = vmatprep.subr.bf16.mxu1 %v2205_v1 }
  0x63   : > { %1957 = vmatpush3.bf16.msra.mxu0 %v2134_v57 }
  0x64   : > { %1977 = vmatpush3.bf16.msra.mxu1 %v2135_v58  ;;  %1958 = vmatprep.subr.bf16.mxu0 %v2205_v1 }
  0x65   : > { %1978 = vmatprep.subr.bf16.mxu1 %v2205_v1 }
  0x67   : > { %1959 = vmatpush3.bf16.msra.mxu0 %v2136_v61 }
  0x68   : > { %1979 = vmatpush3.bf16.msra.mxu1 %v2137_v62  ;;  %1984 = vmatprep.subr.bf16.mxu0 %v2205_v1 }
  0x69   : > { %2004 = vmatprep.subr.bf16.mxu1 %v2205_v1 }
  0x6a   : > { %1961 = vmatmul.mubr.bf16.vlgmr.msra.gmra.mrb[8].mxu0 %v866_v63 }
  0x6b   : > { %1985 = vmatpush3.bf16.msra.mxu0 %v2138_v0  ;;  %1981 = vmatmul.mubr.bf16.vlgmr.msra.gmra.mrb[8].mxu1 %v974_v2 }
  0x6c   : > { %2005 = vmatpush3.bf16.msra.mxu1 %v2139_v3  ;;  %1986 = vmatprep.subr.bf16.mxu0 %v2205_v1 }
  0x6d   : > { %2006 = vmatprep.subr.bf16.mxu1 %v2205_v1  ;;  %2000 = vmatprep.mubr.msk.bf16.mxu0 %vm2206_vm0, %v2205_v1 }
  0x6e   : > { %2020 = vmatprep.mubr.msk.bf16.mxu1 %vm2206_vm0, %v2205_v1 }
  0x6f   : > { %1987 = vmatpush3.bf16.msra.mxu0 %v2140_v4 }
  0x70   : > { %2007 = vmatpush3.bf16.msra.mxu1 %v2141_v5  ;;  %1988 = vmatprep.subr.bf16.mxu0 %v2205_v1 }
  0x71   : > { %2008 = vmatprep.subr.bf16.mxu1 %v2205_v1 }
  0x73   : > { %1989 = vmatpush3.bf16.msra.mxu0 %v2142_v6 }
  0x74   : > { %2009 = vmatpush3.bf16.msra.mxu1 %v2143_v7  ;;  %1990 = vmatprep.subr.bf16.mxu0 %v2205_v1 }
  0x75   : > { %2010 = vmatprep.subr.bf16.mxu1 %v2205_v1 }
  0x77   : > { %1991 = vmatpush3.bf16.msra.mxu0 %v2144_v8 }
  0x78   : > { %2011 = vmatpush3.bf16.msra.mxu1 %v2145_v9  ;;  %1992 = vmatprep.subr.bf16.mxu0 %v2205_v1 }
  0x79   : > { %2012 = vmatprep.subr.bf16.mxu1 %v2205_v1 }
  0x7b   : > { %1993 = vmatpush3.bf16.msra.mxu0 %v2146_v10  ;;  %v1777_v10 = vld [vmem:[%s2653_s4] ss:$0 sm:$0xff] }
  0x7c   : > { %2013 = vmatpush3.bf16.msra.mxu1 %v2147_v11  ;;  %1994 = vmatprep.subr.bf16.mxu0 %v2205_v1 }
  0x7d   : > { %2014 = vmatprep.subr.bf16.mxu1 %v2205_v1 }
  0x7f   : > { %1995 = vmatpush3.bf16.msra.mxu0 %v2148_v14 }
  0x80   : > { %2015 = vmatpush3.bf16.msra.mxu1 %v2149_v16  ;;  %1996 = vmatprep.subr.bf16.mxu0 %v2205_v1 }
  0x81   : > { %2016 = vmatprep.subr.bf16.mxu1 %v2205_v1 }
  0x83   : > { %1997 = vmatpush3.bf16.msra.mxu0 %v2150_v17  ;;  %v1779_v17 = vld [vmem:[%s2655_s6] ss:$0 sm:$0xff] }
  0x84   : > { %2017 = vmatpush3.bf16.msra.mxu1 %v2151_v19  ;;  %1998 = vmatprep.subr.bf16.mxu0 %v2205_v1 }
  0x85   : > { %2018 = vmatprep.subr.bf16.mxu1 %v2205_v1 }
  0x87   : > { %1999 = vmatpush3.bf16.msra.mxu0 %v2152_v20 }
  0x88   : > { %2019 = vmatpush3.bf16.msra.mxu1 %v2153_v23  ;;  %2024 = vmatprep.subr.bf16.mxu0 %v2205_v1 }
  0x8a   : > { %2001 = vmatmul.mubr.bf16.vlgmr.msra.gmra.mrb[12].mxu0 %v400_v12 }
  0x8b   : > { %2025 = vmatpush3.bf16.msra.mxu0 %v2155_v24  ;;  %2021 = vmatmul.mubr.bf16.vlgmr.msra.gmra.mrb[12].mxu1 %v1199_v25 }
  0x8c   : > { %2026 = vmatprep.subr.bf16.mxu0 %v2205_v1  ;;  %2040 = vmatprep.mubr.msk.bf16.mxu0 %vm2206_vm0, %v2205_v1 }
  0x8f   : > { %2027 = vmatpush3.bf16.msra.mxu0 %v2156_v26 }
  0x90   : > { %2028 = vmatprep.subr.bf16.mxu0 %v2205_v1 }
  0x93   : > { %2029 = vmatpush3.bf16.msra.mxu0 %v2157_v27 }
  0x94   : > { %2030 = vmatprep.subr.bf16.mxu0 %v2205_v1 }
  0x97   : > { %2031 = vmatpush3.bf16.msra.mxu0 %v2158_v28 }
  0x98   : > { %2032 = vmatprep.subr.bf16.mxu0 %v2205_v1 }
  0x9b   : > { %2033 = vmatpush3.bf16.msra.mxu0 %v2159_v29 }
  0x9c   : > { %2034 = vmatprep.subr.bf16.mxu0 %v2205_v1 }
  0x9f   : > { %2035 = vmatpush3.bf16.msra.mxu0 %v2160_v30 }
  0xa0   : > { %2036 = vmatprep.subr.bf16.mxu0 %v2205_v1 }
  0xa3   : > { %2037 = vmatpush3.bf16.msra.mxu0 %v2161_v31 }
  0xa4   : > { %2038 = vmatprep.subr.bf16.mxu0 %v2205_v1 }
  0xa7   : > { %2039 = vmatpush3.bf16.msra.mxu0 %v2162_v32 }
  0xaa   : > { %2041 = vmatmul.mubr.bf16.vlgmr.msra.gmra.mrb[16].mxu0 %v1307_v33 }
  0xfd   : > { %v530_v34 = vpop.f32.mrb[0].mxu0 }
  0xfe   : > { %v1882_v35 = vpop.f32.mrb[1].mxu0  ;;  %v618_v36 = vpop.f32.mrb[0].mxu1 }
  0xff   : > { %v619_v37 = vadd.f32 %v618_v36, %v530_v34  ;;  %v533_v38 = vpop.f32.mrb[2].mxu0  ;;  %v1902_v39 = vpop.f32.mrb[1].mxu1 }
 0x100   : > { %v1883_v40 = vpop.f32.mrb[3].mxu0  ;;  %v621_v41 = vpop.f32.mrb[2].mxu1 }
 0x101   : > { %v1903_v42 = vpop.f32.mrb[3].mxu1 }
 0x11d   : > { %v725_v43 = vpop.f32.mrb[4].mxu0 }
 0x11e   : > { %v731_v44 = vadd.f32 %v725_v43, %v619_v37  ;;  %v1922_v45 = vpop.f32.mrb[5].mxu0  ;;  %v831_v46 = vpop.f32.mrb[4].mxu1 }
 0x11f   : > { %v728_v47 = vpop.f32.mrb[6].mxu0  ;;  %v1942_v48 = vpop.f32.mrb[5].mxu1 }
 0x120   : > { %v837_v49 = vadd.f32 %v831_v46, %v731_v44  ;;  %v1923_v1 = vpop.f32.mrb[7].mxu0  ;;  %v834_v50 = vpop.f32.mrb[6].mxu1 }
 0x121   : > { %v1943_v51 = vpop.f32.mrb[7].mxu1 }
 0x13d   : > { %v950_v52 = vpop.f32.mrb[8].mxu0 }
 0x13e   : > { %v956_v53 = vadd.f32 %v950_v52, %v837_v49  ;;  %v1962_v54 = vpop.f32.mrb[9].mxu0  ;;  %v1058_v55 = vpop.f32.mrb[8].mxu1 }
 0x13f   : > { %v953_v56 = vpop.f32.mrb[10].mxu0  ;;  %v1982_v57 = vpop.f32.mrb[9].mxu1 }
 0x140   : > { %v1064_v58 = vadd.f32 %v1058_v55, %v956_v53  ;;  %v1963_v59 = vpop.f32.mrb[11].mxu0  ;;  %v1061_v60 = vpop.f32.mrb[10].mxu1 }
 0x141   : > { %v1983_v61 = vpop.f32.mrb[11].mxu1 }
 0x15d   : > { %v1164_v62 = vpop.f32.mrb[12].mxu0 }
 0x15e   : > { %v1170_v63 = vadd.f32 %v1164_v62, %v1064_v58  ;;  %v2002_v0 = vpop.f32.mrb[13].mxu0  ;;  %v1283_v2 = vpop.f32.mrb[12].mxu1 }
 0x15f   : > { %v1167_v3 = vpop.f32.mrb[14].mxu0  ;;  %v2022_v4 = vpop.f32.mrb[13].mxu1 }
 0x160   : > { %v1289_v5 = vadd.f32 %v1283_v2, %v1170_v63  ;;  %v2003_v6 = vpop.f32.mrb[15].mxu0  ;;  %v1286_v7 = vpop.f32.mrb[14].mxu1 }
 0x161   : > { %v2023_v8 = vpop.f32.mrb[15].mxu1 }
 0x17d   : > { %v1391_v9 = vpop.f32.mrb[16].mxu0 }
 0x17e   : > { %v1397_v11 = vadd.f32 %v1391_v9, %v1289_v5  ;;  %v2042_v12 = vpop.f32.mrb[17].mxu0 }
 0x17f   : > { %v1394_v14 = vpop.f32.mrb[18].mxu0 }
 0x180   : > { %v1405_v15 = vadd.f32 %v1777_v10, %v1397_v11  ;;  %v2043_v16 = vpop.f32.mrb[19].mxu0 }
 0x182   : > { %v1413_v18 = vmul.f32 %v1778_v13, %v1405_v15 }
 0x184   : > { %v1421_v19 = vadd.f32 %v1779_v17, %v1413_v18 }
 0x186   : > { %v1423_v20 = vmin.f32 %v1421_v19, 0.0  ;;  %vm1422_vm1 = vcmp.gt.f32.partialorder %v1421_v19, 0.0 }
 0x188   : > { %v1424_v21 = vmul.f32 1.442695, %v1423_v20 }
 0x18a   : > { %2163 = vpow2.f32 %v1424_v21 }
 0x194   : > { %v2164_v22 = vpop.eup %2163 }
 0x195   : > { %v1780_v23 = vadd.f32 -1.0, %v2164_v22 }
 0x197   : > { %v1427_v24 = vmul.f32 1.6732632, %v1780_v23 }
 0x199   : > { %v1428_v25 = vsel %vm1422_vm1, %v1421_v19, %v1427_v24 }
 0x19a   : > { %v1429_v26 = vmul.f32 1.050701, %v1428_v25 }
 0x19c   : > { %1430 = vst [vmem:[%s394_s14] sm:$0xff] %v1429_v26 }
 0x19d PF: > { %s17_s28 = sadd.s32 1, %s2203_s28   ;;  %s2657_s24 = smov %s2195_s26 }
 0x19e   : > { %p14_p10 = scmp.ge.s32.totalorder %s17_s28, 48   ;;  %s2658_s25 = smov %s2199_s27 }
 0x19f   : > { %s2659_s26 = smov %s2662_s29  ;;  %s2660_s27 = smov %s2666_s30 }
 0x1a0   :  { %16 = sbr.rel (!%p14_p10) target bundleno = 3 (0x3), region = 92 }

// kernel: rawformer_s_forward.20
= control target key start
LH: loop header
LB: loop body
LE: loop exit
PB: predicated region body
PF: predicated region fallthrough
CT: control target
= control target key end

     0   :  { %s1269_s18 = smov 0   ;;  %s1271_s19 = smov 0   ;;  %s1577_s0 = inlined_call_operand.vmem [shape: bf16[192,128], index: 0, kind: input, shape index: {}]   ;;  %s1578_s1 = inlined_call_operand.vmem [shape: bf16[128,256], index: 1, kind: input, shape index: {}]   ;;  %s1579_s2 = inlined_call_operand.vmem [shape: f32[1,256], index: 2, kind: input, shape index: {}]   ;;  %s1580_s3 = inlined_call_operand.vmem [shape: f32[1,256], index: 3, kind: input, shape index: {}]   ;;  %s1581_s4 = inlined_call_operand.vmem [shape: f32[1,256], index: 4, kind: input, shape index: {}]   ;;  %s1582_s5 = inlined_call_operand.vmem [shape: f32[192,256], index: 5, kind: output, shape index: {}]  }
   0x1   :  { %s1273_s20 = smov 0   ;;  %s1275_s21 = smov 0  }
   0x2   :  { %s1277_s22 = smov 0  }
   0x3 LB: > { %s24_s23 = sadd.s32 1, %s1233_s21  ;;  %s1027_s24 = sadd.s32 4294967295, %s1237_s22   ;;  %s1237_s22 = sphi %s1277_s22, %s15_s22   ;;  %s1233_s21 = sphi %s1275_s21, %s1587_s21   ;;  %s1229_s20 = sphi %s1273_s20, %s1586_s20   ;;  %s1225_s19 = sphi %s1271_s19, %s1585_s19   ;;  %s1221_s18 = sphi %s1269_s18, %s1584_s18  }
   0x4   : > { %p25_p0 = scmp.ge.s32.totalorder %s24_s23, 2  ;;  %p67_p1 = scmp.ne.s32.totalorder %s1225_s19, %s1221_s18 }
   0x5   : > { %p68_p2 = scmp.eq.s32.totalorder %s1237_s22, 0  ;;  %p177_p4 = scmp.eq.s32.totalorder %s1027_s24, 1 }
   0x6   : > { %s1589_s23 = smov (%p25_p0, %s24_s23), 0  ;;  %s60_s26 = sadd.s32 1, %s1225_s19 }
   0x7   : > { %p69_p3 = por %p68_p2, %p67_p1  ;;  %s57_s25 = ssub.s32 %s1233_s21, %s1589_s23 }
   0x8   : > { %p58_p5 = scmp.eq.s32.totalorder %s57_s25, 0  ;;  %p1304_p6 = por %p177_p4, %p67_p1 }
   0x9   : > { %p1031_p7 = scmp.ge.s32.totalorder %s1237_s22, 2 }
   0xa   : > { %s1309_s28 = scalar_select %p58_p5, %s1225_s19, %s60_s26  }
   0xb   : > { %208 = sbr.rel (%p1031_p7) target bundleno = 32 (0x20), region = 20 }
  0x12   : > { %211 = sbr.rel (!%p69_p3) target bundleno = 32 (0x20), region = 24  ;;  %s213_s29 = sand.u32 (%p69_p3), 1, %s1225_s19  }
  0x13   : > { %s1033_s30 = sshll.u32 (%p69_p3), %s1233_s21, 2  ;;  %s1032_s6 = sshll.u32 (%p69_p3), %s213_s29, 6 }
  0x14   : > { %s1317_s9 = scalar_lea.vmem (%p69_p3), %s1578_s1, %s1033_s30  ;;  %s215_s10 = scalar_lea.vmem (%p69_p3), [#allocation2], %s1032_s6 }
  0x15   : > { %v233_v0 = vld [vmem:[%s1317_s9] sm:$0xf] (%p69_p3)  ;;  %v235_v1 = vld [vmem:[%s1317_s9 + $0x8] sm:$0xf] (%p69_p3)  ;;  %v237_v2 = vld [vmem:[%s1317_s9 + $0x10] sm:$0xf] (%p69_p3) }
  0x16   : > { %234 = vst [vmem:[%s215_s10] sm:$0xf] (%p69_p3), %v233_v0  ;;  %236 = vst [vmem:[%s215_s10 + $0x4] sm:$0xf] (%p69_p3), %v235_v1  ;;  %v239_v3 = vld [vmem:[%s1317_s9 + $0x18] sm:$0xf] (%p69_p3) }
  0x17   : > { %v241_v4 = vld [vmem:[%s1317_s9 + $0x20] sm:$0xf] (%p69_p3)  ;;  %238 = vst [vmem:[%s215_s10 + $0x8] sm:$0xf] (%p69_p3), %v237_v2  ;;  %240 = vst [vmem:[%s215_s10 + $0xc] sm:$0xf] (%p69_p3), %v239_v3 }
  0x18   : > { %242 = vst [vmem:[%s215_s10 + $0x10] sm:$0xf] (%p69_p3), %v241_v4  ;;  %v243_v5 = vld [vmem:[%s1317_s9 + $0x28] sm:$0xf] (%p69_p3)  ;;  %v245_v6 = vld [vmem:[%s1317_s9 + $0x30] sm:$0xf] (%p69_p3) }
  0x19   : > { %v247_v7 = vld [vmem:[%s1317_s9 + $0x38] sm:$0xf]  ;;  %244 = vst [vmem:[%s215_s10 + $0x14] sm:$0xf] %v243_v5  ;;  %246 = vst [vmem:[%s215_s10 + $0x18] sm:$0xf] %v245_v6 }
  0x1a   : > { %248 = vst [vmem:[%s215_s10 + $0x1c] sm:$0xf] %v247_v7  ;;  %v249_v8 = vld [vmem:[%s1317_s9 + $0x40] sm:$0xf]  ;;  %v251_v9 = vld [vmem:[%s1317_s9 + $0x48] sm:$0xf] }
  0x1b   : > { %v253_v10 = vld [vmem:[%s1317_s9 + $0x50] sm:$0xf]  ;;  %250 = vst [vmem:[%s215_s10 + $0x20] sm:$0xf] %v249_v8  ;;  %252 = vst [vmem:[%s215_s10 + $0x24] sm:$0xf] %v251_v9 }
  0x1c   : > { %254 = vst [vmem:[%s215_s10 + $0x28] sm:$0xf] %v253_v10  ;;  %v255_v11 = vld [vmem:[%s1317_s9 + $0x58] sm:$0xf]  ;;  %v257_v12 = vld [vmem:[%s1317_s9 + $0x60] sm:$0xf] }
  0x1d   : > { %v259_v13 = vld [vmem:[%s1317_s9 + $0x68] sm:$0xf]  ;;  %256 = vst [vmem:[%s215_s10 + $0x2c] sm:$0xf] %v255_v11  ;;  %258 = vst [vmem:[%s215_s10 + $0x30] sm:$0xf] %v257_v12 }
  0x1e   : > { %260 = vst [vmem:[%s215_s10 + $0x34] sm:$0xf] %v259_v13  ;;  %v261_v14 = vld [vmem:[%s1317_s9 + $0x70] sm:$0xf]  ;;  %v263_v15 = vld [vmem:[%s1317_s9 + $0x78] sm:$0xf] }
  0x1f   : > { %262 = vst [vmem:[%s215_s10 + $0x38] sm:$0xf] %v261_v14  ;;  %264 = vst [vmem:[%s215_s10 + $0x3c] sm:$0xf] %v263_v15 }
  0x20 PF: > { %p1034_p8 = scmp.ge.s32.totalorder %s1237_s22, 1  ;;  %p336_p9 = scmp.lt.s32.totalorder %s1237_s22, 3 }
  0x22   : > { %p337_p10 = pnand %p1034_p8, %p336_p9 }
  0x23   : > { %s343_s11 = sand.u32 (!%p337_p10), 1, %s1221_s18   ;;  %v1187_v16 = vld [vmem:[%s1577_s0] sm:$0xff] (!%p337_p10)   ;;  %v1188_v17 = vld [vmem:[%s1577_s0 + $0x30] sm:$0xff] (!%p337_p10)   ;;  %v1189_v26 = vld [vmem:[%s1577_s0 + $0x8] sm:$0xff] (!%p337_p10)   ;;  %p389_p11 = scmp.lt.s32.totalorder (!%p337_p10), %s1229_s20, 1 }
  0x24   : > { %340 = sbr.rel (%p337_p10) target bundleno = 319 (0x13f), region = 77  ;;  %s1035_s14 = sshll.u32 (!%p337_p10), %s343_s11, 6  ;;  %1098 = vmatprep.mubr.bf16.mxu0 (!%p337_p10), %v1187_v16  ;;  %1110 = vmatprep.mubr.bf16.mxu1 (!%p337_p10), %v1188_v17  ;;  %v1190_v27 = vld [vmem:[%s1577_s0 + $0x38] sm:$0xff] (!%p337_p10)   ;;  %v1191_v28 = vld [vmem:[%s1577_s0 + $0x10] sm:$0xff] (!%p337_p10)   ;;  %v1192_v29 = vld [vmem:[%s1577_s0 + $0x40] sm:$0xff] (!%p337_p10)  }
  0x25   : > { %s1346_s17 = scalar_lea.vmem (!%p337_p10), [#allocation2], %s1035_s14  ;;  %v1193_v30 = vld [vmem:[%s1577_s0 + $0x18] sm:$0xff] (!%p337_p10)   ;;  %v1194_v31 = vld [vmem:[%s1577_s0 + $0x48] sm:$0xff] (!%p337_p10)   ;;  %v1195_v32 = vld [vmem:[%s1577_s0 + $0x20] sm:$0xff] (!%p337_p10)   ;;  %s1401_s16 = smul.u32 (!%p337_p10), 192, %s343_s11 }
  0x26   : > { %v1179_v18 = vld [vmem:[%s1346_s17] sm:$0xff] (!%p337_p10)   ;;  %v1180_v19 = vld [vmem:[%s1346_s17 + $0x8] sm:$0xff] (!%p337_p10)   ;;  %v1181_v20 = vld [vmem:[%s1346_s17 + $0x10] sm:$0xff] (!%p337_p10)  }
  0x27   : > { %1082 = vmatprep.subr.bf16.mxu0 (!%p337_p10), %v1179_v18  ;;  %1122 = vmatprep.subr.bf16.mxu1 (!%p337_p10), %v1179_v18  ;;  %v1182_v21 = vld [vmem:[%s1346_s17 + $0x18] sm:$0xff] (!%p337_p10)   ;;  %v1183_v22 = vld [vmem:[%s1346_s17 + $0x20] sm:$0xff] (!%p337_p10)   ;;  %v1184_v23 = vld [vmem:[%s1346_s17 + $0x28] sm:$0xff] (!%p337_p10)   ;;  %s1428_s18 = scalar_lea.vmem (!%p337_p10), [#allocation3], %s1401_s16 }
  0x28   : > { %1083 = vmatpush3.bf16.msra.mxu0 (!%p337_p10), %v1179_v18  ;;  %1130 = vmatpush3.bf16.msra.mxu1 (!%p337_p10), %v1179_v18  ;;  %v1185_v24 = vld [vmem:[%s1346_s17 + $0x30] sm:$0xff] (!%p337_p10)   ;;  %v1186_v25 = vld [vmem:[%s1346_s17 + $0x38] sm:$0xff] (!%p337_p10)   ;;  %v1197_v34 = vld [vmem:[%s1577_s0 + $0x28] sm:$0xff] (!%p337_p10)  }
  0x29   : > { %1084 = vmatprep.subr.bf16.mxu0 (!%p337_p10), %v1180_v19  ;;  %1123 = vmatprep.subr.bf16.mxu1 (!%p337_p10), %v1180_v19  ;;  %v1196_v33 = vld [vmem:[%s1577_s0 + $0x50] sm:$0xff] (!%p337_p10)   ;;  %v1198_v35 = vld [vmem:[%s1577_s0 + $0x58] sm:$0xff] (!%p337_p10)  }
  0x2b   : > { %s390_s30 = scalar_select %p389_p11, %s1229_s20, 1 }
  0x2c   : > { %1085 = vmatpush3.bf16.msra.mxu0 %v1180_v19  ;;  %1131 = vmatpush3.bf16.msra.mxu1 %v1180_v19  ;;  %s1059_s11 = sshll.u32 (%p1304_p6), %s1229_s20, 3 }
  0x2d   : > { %1086 = vmatprep.subr.bf16.mxu0 %v1181_v20  ;;  %1124 = vmatprep.subr.bf16.mxu1 %v1181_v20  ;;  %s391_s8 = scalar_lea.vmem %s1579_s2, %s390_s30  ;;  %s394_s12 = scalar_lea.vmem %s1580_s3, %s390_s30 }
  0x2e   : > { %v1394_v36 = vld [vmem:[%s391_s8] ss:$0 sm:$0xff]  ;;  %s397_s15 = scalar_lea.vmem %s1581_s4, %s390_s30  ;;  %s1515_s25 = scalar_lea.vmem (%p1304_p6), %s1582_s5, %s1059_s11 }
  0x2f   : > { %v1403_v38 = vld [vmem:[%s394_s12] ss:$0 sm:$0xff] }
  0x30   : > { %1087 = vmatpush3.bf16.msra.mxu0 %v1181_v20  ;;  %1132 = vmatpush3.bf16.msra.mxu1 %v1181_v20  ;;  %v1407_v44 = vld [vmem:[%s397_s15] ss:$0 sm:$0xff] }
  0x31   : > { %1088 = vmatprep.subr.bf16.mxu0 %v1182_v21  ;;  %1125 = vmatprep.subr.bf16.mxu1 %v1182_v21 }
  0x34   : > { %1089 = vmatpush3.bf16.msra.mxu0 %v1182_v21  ;;  %1133 = vmatpush3.bf16.msra.mxu1 %v1182_v21 }
  0x35   : > { %1090 = vmatprep.subr.bf16.mxu0 %v1183_v22  ;;  %1126 = vmatprep.subr.bf16.mxu1 %v1183_v22 }
  0x38   : > { %1091 = vmatpush3.bf16.msra.mxu0 %v1183_v22  ;;  %1134 = vmatpush3.bf16.msra.mxu1 %v1183_v22 }
  0x39   : > { %1092 = vmatprep.subr.bf16.mxu0 %v1184_v23  ;;  %1127 = vmatprep.subr.bf16.mxu1 %v1184_v23 }
  0x3c   : > { %1093 = vmatpush3.bf16.msra.mxu0 %v1184_v23  ;;  %1135 = vmatpush3.bf16.msra.mxu1 %v1184_v23 }
  0x3d   : > { %1094 = vmatprep.subr.bf16.mxu0 %v1185_v24  ;;  %1128 = vmatprep.subr.bf16.mxu1 %v1185_v24 }
  0x40   : > { %1095 = vmatpush3.bf16.msra.mxu0 %v1185_v24  ;;  %1136 = vmatpush3.bf16.msra.mxu1 %v1185_v24 }
  0x41   : > { %1096 = vmatprep.subr.bf16.mxu0 %v1186_v25  ;;  %1129 = vmatprep.subr.bf16.mxu1 %v1186_v25 }
  0x44   : > { %1097 = vmatpush3.bf16.msra.mxu0 %v1186_v25  ;;  %1137 = vmatpush3.bf16.msra.mxu1 %v1186_v25 }
  0x47   : > { %1099 = vmatmul.mubr.bf16.vlgmr.msra.gmra.mrb[0].mxu0 %v1189_v26  ;;  %1111 = vmatmul.mubr.bf16.vlgmr.msra.gmra.mrb[0].mxu1 %v1190_v27 }
  0x48   : > { %1102 = vmatprep.mubr.bf16.mxu0 %v1191_v28  ;;  %1114 = vmatprep.mubr.bf16.mxu1 %v1192_v29 }
  0x4f   : > { %1103 = vmatmul.mubr.bf16.gmra.mrb[4].mxu0 %v1193_v30  ;;  %1115 = vmatmul.mubr.bf16.gmra.mrb[4].mxu1 %v1194_v31 }
  0x50   : > { %1106 = vmatprep.mubr.bf16.mxu0 %v1195_v32  ;;  %1118 = vmatprep.mubr.bf16.mxu1 %v1196_v33 }
  0x57   : > { %1107 = vmatmul.mubr.bf16.gmra.mrb[8].mxu0 %v1197_v34  ;;  %1119 = vmatmul.mubr.bf16.gmra.mrb[8].mxu1 %v1198_v35 }
 0x11a   : > { %v1100_v37 = vpop.f32.mrb[0].mxu0  ;;  %v1112_v39 = vpop.f32.mrb[0].mxu1 }
 0x11b   : > { %v610_v40 = vadd.f32 %v1100_v37, %v1394_v36  ;;  %v658_v41 = vadd.f32 %v1112_v39, %v1394_v36  ;;  %v601_v42 = vpop.f32.mrb[1].mxu0  ;;  %v649_v43 = vpop.f32.mrb[1].mxu1 }
 0x11c   : > { %v602_v45 = vadd.f32 %v1394_v36, %v601_v42  ;;  %v650_v46 = vadd.f32 %v1394_v36, %v649_v43  ;;  %v1101_v47 = vpop.f32.mrb[2].mxu0  ;;  %v1113_v48 = vpop.f32.mrb[2].mxu1 }
 0x11d   : > { %v705_v49 = vmul.f32 %v1403_v38, %v610_v40  ;;  %v717_v50 = vmul.f32 %v1403_v38, %v658_v41  ;;  %v613_v51 = vadd.f32 %v1101_v47, %v1394_v36  ;;  %v661_v52 = vadd.f32 %v1113_v48, %v1394_v36  ;;  %v604_v53 = vpop.f32.mrb[3].mxu0  ;;  %v652_v54 = vpop.f32.mrb[3].mxu1 }
 0x11e   : > { %v703_v55 = vmul.f32 %v1403_v38, %v602_v45  ;;  %v715_v56 = vmul.f32 %v1403_v38, %v650_v46  ;;  %v605_v57 = vadd.f32 %v1394_v36, %v604_v53  ;;  %v653_v58 = vadd.f32 %v1394_v36, %v652_v54 }
 0x11f   : > { %v736_v59 = vadd.f32 %v1407_v44, %v705_v49  ;;  %v748_v60 = vadd.f32 %v1407_v44, %v717_v50  ;;  %v706_v61 = vmul.f32 %v1403_v38, %v613_v51  ;;  %v718_v62 = vmul.f32 %v1403_v38, %v661_v52 }
 0x120   : > { %v734_v63 = vadd.f32 %v1407_v44, %v703_v55  ;;  %v746_v0 = vadd.f32 %v1407_v44, %v715_v56  ;;  %v704_v1 = vmul.f32 %v1403_v38, %v605_v57  ;;  %v716_v2 = vmul.f32 %v1403_v38, %v653_v58 }
 0x121   : > { %760 = vst [vmem:[%s1428_s18 + $0x10] sm:$0xff] %v736_v59  ;;  %772 = vst [vmem:[%s1428_s18 + $0x70] sm:$0xff] %v748_v60  ;;  %v737_v3 = vadd.f32 %v1407_v44, %v706_v61  ;;  %v749_v4 = vadd.f32 %v1407_v44, %v718_v62 }
 0x122   : > { %758 = vst [vmem:[%s1428_s18] sm:$0xff] %v734_v63  ;;  %770 = vst [vmem:[%s1428_s18 + $0x60] sm:$0xff] %v746_v0  ;;  %v735_v5 = vadd.f32 %v1407_v44, %v704_v1  ;;  %v747_v6 = vadd.f32 %v1407_v44, %v716_v2  ;;  %v1104_v7 = vpop.f32.mrb[4].mxu0  ;;  %v1116_v8 = vpop.f32.mrb[4].mxu1 }
 0x123   : > { %761 = vst [vmem:[%s1428_s18 + $0x18] sm:$0xff] %v737_v3  ;;  %773 = vst [vmem:[%s1428_s18 + $0x78] sm:$0xff] %v749_v4  ;;  %v626_v9 = vadd.f32 %v1104_v7, %v1394_v36  ;;  %v674_v10 = vadd.f32 %v1116_v8, %v1394_v36  ;;  %v617_v11 = vpop.f32.mrb[5].mxu0  ;;  %v665_v12 = vpop.f32.mrb[5].mxu1 }
 0x124   : > { %759 = vst [vmem:[%s1428_s18 + $0x8] sm:$0xff] %v735_v5  ;;  %771 = vst [vmem:[%s1428_s18 + $0x68] sm:$0xff] %v747_v6  ;;  %v618_v13 = vadd.f32 %v1394_v36, %v617_v11  ;;  %v666_v14 = vadd.f32 %v1394_v36, %v665_v12  ;;  %v1105_v15 = vpop.f32.mrb[6].mxu0  ;;  %v1117_v16 = vpop.f32.mrb[6].mxu1 }
 0x125   : > { %v709_v17 = vmul.f32 %v1403_v38, %v626_v9  ;;  %v721_v18 = vmul.f32 %v1403_v38, %v674_v10  ;;  %v629_v19 = vadd.f32 %v1105_v15, %v1394_v36  ;;  %v677_v20 = vadd.f32 %v1117_v16, %v1394_v36  ;;  %v620_v21 = vpop.f32.mrb[7].mxu0  ;;  %v668_v22 = vpop.f32.mrb[7].mxu1 }
 0x126   : > { %v707_v23 = vmul.f32 %v1403_v38, %v618_v13  ;;  %v719_v24 = vmul.f32 %v1403_v38, %v666_v14  ;;  %v621_v25 = vadd.f32 %v1394_v36, %v620_v21  ;;  %v669_v26 = vadd.f32 %v1394_v36, %v668_v22 }
 0x127   : > { %v740_v27 = vadd.f32 %v1407_v44, %v709_v17  ;;  %v752_v28 = vadd.f32 %v1407_v44, %v721_v18  ;;  %v710_v29 = vmul.f32 %v1403_v38, %v629_v19  ;;  %v722_v30 = vmul.f32 %v1403_v38, %v677_v20 }
 0x128   : > { %v738_v31 = vadd.f32 %v1407_v44, %v707_v23  ;;  %v750_v32 = vadd.f32 %v1407_v44, %v719_v24  ;;  %v708_v33 = vmul.f32 %v1403_v38, %v621_v25  ;;  %v720_v34 = vmul.f32 %v1403_v38, %v669_v26  ;;  %v871_v9 = vld [vmem:[%s1428_s18 + $0x10] sm:$0xff] (%p1304_p6) }
 0x129   : > { %764 = vst [vmem:[%s1428_s18 + $0x30] sm:$0xff] %v740_v27  ;;  %776 = vst [vmem:[%s1428_s18 + $0x90] sm:$0xff] %v752_v28  ;;  %v741_v35 = vadd.f32 %v1407_v44, %v710_v29  ;;  %v753_v37 = vadd.f32 %v1407_v44, %v722_v30  ;;  %v891_v19 = vld [vmem:[%s1428_s18 + $0x60] sm:$0xff] (%p1304_p6)  ;;  %v895_v21 = vld [vmem:[%s1428_s18 + $0x70] sm:$0xff] (%p1304_p6) }
 0x12a   : > { %762 = vst [vmem:[%s1428_s18 + $0x20] sm:$0xff] %v738_v31  ;;  %774 = vst [vmem:[%s1428_s18 + $0x80] sm:$0xff] %v750_v32  ;;  %v739_v39 = vadd.f32 %v1407_v44, %v708_v33  ;;  %v751_v40 = vadd.f32 %v1407_v44, %v720_v34  ;;  %v1108_v41 = vpop.f32.mrb[8].mxu0  ;;  %v1120_v42 = vpop.f32.mrb[8].mxu1  ;;  %v873_v10 = vld [vmem:[%s1428_s18 + $0x18] sm:$0xff] (%p1304_p6) }
 0x12b   : > { %765 = vst [vmem:[%s1428_s18 + $0x38] sm:$0xff] %v741_v35  ;;  %777 = vst [vmem:[%s1428_s18 + $0x98] sm:$0xff] %v753_v37  ;;  %v642_v43 = vadd.f32 %v1108_v41, %v1394_v36  ;;  %v690_v45 = vadd.f32 %v1120_v42, %v1394_v36  ;;  %v633_v46 = vpop.f32.mrb[9].mxu0  ;;  %v681_v47 = vpop.f32.mrb[9].mxu1  ;;  %v893_v20 = vld [vmem:[%s1428_s18 + $0x68] sm:$0xff] (%p1304_p6)  ;;  %v897_v22 = vld [vmem:[%s1428_s18 + $0x78] sm:$0xff] (%p1304_p6) }
 0x12c   : > { %763 = vst [vmem:[%s1428_s18 + $0x28] sm:$0xff] %v739_v39  ;;  %775 = vst [vmem:[%s1428_s18 + $0x88] sm:$0xff] %v751_v40  ;;  %v634_v48 = vadd.f32 %v1394_v36, %v633_v46  ;;  %v682_v49 = vadd.f32 %v1394_v36, %v681_v47  ;;  %v1109_v50 = vpop.f32.mrb[10].mxu0  ;;  %v1121_v51 = vpop.f32.mrb[10].mxu1 }
 0x12d   : > { %v713_v52 = vmul.f32 %v1403_v38, %v642_v43  ;;  %v725_v53 = vmul.f32 %v1403_v38, %v690_v45  ;;  %v645_v54 = vadd.f32 %v1109_v50, %v1394_v36  ;;  %v693_v55 = vadd.f32 %v1121_v51, %v1394_v36  ;;  %v636_v56 = vpop.f32.mrb[11].mxu0  ;;  %v684_v57 = vpop.f32.mrb[11].mxu1  ;;  %872 = vst [vmem:[%s1515_s25 + $0x20] sm:$0xff] (%p1304_p6), %v871_v9 }
 0x12e   : > { %v711_v58 = vmul.f32 %v1403_v38, %v634_v48  ;;  %v723_v59 = vmul.f32 %v1403_v38, %v682_v49  ;;  %v637_v60 = vadd.f32 %v1394_v36, %v636_v56  ;;  %v685_v61 = vadd.f32 %v1394_v36, %v684_v57  ;;  %788 = sbr.rel (!%p1304_p6) target bundleno = 319 (0x13f), region = 85  ;;  %874 = vst [vmem:[%s1515_s25 + $0x30] sm:$0xff] (%p1304_p6), %v873_v10 }
 0x12f   : > { %v744_v62 = vadd.f32 %v1407_v44, %v713_v52  ;;  %v756_v63 = vadd.f32 %v1407_v44, %v725_v53  ;;  %v714_v0 = vmul.f32 %v1403_v38, %v645_v54  ;;  %v726_v1 = vmul.f32 %v1403_v38, %v693_v55  ;;  %892 = vst [vmem:[%s1515_s25 + $0xc0] sm:$0xff] (%p1304_p6), %v891_v19 }
 0x130   : > { %v742_v2 = vadd.f32 %v1407_v44, %v711_v58  ;;  %v754_v3 = vadd.f32 %v1407_v44, %v723_v59  ;;  %v712_v4 = vmul.f32 %v1403_v38, %v637_v60  ;;  %v724_v36 = vmul.f32 %v1403_v38, %v685_v61  ;;  %v867_v38 = vld [vmem:[%s1428_s18] sm:$0xff] (%p1304_p6)  ;;  %v879_v13 = vld [vmem:[%s1428_s18 + $0x30] sm:$0xff] (%p1304_p6)  ;;  %894 = vst [vmem:[%s1515_s25 + $0xd0] sm:$0xff] (%p1304_p6), %v893_v20 }
 0x131   : > { %768 = vst [vmem:[%s1428_s18 + $0x50] sm:$0xff] %v744_v62  ;;  %780 = vst [vmem:[%s1428_s18 + $0xb0] sm:$0xff] %v756_v63  ;;  %v745_v5 = vadd.f32 %v1407_v44, %v714_v0  ;;  %v757_v6 = vadd.f32 %v1407_v44, %v726_v1  ;;  %v875_v11 = vld [vmem:[%s1428_s18 + $0x20] sm:$0xff] (%p1304_p6)  ;;  %v903_v25 = vld [vmem:[%s1428_s18 + $0x90] sm:$0xff] (%p1304_p6) }
 0x132   : > { %766 = vst [vmem:[%s1428_s18 + $0x40] sm:$0xff] %v742_v2  ;;  %778 = vst [vmem:[%s1428_s18 + $0xa0] sm:$0xff] %v754_v3  ;;  %v743_v7 = vadd.f32 %v1407_v44, %v712_v4  ;;  %v755_v8 = vadd.f32 %v1407_v44, %v724_v36  ;;  %v869_v44 = vld [vmem:[%s1428_s18 + $0x8] sm:$0xff] (%p1304_p6)  ;;  %v881_v14 = vld [vmem:[%s1428_s18 + $0x38] sm:$0xff] (%p1304_p6) }
 0x133   : > { %769 = vst [vmem:[%s1428_s18 + $0x58] sm:$0xff] %v745_v5  ;;  %781 = vst [vmem:[%s1428_s18 + $0xb8] sm:$0xff] %v757_v6  ;;  %v877_v12 = vld [vmem:[%s1428_s18 + $0x28] sm:$0xff] (%p1304_p6)  ;;  %v899_v23 = vld [vmem:[%s1428_s18 + $0x80] sm:$0xff] (%p1304_p6) }
 0x134   : > { %767 = vst [vmem:[%s1428_s18 + $0x48] sm:$0xff] %v743_v7  ;;  %779 = vst [vmem:[%s1428_s18 + $0xa8] sm:$0xff] %v755_v8  ;;  %v901_v24 = vld [vmem:[%s1428_s18 + $0x88] sm:$0xff] (%p1304_p6)  ;;  %v905_v26 = vld [vmem:[%s1428_s18 + $0x98] sm:$0xff] (%p1304_p6) }
 0x135   : > { %868 = vst [vmem:[%s1515_s25] sm:$0xff] %v867_v38  ;;  %870 = vst [vmem:[%s1515_s25 + $0x10] sm:$0xff] %v869_v44 }
 0x136   : > { %876 = vst [vmem:[%s1515_s25 + $0x40] sm:$0xff] %v875_v11  ;;  %878 = vst [vmem:[%s1515_s25 + $0x50] sm:$0xff] %v877_v12 }
 0x137   : > { %880 = vst [vmem:[%s1515_s25 + $0x60] sm:$0xff] %v879_v13  ;;  %882 = vst [vmem:[%s1515_s25 + $0x70] sm:$0xff] %v881_v14 }
 0x138   : > { %v887_v17 = vld [vmem:[%s1428_s18 + $0x50] sm:$0xff]  ;;  %896 = vst [vmem:[%s1515_s25 + $0xe0] sm:$0xff] %v895_v21  ;;  %898 = vst [vmem:[%s1515_s25 + $0xf0] sm:$0xff] %v897_v22 }
 0x139   : > { %v883_v15 = vld [vmem:[%s1428_s18 + $0x40] sm:$0xff]  ;;  %888 = vst [vmem:[%s1515_s25 + $0xa0] sm:$0xff] %v887_v17  ;;  %900 = vst [vmem:[%s1515_s25 + $0x100] sm:$0xff] %v899_v23  ;;  %v911_v29 = vld [vmem:[%s1428_s18 + $0xb0] sm:$0xff] }
 0x13a   : > { %884 = vst [vmem:[%s1515_s25 + $0x80] sm:$0xff] %v883_v15  ;;  %v889_v18 = vld [vmem:[%s1428_s18 + $0x58] sm:$0xff]  ;;  %902 = vst [vmem:[%s1515_s25 + $0x110] sm:$0xff] %v901_v24  ;;  %v907_v27 = vld [vmem:[%s1428_s18 + $0xa0] sm:$0xff] }
 0x13b   : > { %v885_v16 = vld [vmem:[%s1428_s18 + $0x48] sm:$0xff]  ;;  %890 = vst [vmem:[%s1515_s25 + $0xb0] sm:$0xff] %v889_v18  ;;  %904 = vst [vmem:[%s1515_s25 + $0x120] sm:$0xff] %v903_v25  ;;  %v913_v30 = vld [vmem:[%s1428_s18 + $0xb8] sm:$0xff] }
 0x13c   : > { %886 = vst [vmem:[%s1515_s25 + $0x90] sm:$0xff] %v885_v16  ;;  %906 = vst [vmem:[%s1515_s25 + $0x130] sm:$0xff] %v905_v26  ;;  %v909_v28 = vld [vmem:[%s1428_s18 + $0xa8] sm:$0xff] }
 0x13d   : > { %908 = vst [vmem:[%s1515_s25 + $0x140] sm:$0xff] %v907_v27  ;;  %910 = vst [vmem:[%s1515_s25 + $0x150] sm:$0xff] %v909_v28 }
 0x13e   : > { %912 = vst [vmem:[%s1515_s25 + $0x160] sm:$0xff] %v911_v29  ;;  %914 = vst [vmem:[%s1515_s25 + $0x170] sm:$0xff] %v913_v30 }
 0x13f PF: > { %s15_s22 = sadd.s32 1, %s1237_s22   ;;  %s1584_s18 = smov %s1225_s19 }
 0x140   : > { %p12_p12 = scmp.ge.s32.totalorder %s15_s22, 4   ;;  %s1585_s19 = smov %s1309_s28 }
 0x141   : > { %s1586_s20 = smov %s1233_s21  ;;  %s1587_s21 = smov %s1589_s23 }
 0x142   :  { %14 = sbr.rel (!%p12_p12) target bundleno = 3 (0x3), region = 166 }

// kernel: rawformer_s_forward.22
= control target key start
LH: loop header
LB: loop body
LE: loop exit
PB: predicated region body
PF: predicated region fallthrough
CT: control target
= control target key end

     0   :  { %v368_v20 = vlaneseq  ;;  %v944_v36 = vmov 0.0   ;;  %s1540_s1 = inlined_call_operand.vmem [shape: bf16[128,128], index: 1, kind: input, shape index: {}]   ;;  %s1541_s0 = inlined_call_operand.vmem [shape: bf16[192,128], index: 0, kind: input, shape index: {}]   ;;  %s1542_s2 = inlined_call_operand.vmem [shape: f32[1,128], index: 2, kind: input, shape index: {}]   ;;  %s1543_s3 = inlined_call_operand.vmem [shape: f32[192,128], index: 3, kind: input, shape index: {}]   ;;  %s1544_s4 = inlined_call_operand.vmem [shape: f32[1,128], index: 4, kind: input, shape index: {}]   ;;  %s1545_s5 = inlined_call_operand.vmem [shape: f32[1,128], index: 5, kind: input, shape index: {}]   ;;  %s1546_s6 = inlined_call_operand.vmem [shape: f32[192,128], index: 6, kind: output, shape index: {}]  }
   0x1   :  { %v876_v0 = vld [vmem:[%s1540_s1] sm:$0xff]   ;;  %v877_v1 = vld [vmem:[%s1540_s1 + $0x8] sm:$0xff]   ;;  %v878_v2 = vld [vmem:[%s1540_s1 + $0x10] sm:$0xff]  }
   0x2   :  { %819 = vmatprep.subr.bf16.mxu0 %v876_v0  ;;  %859 = vmatprep.subr.bf16.mxu1 %v876_v0  ;;  %v879_v3 = vld [vmem:[%s1540_s1 + $0x18] sm:$0xff]   ;;  %v884_v4 = vld [vmem:[%s1541_s0] sm:$0xff]   ;;  %v885_v5 = vld [vmem:[%s1541_s0 + $0x30] sm:$0xff]   ;;  %v369_v21 = vand.u32 127, %v368_v20 }
   0x3   :  { %820 = vmatpush3.bf16.msra.mxu0 %v876_v0  ;;  %867 = vmatpush3.bf16.msra.mxu1 %v876_v0  ;;  %v880_v6 = vld [vmem:[%s1540_s1 + $0x20] sm:$0xff]   ;;  %v881_v7 = vld [vmem:[%s1540_s1 + $0x28] sm:$0xff]   ;;  %v882_v8 = vld [vmem:[%s1540_s1 + $0x30] sm:$0xff]  }
   0x4   :  { %821 = vmatprep.subr.bf16.mxu0 %v877_v1  ;;  %860 = vmatprep.subr.bf16.mxu1 %v877_v1  ;;  %v883_v9 = vld [vmem:[%s1540_s1 + $0x38] sm:$0xff]   ;;  %v886_v10 = vld [vmem:[%s1541_s0 + $0x8] sm:$0xff]   ;;  %v888_v12 = vld [vmem:[%s1541_s0 + $0x10] sm:$0xff]   ;;  %vm370_vm0 = vcmp.lt.s32.totalorder %v369_v21, 64 }
   0x5   :  { %835 = vmatprep.mubr.bf16.mxu0 %v884_v4  ;;  %847 = vmatprep.mubr.bf16.mxu1 %v885_v5  ;;  %v887_v11 = vld [vmem:[%s1541_s0 + $0x38] sm:$0xff]   ;;  %v890_v13 = vld [vmem:[%s1541_s0 + $0x40] sm:$0xff]   ;;  %v891_v15 = vld [vmem:[%s1541_s0 + $0x48] sm:$0xff]   ;;  %v1060_v37 = vsel %vm370_vm0, 1.0, %v944_v36 }
   0x6   :  { %v889_v14 = vld [vmem:[%s1541_s0 + $0x18] sm:$0xff]   ;;  %v892_v16 = vld [vmem:[%s1541_s0 + $0x20] sm:$0xff]   ;;  %v894_v17 = vld [vmem:[%s1541_s0 + $0x50] sm:$0xff]  }
   0x7   :  { %822 = vmatpush3.bf16.msra.mxu0 %v877_v1  ;;  %868 = vmatpush3.bf16.msra.mxu1 %v877_v1  ;;  %v893_v18 = vld [vmem:[%s1541_s0 + $0x28] sm:$0xff]   ;;  %v895_v19 = vld [vmem:[%s1541_s0 + $0x58] sm:$0xff]   ;;  %v1043_v22 = vld [vmem:[%s1542_s2] ss:$0 sm:$0xff] }
   0x8   :  { %823 = vmatprep.subr.bf16.mxu0 %v878_v2  ;;  %861 = vmatprep.subr.bf16.mxu1 %v878_v2  ;;  %v334_v25 = vld [vmem:[%s1543_s3 + $0x70] sm:$0xff]  ;;  %v320_v32 = vld [vmem:[%s1543_s3] sm:$0xff]  ;;  %v323_v34 = vld [vmem:[%s1543_s3 + $0x18] sm:$0xff] }
   0x9   :  { %v322_v26 = vld [vmem:[%s1543_s3 + $0x10] sm:$0xff]  ;;  %v332_v46 = vld [vmem:[%s1543_s3 + $0x60] sm:$0xff]  ;;  %v335_v50 = vld [vmem:[%s1543_s3 + $0x78] sm:$0xff] }
   0xa   :  { %v321_v61 = vld [vmem:[%s1543_s3 + $0x8] sm:$0xff]  ;;  %v326_v5 = vld [vmem:[%s1543_s3 + $0x30] sm:$0xff] }
   0xb   :  { %824 = vmatpush3.bf16.msra.mxu0 %v878_v2  ;;  %869 = vmatpush3.bf16.msra.mxu1 %v878_v2  ;;  %v333_v62 = vld [vmem:[%s1543_s3 + $0x68] sm:$0xff] }
   0xc   :  { %825 = vmatprep.subr.bf16.mxu0 %v879_v3  ;;  %862 = vmatprep.subr.bf16.mxu1 %v879_v3 }
   0xf   :  { %826 = vmatpush3.bf16.msra.mxu0 %v879_v3  ;;  %870 = vmatpush3.bf16.msra.mxu1 %v879_v3 }
  0x10   :  { %827 = vmatprep.subr.bf16.mxu0 %v880_v6  ;;  %863 = vmatprep.subr.bf16.mxu1 %v880_v6 }
  0x13   :  { %828 = vmatpush3.bf16.msra.mxu0 %v880_v6  ;;  %871 = vmatpush3.bf16.msra.mxu1 %v880_v6  ;;  %v327_v6 = vld [vmem:[%s1543_s3 + $0x38] sm:$0xff] }
  0x14   :  { %829 = vmatprep.subr.bf16.mxu0 %v881_v7  ;;  %864 = vmatprep.subr.bf16.mxu1 %v881_v7 }
  0x17   :  { %830 = vmatpush3.bf16.msra.mxu0 %v881_v7  ;;  %872 = vmatpush3.bf16.msra.mxu1 %v881_v7 }
  0x18   :  { %831 = vmatprep.subr.bf16.mxu0 %v882_v8  ;;  %865 = vmatprep.subr.bf16.mxu1 %v882_v8 }
  0x1b   :  { %832 = vmatpush3.bf16.msra.mxu0 %v882_v8  ;;  %873 = vmatpush3.bf16.msra.mxu1 %v882_v8 }
  0x1c   :  { %833 = vmatprep.subr.bf16.mxu0 %v883_v9  ;;  %866 = vmatprep.subr.bf16.mxu1 %v883_v9 }
  0x1f   :  { %834 = vmatpush3.bf16.msra.mxu0 %v883_v9  ;;  %874 = vmatpush3.bf16.msra.mxu1 %v883_v9 }
  0x22   :  { %836 = vmatmul.mubr.bf16.vlgmr.msra.gmra.mrb[0].mxu0 %v886_v10  ;;  %848 = vmatmul.mubr.bf16.vlgmr.msra.gmra.mrb[0].mxu1 %v887_v11 }
  0x23   :  { %839 = vmatprep.mubr.bf16.mxu0 %v888_v12  ;;  %851 = vmatprep.mubr.bf16.mxu1 %v890_v13 }
  0x2a   :  { %840 = vmatmul.mubr.bf16.gmra.mrb[4].mxu0 %v889_v14  ;;  %852 = vmatmul.mubr.bf16.gmra.mrb[4].mxu1 %v891_v15  ;;  %v338_v14 = vld [vmem:[%s1543_s3 + $0x90] sm:$0xff] }
  0x2b   :  { %843 = vmatprep.mubr.bf16.mxu0 %v892_v16  ;;  %855 = vmatprep.mubr.bf16.mxu1 %v894_v17  ;;  %v339_v16 = vld [vmem:[%s1543_s3 + $0x98] sm:$0xff] }
  0x32   :  { %844 = vmatmul.mubr.bf16.gmra.mrb[8].mxu0 %v893_v18  ;;  %856 = vmatmul.mubr.bf16.gmra.mrb[8].mxu1 %v895_v19 }
  0xf5   :  { %v837_v23 = vpop.f32.mrb[0].mxu0  ;;  %v849_v24 = vpop.f32.mrb[0].mxu1 }
  0xf6   :  { %v234_v27 = vadd.f32 %v837_v23, %v1043_v22  ;;  %v282_v28 = vadd.f32 %v849_v24, %v1043_v22  ;;  %v225_v29 = vpop.f32.mrb[1].mxu0  ;;  %v273_v30 = vpop.f32.mrb[1].mxu1 }
  0xf7   :  { %v226_v31 = vadd.f32 %v1043_v22, %v225_v29  ;;  %v838_v33 = vpop.f32.mrb[2].mxu0  ;;  %v850_v35 = vpop.f32.mrb[2].mxu1  ;;  %v274_v43 = vadd.f32 %v1043_v22, %v273_v30 }
  0xf8   :  { %v237_v38 = vadd.f32 %v838_v33, %v1043_v22  ;;  %v228_v39 = vpop.f32.mrb[3].mxu0  ;;  %v276_v40 = vpop.f32.mrb[3].mxu1  ;;  %v1063_v41 = vadd.f32 %v334_v25, %v282_v28  ;;  %v1065_v42 = vadd.f32 %v322_v26, %v234_v27  ;;  %v285_v44 = vadd.f32 %v850_v35, %v1043_v22  ;;  %v325_v35 = vld [vmem:[%s1543_s3 + $0x28] sm:$0xff] }
  0xf9   :  { %v1069_v45 = vadd.f32 %v320_v32, %v226_v31  ;;  %v1083_v51 = vadd.f32 %v332_v46, %v274_v43  ;;  %v229_v52 = vadd.f32 %v1043_v22, %v228_v39  ;;  %v277_v56 = vadd.f32 %v1043_v22, %v276_v40  ;;  %v336_v46 = vld [vmem:[%s1543_s3 + $0x80] sm:$0xff] }
  0xfa   :  { %v1074_v47 = vadd.f32 %v323_v34, %v237_v38  ;;  %v387_v48 = vmul.f32 %v1060_v37, %v1063_v41  ;;  %v375_v49 = vmul.f32 %v1060_v37, %v1065_v42  ;;  %v1086_v55 = vadd.f32 %v335_v50, %v285_v44  ;;  %v324_v34 = vld [vmem:[%s1543_s3 + $0x20] sm:$0xff] }
  0xfb   :  { %v373_v58 = vmul.f32 %v1060_v37, %v1069_v45  ;;  %v1107_v7 = vadd.f32 %v321_v61, %v229_v52  ;;  %v1109_v8 = vadd.f32 %v333_v62, %v277_v56  ;;  %v385_v10 = vmul.f32 %v1060_v37, %v1083_v51  ;;  %v330_v52 = vld [vmem:[%s1543_s3 + $0x50] sm:$0xff] }
  0xfc   :  { %425 = vadd.xlane.f32.xlu0 %v387_v48  ;;  %401 = vadd.xlane.f32.xlu1 %v375_v49  ;;  %v376_v57 = vmul.f32 %v1060_v37, %v1074_v47  ;;  %v388_v9 = vmul.f32 %v1060_v37, %v1086_v55  ;;  %v337_v48 = vld [vmem:[%s1543_s3 + $0x88] sm:$0xff] }
  0xfd   :  { %v841_v53 = vpop.f32.mrb[4].mxu0  ;;  %v853_v54 = vpop.f32.mrb[4].mxu1  ;;  %v386_v19 = vmul.f32 %v1060_v37, %v1109_v8  ;;  %v374_v20 = vmul.f32 %v1060_v37, %v1107_v7 }
  0xfe   :  { %v241_v59 = vpop.f32.mrb[5].mxu0  ;;  %v289_v60 = vpop.f32.mrb[5].mxu1  ;;  %v250_v1 = vadd.f32 %v841_v53, %v1043_v22  ;;  %v298_v11 = vadd.f32 %v853_v54, %v1043_v22  ;;  %v331_v53 = vld [vmem:[%s1543_s3 + $0x58] sm:$0xff] }
  0xff   :  { %v842_v63 = vpop.f32.mrb[6].mxu0  ;;  %v854_v0 = vpop.f32.mrb[6].mxu1  ;;  %v242_v32 = vadd.f32 %v1043_v22, %v241_v59  ;;  %v290_v43 = vadd.f32 %v1043_v22, %v289_v60 }
 0x100   :  { %403 = vadd.xlane.f32.xlu1 %v376_v57  ;;  %397 = vadd.xlane.f32.xlu0 %v373_v58  ;;  %v253_v2 = vadd.f32 %v842_v63, %v1043_v22  ;;  %v244_v3 = vpop.f32.mrb[7].mxu0  ;;  %v292_v4 = vpop.f32.mrb[7].mxu1  ;;  %v1116_v12 = vadd.f32 %v326_v5, %v250_v1  ;;  %v301_v15 = vadd.f32 %v854_v0, %v1043_v22  ;;  %v328_v1 = vld [vmem:[%s1543_s3 + $0x40] sm:$0xff] }
 0x101   :  { %v1133_v24 = vadd.f32 %v338_v14, %v298_v11  ;;  %v245_v33 = vadd.f32 %v1043_v22, %v244_v3  ;;  %v1153_v39 = vadd.f32 %v324_v34, %v242_v32  ;;  %v293_v44 = vadd.f32 %v1043_v22, %v292_v4 }
 0x102   :  { %v1118_v13 = vadd.f32 %v327_v6, %v253_v2  ;;  %v1135_v27 = vadd.f32 %v339_v16, %v301_v15  ;;  %v379_v29 = vmul.f32 %v1060_v37, %v1116_v12  ;;  %v1173_v54 = vadd.f32 %v336_v46, %v290_v43  ;;  %v329_v2 = vld [vmem:[%s1543_s3 + $0x48] sm:$0xff] }
 0x103   :  { %v391_v38 = vmul.f32 %v1060_v37, %v1133_v24  ;;  %v1155_v40 = vadd.f32 %v325_v35, %v245_v33  ;;  %v1175_v56 = vadd.f32 %v337_v48, %v293_v44  ;;  %v377_v58 = vmul.f32 %v1060_v37, %v1153_v39 }
 0x104   :  { %427 = vadd.xlane.f32.xlu1 %v388_v9  ;;  %421 = vadd.xlane.f32.xlu0 %v385_v10  ;;  %v380_v28 = vmul.f32 %v1060_v37, %v1118_v13  ;;  %v392_v36 = vmul.f32 %v1060_v37, %v1135_v27  ;;  %v389_v0 = vmul.f32 %v1060_v37, %v1173_v54  ;;  %v340_v9 = vld [vmem:[%s1543_s3 + $0xa0] sm:$0xff]  ;;  %v341_v10 = vld [vmem:[%s1543_s3 + $0xa8] sm:$0xff] }
 0x105   :  { %v845_v17 = vpop.f32.mrb[8].mxu0  ;;  %v1127_v18 = vpop.f32.mrb[8].mxu1  ;;  %v378_v57 = vmul.f32 %v1060_v37, %v1155_v40  ;;  %v390_v63 = vmul.f32 %v1060_v37, %v1175_v56 }
 0x106   :  { %v257_v21 = vpop.f32.mrb[9].mxu0  ;;  %v305_v23 = vpop.f32.mrb[9].mxu1  ;;  %v266_v49 = vadd.f32 %v845_v17, %v1043_v22  ;;  %v314_v17 = vadd.f32 %v1127_v18, %v1043_v22 }
 0x107   :  { %v846_v25 = vpop.f32.mrb[10].mxu0  ;;  %v858_v26 = vpop.f32.mrb[10].mxu1  ;;  %v258_v61 = vadd.f32 %v1043_v22, %v257_v21  ;;  %v306_v3 = vadd.f32 %v1043_v22, %v305_v23  ;;  %v342_v23 = vld [vmem:[%s1543_s3 + $0xb0] sm:$0xff] }
 0x108   :  { %423 = vadd.xlane.f32.xlu1 %v386_v19  ;;  %399 = vadd.xlane.f32.xlu0 %v374_v20  ;;  %v260_v30 = vpop.f32.mrb[11].mxu0  ;;  %v308_v31 = vpop.f32.mrb[11].mxu1  ;;  %v269_v50 = vadd.f32 %v846_v25, %v1043_v22  ;;  %v1181_v59 = vadd.f32 %v330_v52, %v266_v49  ;;  %v317_v19 = vadd.f32 %v858_v26, %v1043_v22  ;;  %v343_v25 = vld [vmem:[%s1543_s3 + $0xb8] sm:$0xff] }
 0x109   :  { %v261_v62 = vadd.f32 %v1043_v22, %v260_v30  ;;  %v309_v6 = vadd.f32 %v1043_v22, %v308_v31  ;;  %v1209_v11 = vadd.f32 %v328_v1, %v258_v61  ;;  %v1213_v15 = vadd.f32 %v340_v9, %v306_v3 }
 0x10a   :  { %v1183_v60 = vadd.f32 %v331_v53, %v269_v50  ;;  %v383_v5 = vmul.f32 %v1060_v37, %v1181_v59  ;;  %v1234_v26 = vadd.f32 %v342_v23, %v314_v17 }
 0x10b   :  { %v1211_v14 = vadd.f32 %v329_v2, %v261_v62  ;;  %v1215_v16 = vadd.f32 %v341_v10, %v309_v6  ;;  %v381_v21 = vmul.f32 %v1060_v37, %v1209_v11  ;;  %v393_v22 = vmul.f32 %v1060_v37, %v1213_v15 }
 0x10c   :  { %411 = vadd.xlane.f32.xlu1 %v380_v28  ;;  %409 = vadd.xlane.f32.xlu0 %v379_v29  ;;  %v384_v4 = vmul.f32 %v1060_v37, %v1183_v60  ;;  %v1236_v28 = vadd.f32 %v343_v25, %v317_v19  ;;  %v395_v30 = vmul.f32 %v1060_v37, %v1234_v26 }
 0x10d   :  { %v382_v20 = vmul.f32 %v1060_v37, %v1211_v14  ;;  %v394_v18 = vmul.f32 %v1060_v37, %v1215_v16 }
 0x10e   :  { %v396_v29 = vmul.f32 %v1060_v37, %v1236_v28 }
 0x110   :  { %435 = vadd.xlane.f32.xlu1 %v392_v36  ;;  %433 = vadd.xlane.f32.xlu0 %v391_v38 }
 0x114   :  { %407 = vadd.xlane.f32.xlu1 %v378_v57  ;;  %405 = vadd.xlane.f32.xlu0 %v377_v58 }
 0x118   :  { %431 = vadd.xlane.f32.xlu1 %v390_v63  ;;  %429 = vadd.xlane.f32.xlu0 %v389_v0 }
 0x11c   :  { %419 = vadd.xlane.f32.xlu1 %v384_v4  ;;  %417 = vadd.xlane.f32.xlu0 %v383_v5 }
 0x120   :  { %415 = vadd.xlane.f32.xlu1 %v382_v20  ;;  %413 = vadd.xlane.f32.xlu0 %v381_v21 }
 0x124   :  { %439 = vadd.xlane.f32.xlu1 %v394_v18  ;;  %437 = vadd.xlane.f32.xlu0 %v393_v22 }
 0x128   :  { %443 = vadd.xlane.f32.xlu1 %v396_v29  ;;  %441 = vadd.xlane.f32.xlu0 %v395_v30 }
 0x189   :  { %v426_v31 = vpop.xlane.xlu0 %425  ;;  %v402_v32 = vpop.xlane.xlu1 %401 }
 0x18a   :  { %v459_v33 = vmul.f32 0.015625, %v426_v31  ;;  %v447_v34 = vmul.f32 0.015625, %v402_v32 }
 0x18c   :  { %v483_v35 = vsub.f32 %v1063_v41, %v459_v33  ;;  %v471_v36 = vsub.f32 %v1065_v42, %v447_v34 }
 0x18d   :  { %v404_v38 = vpop.xlane.xlu1 %403  ;;  %v398_v43 = vpop.xlane.xlu0 %397 }
 0x18e   :  { %v448_v44 = vmul.f32 0.015625, %v404_v38  ;;  %v445_v46 = vmul.f32 0.015625, %v398_v43  ;;  %v1245_v48 = vmul.f32 %v1060_v37, %v471_v36  ;;  %v1252_v53 = vmul.f32 %v1060_v37, %v483_v35 }
 0x190   :  { %v472_v49 = vsub.f32 %v1074_v47, %v448_v44  ;;  %v469_v50 = vsub.f32 %v1069_v45, %v445_v46  ;;  %v519_v52 = vmul.f32 %v1245_v48, %v1245_v48  ;;  %v531_v0 = vmul.f32 %v1252_v53, %v1252_v53 }
 0x191   :  { %v428_v41 = vpop.xlane.xlu1 %427  ;;  %v422_v57 = vpop.xlane.xlu0 %421 }
 0x192   :  { %v460_v42 = vmul.f32 0.015625, %v428_v41  ;;  %v457_v58 = vmul.f32 0.015625, %v422_v57  ;;  %545 = vadd.xlane.f32.xlu0 %v519_v52  ;;  %v1255_v61 = vmul.f32 %v1060_v37, %v472_v49  ;;  %v1258_v62 = vmul.f32 %v1060_v37, %v469_v50 }
 0x194   :  { %v484_v47 = vsub.f32 %v1086_v55, %v460_v42  ;;  %v481_v45 = vsub.f32 %v1083_v51, %v457_v58  ;;  %v520_v63 = vmul.f32 %v1255_v61, %v1255_v61  ;;  %v517_v55 = vmul.f32 %v1258_v62, %v1258_v62 }
 0x195   :  { %v424_v1 = vpop.xlane.xlu1 %423  ;;  %v400_v2 = vpop.xlane.xlu0 %399 }
 0x196   :  { %v458_v3 = vmul.f32 0.015625, %v424_v1  ;;  %v446_v4 = vmul.f32 0.015625, %v400_v2  ;;  %547 = vadd.xlane.f32.xlu1 %v520_v63  ;;  %569 = vadd.xlane.f32.xlu0 %v531_v0  ;;  %v1267_v5 = vmul.f32 %v1060_v37, %v484_v47  ;;  %v1276_v10 = vmul.f32 %v1060_v37, %v481_v45 }
 0x198   :  { %v482_v51 = vsub.f32 %v1109_v8, %v458_v3  ;;  %v470_v6 = vsub.f32 %v1107_v7, %v446_v4  ;;  %v532_v9 = vmul.f32 %v1267_v5, %v1267_v5  ;;  %v529_v18 = vmul.f32 %v1276_v10, %v1276_v10 }
 0x199   :  { %v412_v17 = vpop.xlane.xlu1 %411  ;;  %v410_v19 = vpop.xlane.xlu0 %409 }
 0x19a   :  { %v452_v20 = vmul.f32 0.015625, %v412_v17  ;;  %v451_v21 = vmul.f32 0.015625, %v410_v19  ;;  %571 = vadd.xlane.f32.xlu1 %v532_v9  ;;  %541 = vadd.xlane.f32.xlu0 %v517_v55  ;;  %v1279_v23 = vmul.f32 %v1060_v37, %v470_v6  ;;  %v1282_v25 = vmul.f32 %v1060_v37, %v482_v51 }
 0x19c   :  { %v476_v7 = vsub.f32 %v1118_v13, %v452_v20  ;;  %v475_v8 = vsub.f32 %v1116_v12, %v451_v21  ;;  %v518_v22 = vmul.f32 %v1279_v23, %v1279_v23  ;;  %v530_v13 = vmul.f32 %v1282_v25, %v1282_v25 }
 0x19d   :  { %v436_v29 = vpop.xlane.xlu1 %435  ;;  %v434_v30 = vpop.xlane.xlu0 %433 }
 0x19e   :  { %v464_v31 = vmul.f32 0.015625, %v436_v29  ;;  %v463_v32 = vmul.f32 0.015625, %v434_v30  ;;  %565 = vadd.xlane.f32.xlu0 %v529_v18  ;;  %543 = vadd.xlane.f32.xlu1 %v518_v22  ;;  %v1291_v33 = vmul.f32 %v1060_v37, %v475_v8  ;;  %v1300_v36 = vmul.f32 %v1060_v37, %v476_v7 }
 0x1a0   :  { %v488_v12 = vsub.f32 %v1135_v27, %v464_v31  ;;  %v487_v34 = vsub.f32 %v1133_v24, %v463_v32  ;;  %v523_v35 = vmul.f32 %v1291_v33, %v1291_v33  ;;  %v524_v52 = vmul.f32 %v1300_v36, %v1300_v36 }
 0x1a1   :  { %v408_v38 = vpop.xlane.xlu1 %407  ;;  %v406_v43 = vpop.xlane.xlu0 %405 }
 0x1a2   :  { %v450_v44 = vmul.f32 0.015625, %v408_v38  ;;  %v449_v46 = vmul.f32 0.015625, %v406_v43  ;;  %567 = vadd.xlane.f32.xlu1 %v530_v13  ;;  %553 = vadd.xlane.f32.xlu0 %v523_v35  ;;  %v1303_v49 = vmul.f32 %v1060_v37, %v487_v34  ;;  %v1306_v50 = vmul.f32 %v1060_v37, %v488_v12 }
 0x1a4   :  { %v474_v24 = vsub.f32 %v1155_v40, %v450_v44  ;;  %v473_v27 = vsub.f32 %v1153_v39, %v449_v46  ;;  %v535_v41 = vmul.f32 %v1303_v49, %v1303_v49  ;;  %v536_v40 = vmul.f32 %v1306_v50, %v1306_v50 }
 0x1a5   :  { %v432_v57 = vpop.xlane.xlu1 %431  ;;  %v430_v42 = vpop.xlane.xlu0 %429 }
 0x1a6   :  { %v462_v58 = vmul.f32 0.015625, %v432_v57  ;;  %v461_v47 = vmul.f32 0.015625, %v430_v42  ;;  %555 = vadd.xlane.f32.xlu1 %v524_v52  ;;  %577 = vadd.xlane.f32.xlu0 %v535_v41  ;;  %v1315_v45 = vmul.f32 %v1060_v37, %v473_v27  ;;  %v1324_v1 = vmul.f32 %v1060_v37, %v474_v24 }
 0x1a8   :  { %v486_v39 = vsub.f32 %v1175_v56, %v462_v58  ;;  %v485_v63 = vsub.f32 %v1173_v54, %v461_v47  ;;  %v521_v0 = vmul.f32 %v1315_v45, %v1315_v45  ;;  %v522_v9 = vmul.f32 %v1324_v1, %v1324_v1 }
 0x1a9   :  { %v420_v2 = vpop.xlane.xlu1 %419  ;;  %v418_v3 = vpop.xlane.xlu0 %417 }
 0x1aa   :  { %v456_v4 = vmul.f32 0.015625, %v420_v2  ;;  %v455_v55 = vmul.f32 0.015625, %v418_v3  ;;  %579 = vadd.xlane.f32.xlu1 %v536_v40  ;;  %549 = vadd.xlane.f32.xlu0 %v521_v0  ;;  %v1327_v51 = vmul.f32 %v1060_v37, %v485_v63  ;;  %v1330_v6 = vmul.f32 %v1060_v37, %v486_v39 }
 0x1ac   :  { %v480_v54 = vsub.f32 %v1183_v60, %v456_v4  ;;  %v479_v56 = vsub.f32 %v1181_v59, %v455_v55  ;;  %v533_v17 = vmul.f32 %v1327_v51, %v1327_v51  ;;  %v534_v60 = vmul.f32 %v1330_v6, %v1330_v6 }
 0x1ad   :  { %v416_v19 = vpop.xlane.xlu1 %415  ;;  %v414_v20 = vpop.xlane.xlu0 %413 }
 0x1ae   :  { %v454_v21 = vmul.f32 0.015625, %v416_v19  ;;  %v453_v7 = vmul.f32 0.015625, %v414_v20  ;;  %551 = vadd.xlane.f32.xlu1 %v522_v9  ;;  %573 = vadd.xlane.f32.xlu0 %v533_v17  ;;  %v1339_v8 = vmul.f32 %v1060_v37, %v479_v56  ;;  %v1348_v29 = vmul.f32 %v1060_v37, %v480_v54 }
 0x1b0   :  { %v478_v59 = vsub.f32 %v1211_v14, %v454_v21  ;;  %v477_v18 = vsub.f32 %v1209_v11, %v453_v7  ;;  %v527_v22 = vmul.f32 %v1339_v8, %v1339_v8  ;;  %v528_v35 = vmul.f32 %v1348_v29, %v1348_v29 }
 0x1b1   :  { %v440_v30 = vpop.xlane.xlu1 %439  ;;  %v438_v31 = vpop.xlane.xlu0 %437 }
 0x1b2   :  { %v466_v32 = vmul.f32 0.015625, %v440_v30  ;;  %v465_v13 = vmul.f32 0.015625, %v438_v31  ;;  %575 = vadd.xlane.f32.xlu1 %v534_v60  ;;  %561 = vadd.xlane.f32.xlu0 %v527_v22  ;;  %v1351_v12 = vmul.f32 %v1060_v37, %v477_v18  ;;  %v1354_v34 = vmul.f32 %v1060_v37, %v478_v59  ;;  %v1389_v22 = vld [vmem:[%s1544_s4] ss:$0 sm:$0xff] }
 0x1b4   :  { %v490_v11 = vsub.f32 %v1215_v16, %v466_v32  ;;  %v489_v14 = vsub.f32 %v1213_v15, %v465_v13  ;;  %v525_v38 = vmul.f32 %v1351_v12, %v1351_v12  ;;  %v526_v16 = vmul.f32 %v1354_v34, %v1354_v34 }
 0x1b5   :  { %v444_v43 = vpop.xlane.xlu1 %443  ;;  %v442_v44 = vpop.xlane.xlu0 %441 }
 0x1b6   :  { %v468_v46 = vmul.f32 0.015625, %v444_v43  ;;  %v467_v24 = vmul.f32 0.015625, %v442_v44  ;;  %563 = vadd.xlane.f32.xlu1 %v528_v35  ;;  %557 = vadd.xlane.f32.xlu0 %v525_v38  ;;  %v1363_v27 = vmul.f32 %v1060_v37, %v489_v14  ;;  %v1372_v57 = vmul.f32 %v1060_v37, %v490_v11  ;;  %v1395_v14 = vld [vmem:[%s1545_s5] ss:$0 sm:$0xff] }
 0x1b8   :  { %v492_v15 = vsub.f32 %v1236_v28, %v468_v46  ;;  %v491_v52 = vsub.f32 %v1234_v26, %v467_v24  ;;  %v537_v41 = vmul.f32 %v1363_v27, %v1363_v27  ;;  %v538_v58 = vmul.f32 %v1372_v57, %v1372_v57 }
 0x1ba   :  { %559 = vadd.xlane.f32.xlu1 %v526_v16  ;;  %581 = vadd.xlane.f32.xlu0 %v537_v41  ;;  %v1375_v42 = vmul.f32 %v1060_v37, %v491_v52  ;;  %v1382_v28 = vmul.f32 %v1060_v37, %v492_v15 }
 0x1bc   :  { %v539_v47 = vmul.f32 %v1375_v42, %v1375_v42  ;;  %v540_v26 = vmul.f32 %v1382_v28, %v1382_v28 }
 0x1be   :  { %583 = vadd.xlane.f32.xlu1 %v538_v58  ;;  %585 = vadd.xlane.f32.xlu0 %v539_v47 }
 0x1c2   :  { %587 = vadd.xlane.f32.xlu1 %v540_v26 }
 0x21f   :  { %v546_v40 = vpop.xlane.xlu0 %545 }
 0x220   :  { %v591_v39 = vmul.f32 0.015625, %v546_v40 }
 0x222   :  { %v615_v63 = vadd.f32 1e-05, %v591_v39 }
 0x223   :  { %v548_v0 = vpop.xlane.xlu1 %547  ;;  %v570_v2 = vpop.xlane.xlu0 %569 }
 0x224   :  { %896 = vrsqrt.f32 %v615_v63  ;;  %v592_v3 = vmul.f32 0.015625, %v548_v0  ;;  %v603_v4 = vmul.f32 0.015625, %v570_v2 }
 0x226   :  { %v616_v55 = vadd.f32 1e-05, %v592_v3  ;;  %v627_v54 = vadd.f32 1e-05, %v603_v4 }
 0x227   :  { %v572_v56 = vpop.xlane.xlu1 %571  ;;  %v542_v9 = vpop.xlane.xlu0 %541 }
 0x228   :  { %898 = vrsqrt.f32 %v616_v55  ;;  %v604_v37 = vmul.f32 0.015625, %v572_v56  ;;  %v589_v17 = vmul.f32 0.015625, %v542_v9 }
 0x229   :  { %900 = vrsqrt.f32 %v627_v54 }
 0x22a   :  { %v628_v19 = vadd.f32 1e-05, %v604_v37  ;;  %v613_v20 = vadd.f32 1e-05, %v589_v17 }
 0x22b   :  { %v544_v21 = vpop.xlane.xlu1 %543  ;;  %v566_v7 = vpop.xlane.xlu0 %565 }
 0x22c   :  { %902 = vrsqrt.f32 %v628_v19  ;;  %v590_v60 = vmul.f32 0.015625, %v544_v21  ;;  %v601_v59 = vmul.f32 0.015625, %v566_v7 }
 0x22d   :  { %904 = vrsqrt.f32 %v613_v20 }
 0x22e   :  { %v897_v18 = vpop.eup %896  ;;  %v614_v30 = vadd.f32 1e-05, %v590_v60  ;;  %v625_v31 = vadd.f32 1e-05, %v601_v59 }
 0x22f   :  { %v663_v32 = vmul.f32 %v897_v18, %v1245_v48  ;;  %v568_v13 = vpop.xlane.xlu1 %567  ;;  %v554_v11 = vpop.xlane.xlu0 %553 }
 0x230   :  { %906 = vrsqrt.f32 %v614_v30  ;;  %v602_v35 = vmul.f32 0.015625, %v568_v13  ;;  %v595_v38 = vmul.f32 0.015625, %v554_v11 }
 0x231   :  { %v694_v43 = vmul.f32 %v1389_v22, %v663_v32  ;;  %908 = vrsqrt.f32 %v625_v31 }
 0x232   :  { %v899_v44 = vpop.eup %898  ;;  %v626_v46 = vadd.f32 1e-05, %v602_v35  ;;  %v619_v24 = vadd.f32 1e-05, %v595_v38 }
 0x233   :  { %v901_v16 = vpop.eup %900  ;;  %v725_v15 = vadd.f32 %v1395_v14, %v694_v43  ;;  %v664_v48 = vmul.f32 %v899_v44, %v1255_v61  ;;  %v556_v52 = vpop.xlane.xlu1 %555 }
 0x234   :  { %v578_v41 = vpop.xlane.xlu0 %577  ;;  %v675_v58 = vmul.f32 %v901_v16, %v1252_v53  ;;  %910 = vrsqrt.f32 %v626_v46  ;;  %v596_v47 = vmul.f32 0.015625, %v556_v52 }
 0x235   :  { %v607_v26 = vmul.f32 0.015625, %v578_v41  ;;  %749 = vst [vmem:[%s1546_s6 + $0x10] sm:$0xff] %v725_v15  ;;  %v695_v40 = vmul.f32 %v1389_v22, %v664_v48  ;;  %912 = vrsqrt.f32 %v619_v24 }
 0x236   :  { %v903_v39 = vpop.eup %902  ;;  %v706_v63 = vmul.f32 %v1389_v22, %v675_v58  ;;  %v620_v0 = vadd.f32 1e-05, %v596_v47 }
 0x237   :  { %v631_v2 = vadd.f32 1e-05, %v607_v26  ;;  %v905_v61 = vpop.eup %904  ;;  %v726_v3 = vadd.f32 %v1395_v14, %v695_v40  ;;  %v676_v53 = vmul.f32 %v903_v39, %v1267_v5  ;;  %v580_v4 = vpop.xlane.xlu1 %579 }
 0x238   :  { %v550_v55 = vpop.xlane.xlu0 %549  ;;  %v737_v54 = vadd.f32 %v1395_v14, %v706_v63  ;;  %v661_v56 = vmul.f32 %v905_v61, %v1258_v62  ;;  %914 = vrsqrt.f32 %v620_v0  ;;  %v608_v9 = vmul.f32 0.015625, %v580_v4 }
 0x239   :  { %750 = vst [vmem:[%s1546_s6 + $0x18] sm:$0xff] %v726_v3  ;;  %v707_v37 = vmul.f32 %v1389_v22, %v676_v53  ;;  %916 = vrsqrt.f32 %v631_v2  ;;  %v593_v17 = vmul.f32 0.015625, %v550_v55 }
 0x23a   :  { %v907_v19 = vpop.eup %906  ;;  %761 = vst [vmem:[%s1546_s6 + $0x70] sm:$0xff] %v737_v54  ;;  %v692_v5 = vmul.f32 %v1389_v22, %v661_v56  ;;  %v632_v20 = vadd.f32 1e-05, %v608_v9 }
 0x23b   :  { %v909_v21 = vpop.eup %908  ;;  %v738_v62 = vadd.f32 %v1395_v14, %v707_v37  ;;  %v662_v7 = vmul.f32 %v907_v19, %v1279_v23  ;;  %v617_v60 = vadd.f32 1e-05, %v593_v17  ;;  %v552_v59 = vpop.xlane.xlu1 %551 }
 0x23c   :  { %v574_v18 = vpop.xlane.xlu0 %573  ;;  %v723_v30 = vadd.f32 %v1395_v14, %v692_v5  ;;  %v673_v31 = vmul.f32 %v909_v21, %v1276_v10  ;;  %918 = vrsqrt.f32 %v632_v20  ;;  %v594_v32 = vmul.f32 0.015625, %v552_v59 }
 0x23d   :  { %762 = vst [vmem:[%s1546_s6 + $0x78] sm:$0xff] %v738_v62  ;;  %v693_v13 = vmul.f32 %v1389_v22, %v662_v7  ;;  %920 = vrsqrt.f32 %v617_v60  ;;  %v605_v11 = vmul.f32 0.015625, %v574_v18 }
 0x23e   :  { %v911_v35 = vpop.eup %910  ;;  %747 = vst [vmem:[%s1546_s6] sm:$0xff] %v723_v30  ;;  %v704_v23 = vmul.f32 %v1389_v22, %v673_v31  ;;  %v618_v38 = vadd.f32 1e-05, %v594_v32 }
 0x23f   :  { %v913_v43 = vpop.eup %912  ;;  %v724_v10 = vadd.f32 %v1395_v14, %v693_v13  ;;  %v674_v44 = vmul.f32 %v911_v35, %v1282_v25  ;;  %v629_v46 = vadd.f32 1e-05, %v605_v11  ;;  %v576_v24 = vpop.xlane.xlu1 %575 }
 0x240   :  { %v562_v16 = vpop.xlane.xlu0 %561  ;;  %v735_v15 = vadd.f32 %v1395_v14, %v704_v23  ;;  %v667_v48 = vmul.f32 %v913_v43, %v1291_v33  ;;  %922 = vrsqrt.f32 %v618_v38  ;;  %v606_v52 = vmul.f32 0.015625, %v576_v24 }
 0x241   :  { %748 = vst [vmem:[%s1546_s6 + $0x8] sm:$0xff] %v724_v10  ;;  %v705_v41 = vmul.f32 %v1389_v22, %v674_v44  ;;  %924 = vrsqrt.f32 %v629_v46  ;;  %v599_v58 = vmul.f32 0.015625, %v562_v16 }
 0x242   :  { %v915_v47 = vpop.eup %914  ;;  %759 = vst [vmem:[%s1546_s6 + $0x60] sm:$0xff] %v735_v15  ;;  %v698_v25 = vmul.f32 %v1389_v22, %v667_v48  ;;  %v630_v26 = vadd.f32 1e-05, %v606_v52 }
 0x243   :  { %v917_v40 = vpop.eup %916  ;;  %v736_v33 = vadd.f32 %v1395_v14, %v705_v41  ;;  %v668_v39 = vmul.f32 %v915_v47, %v1300_v36  ;;  %v623_v63 = vadd.f32 1e-05, %v599_v58  ;;  %v564_v0 = vpop.xlane.xlu1 %563 }
 0x244   :  { %v558_v2 = vpop.xlane.xlu0 %557  ;;  %v729_v61 = vadd.f32 %v1395_v14, %v698_v25  ;;  %v679_v3 = vmul.f32 %v917_v40, %v1303_v49  ;;  %926 = vrsqrt.f32 %v630_v26  ;;  %v600_v53 = vmul.f32 0.015625, %v564_v0 }
 0x245   :  { %760 = vst [vmem:[%s1546_s6 + $0x68] sm:$0xff] %v736_v33  ;;  %v699_v4 = vmul.f32 %v1389_v22, %v668_v39  ;;  %928 = vrsqrt.f32 %v623_v63  ;;  %v597_v55 = vmul.f32 0.015625, %v558_v2 }
 0x246   :  { %v919_v54 = vpop.eup %918  ;;  %753 = vst [vmem:[%s1546_s6 + $0x30] sm:$0xff] %v729_v61  ;;  %v710_v36 = vmul.f32 %v1389_v22, %v679_v3  ;;  %v624_v56 = vadd.f32 1e-05, %v600_v53 }
 0x247   :  { %v921_v9 = vpop.eup %920  ;;  %v730_v49 = vadd.f32 %v1395_v14, %v699_v4  ;;  %v680_v37 = vmul.f32 %v919_v54, %v1306_v50  ;;  %v621_v17 = vadd.f32 1e-05, %v597_v55  ;;  %v560_v19 = vpop.xlane.xlu1 %559 }
 0x248   :  { %v582_v5 = vpop.xlane.xlu0 %581  ;;  %v741_v20 = vadd.f32 %v1395_v14, %v710_v36  ;;  %v665_v21 = vmul.f32 %v921_v9, %v1315_v45  ;;  %930 = vrsqrt.f32 %v624_v56  ;;  %v598_v62 = vmul.f32 0.015625, %v560_v19 }
 0x249   :  { %754 = vst [vmem:[%s1546_s6 + $0x38] sm:$0xff] %v730_v49  ;;  %v711_v7 = vmul.f32 %v1389_v22, %v680_v37  ;;  %932 = vrsqrt.f32 %v621_v17  ;;  %v609_v60 = vmul.f32 0.015625, %v582_v5 }
 0x24a   :  { %v923_v59 = vpop.eup %922  ;;  %765 = vst [vmem:[%s1546_s6 + $0x90] sm:$0xff] %v741_v20  ;;  %v696_v50 = vmul.f32 %v1389_v22, %v665_v21  ;;  %v622_v18 = vadd.f32 1e-05, %v598_v62 }
 0x24b   :  { %v925_v30 = vpop.eup %924  ;;  %v742_v45 = vadd.f32 %v1395_v14, %v711_v7  ;;  %v666_v31 = vmul.f32 %v923_v59, %v1324_v1  ;;  %v633_v32 = vadd.f32 1e-05, %v609_v60  ;;  %v584_v13 = vpop.xlane.xlu1 %583 }
 0x24c   :  { %v586_v11 = vpop.xlane.xlu0 %585  ;;  %v727_v35 = vadd.f32 %v1395_v14, %v696_v50  ;;  %v677_v23 = vmul.f32 %v925_v30, %v1327_v51  ;;  %934 = vrsqrt.f32 %v622_v18  ;;  %v610_v38 = vmul.f32 0.015625, %v584_v13 }
 0x24d   :  { %766 = vst [vmem:[%s1546_s6 + $0x98] sm:$0xff] %v742_v45  ;;  %v697_v43 = vmul.f32 %v1389_v22, %v666_v31  ;;  %936 = vrsqrt.f32 %v633_v32  ;;  %v611_v10 = vmul.f32 0.015625, %v586_v11 }
 0x24e   :  { %v927_v44 = vpop.eup %926  ;;  %751 = vst [vmem:[%s1546_s6 + $0x20] sm:$0xff] %v727_v35  ;;  %v708_v1 = vmul.f32 %v1389_v22, %v677_v23  ;;  %v634_v46 = vadd.f32 1e-05, %v610_v38 }
 0x24f   :  { %v929_v24 = vpop.eup %928  ;;  %v728_v51 = vadd.f32 %v1395_v14, %v697_v43  ;;  %v678_v16 = vmul.f32 %v927_v44, %v1330_v6  ;;  %v635_v15 = vadd.f32 1e-05, %v611_v10  ;;  %v588_v48 = vpop.xlane.xlu1 %587 }
 0x250   :  { %v739_v52 = vadd.f32 %v1395_v14, %v708_v1  ;;  %v671_v41 = vmul.f32 %v929_v24, %v1339_v8  ;;  %938 = vrsqrt.f32 %v634_v46  ;;  %v612_v58 = vmul.f32 0.015625, %v588_v48 }
 0x251   :  { %752 = vst [vmem:[%s1546_s6 + $0x28] sm:$0xff] %v728_v51  ;;  %v709_v47 = vmul.f32 %v1389_v22, %v678_v16  ;;  %940 = vrsqrt.f32 %v635_v15 }
 0x252   :  { %v931_v25 = vpop.eup %930  ;;  %763 = vst [vmem:[%s1546_s6 + $0x80] sm:$0xff] %v739_v52  ;;  %v702_v6 = vmul.f32 %v1389_v22, %v671_v41  ;;  %v636_v26 = vadd.f32 1e-05, %v612_v58 }
 0x253   :  { %v933_v40 = vpop.eup %932  ;;  %v740_v8 = vadd.f32 %v1395_v14, %v709_v47  ;;  %v672_v33 = vmul.f32 %v931_v25, %v1348_v29 }
 0x254   :  { %v733_v39 = vadd.f32 %v1395_v14, %v702_v6  ;;  %v669_v63 = vmul.f32 %v933_v40, %v1351_v12  ;;  %942 = vrsqrt.f32 %v636_v26 }
 0x255   :  { %764 = vst [vmem:[%s1546_s6 + $0x88] sm:$0xff] %v740_v8  ;;  %v703_v0 = vmul.f32 %v1389_v22, %v672_v33 }
 0x256   :  { %v935_v2 = vpop.eup %934  ;;  %757 = vst [vmem:[%s1546_s6 + $0x50] sm:$0xff] %v733_v39  ;;  %v700_v61 = vmul.f32 %v1389_v22, %v669_v63 }
 0x257   :  { %v937_v3 = vpop.eup %936  ;;  %v734_v29 = vadd.f32 %v1395_v14, %v703_v0  ;;  %v670_v53 = vmul.f32 %v935_v2, %v1354_v34 }
 0x258   :  { %v731_v12 = vadd.f32 %v1395_v14, %v700_v61  ;;  %v681_v4 = vmul.f32 %v937_v3, %v1363_v27 }
 0x259   :  { %758 = vst [vmem:[%s1546_s6 + $0x58] sm:$0xff] %v734_v29  ;;  %v701_v55 = vmul.f32 %v1389_v22, %v670_v53 }
 0x25a   :  { %v939_v54 = vpop.eup %938  ;;  %755 = vst [vmem:[%s1546_s6 + $0x40] sm:$0xff] %v731_v12  ;;  %v712_v36 = vmul.f32 %v1389_v22, %v681_v4 }
 0x25b   :  { %v941_v56 = vpop.eup %940  ;;  %v732_v34 = vadd.f32 %v1395_v14, %v701_v55  ;;  %v682_v9 = vmul.f32 %v939_v54, %v1372_v57 }
 0x25c   :  { %v743_v27 = vadd.f32 %v1395_v14, %v712_v36  ;;  %v683_v49 = vmul.f32 %v941_v56, %v1375_v42 }
 0x25d   :  { %756 = vst [vmem:[%s1546_s6 + $0x48] sm:$0xff] %v732_v34  ;;  %v713_v37 = vmul.f32 %v1389_v22, %v682_v9 }
 0x25e   :  { %v943_v17 = vpop.eup %942  ;;  %767 = vst [vmem:[%s1546_s6 + $0xa0] sm:$0xff] %v743_v27  ;;  %v714_v19 = vmul.f32 %v1389_v22, %v683_v49 }
 0x25f   :  { %v744_v5 = vadd.f32 %v1395_v14, %v713_v37  ;;  %v684_v57 = vmul.f32 %v943_v17, %v1382_v28 }
 0x260   :  { %v745_v20 = vadd.f32 %v1395_v14, %v714_v19 }
 0x261   :  { %768 = vst [vmem:[%s1546_s6 + $0xa8] sm:$0xff] %v744_v5  ;;  %v715_v42 = vmul.f32 %v1389_v22, %v684_v57 }
 0x262   :  { %769 = vst [vmem:[%s1546_s6 + $0xb0] sm:$0xff] %v745_v20 }
 0x263   :  { %v746_v21 = vadd.f32 %v1395_v14, %v715_v42 }
 0x265   :  { %770 = vst [vmem:[%s1546_s6 + $0xb8] sm:$0xff] %v746_v21 }

// kernel: rawformer_s_forward.23
= control target key start
LH: loop header
LB: loop body
LE: loop exit
PB: predicated region body
PF: predicated region fallthrough
CT: control target
= control target key end

     0   :  { %s799_s1 = inlined_call_operand.vmem [shape: bf16[128,128], index: 1, kind: input, shape index: {}]   ;;  %s800_s0 = inlined_call_operand.vmem [shape: bf16[192,128], index: 0, kind: input, shape index: {}]   ;;  %s801_s2 = inlined_call_operand.vmem [shape: f32[1,128], index: 2, kind: input, shape index: {}]   ;;  %s802_s3 = inlined_call_operand.vmem [shape: f32[1,128], index: 3, kind: input, shape index: {}]   ;;  %s803_s4 = inlined_call_operand.vmem [shape: f32[1,128], index: 4, kind: input, shape index: {}]   ;;  %s804_s5 = inlined_call_operand.vmem [shape: f32[192,128], index: 5, kind: output, shape index: {}]  }
   0x1   :  { %v530_v0 = vld [vmem:[%s799_s1] sm:$0xff]   ;;  %v531_v1 = vld [vmem:[%s799_s1 + $0x8] sm:$0xff]   ;;  %v532_v2 = vld [vmem:[%s799_s1 + $0x10] sm:$0xff]  }
   0x2   :  { %474 = vmatprep.subr.bf16.mxu0 %v530_v0  ;;  %514 = vmatprep.subr.bf16.mxu1 %v530_v0  ;;  %v533_v3 = vld [vmem:[%s799_s1 + $0x18] sm:$0xff]   ;;  %v538_v4 = vld [vmem:[%s800_s0] sm:$0xff]   ;;  %v539_v5 = vld [vmem:[%s800_s0 + $0x30] sm:$0xff]  }
   0x3   :  { %475 = vmatpush3.bf16.msra.mxu0 %v530_v0  ;;  %522 = vmatpush3.bf16.msra.mxu1 %v530_v0  ;;  %v534_v6 = vld [vmem:[%s799_s1 + $0x20] sm:$0xff]   ;;  %v535_v7 = vld [vmem:[%s799_s1 + $0x28] sm:$0xff]   ;;  %v536_v8 = vld [vmem:[%s799_s1 + $0x30] sm:$0xff]  }
   0x4   :  { %476 = vmatprep.subr.bf16.mxu0 %v531_v1  ;;  %515 = vmatprep.subr.bf16.mxu1 %v531_v1  ;;  %v537_v9 = vld [vmem:[%s799_s1 + $0x38] sm:$0xff]   ;;  %v540_v10 = vld [vmem:[%s800_s0 + $0x8] sm:$0xff]   ;;  %v542_v12 = vld [vmem:[%s800_s0 + $0x10] sm:$0xff]  }
   0x5   :  { %490 = vmatprep.mubr.bf16.mxu0 %v538_v4  ;;  %502 = vmatprep.mubr.bf16.mxu1 %v539_v5  ;;  %v541_v11 = vld [vmem:[%s800_s0 + $0x38] sm:$0xff]   ;;  %v543_v13 = vld [vmem:[%s800_s0 + $0x40] sm:$0xff]   ;;  %v545_v15 = vld [vmem:[%s800_s0 + $0x48] sm:$0xff]  }
   0x6   :  { %v544_v14 = vld [vmem:[%s800_s0 + $0x18] sm:$0xff]   ;;  %v546_v16 = vld [vmem:[%s800_s0 + $0x20] sm:$0xff]   ;;  %v547_v17 = vld [vmem:[%s800_s0 + $0x50] sm:$0xff]  }
   0x7   :  { %477 = vmatpush3.bf16.msra.mxu0 %v531_v1  ;;  %523 = vmatpush3.bf16.msra.mxu1 %v531_v1  ;;  %v548_v18 = vld [vmem:[%s800_s0 + $0x28] sm:$0xff]   ;;  %v549_v19 = vld [vmem:[%s800_s0 + $0x58] sm:$0xff]   ;;  %v643_v20 = vld [vmem:[%s801_s2] ss:$0 sm:$0xff] }
   0x8   :  { %478 = vmatprep.subr.bf16.mxu0 %v532_v2  ;;  %516 = vmatprep.subr.bf16.mxu1 %v532_v2  ;;  %v648_v22 = vld [vmem:[%s802_s3] ss:$0 sm:$0xff] }
   0x9   :  { %v655_v28 = vld [vmem:[%s803_s4] ss:$0 sm:$0xff] }
   0xb   :  { %479 = vmatpush3.bf16.msra.mxu0 %v532_v2  ;;  %524 = vmatpush3.bf16.msra.mxu1 %v532_v2 }
   0xc   :  { %480 = vmatprep.subr.bf16.mxu0 %v533_v3  ;;  %517 = vmatprep.subr.bf16.mxu1 %v533_v3 }
   0xf   :  { %481 = vmatpush3.bf16.msra.mxu0 %v533_v3  ;;  %525 = vmatpush3.bf16.msra.mxu1 %v533_v3 }
  0x10   :  { %482 = vmatprep.subr.bf16.mxu0 %v534_v6  ;;  %518 = vmatprep.subr.bf16.mxu1 %v534_v6 }
  0x13   :  { %483 = vmatpush3.bf16.msra.mxu0 %v534_v6  ;;  %526 = vmatpush3.bf16.msra.mxu1 %v534_v6 }
  0x14   :  { %484 = vmatprep.subr.bf16.mxu0 %v535_v7  ;;  %519 = vmatprep.subr.bf16.mxu1 %v535_v7 }
  0x17   :  { %485 = vmatpush3.bf16.msra.mxu0 %v535_v7  ;;  %527 = vmatpush3.bf16.msra.mxu1 %v535_v7 }
  0x18   :  { %486 = vmatprep.subr.bf16.mxu0 %v536_v8  ;;  %520 = vmatprep.subr.bf16.mxu1 %v536_v8 }
  0x1b   :  { %487 = vmatpush3.bf16.msra.mxu0 %v536_v8  ;;  %528 = vmatpush3.bf16.msra.mxu1 %v536_v8 }
  0x1c   :  { %488 = vmatprep.subr.bf16.mxu0 %v537_v9  ;;  %521 = vmatprep.subr.bf16.mxu1 %v537_v9 }
  0x1f   :  { %489 = vmatpush3.bf16.msra.mxu0 %v537_v9  ;;  %529 = vmatpush3.bf16.msra.mxu1 %v537_v9 }
  0x22   :  { %491 = vmatmul.mubr.bf16.vlgmr.msra.gmra.mrb[0].mxu0 %v540_v10  ;;  %503 = vmatmul.mubr.bf16.vlgmr.msra.gmra.mrb[0].mxu1 %v541_v11 }
  0x23   :  { %494 = vmatprep.mubr.bf16.mxu0 %v542_v12  ;;  %506 = vmatprep.mubr.bf16.mxu1 %v543_v13 }
  0x2a   :  { %495 = vmatmul.mubr.bf16.gmra.mrb[4].mxu0 %v544_v14  ;;  %507 = vmatmul.mubr.bf16.gmra.mrb[4].mxu1 %v545_v15 }
  0x2b   :  { %498 = vmatprep.mubr.bf16.mxu0 %v546_v16  ;;  %510 = vmatprep.mubr.bf16.mxu1 %v547_v17 }
  0x32   :  { %499 = vmatmul.mubr.bf16.gmra.mrb[8].mxu0 %v548_v18  ;;  %511 = vmatmul.mubr.bf16.gmra.mrb[8].mxu1 %v549_v19 }
  0xf5   :  { %v492_v21 = vpop.f32.mrb[0].mxu0  ;;  %v504_v23 = vpop.f32.mrb[0].mxu1 }
  0xf6   :  { %v231_v24 = vadd.f32 %v492_v21, %v643_v20  ;;  %v279_v25 = vadd.f32 %v504_v23, %v643_v20  ;;  %v222_v26 = vpop.f32.mrb[1].mxu0  ;;  %v270_v27 = vpop.f32.mrb[1].mxu1 }
  0xf7   :  { %v223_v29 = vadd.f32 %v643_v20, %v222_v26  ;;  %v271_v30 = vadd.f32 %v643_v20, %v270_v27  ;;  %v493_v31 = vpop.f32.mrb[2].mxu0  ;;  %v505_v32 = vpop.f32.mrb[2].mxu1 }
  0xf8   :  { %v326_v33 = vmul.f32 %v648_v22, %v231_v24  ;;  %v338_v34 = vmul.f32 %v648_v22, %v279_v25  ;;  %v234_v35 = vadd.f32 %v493_v31, %v643_v20  ;;  %v282_v36 = vadd.f32 %v505_v32, %v643_v20  ;;  %v225_v37 = vpop.f32.mrb[3].mxu0  ;;  %v273_v38 = vpop.f32.mrb[3].mxu1 }
  0xf9   :  { %v324_v39 = vmul.f32 %v648_v22, %v223_v29  ;;  %v336_v40 = vmul.f32 %v648_v22, %v271_v30  ;;  %v226_v41 = vadd.f32 %v643_v20, %v225_v37  ;;  %v274_v42 = vadd.f32 %v643_v20, %v273_v38 }
  0xfa   :  { %v357_v43 = vadd.f32 %v655_v28, %v326_v33  ;;  %v369_v44 = vadd.f32 %v655_v28, %v338_v34  ;;  %v327_v45 = vmul.f32 %v648_v22, %v234_v35  ;;  %v339_v46 = vmul.f32 %v648_v22, %v282_v36 }
  0xfb   :  { %v355_v47 = vadd.f32 %v655_v28, %v324_v39  ;;  %v367_v48 = vadd.f32 %v655_v28, %v336_v40  ;;  %v325_v49 = vmul.f32 %v648_v22, %v226_v41  ;;  %v337_v50 = vmul.f32 %v648_v22, %v274_v42 }
  0xfc   :  { %v381_v51 = vmax.f32 %v357_v43, 0.0  ;;  %v393_v52 = vmax.f32 %v369_v44, 0.0  ;;  %v358_v53 = vadd.f32 %v655_v28, %v327_v45  ;;  %v370_v54 = vadd.f32 %v655_v28, %v339_v46 }
  0xfd   :  { %v379_v55 = vmax.f32 %v355_v47, 0.0  ;;  %v391_v56 = vmax.f32 %v367_v48, 0.0  ;;  %v356_v57 = vadd.f32 %v655_v28, %v325_v49  ;;  %v368_v58 = vadd.f32 %v655_v28, %v337_v50  ;;  %v496_v59 = vpop.f32.mrb[4].mxu0  ;;  %v508_v60 = vpop.f32.mrb[4].mxu1 }
  0xfe   :  { %405 = vst [vmem:[%s804_s5 + $0x10] sm:$0xff] %v381_v51  ;;  %417 = vst [vmem:[%s804_s5 + $0x70] sm:$0xff] %v393_v52  ;;  %v382_v61 = vmax.f32 %v358_v53, 0.0  ;;  %v394_v62 = vmax.f32 %v370_v54, 0.0  ;;  %v247_v63 = vadd.f32 %v496_v59, %v643_v20  ;;  %v295_v0 = vadd.f32 %v508_v60, %v643_v20  ;;  %v238_v1 = vpop.f32.mrb[5].mxu0  ;;  %v286_v2 = vpop.f32.mrb[5].mxu1 }
  0xff   :  { %403 = vst [vmem:[%s804_s5] sm:$0xff] %v379_v55  ;;  %415 = vst [vmem:[%s804_s5 + $0x60] sm:$0xff] %v391_v56  ;;  %v380_v3 = vmax.f32 %v356_v57, 0.0  ;;  %v392_v4 = vmax.f32 %v368_v58, 0.0  ;;  %v239_v5 = vadd.f32 %v643_v20, %v238_v1  ;;  %v287_v6 = vadd.f32 %v643_v20, %v286_v2  ;;  %v497_v7 = vpop.f32.mrb[6].mxu0  ;;  %v509_v8 = vpop.f32.mrb[6].mxu1 }
 0x100   :  { %406 = vst [vmem:[%s804_s5 + $0x18] sm:$0xff] %v382_v61  ;;  %418 = vst [vmem:[%s804_s5 + $0x78] sm:$0xff] %v394_v62  ;;  %v330_v9 = vmul.f32 %v648_v22, %v247_v63  ;;  %v342_v10 = vmul.f32 %v648_v22, %v295_v0  ;;  %v250_v11 = vadd.f32 %v497_v7, %v643_v20  ;;  %v241_v13 = vpop.f32.mrb[7].mxu0  ;;  %v289_v14 = vpop.f32.mrb[7].mxu1 }
 0x101   :  { %v298_v12 = vadd.f32 %v509_v8, %v643_v20  ;;  %404 = vst [vmem:[%s804_s5 + $0x8] sm:$0xff] %v380_v3  ;;  %416 = vst [vmem:[%s804_s5 + $0x68] sm:$0xff] %v392_v4  ;;  %v328_v15 = vmul.f32 %v648_v22, %v239_v5  ;;  %v340_v16 = vmul.f32 %v648_v22, %v287_v6 }
 0x102   :  { %v242_v17 = vadd.f32 %v643_v20, %v241_v13  ;;  %v290_v18 = vadd.f32 %v643_v20, %v289_v14  ;;  %v361_v19 = vadd.f32 %v655_v28, %v330_v9  ;;  %v373_v21 = vadd.f32 %v655_v28, %v342_v10 }
 0x103   :  { %v331_v23 = vmul.f32 %v648_v22, %v250_v11  ;;  %v343_v24 = vmul.f32 %v648_v22, %v298_v12  ;;  %v359_v25 = vadd.f32 %v655_v28, %v328_v15  ;;  %v371_v26 = vadd.f32 %v655_v28, %v340_v16 }
 0x104   :  { %v329_v27 = vmul.f32 %v648_v22, %v242_v17  ;;  %v341_v29 = vmul.f32 %v648_v22, %v290_v18  ;;  %v385_v30 = vmax.f32 %v361_v19, 0.0  ;;  %v397_v31 = vmax.f32 %v373_v21, 0.0 }
 0x105   :  { %v362_v32 = vadd.f32 %v655_v28, %v331_v23  ;;  %v374_v33 = vadd.f32 %v655_v28, %v343_v24  ;;  %v383_v34 = vmax.f32 %v359_v25, 0.0  ;;  %v395_v35 = vmax.f32 %v371_v26, 0.0  ;;  %v500_v38 = vpop.f32.mrb[8].mxu0  ;;  %v512_v39 = vpop.f32.mrb[8].mxu1 }
 0x106   :  { %v360_v36 = vadd.f32 %v655_v28, %v329_v27  ;;  %v372_v37 = vadd.f32 %v655_v28, %v341_v29  ;;  %409 = vst [vmem:[%s804_s5 + $0x30] sm:$0xff] %v385_v30  ;;  %421 = vst [vmem:[%s804_s5 + $0x90] sm:$0xff] %v397_v31  ;;  %v263_v42 = vadd.f32 %v500_v38, %v643_v20  ;;  %v254_v44 = vpop.f32.mrb[9].mxu0  ;;  %v302_v45 = vpop.f32.mrb[9].mxu1 }
 0x107   :  { %v386_v40 = vmax.f32 %v362_v32, 0.0  ;;  %v398_v41 = vmax.f32 %v374_v33, 0.0  ;;  %v311_v43 = vadd.f32 %v512_v39, %v643_v20  ;;  %407 = vst [vmem:[%s804_s5 + $0x20] sm:$0xff] %v383_v34  ;;  %419 = vst [vmem:[%s804_s5 + $0x80] sm:$0xff] %v395_v35  ;;  %v255_v48 = vadd.f32 %v643_v20, %v254_v44  ;;  %v501_v50 = vpop.f32.mrb[10].mxu0  ;;  %v513_v51 = vpop.f32.mrb[10].mxu1 }
 0x108   :  { %v384_v46 = vmax.f32 %v360_v36, 0.0  ;;  %v396_v47 = vmax.f32 %v372_v37, 0.0  ;;  %v303_v49 = vadd.f32 %v643_v20, %v302_v45  ;;  %v334_v52 = vmul.f32 %v648_v22, %v263_v42  ;;  %v257_v56 = vpop.f32.mrb[11].mxu0  ;;  %v305_v57 = vpop.f32.mrb[11].mxu1 }
 0x109   :  { %410 = vst [vmem:[%s804_s5 + $0x38] sm:$0xff] %v386_v40  ;;  %422 = vst [vmem:[%s804_s5 + $0x98] sm:$0xff] %v398_v41  ;;  %v346_v53 = vmul.f32 %v648_v22, %v311_v43  ;;  %v266_v54 = vadd.f32 %v501_v50, %v643_v20  ;;  %v314_v55 = vadd.f32 %v513_v51, %v643_v20 }
 0x10a   :  { %408 = vst [vmem:[%s804_s5 + $0x28] sm:$0xff] %v384_v46  ;;  %420 = vst [vmem:[%s804_s5 + $0x88] sm:$0xff] %v396_v47  ;;  %v332_v58 = vmul.f32 %v648_v22, %v255_v48  ;;  %v344_v59 = vmul.f32 %v648_v22, %v303_v49  ;;  %v258_v60 = vadd.f32 %v643_v20, %v257_v56 }
 0x10b   :  { %v306_v61 = vadd.f32 %v643_v20, %v305_v57  ;;  %v365_v62 = vadd.f32 %v655_v28, %v334_v52  ;;  %v377_v63 = vadd.f32 %v655_v28, %v346_v53  ;;  %v335_v0 = vmul.f32 %v648_v22, %v266_v54 }
 0x10c   :  { %v347_v1 = vmul.f32 %v648_v22, %v314_v55  ;;  %v363_v2 = vadd.f32 %v655_v28, %v332_v58  ;;  %v375_v3 = vadd.f32 %v655_v28, %v344_v59  ;;  %v333_v4 = vmul.f32 %v648_v22, %v258_v60 }
 0x10d   :  { %v345_v5 = vmul.f32 %v648_v22, %v306_v61  ;;  %v389_v6 = vmax.f32 %v365_v62, 0.0  ;;  %v401_v7 = vmax.f32 %v377_v63, 0.0  ;;  %v366_v20 = vadd.f32 %v655_v28, %v335_v0 }
 0x10e   :  { %v378_v8 = vadd.f32 %v655_v28, %v347_v1  ;;  %v387_v9 = vmax.f32 %v363_v2, 0.0  ;;  %v399_v10 = vmax.f32 %v375_v3, 0.0  ;;  %v364_v11 = vadd.f32 %v655_v28, %v333_v4 }
 0x10f   :  { %v376_v12 = vadd.f32 %v655_v28, %v345_v5  ;;  %413 = vst [vmem:[%s804_s5 + $0x50] sm:$0xff] %v389_v6  ;;  %425 = vst [vmem:[%s804_s5 + $0xb0] sm:$0xff] %v401_v7  ;;  %v390_v22 = vmax.f32 %v366_v20, 0.0 }
 0x110   :  { %v402_v13 = vmax.f32 %v378_v8, 0.0  ;;  %411 = vst [vmem:[%s804_s5 + $0x40] sm:$0xff] %v387_v9  ;;  %423 = vst [vmem:[%s804_s5 + $0xa0] sm:$0xff] %v399_v10  ;;  %v388_v14 = vmax.f32 %v364_v11, 0.0 }
 0x111   :  { %v400_v28 = vmax.f32 %v376_v12, 0.0  ;;  %414 = vst [vmem:[%s804_s5 + $0x58] sm:$0xff] %v390_v22 }
 0x112   :  { %426 = vst [vmem:[%s804_s5 + $0xb8] sm:$0xff] %v402_v13  ;;  %412 = vst [vmem:[%s804_s5 + $0x48] sm:$0xff] %v388_v14 }
 0x113   :  { %424 = vst [vmem:[%s804_s5 + $0xa8] sm:$0xff] %v400_v28 }

// kernel: rawformer_s_forward.21
= control target key start
LH: loop header
LB: loop body
LE: loop exit
PB: predicated region body
PF: predicated region fallthrough
CT: control target
= control target key end

     0   :  { %s3294_s12 = smov 0   ;;  %s4233_s0 = inlined_call_operand.vmem [shape: bf16[2,4,96,16], index: 0, kind: input, shape index: {}]   ;;  %s4234_s1 = inlined_call_operand.vmem [shape: bf16[2,4,96,16], index: 1, kind: input, shape index: {}]   ;;  %s4235_s2 = inlined_call_operand.vmem [shape: bf16[2,4,96,16], index: 2, kind: input, shape index: {}]   ;;  %s4236_s3 = inlined_call_operand.vmem [shape: f32[2,96,128], index: 3, kind: output, shape index: {}]  }
   0x1 LB: > { %s2543_s13 = sadd.s32 4294967295, %s3269_s12   ;;  %p2547_p0 = scmp.ge.s32.totalorder %s3269_s12, 1  ;;  %s3269_s12 = sphi %s3294_s12, %s13_s12  }
   0x2   : > { %p157_p1 = scmp.lt.s32.totalorder %s3269_s12, 3 }
   0x4   : > { %p158_p2 = pnand %p2547_p0, %p157_p1 }
   0x6   : > { %161 = sbr.rel (%p158_p2) target bundleno = 1038 (0x40e), region = 32 }
   0xd   : > { %p191_p3 = scmp.lt.s32.totalorder %s2543_s13, 1  ;;  %vm416_vm0 = vcmask 130048   ;;  %vm1164_vm2 = vcmask 785408   ;;  %s3271_s24 = smov 16   ;;  %vm2413_vm3 = vcmask 261120   ;;  %vm2426_vm4 = vcmask 392192  }
   0xe   : > { %s3272_s25 = smov 32   ;;  %s3273_s26 = smov 48   ;;  %vm2439_vm5 = vcmask 523264  }
   0xf   : > { %s4259_s13 = smov (!%p191_p3, %s2543_s13), 1 }
  0x10   : > { %s3305_s14 = smul.u32 192, %s4259_s13 }
  0x11   : > { %s2987_s27 = smul.u32 96, %s4259_s13 }
  0x12   : > { %s3311_s17 = scalar_lea.vmem %s4234_s1, %s3305_s14  ;;  %s3331_s20 = scalar_lea.vmem %s4233_s0, %s3305_s14 }
  0x13   : > { %v2999_v0 = vld [vmem:[%s3311_s17] sm:$0xff]   ;;  %v3000_v1 = vld [vmem:[%s3311_s17 + $0x30] sm:$0xff]   ;;  %v3001_v3 = vld [vmem:[%s3311_s17 + $0x8] sm:$0xff]   ;;  %s3790_s23 = scalar_lea.vmem %s4235_s2, %s3305_s14  ;;  %s4155_s30 = scalar_lea.vmem %s4236_s3, %s2987_s27 }
  0x14   : > { %2962 = vmatprep.subr.msk.bf16.mxu0 %vm416_vm0, %v2999_v0  ;;  %v436_v2 = vsel %vm416_vm0, %v2999_v0, 0  ;;  %2968 = vmatprep.subr.msk.bf16.mxu1 %vm416_vm0, %v3000_v1  ;;  %v613_v4 = vsel %vm416_vm0, %v3000_v1, 0  ;;  %v3002_v5 = vld [vmem:[%s3311_s17 + $0x38] sm:$0xff]   ;;  %v439_v6 = vsel %vm416_vm0, %v3001_v3, 0  ;;  %v3003_v7 = vld [vmem:[%s3311_s17 + $0x10] sm:$0xff]   ;;  %v3004_v9 = vld [vmem:[%s3311_s17 + $0x40] sm:$0xff]  }
  0x15   : > { %2771 = vmatpush3.bf16.xpose.msra.mxu0 %v436_v2  ;;  %2795 = vmatpush3.bf16.xpose.msra.mxu1 %v613_v4  ;;  %v616_v8 = vsel %vm416_vm0, %v3002_v5, 0  ;;  %v3011_v10 = vld [vmem:[%s3331_s20] sm:$0xff]   ;;  %v3012_v11 = vld [vmem:[%s3331_s20 + $0x30] sm:$0xff]   ;;  %v442_v12 = vsel %vm416_vm0, %v3003_v7, 0  ;;  %v3005_v13 = vld [vmem:[%s3311_s17 + $0x18] sm:$0xff]   ;;  %v619_v14 = vsel %vm416_vm0, %v3004_v9, 0 }
  0x16   : > { %2963 = vmatprep.subr.msk.bf16.mxu0 %vm416_vm0, %v3001_v3  ;;  %2969 = vmatprep.subr.msk.bf16.mxu1 %vm416_vm0, %v3002_v5  ;;  %v3006_v15 = vld [vmem:[%s3311_s17 + $0x48] sm:$0xff]   ;;  %v445_v16 = vsel %vm416_vm0, %v3005_v13, 0  ;;  %v3007_v17 = vld [vmem:[%s3311_s17 + $0x20] sm:$0xff]   ;;  %v3008_v19 = vld [vmem:[%s3311_s17 + $0x50] sm:$0xff]  }
  0x17   : > { %2782 = vmatprep.mubr.msk.bf16.mxu0 %vm416_vm0, %v3011_v10  ;;  %2806 = vmatprep.mubr.msk.bf16.mxu1 %vm416_vm0, %v3012_v11  ;;  %v622_v18 = vsel %vm416_vm0, %v3006_v15, 0  ;;  %v448_v20 = vsel %vm416_vm0, %v3007_v17, 0  ;;  %v3009_v21 = vld [vmem:[%s3311_s17 + $0x28] sm:$0xff]   ;;  %v625_v22 = vsel %vm416_vm0, %v3008_v19, 0  ;;  %v3010_v23 = vld [vmem:[%s3311_s17 + $0x58] sm:$0xff]   ;;  %v3015_v25 = vld [vmem:[%s3311_s17 + $0x60] sm:$0xff]  }
  0x18   : > { %v451_v24 = vsel %vm416_vm0, %v3009_v21, 0  ;;  %v628_v26 = vsel %vm416_vm0, %v3010_v23, 0  ;;  %v3016_v27 = vld [vmem:[%s3311_s17 + $0x90] sm:$0xff]   ;;  %v3013_v28 = vld [vmem:[%s3331_s20 + $0x8] sm:$0xff]   ;;  %v3014_v29 = vld [vmem:[%s3331_s20 + $0x38] sm:$0xff]   ;;  %v790_v30 = vsel %vm416_vm0, %v3015_v25, 0 }
  0x19   : > { %v3017_v31 = vld [vmem:[%s3311_s17 + $0x68] sm:$0xff]   ;;  %v967_v32 = vsel %vm416_vm0, %v3016_v27, 0  ;;  %v3018_v33 = vld [vmem:[%s3311_s17 + $0x98] sm:$0xff]   ;;  %v3019_v34 = vld [vmem:[%s3331_s20 + $0x10] sm:$0xff]  }
  0x1a   : > { %v3022_v35 = vld [vmem:[%s3331_s20 + $0x40] sm:$0xff]   ;;  %v3020_v36 = vld [vmem:[%s3331_s20 + $0x18] sm:$0xff]   ;;  %v3023_v37 = vld [vmem:[%s3331_s20 + $0x48] sm:$0xff]   ;;  %v793_v38 = vsel %vm416_vm0, %v3017_v31, 0  ;;  %v970_v40 = vsel %vm416_vm0, %v3018_v33, 0 }
  0x1b   : > { %v3021_v39 = vld [vmem:[%s3311_s17 + $0x70] sm:$0xff]   ;;  %v3024_v41 = vld [vmem:[%s3311_s17 + $0xa0] sm:$0xff]   ;;  %v3028_v44 = vld [vmem:[%s3331_s20 + $0x28] sm:$0xff]  }
  0x1c   : > { %v3027_v42 = vld [vmem:[%s3331_s20 + $0x20] sm:$0xff]   ;;  %v3030_v43 = vld [vmem:[%s3331_s20 + $0x50] sm:$0xff]   ;;  %v3031_v45 = vld [vmem:[%s3331_s20 + $0x58] sm:$0xff]   ;;  %v796_v46 = vsel %vm416_vm0, %v3021_v39, 0  ;;  %v973_v48 = vsel %vm416_vm0, %v3024_v41, 0 }
  0x1d   : > { %2773 = vmatpush3.bf16.xpose.msra.mxu0 %v439_v6  ;;  %2797 = vmatpush3.bf16.xpose.msra.mxu1 %v616_v8  ;;  %v3025_v47 = vld [vmem:[%s3311_s17 + $0x78] sm:$0xff]   ;;  %v3026_v49 = vld [vmem:[%s3311_s17 + $0xa8] sm:$0xff]   ;;  %v3035_v50 = vld [vmem:[%s3331_s20 + $0x60] sm:$0xff]   ;;  %v1113_v8 = vlaneseq }
  0x1e   : > { %2964 = vmatprep.subr.msk.bf16.mxu0 %vm416_vm0, %v3003_v7  ;;  %2970 = vmatprep.subr.msk.bf16.mxu1 %vm416_vm0, %v3004_v9  ;;  %v3037_v51 = vld [vmem:[%s3331_s20 + $0x90] sm:$0xff]   ;;  %v799_v52 = vsel %vm416_vm0, %v3025_v47, 0  ;;  %v3029_v53 = vld [vmem:[%s3311_s17 + $0x80] sm:$0xff]   ;;  %v976_v54 = vsel %vm416_vm0, %v3026_v49, 0  ;;  %v3033_v57 = vld [vmem:[%s3311_s17 + $0x88] sm:$0xff]  }
  0x1f   : > { %v3032_v55 = vld [vmem:[%s3311_s17 + $0xb0] sm:$0xff]   ;;  %v802_v56 = vsel %vm416_vm0, %v3029_v53, 0  ;;  %v3034_v59 = vld [vmem:[%s3311_s17 + $0xb8] sm:$0xff]   ;;  %v805_v60 = vsel %vm416_vm0, %v3033_v57, 0  ;;  %v3036_v62 = vld [vmem:[%s3331_s20 + $0x68] sm:$0xff]   ;;  %v3439_v9 = vand.u32 127, %v1113_v8 }
  0x20   : > { %v979_v58 = vsel %vm416_vm0, %v3032_v55, 0  ;;  %v982_v61 = vsel %vm416_vm0, %v3034_v59, 0  ;;  %v3038_v63 = vld [vmem:[%s3331_s20 + $0x98] sm:$0xff]   ;;  %v3039_v0 = vld [vmem:[%s3331_s20 + $0x70] sm:$0xff]   ;;  %v3041_v1 = vld [vmem:[%s3331_s20 + $0xa0] sm:$0xff]  }
  0x21   : > { %v3040_v2 = vld [vmem:[%s3331_s20 + $0x78] sm:$0xff]   ;;  %v3042_v3 = vld [vmem:[%s3331_s20 + $0xa8] sm:$0xff]   ;;  %v3043_v4 = vld [vmem:[%s3331_s20 + $0x80] sm:$0xff]   ;;  %vm1115_vm1 = vcmp.lt.s32.totalorder %v3439_v9, 92 }
  0x22   : > { %v3045_v5 = vld [vmem:[%s3331_s20 + $0xb0] sm:$0xff]   ;;  %v3044_v6 = vld [vmem:[%s3331_s20 + $0x88] sm:$0xff]   ;;  %v3046_v7 = vld [vmem:[%s3331_s20 + $0xb8] sm:$0xff]  }
  0x25   : > { %2775 = vmatpush3.bf16.xpose.msra.mxu0 %v442_v12  ;;  %2799 = vmatpush3.bf16.xpose.msra.mxu1 %v619_v14 }
  0x26   : > { %2965 = vmatprep.subr.msk.bf16.mxu0 %vm416_vm0, %v3005_v13  ;;  %2971 = vmatprep.subr.msk.bf16.mxu1 %vm416_vm0, %v3006_v15 }
  0x2d   : > { %2777 = vmatpush3.bf16.xpose.msra.mxu0 %v445_v16  ;;  %2801 = vmatpush3.bf16.xpose.msra.mxu1 %v622_v18 }
  0x2e   : > { %2966 = vmatprep.subr.msk.bf16.mxu0 %vm416_vm0, %v3007_v17  ;;  %2972 = vmatprep.subr.msk.bf16.mxu1 %vm416_vm0, %v3008_v19 }
  0x35   : > { %2779 = vmatpush3.bf16.xpose.msra.mxu0 %v448_v20  ;;  %2803 = vmatpush3.bf16.xpose.msra.mxu1 %v625_v22 }
  0x36   : > { %2967 = vmatprep.subr.msk.bf16.mxu0 %vm416_vm0, %v3009_v21  ;;  %2973 = vmatprep.subr.msk.bf16.mxu1 %vm416_vm0, %v3010_v23 }
  0x3d   : > { %2781 = vmatpush3.bf16.xpose.msra.mxu0 %v451_v24  ;;  %2805 = vmatpush3.bf16.xpose.msra.mxu1 %v628_v26 }
  0x3e   : > { %2974 = vmatprep.subr.msk.bf16.mxu0 %vm416_vm0, %v3015_v25  ;;  %2980 = vmatprep.subr.msk.bf16.mxu1 %vm416_vm0, %v3016_v27 }
  0x44   : > { %2783 = vmatmul.mubr.msk.bf16.vlgmr.msra.gmra.mrb[0].mxu0 %vm416_vm0, %v3013_v28  ;;  %2807 = vmatmul.mubr.msk.bf16.vlgmr.msra.gmra.mrb[0].mxu1 %vm416_vm0, %v3014_v29 }
  0x45   : > { %2819 = vmatpush3.bf16.xpose.msra.mxu0 %v790_v30  ;;  %2843 = vmatpush3.bf16.xpose.msra.mxu1 %v967_v32 }
  0x46   : > { %2975 = vmatprep.subr.msk.bf16.mxu0 %vm416_vm0, %v3017_v31  ;;  %2981 = vmatprep.subr.msk.bf16.mxu1 %vm416_vm0, %v3018_v33 }
  0x47   : > { %2786 = vmatprep.mubr.msk.bf16.mxu0 %vm416_vm0, %v3019_v34  ;;  %2810 = vmatprep.mubr.msk.bf16.mxu1 %vm416_vm0, %v3022_v35 }
  0x4c   : > { %2787 = vmatmul.mubr.msk.bf16.gmra.mrb[4].mxu0 %vm416_vm0, %v3020_v36  ;;  %2811 = vmatmul.mubr.msk.bf16.gmra.mrb[4].mxu1 %vm416_vm0, %v3023_v37 }
  0x4d   : > { %2821 = vmatpush3.bf16.xpose.msra.mxu0 %v793_v38  ;;  %2845 = vmatpush3.bf16.xpose.msra.mxu1 %v970_v40 }
  0x4e   : > { %2976 = vmatprep.subr.msk.bf16.mxu0 %vm416_vm0, %v3021_v39  ;;  %2982 = vmatprep.subr.msk.bf16.mxu1 %vm416_vm0, %v3024_v41 }
  0x4f   : > { %2790 = vmatprep.mubr.msk.bf16.mxu0 %vm416_vm0, %v3027_v42  ;;  %2814 = vmatprep.mubr.msk.bf16.mxu1 %vm416_vm0, %v3030_v43 }
  0x54   : > { %2791 = vmatmul.mubr.msk.bf16.gmra.mrb[8].mxu0 %vm416_vm0, %v3028_v44  ;;  %2815 = vmatmul.mubr.msk.bf16.gmra.mrb[8].mxu1 %vm416_vm0, %v3031_v45 }
  0x55   : > { %2823 = vmatpush3.bf16.xpose.msra.mxu0 %v796_v46  ;;  %2847 = vmatpush3.bf16.xpose.msra.mxu1 %v973_v48 }
  0x56   : > { %2977 = vmatprep.subr.msk.bf16.mxu0 %vm416_vm0, %v3025_v47  ;;  %2983 = vmatprep.subr.msk.bf16.mxu1 %vm416_vm0, %v3026_v49 }
  0x57   : > { %2830 = vmatprep.mubr.msk.bf16.mxu0 %vm416_vm0, %v3035_v50  ;;  %2854 = vmatprep.mubr.msk.bf16.mxu1 %vm416_vm0, %v3037_v51 }
  0x5d   : > { %2825 = vmatpush3.bf16.xpose.msra.mxu0 %v799_v52  ;;  %2849 = vmatpush3.bf16.xpose.msra.mxu1 %v976_v54 }
  0x5e   : > { %2978 = vmatprep.subr.msk.bf16.mxu0 %vm416_vm0, %v3029_v53  ;;  %2984 = vmatprep.subr.msk.bf16.mxu1 %vm416_vm0, %v3032_v55 }
  0x65   : > { %2827 = vmatpush3.bf16.xpose.msra.mxu0 %v802_v56  ;;  %2851 = vmatpush3.bf16.xpose.msra.mxu1 %v979_v58 }
  0x66   : > { %2979 = vmatprep.subr.msk.bf16.mxu0 %vm416_vm0, %v3033_v57  ;;  %2985 = vmatprep.subr.msk.bf16.mxu1 %vm416_vm0, %v3034_v59 }
  0x6d   : > { %2829 = vmatpush3.bf16.xpose.msra.mxu0 %v805_v60  ;;  %2853 = vmatpush3.bf16.xpose.msra.mxu1 %v982_v61 }
  0x74   : > { %2831 = vmatmul.mubr.msk.bf16.vlgmr.msra.gmra.mrb[12].mxu0 %vm416_vm0, %v3036_v62  ;;  %2855 = vmatmul.mubr.msk.bf16.vlgmr.msra.gmra.mrb[12].mxu1 %vm416_vm0, %v3038_v63 }
  0x75   : > { %2834 = vmatprep.mubr.msk.bf16.mxu0 %vm416_vm0, %v3039_v0  ;;  %2858 = vmatprep.mubr.msk.bf16.mxu1 %vm416_vm0, %v3041_v1 }
  0x7c   : > { %2835 = vmatmul.mubr.msk.bf16.gmra.mrb[16].mxu0 %vm416_vm0, %v3040_v2  ;;  %2859 = vmatmul.mubr.msk.bf16.gmra.mrb[16].mxu1 %vm416_vm0, %v3042_v3 }
  0x7d   : > { %2838 = vmatprep.mubr.msk.bf16.mxu0 %vm416_vm0, %v3043_v4  ;;  %2862 = vmatprep.mubr.msk.bf16.mxu1 %vm416_vm0, %v3045_v5 }
  0x84   : > { %2839 = vmatmul.mubr.msk.bf16.gmra.mrb[20].mxu0 %vm416_vm0, %v3044_v6  ;;  %2863 = vmatmul.mubr.msk.bf16.gmra.mrb[20].mxu1 %vm416_vm0, %v3046_v7 }
 0x117   : > { %v2784_v10 = vpop.f32.mrb[0].mxu0  ;;  %v2808_v12 = vpop.f32.mrb[0].mxu1 }
 0x118   : > { %v1067_v11 = vmul.f32 0.25, %v2784_v10  ;;  %v487_v13 = vpop.f32.mrb[1].mxu0  ;;  %v1079_v14 = vmul.f32 0.25, %v2808_v12  ;;  %v664_v16 = vpop.f32.mrb[1].mxu1 }
 0x119   : > { %v1065_v15 = vmul.f32 0.25, %v487_v13  ;;  %v2785_v17 = vpop.f32.mrb[2].mxu0  ;;  %v2809_v19 = vpop.f32.mrb[2].mxu1  ;;  %v1077_v28 = vmul.f32 0.25, %v664_v16 }
 0x11a   : > { %v1068_v18 = vmul.f32 0.25, %v2785_v17  ;;  %v490_v20 = vpop.f32.mrb[3].mxu0  ;;  %v3444_v21 = vsel %vm1115_vm1, %v1067_v11, -1e+30  ;;  %v667_v22 = vpop.f32.mrb[3].mxu1  ;;  %v1080_v25 = vmul.f32 0.25, %v2809_v19 }
 0x11b   : > { %v3448_v23 = vsel %vm1115_vm1, %v1079_v14, -1e+30  ;;  %v1171_v24 = vsel %vm1164_vm2, %v3444_v21, -inf  ;;  %v3460_v29 = vsel %vm1115_vm1, %v1065_v15, -1e+30  ;;  %v1078_v32 = vmul.f32 0.25, %v667_v22 }
 0x11c   : > { %v1207_v26 = vsel %vm1164_vm2, %v3448_v23, -inf  ;;  %1172 = vmax.xlane.f32.xlu1 %v1171_v24  ;;  %v3456_v27 = vsel %vm1115_vm1, %v1068_v18, -1e+30  ;;  %v1165_v33 = vsel %vm1164_vm2, %v3460_v29, -inf  ;;  %v3468_v34 = vsel %vm1115_vm1, %v1080_v25, -1e+30 }
 0x11d   : > { %1208 = vmax.xlane.f32.xlu0 %v1207_v26  ;;  %v1174_v30 = vsel %vm1164_vm2, %v3456_v27, -inf  ;;  %v1066_v37 = vmul.f32 0.25, %v490_v20  ;;  %v3472_v38 = vsel %vm1115_vm1, %v1077_v28, -1e+30  ;;  %v1210_v44 = vsel %vm1164_vm2, %v3468_v34, -inf }
 0x11e   : > { %v1201_v47 = vsel %vm1164_vm2, %v3472_v38, -inf  ;;  %v3480_v48 = vsel %vm1115_vm1, %v1078_v32, -1e+30 }
 0x11f   : > { %v2788_v31 = vpop.f32.mrb[4].mxu0  ;;  %v2812_v36 = vpop.f32.mrb[4].mxu1  ;;  %v3484_v49 = vsel %vm1115_vm1, %v1066_v37, -1e+30  ;;  %v1204_v52 = vsel %vm1164_vm2, %v3480_v48, -inf }
 0x120   : > { %1175 = vmax.xlane.f32.xlu1 %v1174_v30  ;;  %v503_v35 = vpop.f32.mrb[5].mxu0  ;;  %v680_v40 = vpop.f32.mrb[5].mxu1  ;;  %v1071_v45 = vmul.f32 0.25, %v2788_v31  ;;  %v1083_v53 = vmul.f32 0.25, %v2812_v36  ;;  %v1168_v56 = vsel %vm1164_vm2, %v3484_v49, -inf }
 0x121   : > { %1166 = vmax.xlane.f32.xlu0 %v1165_v33  ;;  %v2789_v39 = vpop.f32.mrb[6].mxu0  ;;  %v2813_v43 = vpop.f32.mrb[6].mxu1  ;;  %v1069_v5 = vmul.f32 0.25, %v503_v35  ;;  %v1081_v11 = vmul.f32 0.25, %v680_v40 }
 0x122   : > { %v1072_v41 = vmul.f32 0.25, %v2789_v39  ;;  %v506_v42 = vpop.f32.mrb[7].mxu0  ;;  %v683_v46 = vpop.f32.mrb[7].mxu1  ;;  %v1084_v50 = vmul.f32 0.25, %v2813_v43  ;;  %v3494_v54 = vsel %vm1115_vm1, %v1071_v45, -1e+30 }
 0x123   : > { %v1183_v62 = vsel %vm1164_vm2, %v3494_v54, -inf  ;;  %v3508_v2 = vsel %vm1115_vm1, %v1083_v53, -1e+30  ;;  %v1070_v4 = vmul.f32 0.25, %v506_v42  ;;  %v1082_v8 = vmul.f32 0.25, %v683_v46 }
 0x124   : > { %1211 = vmax.xlane.f32.xlu1 %v1210_v44  ;;  %v3488_v51 = vsel %vm1115_vm1, %v1072_v41, -1e+30  ;;  %v3504_v63 = vsel %vm1115_vm1, %v1084_v50, -1e+30  ;;  %v1219_v7 = vsel %vm1164_vm2, %v3508_v2, -inf }
 0x125   : > { %1202 = vmax.xlane.f32.xlu0 %v1201_v47  ;;  %v1186_v59 = vsel %vm1164_vm2, %v3488_v51, -inf  ;;  %v1222_v6 = vsel %vm1164_vm2, %v3504_v63, -inf  ;;  %v3516_v10 = vsel %vm1115_vm1, %v1070_v4, -1e+30  ;;  %v3520_v12 = vsel %vm1115_vm1, %v1069_v5, -1e+30 }
 0x126   : > { %v1180_v14 = vsel %vm1164_vm2, %v3516_v10, -inf  ;;  %v1177_v16 = vsel %vm1164_vm2, %v3520_v12, -inf  ;;  %v3528_v17 = vsel %vm1115_vm1, %v1082_v8, -1e+30  ;;  %v3532_v18 = vsel %vm1115_vm1, %v1081_v11, -1e+30 }
 0x127   : > { %v2792_v55 = vpop.f32.mrb[8].mxu0  ;;  %v2816_v58 = vpop.f32.mrb[8].mxu1  ;;  %v1216_v22 = vsel %vm1164_vm2, %v3528_v17, -inf  ;;  %v1213_v26 = vsel %vm1164_vm2, %v3532_v18, -inf }
 0x128   : > { %1205 = vmax.xlane.f32.xlu1 %v1204_v52  ;;  %v519_v57 = vpop.f32.mrb[9].mxu0  ;;  %v696_v61 = vpop.f32.mrb[9].mxu1  ;;  %v1075_v15 = vmul.f32 0.25, %v2792_v55  ;;  %v1087_v24 = vmul.f32 0.25, %v2816_v58 }
 0x129   : > { %1169 = vmax.xlane.f32.xlu0 %v1168_v56  ;;  %v2793_v60 = vpop.f32.mrb[10].mxu0  ;;  %v2817_v1 = vpop.f32.mrb[10].mxu1  ;;  %v1073_v35 = vmul.f32 0.25, %v519_v57  ;;  %v1085_v41 = vmul.f32 0.25, %v696_v61 }
 0x12a   : > { %v522_v0 = vpop.f32.mrb[11].mxu0  ;;  %v699_v3 = vpop.f32.mrb[11].mxu1  ;;  %v1076_v13 = vmul.f32 0.25, %v2793_v60  ;;  %v1088_v19 = vmul.f32 0.25, %v2817_v1  ;;  %v3542_v25 = vsel %vm1115_vm1, %v1075_v15, -1e+30 }
 0x12b   : > { %v1195_v30 = vsel %vm1164_vm2, %v3542_v25, -inf  ;;  %v3556_v32 = vsel %vm1115_vm1, %v1087_v24, -1e+30  ;;  %v1074_v33 = vmul.f32 0.25, %v522_v0  ;;  %v1086_v39 = vmul.f32 0.25, %v699_v3 }
 0x12c   : > { %1187 = vmax.xlane.f32.xlu1 %v1186_v59  ;;  %v3536_v20 = vsel %vm1115_vm1, %v1076_v13, -1e+30  ;;  %v3552_v31 = vsel %vm1115_vm1, %v1088_v19, -1e+30  ;;  %v1231_v37 = vsel %vm1164_vm2, %v3556_v32, -inf }
 0x12d   : > { %1184 = vmax.xlane.f32.xlu0 %v1183_v62  ;;  %v1198_v28 = vsel %vm1164_vm2, %v3536_v20, -inf  ;;  %v1234_v36 = vsel %vm1164_vm2, %v3552_v31, -inf  ;;  %v3564_v40 = vsel %vm1115_vm1, %v1074_v33, -1e+30  ;;  %v3568_v42 = vsel %vm1115_vm1, %v1073_v35, -1e+30 }
 0x12e   : > { %v1192_v43 = vsel %vm1164_vm2, %v3564_v40, -inf  ;;  %v1189_v44 = vsel %vm1164_vm2, %v3568_v42, -inf  ;;  %v3576_v45 = vsel %vm1115_vm1, %v1086_v39, -1e+30  ;;  %v3580_v46 = vsel %vm1115_vm1, %v1085_v41, -1e+30 }
 0x12f   : > { %v1228_v50 = vsel %vm1164_vm2, %v3576_v45, -inf  ;;  %v1225_v53 = vsel %vm1164_vm2, %v3580_v46, -inf }
 0x130   : > { %1223 = vmax.xlane.f32.xlu1 %v1222_v6 }
 0x131   : > { %1220 = vmax.xlane.f32.xlu0 %v1219_v7 }
 0x134   : > { %1181 = vmax.xlane.f32.xlu1 %v1180_v14 }
 0x135   : > { %1178 = vmax.xlane.f32.xlu0 %v1177_v16 }
 0x138   : > { %1217 = vmax.xlane.f32.xlu1 %v1216_v22 }
 0x139   : > { %1214 = vmax.xlane.f32.xlu0 %v1213_v26 }
 0x13c   : > { %1199 = vmax.xlane.f32.xlu1 %v1198_v28 }
 0x13d   : > { %1196 = vmax.xlane.f32.xlu0 %v1195_v30 }
 0x140   : > { %1235 = vmax.xlane.f32.xlu1 %v1234_v36 }
 0x141   : > { %1232 = vmax.xlane.f32.xlu0 %v1231_v37 }
 0x144   : > { %1193 = vmax.xlane.f32.xlu1 %v1192_v43 }
 0x145   : > { %1190 = vmax.xlane.f32.xlu0 %v1189_v44 }
 0x147   : > { %v2832_v47 = vpop.f32.mrb[12].mxu0  ;;  %v2856_v56 = vpop.f32.mrb[12].mxu1 }
 0x148   : > { %v1091_v52 = vmul.f32 0.25, %v2832_v47  ;;  %1229 = vmax.xlane.f32.xlu1 %v1228_v50  ;;  %v841_v55 = vpop.f32.mrb[13].mxu0  ;;  %v1103_v58 = vmul.f32 0.25, %v2856_v56  ;;  %v1018_v59 = vpop.f32.mrb[13].mxu1 }
 0x149   : > { %1226 = vmax.xlane.f32.xlu0 %v1225_v53  ;;  %v2833_v57 = vpop.f32.mrb[14].mxu0  ;;  %v2857_v62 = vpop.f32.mrb[14].mxu1  ;;  %v1089_v7 = vmul.f32 0.25, %v841_v55  ;;  %v1101_v24 = vmul.f32 0.25, %v1018_v59 }
 0x14a   : > { %v1092_v60 = vmul.f32 0.25, %v2833_v57  ;;  %v844_v61 = vpop.f32.mrb[15].mxu0  ;;  %v3588_v0 = vsel %vm1115_vm1, %v1091_v52, -1e+30  ;;  %v1104_v1 = vmul.f32 0.25, %v2857_v62  ;;  %v1021_v4 = vpop.f32.mrb[15].mxu1 }
 0x14b   : > { %v1243_v3 = vsel %vm1164_vm2, %v3588_v0, -inf  ;;  %v3594_v5 = vsel %vm1115_vm1, %v1103_v58, -1e+30  ;;  %v1090_v13 = vmul.f32 0.25, %v844_v61  ;;  %v3612_v26 = vsel %vm1115_vm1, %v1089_v7, -1e+30 }
 0x14c   : > { %v3598_v6 = vsel %vm1115_vm1, %v1092_v60, -1e+30  ;;  %v3604_v11 = vsel %vm1115_vm1, %v1104_v1, -1e+30  ;;  %v1279_v14 = vsel %vm1164_vm2, %v3594_v5, -inf  ;;  %v1102_v33 = vmul.f32 0.25, %v1021_v4 }
 0x14d   : > { %1244 = vmax.xlane.f32.xlu0 %v1243_v3  ;;  %v1246_v8 = vsel %vm1164_vm2, %v3598_v6, -inf  ;;  %v1282_v15 = vsel %vm1164_vm2, %v3604_v11, -inf  ;;  %v3616_v35 = vsel %vm1115_vm1, %v1090_v13, -1e+30  ;;  %v1237_v43 = vsel %vm1164_vm2, %v3612_v26, -inf }
 0x14e   : > { %1247 = vmax.xlane.f32.xlu1 %v1246_v8  ;;  %v1240_v47 = vsel %vm1164_vm2, %v3616_v35, -inf  ;;  %v3624_v50 = vsel %vm1115_vm1, %v1101_v24, -1e+30  ;;  %v3628_v52 = vsel %vm1115_vm1, %v1102_v33, -1e+30 }
 0x14f   : > { %v2836_v16 = vpop.f32.mrb[16].mxu0  ;;  %v2860_v22 = vpop.f32.mrb[16].mxu1  ;;  %v1273_v57 = vsel %vm1164_vm2, %v3624_v50, -inf  ;;  %v1276_v62 = vsel %vm1164_vm2, %v3628_v52, -inf }
 0x150   : > { %v857_v19 = vpop.f32.mrb[17].mxu0  ;;  %v1034_v30 = vpop.f32.mrb[17].mxu1  ;;  %v1095_v39 = vmul.f32 0.25, %v2836_v16  ;;  %v1107_v53 = vmul.f32 0.25, %v2860_v22 }
 0x151   : > { %1280 = vmax.xlane.f32.xlu0 %v1279_v14  ;;  %v2837_v28 = vpop.f32.mrb[18].mxu0  ;;  %v2861_v37 = vpop.f32.mrb[18].mxu1  ;;  %v1093_v22 = vmul.f32 0.25, %v857_v19 }
 0x152   : > { %1283 = vmax.xlane.f32.xlu1 %v1282_v15  ;;  %v860_v36 = vpop.f32.mrb[19].mxu0  ;;  %v1037_v41 = vpop.f32.mrb[19].mxu1  ;;  %v1096_v44 = vmul.f32 0.25, %v2837_v28  ;;  %v3632_v55 = vsel %vm1115_vm1, %v1095_v39, -1e+30  ;;  %v1108_v58 = vmul.f32 0.25, %v2861_v37 }
 0x153   : > { %v1255_v4 = vsel %vm1164_vm2, %v3632_v55, -inf  ;;  %v3648_v14 = vsel %vm1115_vm1, %v1107_v53, -1e+30  ;;  %v1094_v24 = vmul.f32 0.25, %v860_v36  ;;  %v1105_v37 = vmul.f32 0.25, %v1034_v30 }
 0x154   : > { %v3638_v59 = vsel %vm1115_vm1, %v1096_v44, -1e+30  ;;  %v3652_v16 = vsel %vm1115_vm1, %v1108_v58, -1e+30  ;;  %v1291_v28 = vsel %vm1164_vm2, %v3648_v14, -inf }
 0x155   : > { %1238 = vmax.xlane.f32.xlu0 %v1237_v43  ;;  %v1258_v13 = vsel %vm1164_vm2, %v3638_v59, -inf  ;;  %v1294_v33 = vsel %vm1164_vm2, %v3652_v16, -inf  ;;  %v3660_v39 = vsel %vm1115_vm1, %v1093_v22, -1e+30  ;;  %v1106_v43 = vmul.f32 0.25, %v1037_v41 }
 0x156   : > { %1241 = vmax.xlane.f32.xlu1 %v1240_v47  ;;  %v3664_v19 = vsel %vm1115_vm1, %v1094_v24, -1e+30  ;;  %v1249_v44 = vsel %vm1164_vm2, %v3660_v39, -inf  ;;  %v3672_v53 = vsel %vm1115_vm1, %v1105_v37, -1e+30 }
 0x157   : > { %v2840_v56 = vpop.f32.mrb[20].mxu0  ;;  %v2864_v61 = vpop.f32.mrb[20].mxu1  ;;  %v1252_v30 = vsel %vm1164_vm2, %v3664_v19, -inf  ;;  %v3676_v41 = vsel %vm1115_vm1, %v1106_v43, -1e+30  ;;  %v1285_v58 = vsel %vm1164_vm2, %v3672_v53, -inf }
 0x158   : > { %v873_v60 = vpop.f32.mrb[21].mxu0  ;;  %v1050_v3 = vpop.f32.mrb[21].mxu1  ;;  %v1099_v36 = vmul.f32 0.25, %v2840_v56 }
 0x159   : > { %1274 = vmax.xlane.f32.xlu0 %v1273_v57  ;;  %v2841_v1 = vpop.f32.mrb[22].mxu0  ;;  %v2865_v8 = vpop.f32.mrb[22].mxu1  ;;  %v1111_v57 = vmul.f32 0.25, %v2864_v61  ;;  %v1097_v24 = vmul.f32 0.25, %v873_v60  ;;  %v1109_v43 = vmul.f32 0.25, %v1050_v3 }
 0x15a   : > { %1277 = vmax.xlane.f32.xlu1 %v1276_v62  ;;  %v876_v7 = vpop.f32.mrb[23].mxu0  ;;  %v1053_v15 = vpop.f32.mrb[23].mxu1  ;;  %v1100_v47 = vmul.f32 0.25, %v2841_v1  ;;  %v3680_v56 = vsel %vm1115_vm1, %v1099_v36, -1e+30  ;;  %v1112_v62 = vmul.f32 0.25, %v2865_v8 }
 0x15b   : > { %v1267_v61 = vsel %vm1164_vm2, %v3680_v56, -inf  ;;  %v3696_v22 = vsel %vm1115_vm1, %v1111_v57, -1e+30  ;;  %v3708_v36 = vsel %vm1115_vm1, %v1097_v24, -1e+30 }
 0x15c   : > { %v3686_v1 = vsel %vm1115_vm1, %v1100_v47, -1e+30  ;;  %v3700_v8 = vsel %vm1115_vm1, %v1112_v62, -1e+30  ;;  %v3720_v3 = vsel %vm1115_vm1, %v1109_v43, -1e+30 }
 0x15d   : > { %1256 = vmax.xlane.f32.xlu0 %v1255_v4  ;;  %v1288_v4 = vsel %vm1164_vm2, %v3676_v41, -inf  ;;  %v1306_v37 = vsel %vm1164_vm2, %v3700_v8, -inf }
 0x15e   : > { %1259 = vmax.xlane.f32.xlu1 %v1258_v13  ;;  %v1270_v13 = vsel %vm1164_vm2, %v3686_v1, -inf }
 0x161   : > { %1292 = vmax.xlane.f32.xlu0 %v1291_v28  ;;  %v1098_v28 = vmul.f32 0.25, %v876_v7  ;;  %v1261_v7 = vsel %vm1164_vm2, %v3708_v36, -inf }
 0x162   : > { %1295 = vmax.xlane.f32.xlu1 %v1294_v33  ;;  %v1303_v33 = vsel %vm1164_vm2, %v3696_v22, -inf }
 0x163   : > { %v3712_v60 = vsel %vm1115_vm1, %v1098_v28, -1e+30 }
 0x164   : > { %v1264_v47 = vsel %vm1164_vm2, %v3712_v60, -inf }
 0x165   : > { %1250 = vmax.xlane.f32.xlu0 %v1249_v44  ;;  %v1110_v44 = vmul.f32 0.25, %v1053_v15 }
 0x166   : > { %1253 = vmax.xlane.f32.xlu1 %v1252_v30  ;;  %v1297_v30 = vsel %vm1164_vm2, %v3720_v3, -inf }
 0x167   : > { %v3724_v15 = vsel %vm1115_vm1, %v1110_v44, -1e+30 }
 0x168   : > { %v1300_v57 = vsel %vm1164_vm2, %v3724_v15, -inf }
 0x169   : > { %1286 = vmax.xlane.f32.xlu0 %v1285_v58 }
 0x16a   : > { %1289 = vmax.xlane.f32.xlu1 %v1288_v4 }
 0x16d   : > { %1268 = vmax.xlane.f32.xlu0 %v1267_v61 }
 0x16e   : > { %1271 = vmax.xlane.f32.xlu1 %v1270_v13 }
 0x171   : > { %1304 = vmax.xlane.f32.xlu0 %v1303_v33 }
 0x172   : > { %1307 = vmax.xlane.f32.xlu1 %v1306_v37 }
 0x175   : > { %1262 = vmax.xlane.f32.xlu0 %v1261_v7 }
 0x176   : > { %1265 = vmax.xlane.f32.xlu1 %v1264_v47 }
 0x179   : > { %1298 = vmax.xlane.f32.xlu0 %v1297_v30 }
 0x17a   : > { %1301 = vmax.xlane.f32.xlu1 %v1300_v57 }
 0x1a9   : > { %v1173_v58 = vpop.xlane.xlu1 %1172 }
 0x1aa   : > { %v1209_v62 = vpop.xlane.xlu0 %1208  ;;  %v1311_v4 = vsub.f32 %v3444_v21, %v1173_v58 }
 0x1ab   : > { %v1323_v61 = vsub.f32 %v3448_v23, %v1209_v62 }
 0x1ac   : > { %v1361_v13 = vmul.f32 1.442695, %v1311_v4 }
 0x1ad   : > { %v1385_v24 = vmul.f32 1.442695, %v1323_v61  ;;  %v1176_v28 = vpop.xlane.xlu1 %1175 }
 0x1ae   : > { %3071 = vpow2.f32 %v1361_v13  ;;  %v1167_v9 = vpop.xlane.xlu0 %1166  ;;  %v1312_v33 = vsub.f32 %v3456_v27, %v1176_v28 }
 0x1af   : > { %v1309_v37 = vsub.f32 %v3460_v29, %v1167_v9  ;;  %3073 = vpow2.f32 %v1385_v24 }
 0x1b0   : > { %v1363_v43 = vmul.f32 1.442695, %v1312_v33 }
 0x1b1   : > { %v1357_v44 = vmul.f32 1.442695, %v1309_v37  ;;  %v1212_v7 = vpop.xlane.xlu1 %1211 }
 0x1b2   : > { %3075 = vpow2.f32 %v1363_v43  ;;  %v1203_v47 = vpop.xlane.xlu0 %1202  ;;  %v1324_v30 = vsub.f32 %v3468_v34, %v1212_v7 }
 0x1b3   : > { %v1321_v21 = vsub.f32 %v3472_v38, %v1203_v47  ;;  %3077 = vpow2.f32 %v1357_v44 }
 0x1b4   : > { %v1387_v23 = vmul.f32 1.442695, %v1324_v30 }
 0x1b5   : > { %v1381_v57 = vmul.f32 1.442695, %v1321_v21  ;;  %v1206_v58 = vpop.xlane.xlu1 %1205 }
 0x1b6   : > { %3079 = vpow2.f32 %v1387_v23  ;;  %v1322_v62 = vsub.f32 %v3480_v48, %v1206_v58  ;;  %v1170_v27 = vpop.xlane.xlu0 %1169 }
 0x1b7   : > { %v1310_v29 = vsub.f32 %v3484_v49, %v1170_v27  ;;  %3081 = vpow2.f32 %v1381_v57 }
 0x1b8   : > { %v3738_v4 = vpop.eup %3071  ;;  %v1383_v61 = vmul.f32 1.442695, %v1322_v62 }
 0x1b9   : > { %v1359_v13 = vmul.f32 1.442695, %v1310_v29  ;;  %v1188_v24 = vpop.xlane.xlu1 %1187  ;;  %v1459_v34 = vsel %vm1164_vm2, %v3738_v4, 0.0  ;;  %v3742_v38 = vpop.eup %3073 }
 0x1ba   : > { %v1185_v28 = vpop.xlane.xlu0 %1184  ;;  %v1316_v9 = vsub.f32 %v3488_v51, %v1188_v24  ;;  %1460 = vadd.xlane.f32.xlu0 %v1459_v34  ;;  %v1495_v44 = vsel %vm1164_vm2, %v3742_v38, 0.0 }
 0x1bb   : > { %3083 = vpow2.f32 %v1359_v13  ;;  %v1315_v48 = vsub.f32 %v3494_v54, %v1185_v28 }
 0x1bc   : > { %v3746_v33 = vpop.eup %3075  ;;  %v1371_v49 = vmul.f32 1.442695, %v1316_v9  ;;  %3085 = vpow2.f32 %v1383_v61 }
 0x1bd   : > { %v1369_v37 = vmul.f32 1.442695, %v1315_v48  ;;  %v1224_v43 = vpop.xlane.xlu1 %1223  ;;  %v1462_v7 = vsel %vm1164_vm2, %v3746_v33, 0.0  ;;  %v3752_v47 = vpop.eup %3077 }
 0x1be   : > { %v1221_v30 = vpop.xlane.xlu0 %1220  ;;  %v1328_v51 = vsub.f32 %v3504_v63, %v1224_v43  ;;  %1496 = vadd.xlane.f32.xlu0 %v1495_v44  ;;  %1463 = vadd.xlane.f32.xlu1 %v1462_v7  ;;  %v1453_v62 = vsel %vm1164_vm2, %v3752_v47, 0.0 }
 0x1bf   : > { %3087 = vpow2.f32 %v1369_v37  ;;  %v1327_v54 = vsub.f32 %v3508_v2, %v1221_v30 }
 0x1c0   : > { %v3756_v21 = vpop.eup %3079  ;;  %3089 = vpow2.f32 %v1371_v49  ;;  %v1395_v57 = vmul.f32 1.442695, %v1328_v51 }
 0x1c1   : > { %v1393_v23 = vmul.f32 1.442695, %v1327_v54  ;;  %v1182_v58 = vpop.xlane.xlu1 %1181  ;;  %v1498_v27 = vsel %vm1164_vm2, %v3756_v21, 0.0  ;;  %v3762_v29 = vpop.eup %3081 }
 0x1c2   : > { %v1179_v63 = vpop.xlane.xlu0 %1178  ;;  %v1314_v61 = vsub.f32 %v3516_v10, %v1182_v58  ;;  %1454 = vadd.xlane.f32.xlu0 %v1453_v62  ;;  %1499 = vadd.xlane.f32.xlu1 %v1498_v27  ;;  %v1489_v9 = vsel %vm1164_vm2, %v3762_v29, 0.0 }
 0x1c3   : > { %3091 = vpow2.f32 %v1393_v23  ;;  %v1313_v2 = vsub.f32 %v3520_v12, %v1179_v63  ;;  %v3047_v63 = vld [vmem:[%s3790_s23] sm:$0xff]  }
 0x1c4   : > { %3093 = vpow2.f32 %v1395_v57  ;;  %v1367_v34 = vmul.f32 1.442695, %v1314_v61  ;;  %2866 = vmatprep.subr.bf16.mxu0 %v3047_v63 }
 0x1c5   : > { %v3766_v13 = vpop.eup %3083  ;;  %v1365_v24 = vmul.f32 1.442695, %v1313_v2  ;;  %v1218_v28 = vpop.xlane.xlu1 %1217  ;;  %2867 = vmatpush3.bf16.msra.mxu0 %v3047_v63 }
 0x1c6   : > { %v1215_v48 = vpop.xlane.xlu0 %1214  ;;  %v1326_v49 = vsub.f32 %v3528_v17, %v1218_v28  ;;  %1490 = vadd.xlane.f32.xlu0 %v1489_v9  ;;  %v1456_v10 = vsel %vm1164_vm2, %v3766_v13, 0.0  ;;  %v3773_v37 = vpop.eup %3085  ;;  %v3048_v9 = vld [vmem:[%s3790_s23 + $0x8] sm:$0xff]  }
 0x1c7   : > { %3095 = vpow2.f32 %v1365_v24  ;;  %v1325_v12 = vsub.f32 %v3532_v18, %v1215_v48  ;;  %1457 = vadd.xlane.f32.xlu1 %v1456_v10  ;;  %v1492_v57 = vsel %vm1164_vm2, %v3773_v37, 0.0  ;;  %v3049_v48 = vld [vmem:[%s3790_s23 + $0x30] sm:$0xff]   ;;  %2868 = vmatprep.subr.bf16.mxu0 %v3048_v9 }
 0x1c8   : > { %3097 = vpow2.f32 %v1367_v34  ;;  %v1391_v7 = vmul.f32 1.442695, %v1326_v49  ;;  %2890 = vmatprep.subr.bf16.mxu1 %v3049_v48 }
 0x1c9   : > { %v3776_v43 = vpop.eup %3087  ;;  %v1389_v44 = vmul.f32 1.442695, %v1325_v12  ;;  %v1200_v30 = vpop.xlane.xlu1 %1199  ;;  %2891 = vmatpush3.bf16.msra.mxu1 %v3049_v48  ;;  %2869 = vmatpush3.bf16.msra.mxu0 %v3048_v9 }
 0x1ca   : > { %v3778_v51 = vpop.eup %3089  ;;  %v1197_v17 = vpop.xlane.xlu0 %1196  ;;  %v1320_v54 = vsub.f32 %v3536_v20, %v1200_v30  ;;  %v1471_v23 = vsel %vm1164_vm2, %v3776_v43, 0.0 }
 0x1cb   : > { %3099 = vpow2.f32 %v1389_v44  ;;  %v1319_v18 = vsub.f32 %v3542_v25, %v1197_v17  ;;  %1472 = vadd.xlane.f32.xlu0 %v1471_v23  ;;  %1493 = vadd.xlane.f32.xlu1 %v1492_v57  ;;  %v1474_v24 = vsel %vm1164_vm2, %v3778_v51, 0.0  ;;  %v3050_v23 = vld [vmem:[%s3790_s23 + $0x10] sm:$0xff]   ;;  %v3051_v57 = vld [vmem:[%s3790_s23 + $0x38] sm:$0xff]  }
 0x1cc   : > { %v1379_v58 = vmul.f32 1.442695, %v1320_v54  ;;  %3101 = vpow2.f32 %v1391_v7  ;;  %2870 = vmatprep.subr.bf16.mxu0 %v3050_v23  ;;  %2892 = vmatprep.subr.bf16.mxu1 %v3051_v57 }
 0x1cd   : > { %v3792_v20 = vpop.eup %3091  ;;  %v1377_v62 = vmul.f32 1.442695, %v1319_v18  ;;  %v1236_v27 = vpop.xlane.xlu1 %1235  ;;  %2893 = vmatpush3.bf16.msra.mxu1 %v3051_v57  ;;  %2871 = vmatpush3.bf16.msra.mxu0 %v3050_v23 }
 0x1ce   : > { %v1233_v61 = vpop.xlane.xlu0 %1232  ;;  %v1332_v25 = vsub.f32 %v3552_v31, %v1236_v27  ;;  %v1507_v2 = vsel %vm1164_vm2, %v3792_v20, 0.0  ;;  %v3800_v34 = vpop.eup %3093 }
 0x1cf   : > { %3103 = vpow2.f32 %v1377_v62  ;;  %v1331_v28 = vsub.f32 %v3556_v32, %v1233_v61  ;;  %1508 = vadd.xlane.f32.xlu0 %v1507_v2  ;;  %1475 = vadd.xlane.f32.xlu1 %v1474_v24  ;;  %v1510_v30 = vsel %vm1164_vm2, %v3800_v34, 0.0  ;;  %v3052_v24 = vld [vmem:[%s3790_s23 + $0x18] sm:$0xff]  }
 0x1d0   : > { %3105 = vpow2.f32 %v1379_v58  ;;  %v1403_v10 = vmul.f32 1.442695, %v1332_v25  ;;  %2872 = vmatprep.subr.bf16.mxu0 %v3052_v24 }
 0x1d1   : > { %v3805_v49 = vpop.eup %3095  ;;  %v1401_v31 = vmul.f32 1.442695, %v1331_v28  ;;  %v1194_v12 = vpop.xlane.xlu1 %1193  ;;  %v3053_v28 = vld [vmem:[%s3790_s23 + $0x40] sm:$0xff]   ;;  %2873 = vmatpush3.bf16.msra.mxu0 %v3052_v24 }
 0x1d2   : > { %v1191_v44 = vpop.xlane.xlu0 %1190  ;;  %v1318_v7 = vsub.f32 %v3564_v40, %v1194_v12  ;;  %v1465_v32 = vsel %vm1164_vm2, %v3805_v49, 0.0  ;;  %v3812_v17 = vpop.eup %3097  ;;  %2894 = vmatprep.subr.bf16.mxu1 %v3053_v28 }
 0x1d3   : > { %3107 = vpow2.f32 %v1401_v31  ;;  %v1317_v54 = vsub.f32 %v3568_v42, %v1191_v44  ;;  %1466 = vadd.xlane.f32.xlu0 %v1465_v32  ;;  %1511 = vadd.xlane.f32.xlu1 %v1510_v30  ;;  %v1468_v61 = vsel %vm1164_vm2, %v3812_v17, 0.0  ;;  %v3054_v30 = vld [vmem:[%s3790_s23 + $0x20] sm:$0xff]  }
 0x1d4   : > { %3109 = vpow2.f32 %v1403_v10  ;;  %v1375_v58 = vmul.f32 1.442695, %v1318_v7  ;;  %2895 = vmatpush3.bf16.msra.mxu1 %v3053_v28  ;;  %2874 = vmatprep.subr.bf16.mxu0 %v3054_v30 }
 0x1d5   : > { %v3817_v18 = vpop.eup %3099  ;;  %v1373_v40 = vmul.f32 1.442695, %v1317_v54  ;;  %v1230_v62 = vpop.xlane.xlu1 %1229  ;;  %v3055_v54 = vld [vmem:[%s3790_s23 + $0x48] sm:$0xff]   ;;  %2875 = vmatpush3.bf16.msra.mxu0 %v3054_v30 }
 0x1d6   : > { %v1227_v27 = vpop.xlane.xlu0 %1226  ;;  %v1330_v63 = vsub.f32 %v3576_v45, %v1230_v62  ;;  %v1501_v42 = vsel %vm1164_vm2, %v3817_v18, 0.0  ;;  %v3824_v25 = vpop.eup %3101  ;;  %2896 = vmatprep.subr.bf16.mxu1 %v3055_v54 }
 0x1d7   : > { %3111 = vpow2.f32 %v1373_v40  ;;  %v1329_v2 = vsub.f32 %v3580_v46, %v1227_v27  ;;  %1502 = vadd.xlane.f32.xlu0 %v1501_v42  ;;  %1469 = vadd.xlane.f32.xlu1 %v1468_v61  ;;  %v1504_v46 = vsel %vm1164_vm2, %v3824_v25, 0.0  ;;  %v3056_v61 = vld [vmem:[%s3790_s23 + $0x28] sm:$0xff]  }
 0x1d8   : > { %3113 = vpow2.f32 %v1375_v58  ;;  %v1399_v48 = vmul.f32 1.442695, %v1330_v63  ;;  %2897 = vmatpush3.bf16.msra.mxu1 %v3055_v54  ;;  %2876 = vmatprep.subr.bf16.mxu0 %v3056_v61 }
 0x1d9   : > { %v3829_v9 = vpop.eup %3103  ;;  %v1397_v45 = vmul.f32 1.442695, %v1329_v2  ;;  %v3057_v2 = vld [vmem:[%s3790_s23 + $0x50] sm:$0xff]   ;;  %2877 = vmatpush3.bf16.msra.mxu0 %v3056_v61 }
 0x1da   : > { %v1245_v31 = vpop.xlane.xlu0 %1244  ;;  %v1483_v10 = vsel %vm1164_vm2, %v3829_v9, 0.0  ;;  %v3835_v12 = vpop.eup %3105  ;;  %2898 = vmatprep.subr.bf16.mxu1 %v3057_v2 }
 0x1db   : > { %3115 = vpow2.f32 %v1397_v45  ;;  %v1335_v44 = vsub.f32 %v3588_v0, %v1245_v31  ;;  %1484 = vadd.xlane.f32.xlu0 %v1483_v10  ;;  %1505 = vadd.xlane.f32.xlu1 %v1504_v46  ;;  %v1248_v7 = vpop.xlane.xlu1 %1247  ;;  %v1486_v62 = vsel %vm1164_vm2, %v3835_v12, 0.0 }
 0x1dc   : > { %v1336_v32 = vsub.f32 %v3598_v6, %v1248_v7  ;;  %3117 = vpow2.f32 %v1399_v48  ;;  %2899 = vmatpush3.bf16.msra.mxu1 %v3057_v2  ;;  %v3058_v7 = vld [vmem:[%s3790_s23 + $0x58] sm:$0xff]  }
 0x1dd   : > { %v3841_v23 = vpop.eup %3107  ;;  %v1409_v57 = vmul.f32 1.442695, %v1335_v44  ;;  %2900 = vmatprep.subr.bf16.mxu1 %v3058_v7 }
 0x1de   : > { %v1411_v40 = vmul.f32 1.442695, %v1336_v32  ;;  %v1281_v58 = vpop.xlane.xlu0 %1280  ;;  %v1519_v0 = vsel %vm1164_vm2, %v3841_v23, 0.0  ;;  %v3847_v6 = vpop.eup %3109 }
 0x1df   : > { %3119 = vpow2.f32 %v1409_v57  ;;  %v1347_v27 = vsub.f32 %v3594_v5, %v1281_v58  ;;  %1520 = vadd.xlane.f32.xlu0 %v1519_v0  ;;  %1487 = vadd.xlane.f32.xlu1 %v1486_v62  ;;  %v1284_v63 = vpop.xlane.xlu1 %1283  ;;  %v1522_v5 = vsel %vm1164_vm2, %v3847_v6, 0.0 }
 0x1e0   : > { %v1348_v42 = vsub.f32 %v3604_v11, %v1284_v63  ;;  %3121 = vpow2.f32 %v1411_v40  ;;  %2901 = vmatpush3.bf16.msra.mxu1 %v3058_v7 }
 0x1e1   : > { %v3853_v24 = vpop.eup %3111  ;;  %v1433_v28 = vmul.f32 1.442695, %v1347_v27 }
 0x1e2   : > { %v1435_v45 = vmul.f32 1.442695, %v1348_v42  ;;  %v1239_v48 = vpop.xlane.xlu0 %1238  ;;  %v1477_v31 = vsel %vm1164_vm2, %v3853_v24, 0.0  ;;  %v3859_v11 = vpop.eup %3113 }
 0x1e3   : > { %3123 = vpow2.f32 %v1433_v28  ;;  %v1333_v10 = vsub.f32 %v3612_v26, %v1239_v48  ;;  %1478 = vadd.xlane.f32.xlu0 %v1477_v31  ;;  %1523 = vadd.xlane.f32.xlu1 %v1522_v5  ;;  %v1242_v46 = vpop.xlane.xlu1 %1241  ;;  %v1480_v26 = vsel %vm1164_vm2, %v3859_v11, 0.0 }
 0x1e4   : > { %v1334_v44 = vsub.f32 %v3616_v35, %v1242_v46  ;;  %3125 = vpow2.f32 %v1435_v45 }
 0x1e5   : > { %v3864_v32 = vpop.eup %3115  ;;  %v1405_v30 = vmul.f32 1.442695, %v1333_v10 }
 0x1e6   : > { %v1407_v54 = vmul.f32 1.442695, %v1334_v44  ;;  %v1275_v57 = vpop.xlane.xlu0 %1274  ;;  %v1513_v40 = vsel %vm1164_vm2, %v3864_v32, 0.0  ;;  %v3870_v58 = vpop.eup %3117 }
 0x1e7   : > { %3127 = vpow2.f32 %v1405_v30  ;;  %v1345_v35 = vsub.f32 %v3624_v50, %v1275_v57  ;;  %1514 = vadd.xlane.f32.xlu0 %v1513_v40  ;;  %1481 = vadd.xlane.f32.xlu1 %v1480_v26  ;;  %v1278_v0 = vpop.xlane.xlu1 %1277  ;;  %v1516_v28 = vsel %vm1164_vm2, %v3870_v58, 0.0 }
 0x1e8   : > { %v1346_v62 = vsub.f32 %v3628_v52, %v1278_v0  ;;  %3129 = vpow2.f32 %v1407_v54 }
 0x1e9   : > { %v3874_v27 = vpop.eup %3119  ;;  %v1429_v63 = vmul.f32 1.442695, %v1345_v35 }
 0x1ea   : > { %v1431_v42 = vmul.f32 1.442695, %v1346_v62  ;;  %v1257_v61 = vpop.xlane.xlu0 %1256  ;;  %v1531_v2 = vsel %vm1164_vm2, %v3874_v27, 0.0  ;;  %v3880_v45 = vpop.eup %3121 }
 0x1eb   : > { %3131 = vpow2.f32 %v1429_v63  ;;  %v1339_v50 = vsub.f32 %v3632_v55, %v1257_v61  ;;  %1532 = vadd.xlane.f32.xlu0 %v1531_v2  ;;  %1517 = vadd.xlane.f32.xlu1 %v1516_v28  ;;  %v1260_v52 = vpop.xlane.xlu1 %1259  ;;  %v1534_v7 = vsel %vm1164_vm2, %v3880_v45, 0.0 }
 0x1ec   : > { %v1340_v48 = vsub.f32 %v3638_v59, %v1260_v52  ;;  %3133 = vpow2.f32 %v1431_v42 }
 0x1ed   : > { %v3884_v31 = vpop.eup %3123  ;;  %v1417_v5 = vmul.f32 1.442695, %v1339_v50 }
 0x1ee   : > { %v1419_v10 = vmul.f32 1.442695, %v1340_v48  ;;  %v1293_v46 = vpop.xlane.xlu0 %1292  ;;  %v1567_v44 = vsel %vm1164_vm2, %v3884_v31, 0.0  ;;  %v3890_v30 = vpop.eup %3125 }
 0x1ef   : > { %3135 = vpow2.f32 %v1417_v5  ;;  %v1351_v55 = vsub.f32 %v3648_v14, %v1293_v46  ;;  %1568 = vadd.xlane.f32.xlu0 %v1567_v44  ;;  %1535 = vadd.xlane.f32.xlu1 %v1534_v7  ;;  %v1296_v59 = vpop.xlane.xlu1 %1295  ;;  %v1570_v62 = vsel %vm1164_vm2, %v3890_v30, 0.0 }
 0x1f0   : > { %v1352_v54 = vsub.f32 %v3652_v16, %v1296_v59  ;;  %3137 = vpow2.f32 %v1419_v10 }
 0x1f1   : > { %v3894_v57 = vpop.eup %3127  ;;  %v1441_v40 = vmul.f32 1.442695, %v1351_v55 }
 0x1f2   : > { %v1443_v26 = vmul.f32 1.442695, %v1352_v54  ;;  %v1251_v35 = vpop.xlane.xlu0 %1250  ;;  %v1525_v0 = vsel %vm1164_vm2, %v3894_v57, 0.0  ;;  %v3900_v63 = vpop.eup %3129 }
 0x1f3   : > { %3139 = vpow2.f32 %v1441_v40  ;;  %v1337_v14 = vsub.f32 %v3660_v39, %v1251_v35  ;;  %1526 = vadd.xlane.f32.xlu0 %v1525_v0  ;;  %1571 = vadd.xlane.f32.xlu1 %v1570_v62  ;;  %v1254_v16 = vpop.xlane.xlu1 %1253  ;;  %v1528_v48 = vsel %vm1164_vm2, %v3900_v63, 0.0  ;;  %v3925_v35 = vld [vmem:[%s3790_s23 + $0x60] sm:$0xff]  }
 0x1f4   : > { %v1338_v42 = vsub.f32 %v3664_v19, %v1254_v16  ;;  %3141 = vpow2.f32 %v1443_v26  ;;  %2914 = vmatprep.subr.bf16.mxu0 %v3925_v35 }
 0x1f5   : > { %v3904_v61 = vpop.eup %3131  ;;  %v1413_v2 = vmul.f32 1.442695, %v1337_v14 }
 0x1f6   : > { %v1415_v28 = vmul.f32 1.442695, %v1338_v42  ;;  %v1287_v50 = vpop.xlane.xlu0 %1286  ;;  %v1561_v52 = vsel %vm1164_vm2, %v3904_v61, 0.0  ;;  %v3910_v5 = vpop.eup %3133 }
 0x1f7   : > { %3143 = vpow2.f32 %v1413_v2  ;;  %v1349_v39 = vsub.f32 %v3672_v53, %v1287_v50  ;;  %1562 = vadd.xlane.f32.xlu0 %v1561_v52  ;;  %1529 = vadd.xlane.f32.xlu1 %v1528_v48  ;;  %v1290_v19 = vpop.xlane.xlu1 %1289  ;;  %v1564_v54 = vsel %vm1164_vm2, %v3910_v5, 0.0 }
 0x1f8   : > { %v1350_v10 = vsub.f32 %v3676_v41, %v1290_v19  ;;  %3145 = vpow2.f32 %v1415_v28  ;;  %v3937_v28 = vld [vmem:[%s3790_s23 + $0x90] sm:$0xff]  }
 0x1f9   : > { %v3914_v46 = vpop.eup %3135  ;;  %v1437_v44 = vmul.f32 1.442695, %v1349_v39  ;;  %2938 = vmatprep.subr.bf16.mxu1 %v3937_v28 }
 0x1fa   : > { %v1439_v7 = vmul.f32 1.442695, %v1350_v10  ;;  %v1269_v55 = vpop.xlane.xlu0 %1268  ;;  %v1543_v59 = vsel %vm1164_vm2, %v3914_v46, 0.0  ;;  %v3920_v40 = vpop.eup %3137 }
 0x1fb   : > { %3147 = vpow2.f32 %v1437_v44  ;;  %v1343_v53 = vsub.f32 %v3680_v56, %v1269_v55  ;;  %1544 = vadd.xlane.f32.xlu0 %v1543_v59  ;;  %1565 = vadd.xlane.f32.xlu1 %v1564_v54  ;;  %v1272_v41 = vpop.xlane.xlu1 %1271  ;;  %v1546_v56 = vsel %vm1164_vm2, %v3920_v40, 0.0 }
 0x1fc   : > { %v1344_v26 = vsub.f32 %v3686_v1, %v1272_v41  ;;  %3149 = vpow2.f32 %v1439_v7 }
 0x1fd   : > { %v3927_v0 = vpop.eup %3139  ;;  %v1425_v62 = vmul.f32 1.442695, %v1343_v53 }
 0x1fe   : > { %v1427_v14 = vmul.f32 1.442695, %v1344_v26  ;;  %v1305_v16 = vpop.xlane.xlu0 %1304  ;;  %v1579_v42 = vsel %vm1164_vm2, %v3927_v0, 0.0  ;;  %v3934_v2 = vpop.eup %3141 }
 0x1ff   : > { %3151 = vpow2.f32 %v1425_v62  ;;  %1580 = vadd.xlane.f32.xlu0 %v1579_v42  ;;  %1547 = vadd.xlane.f32.xlu1 %v1546_v56  ;;  %v1308_v1 = vpop.xlane.xlu1 %1307  ;;  %v1582_v39 = vsel %vm1164_vm2, %v3934_v2, 0.0  ;;  %v1355_v59 = vsub.f32 %v3696_v22, %v1305_v16 }
 0x200   : > { %3153 = vpow2.f32 %v1427_v14  ;;  %v1356_v53 = vsub.f32 %v3700_v8, %v1308_v1 }
 0x201   : > { %v3939_v50 = vpop.eup %3143  ;;  %v1449_v16 = vmul.f32 1.442695, %v1355_v59 }
 0x202   : > { %v1263_v52 = vpop.xlane.xlu0 %1262  ;;  %v1537_v48 = vsel %vm1164_vm2, %v3939_v50, 0.0  ;;  %v3946_v19 = vpop.eup %3145  ;;  %v1451_v1 = vmul.f32 1.442695, %v1356_v53 }
 0x203   : > { %v1341_v10 = vsub.f32 %v3708_v36, %v1263_v52  ;;  %1538 = vadd.xlane.f32.xlu0 %v1537_v48  ;;  %1583 = vadd.xlane.f32.xlu1 %v1582_v39  ;;  %v1266_v44 = vpop.xlane.xlu1 %1265  ;;  %v1540_v36 = vsel %vm1164_vm2, %v3946_v19, 0.0 }
 0x204   : > { %v1342_v7 = vsub.f32 %v3712_v60, %v1266_v44 }
 0x205   : > { %v3950_v55 = vpop.eup %3147  ;;  %v1421_v54 = vmul.f32 1.442695, %v1341_v10 }
 0x206   : > { %v1423_v41 = vmul.f32 1.442695, %v1342_v7  ;;  %v1299_v26 = vpop.xlane.xlu0 %1298  ;;  %v1573_v62 = vsel %vm1164_vm2, %v3950_v55, 0.0  ;;  %v3958_v14 = vpop.eup %3149 }
 0x207   : > { %3155 = vpow2.f32 %v1421_v54  ;;  %v1353_v60 = vsub.f32 %v3720_v3, %v1299_v26  ;;  %1574 = vadd.xlane.f32.xlu0 %v1573_v62  ;;  %1541 = vadd.xlane.f32.xlu1 %v1540_v36  ;;  %v1302_v42 = vpop.xlane.xlu1 %1301  ;;  %v1576_v39 = vsel %vm1164_vm2, %v3958_v14, 0.0 }
 0x208   : > { %3157 = vpow2.f32 %v1423_v41  ;;  %v1354_v22 = vsub.f32 %v3724_v15, %v1302_v42 }
 0x209   : > { %v3962_v8 = vpop.eup %3151  ;;  %v1445_v56 = vmul.f32 1.442695, %v1353_v60 }
 0x20a   : > { %4244 = vst [vmem:[#allocation2_spill] sm:$0xff] %v3962_v8  ;;  %v1447_v52 = vmul.f32 1.442695, %v1354_v22  ;;  %v1555_v48 = vsel %vm1164_vm2, %v3962_v8, 0.0  ;;  %v3968_v10 = vpop.eup %3153  ;;  %v3061_v8 = vld [vmem:[%s3790_s23 + $0x68] sm:$0xff]  }
 0x20b   : > { %3159 = vpow2.f32 %v1445_v56  ;;  %1556 = vadd.xlane.f32.xlu0 %v1555_v48  ;;  %1577 = vadd.xlane.f32.xlu1 %v1576_v39  ;;  %v1558_v3 = vsel %vm1164_vm2, %v3968_v10, 0.0 }
 0x20c   : > { %3161 = vpow2.f32 %v1447_v52 }
 0x20d   : > { %3163 = vpow2.f32 %v1449_v16 }
 0x20e   : > { %3165 = vpow2.f32 %v1451_v1 }
 0x20f   : > { %1559 = vadd.xlane.f32.xlu1 %v1558_v3 }
 0x211   : > { %v3972_v15 = vpop.eup %3155 }
 0x212   : > { %4245 = vst [vmem:[#allocation3_spill] sm:$0xff] %v3972_v15  ;;  %v3974_v44 = vpop.eup %3157  ;;  %v1549_v7 = vsel %vm1164_vm2, %v3972_v15, 0.0 }
 0x213   : > { %4246 = vst [vmem:[#allocation4_spill] sm:$0xff] %v3974_v44  ;;  %1550 = vadd.xlane.f32.xlu0 %v1549_v7  ;;  %v1552_v59 = vsel %vm1164_vm2, %v3974_v44, 0.0 }
 0x214   : > { %1553 = vadd.xlane.f32.xlu1 %v1552_v59 }
 0x215   : > { %v3980_v54 = vpop.eup %3159 }
 0x216   : > { %4247 = vst [vmem:[#allocation5_spill] sm:$0xff] %v3980_v54  ;;  %v3982_v53 = vpop.eup %3161  ;;  %v1585_v41 = vsel %vm1164_vm2, %v3980_v54, 0.0 }
 0x217   : > { %4248 = vst [vmem:[#allocation6_spill] sm:$0xff] %v3982_v53  ;;  %v3986_v26 = vpop.eup %3163  ;;  %1586 = vadd.xlane.f32.xlu0 %v1585_v41  ;;  %v1588_v62 = vsel %vm1164_vm2, %v3982_v53, 0.0 }
 0x218   : > { %4249 = vst [vmem:[#allocation7_spill] sm:$0xff] %v3986_v26  ;;  %v3990_v36 = vpop.eup %3165  ;;  %1589 = vadd.xlane.f32.xlu1 %v1588_v62  ;;  %v1591_v60 = vsel %vm1164_vm2, %v3986_v26, 0.0 }
 0x219   : > { %4250 = vst [vmem:[#allocation8_spill] sm:$0xff] %v3990_v36  ;;  %v1594_v42 = vsel %vm1164_vm2, %v3990_v36, 0.0 }
 0x21b   : > { %1592 = vadd.xlane.f32.xlu0 %v1591_v60 }
 0x21c   : > { %1595 = vadd.xlane.f32.xlu1 %v1594_v42 }
 0x247   : > { %v1461_v22 = vpop.xlane.xlu0 %1460 }
 0x24b   : > { %v1497_v16 = vpop.xlane.xlu0 %1496  ;;  %v1464_v56 = vpop.xlane.xlu1 %1463 }
 0x24c   : > { %3167 = vrcp.f32 %v1464_v56 }
 0x24f   : > { %v1455_v1 = vpop.xlane.xlu0 %1454  ;;  %v1500_v52 = vpop.xlane.xlu1 %1499 }
 0x250   : > { %3169 = vrcp.f32 %v1455_v1 }
 0x251   : > { %3171 = vrcp.f32 %v1461_v22 }
 0x253   : > { %v1491_v48 = vpop.xlane.xlu0 %1490 }
 0x254   : > { %v1458_v39 = vpop.xlane.xlu1 %1457 }
 0x255   : > { %3173 = vrcp.f32 %v1458_v39 }
 0x256   : > { %3175 = vrcp.f32 %v1500_v52  ;;  %v3168_v59 = vpop.eup %3167 }
 0x257   : > { %3177 = vrcp.f32 %v1491_v48  ;;  %v1604_v56 = vmul.f32 %v3168_v59, %v3746_v33  ;;  %v3062_v59 = vld [vmem:[%s3790_s23 + $0x70] sm:$0xff]  }
 0x258   : > { %v1473_v3 = vpop.xlane.xlu0 %1472  ;;  %v1494_v7 = vpop.xlane.xlu1 %1493  ;;  %3179 = vrcp.f32 %v1497_v16 }
 0x259   : > { %3181 = vrcp.f32 %v1494_v7 }
 0x25a   : > { %v3170_v60 = vpop.eup %3169 }
 0x25b   : > { %v3172_v42 = vpop.eup %3171  ;;  %v1598_v22 = vmul.f32 %v3170_v60, %v3752_v47 }
 0x25c   : > { %v1509_v41 = vpop.xlane.xlu0 %1508  ;;  %v1476_v62 = vpop.xlane.xlu1 %1475  ;;  %v1602_v39 = vmul.f32 %v3172_v42, %v3738_v4 }
 0x25d   : > { %3183 = vrcp.f32 %v1476_v62 }
 0x25e   : > { %v1694_v54 = vpack.c.bf16 %v1604_v56, %v1602_v39 }
 0x25f   : > { %v3174_v36 = vpop.eup %3173 }
 0x260   : > { %v1467_v1 = vpop.xlane.xlu0 %1466  ;;  %v1512_v26 = vpop.xlane.xlu1 %1511  ;;  %v1600_v52 = vmul.f32 %v3174_v36, %v3766_v13 }
 0x261   : > { %v3176_v48 = vpop.eup %3175  ;;  %3185 = vrcp.f32 %v1467_v1 }
 0x262   : > { %v3178_v16 = vpop.eup %3177  ;;  %v1693_v7 = vpack.c.bf16 %v1600_v52, %v1598_v22  ;;  %v1628_v15 = vmul.f32 %v3176_v48, %v3756_v21  ;;  %3187 = vrcp.f32 %v1473_v3 }
 0x263   : > { %v3180_v53 = vpop.eup %3179  ;;  %v1622_v4 = vmul.f32 %v3178_v16, %v3762_v29 }
 0x264   : > { %v3182_v44 = vpop.eup %3181  ;;  %v1503_v33 = vpop.xlane.xlu0 %1502  ;;  %2878 = vmatprep.mubr.msk.bf16.mxu0 %vm1164_vm2, %v1693_v7  ;;  %v1626_v36 = vmul.f32 %v3180_v53, %v3742_v38  ;;  %v3064_v38 = vld [vmem:[%s3790_s23 + $0x78] sm:$0xff]  }
 0x265   : > { %v1470_v47 = vpop.xlane.xlu1 %1469  ;;  %2879 = vmatmul.mubr.msk.bf16.vlgmr.msra.gmra.mrb[24].mxu0 %vm1164_vm2, %v1694_v54  ;;  %v1624_v13 = vmul.f32 %v3182_v44, %v3773_v37  ;;  %v3063_v54 = vld [vmem:[%s3790_s23 + $0x98] sm:$0xff]  }
 0x266   : > { %3189 = vrcp.f32 %v1470_v47  ;;  %2915 = vmatpush3.bf16.msra.mxu0 %v3925_v35  ;;  %v1700_v62 = vpack.c.bf16 %v1628_v15, %v1626_v36  ;;  %v3065_v35 = vld [vmem:[%s3790_s23 + $0xa0] sm:$0xff]  }
 0x267   : > { %3191 = vrcp.f32 %v1512_v26  ;;  %v1699_v21 = vpack.c.bf16 %v1624_v13, %v1622_v4  ;;  %2916 = vmatprep.subr.bf16.mxu0 %v3061_v8  ;;  %v3184_v15 = vpop.eup %3183  ;;  %v3066_v26 = vld [vmem:[%s3790_s23 + $0x80] sm:$0xff]   ;;  %v3069_v13 = vld [vmem:[%s3790_s23 + $0xb0] sm:$0xff]  }
 0x268   : > { %3193 = vrcp.f32 %v1503_v33  ;;  %v1485_v3 = vpop.xlane.xlu0 %1484 }
 0x269   : > { %v1506_v60 = vpop.xlane.xlu1 %1505  ;;  %3195 = vrcp.f32 %v1509_v41  ;;  %2902 = vmatprep.mubr.msk.bf16.mxu1 %vm1164_vm2, %v1699_v21 }
 0x26a   : > { %3197 = vrcp.f32 %v1506_v60  ;;  %2903 = vmatmul.mubr.msk.bf16.vlgmr.msra.gmra.mrb[24].mxu1 %vm1164_vm2, %v1700_v62  ;;  %2917 = vmatpush3.bf16.msra.mxu0 %v3061_v8  ;;  %v1612_v8 = vmul.f32 %v3184_v15, %v3778_v51  ;;  %v3070_v60 = vld [vmem:[%s3790_s23 + $0xb8] sm:$0xff]  }
 0x26b   : > { %2939 = vmatpush3.bf16.msra.mxu1 %v3937_v28  ;;  %2918 = vmatprep.subr.bf16.mxu0 %v3062_v59  ;;  %v3186_v44 = vpop.eup %3185  ;;  %v3067_v28 = vld [vmem:[%s3790_s23 + $0xa8] sm:$0xff]  }
 0x26c   : > { %v1521_v29 = vpop.xlane.xlu0 %1520  ;;  %2940 = vmatprep.subr.bf16.mxu1 %v3063_v54  ;;  %v3188_v53 = vpop.eup %3187  ;;  %v1606_v22 = vmul.f32 %v3186_v44, %v3805_v49 }
 0x26d   : > { %v1488_v37 = vpop.xlane.xlu1 %1487  ;;  %v1610_v39 = vmul.f32 %v3188_v53, %v3776_v43 }
 0x26e   : > { %2919 = vmatpush3.bf16.msra.mxu0 %v3062_v59  ;;  %3199 = vrcp.f32 %v1488_v37 }
 0x26f   : > { %2941 = vmatpush3.bf16.msra.mxu1 %v3063_v54  ;;  %2920 = vmatprep.subr.bf16.mxu0 %v3064_v38  ;;  %v1696_v4 = vpack.c.bf16 %v1612_v8, %v1610_v39 }
 0x270   : > { %v3190_v41 = vpop.eup %3189  ;;  %v1479_v42 = vpop.xlane.xlu0 %1478  ;;  %2942 = vmatprep.subr.bf16.mxu1 %v3065_v35 }
 0x271   : > { %v1524_v56 = vpop.xlane.xlu1 %1523  ;;  %v3192_v1 = vpop.eup %3191  ;;  %v1608_v52 = vmul.f32 %v3190_v41, %v3812_v17  ;;  %3201 = vrcp.f32 %v1479_v42  ;;  %v3068_v17 = vld [vmem:[%s3790_s23 + $0x88] sm:$0xff]  }
 0x272   : > { %v3194_v48 = vpop.eup %3193  ;;  %2921 = vmatpush3.bf16.msra.mxu0 %v3064_v38  ;;  %v1636_v49 = vmul.f32 %v3192_v1, %v3800_v34  ;;  %3203 = vrcp.f32 %v1485_v3 }
 0x273   : > { %v3196_v16 = vpop.eup %3195  ;;  %v1695_v7 = vpack.c.bf16 %v1608_v52, %v1606_v22  ;;  %2943 = vmatpush3.bf16.msra.mxu1 %v3065_v35  ;;  %2922 = vmatprep.subr.bf16.mxu0 %v3066_v26  ;;  %v1630_v43 = vmul.f32 %v3194_v48, %v3817_v18 }
 0x274   : > { %v3198_v33 = vpop.eup %3197  ;;  %v1515_v51 = vpop.xlane.xlu0 %1514  ;;  %2944 = vmatprep.subr.bf16.mxu1 %v3067_v28  ;;  %v1634_v21 = vmul.f32 %v3196_v16, %v3792_v20 }
 0x275   : > { %v1482_v47 = vpop.xlane.xlu1 %1481  ;;  %2882 = vmatprep.mubr.msk.bf16.mxu0 %vm1164_vm2, %v1695_v7  ;;  %v1632_v36 = vmul.f32 %v3198_v33, %v3824_v25 }
 0x276   : > { %3205 = vrcp.f32 %v1482_v47  ;;  %2883 = vmatmul.mubr.msk.bf16.gmra.mrb[28].mxu0 %vm1164_vm2, %v1696_v4  ;;  %v1702_v3 = vpack.c.bf16 %v1636_v49, %v1634_v21 }
 0x277   : > { %3207 = vrcp.f32 %v1524_v56  ;;  %v1701_v59 = vpack.c.bf16 %v1632_v36, %v1630_v43  ;;  %2923 = vmatpush3.bf16.msra.mxu0 %v3066_v26  ;;  %2945 = vmatpush3.bf16.msra.mxu1 %v3067_v28 }
 0x278   : > { %3209 = vrcp.f32 %v1515_v51  ;;  %v1533_v34 = vpop.xlane.xlu0 %1532  ;;  %2924 = vmatprep.subr.bf16.mxu0 %v3068_v17  ;;  %2946 = vmatprep.subr.bf16.mxu1 %v3069_v13  ;;  %v3200_v25 = vpop.eup %3199 }
 0x279   : > { %v1518_v62 = vpop.xlane.xlu1 %1517  ;;  %3211 = vrcp.f32 %v1521_v29  ;;  %2906 = vmatprep.mubr.msk.bf16.mxu1 %vm1164_vm2, %v1701_v59  ;;  %v1620_v44 = vmul.f32 %v3200_v25, %v3835_v12 }
 0x27a   : > { %3213 = vrcp.f32 %v1518_v62  ;;  %2907 = vmatmul.mubr.msk.bf16.gmra.mrb[28].mxu1 %vm1164_vm2, %v1702_v3 }
 0x27b   : > { %2925 = vmatpush3.bf16.msra.mxu0 %v3068_v17  ;;  %2947 = vmatpush3.bf16.msra.mxu1 %v3069_v13  ;;  %v3202_v54 = vpop.eup %3201 }
 0x27c   : > { %v1569_v20 = vpop.xlane.xlu0 %1568  ;;  %2948 = vmatprep.subr.bf16.mxu1 %v3070_v60  ;;  %v3204_v38 = vpop.eup %3203  ;;  %v1614_v53 = vmul.f32 %v3202_v54, %v3853_v24 }
 0x27d   : > { %v1536_v18 = vpop.xlane.xlu1 %1535  ;;  %v1618_v42 = vmul.f32 %v3204_v38, %v3829_v9 }
 0x27e   : > { %3215 = vrcp.f32 %v1536_v18 }
 0x27f   : > { %2949 = vmatpush3.bf16.msra.mxu1 %v3070_v60  ;;  %v1698_v52 = vpack.c.bf16 %v1620_v44, %v1618_v42 }
 0x280   : > { %v3206_v37 = vpop.eup %3205  ;;  %v1527_v35 = vpop.xlane.xlu0 %1526 }
 0x281   : > { %v1572_v15 = vpop.xlane.xlu1 %1571  ;;  %v3208_v29 = vpop.eup %3207  ;;  %v1616_v26 = vmul.f32 %v3206_v37, %v3859_v11  ;;  %3217 = vrcp.f32 %v1527_v35 }
 0x282   : > { %v3210_v41 = vpop.eup %3209  ;;  %v1644_v48 = vmul.f32 %v3208_v29, %v3847_v6  ;;  %3219 = vrcp.f32 %v1533_v34 }
 0x283   : > { %v3212_v56 = vpop.eup %3211  ;;  %v1697_v8 = vpack.c.bf16 %v1616_v26, %v1614_v53  ;;  %v1638_v12 = vmul.f32 %v3210_v41, %v3864_v32 }
 0x284   : > { %v3214_v28 = vpop.eup %3213  ;;  %v1563_v1 = vpop.xlane.xlu0 %1562  ;;  %v1642_v9 = vmul.f32 %v3212_v56, %v3841_v23 }
 0x285   : > { %v1530_v22 = vpop.xlane.xlu1 %1529  ;;  %2886 = vmatprep.mubr.msk.bf16.mxu0 %vm1164_vm2, %v1697_v8  ;;  %v1640_v24 = vmul.f32 %v3214_v28, %v3870_v58 }
 0x286   : > { %3221 = vrcp.f32 %v1530_v22  ;;  %2887 = vmatmul.mubr.msk.bf16.gmra.mrb[32].mxu0 %vm1164_vm2, %v1698_v52  ;;  %v1704_v7 = vpack.c.bf16 %v1644_v48, %v1642_v9 }
 0x287   : > { %3223 = vrcp.f32 %v1572_v15  ;;  %v1703_v11 = vpack.c.bf16 %v1640_v24, %v1638_v12 }
 0x288   : > { %3225 = vrcp.f32 %v1563_v1  ;;  %v1545_v39 = vpop.xlane.xlu0 %1544  ;;  %v3216_v58 = vpop.eup %3215 }
 0x289   : > { %v1566_v16 = vpop.xlane.xlu1 %1565  ;;  %3227 = vrcp.f32 %v1569_v20  ;;  %2910 = vmatprep.mubr.msk.bf16.mxu1 %vm1164_vm2, %v1703_v11  ;;  %v1652_v23 = vmul.f32 %v3216_v58, %v3880_v45 }
 0x28a   : > { %3229 = vrcp.f32 %v1566_v16  ;;  %2911 = vmatmul.mubr.msk.bf16.gmra.mrb[32].mxu1 %vm1164_vm2, %v1704_v7  ;;  %v4251_v16 = vld [vmem:[#allocation3_spill] sm:$0xff] }
 0x28b   : > { %v3218_v33 = vpop.eup %3217 }
 0x28c   : > { %v1581_v6 = vpop.xlane.xlu0 %1580  ;;  %v3220_v51 = vpop.eup %3219  ;;  %v1646_v13 = vmul.f32 %v3218_v33, %v3894_v57 }
 0x28d   : > { %v1548_v32 = vpop.xlane.xlu1 %1547  ;;  %v1650_v21 = vmul.f32 %v3220_v51, %v3874_v27 }
 0x28e   : > { %3231 = vrcp.f32 %v1548_v32  ;;  %v4253_v32 = vld [vmem:[#allocation2_spill] sm:$0xff] }
 0x28f   : > { %v1706_v3 = vpack.c.bf16 %v1652_v23, %v1650_v21  ;;  %v4256_v21 = vld [vmem:[#allocation7_spill] sm:$0xff] }
 0x290   : > { %v3222_v47 = vpop.eup %3221  ;;  %v1539_v4 = vpop.xlane.xlu0 %1538 }
 0x291   : > { %v1584_v49 = vpop.xlane.xlu1 %1583  ;;  %v3224_v17 = vpop.eup %3223  ;;  %v1648_v43 = vmul.f32 %v3222_v47, %v3900_v63  ;;  %3233 = vrcp.f32 %v1539_v4  ;;  %v4254_v4 = vld [vmem:[#allocation5_spill] sm:$0xff] }
 0x292   : > { %v3226_v36 = vpop.eup %3225  ;;  %v1676_v60 = vmul.f32 %v3224_v17, %v3890_v30  ;;  %3235 = vrcp.f32 %v1545_v39  ;;  %v4255_v17 = vld [vmem:[#allocation6_spill] sm:$0xff] }
 0x293   : > { %v3228_v59 = vpop.eup %3227  ;;  %v1705_v34 = vpack.c.bf16 %v1648_v43, %v1646_v13  ;;  %v1670_v57 = vmul.f32 %v3226_v36, %v3904_v61 }
 0x294   : > { %v3230_v62 = vpop.eup %3229  ;;  %v1575_v45 = vpop.xlane.xlu0 %1574  ;;  %v1674_v18 = vmul.f32 %v3228_v59, %v3884_v31 }
 0x295   : > { %v1542_v20 = vpop.xlane.xlu1 %1541  ;;  %2926 = vmatprep.mubr.msk.bf16.mxu0 %vm1164_vm2, %v1705_v34  ;;  %v1672_v63 = vmul.f32 %v3230_v62, %v3910_v5  ;;  %v4257_v34 = vld [vmem:[#allocation8_spill] sm:$0xff] }
 0x296   : > { %3237 = vrcp.f32 %v1542_v20  ;;  %2927 = vmatmul.mubr.msk.bf16.vlgmr.msra.gmra.mrb[36].mxu0 %vm1164_vm2, %v1706_v3  ;;  %v1712_v25 = vpack.c.bf16 %v1676_v60, %v1674_v18 }
 0x297   : > { %3239 = vrcp.f32 %v1584_v49  ;;  %v1711_v27 = vpack.c.bf16 %v1672_v63, %v1670_v57 }
 0x298   : > { %3241 = vrcp.f32 %v1575_v45  ;;  %v1557_v54 = vpop.xlane.xlu0 %1556  ;;  %v3232_v38 = vpop.eup %3231 }
 0x299   : > { %v1578_v30 = vpop.xlane.xlu1 %1577  ;;  %3243 = vrcp.f32 %v1581_v6  ;;  %2950 = vmatprep.mubr.msk.bf16.mxu1 %vm1164_vm2, %v1711_v27  ;;  %v1660_v15 = vmul.f32 %v3232_v38, %v3920_v40  ;;  %v4252_v6 = vld [vmem:[#allocation4_spill] sm:$0xff] }
 0x29a   : > { %3245 = vrcp.f32 %v1578_v30  ;;  %2951 = vmatmul.mubr.msk.bf16.vlgmr.msra.gmra.mrb[36].mxu1 %vm1164_vm2, %v1712_v25 }
 0x29b   : > { %v3234_v5 = vpop.eup %3233 }
 0x29c   : > { %v3236_v37 = vpop.eup %3235  ;;  %v1654_v53 = vmul.f32 %v3234_v5, %v3939_v50 }
 0x29d   : > { %v1560_v61 = vpop.xlane.xlu1 %1559  ;;  %v1658_v42 = vmul.f32 %v3236_v37, %v3914_v46 }
 0x29e   : > { %3247 = vrcp.f32 %v1560_v61 }
 0x29f   : > { %3249 = vrcp.f32 %v1557_v54  ;;  %v1708_v22 = vpack.c.bf16 %v1660_v15, %v1658_v42 }
 0x2a0   : > { %v3238_v31 = vpop.eup %3237  ;;  %v1551_v35 = vpop.xlane.xlu0 %1550 }
 0x2a1   : > { %v3240_v44 = vpop.eup %3239  ;;  %3251 = vrcp.f32 %v1551_v35  ;;  %v1554_v29 = vpop.xlane.xlu1 %1553  ;;  %v1656_v26 = vmul.f32 %v3238_v31, %v3946_v19 }
 0x2a2   : > { %v3242_v41 = vpop.eup %3241  ;;  %3253 = vrcp.f32 %v1554_v29  ;;  %v1684_v52 = vmul.f32 %v3240_v44, %v3934_v2 }
 0x2a3   : > { %v3244_v56 = vpop.eup %3243  ;;  %v1707_v8 = vpack.c.bf16 %v1656_v26, %v1654_v53  ;;  %v1678_v48 = vmul.f32 %v3242_v41, %v3950_v55 }
 0x2a4   : > { %v3246_v28 = vpop.eup %3245  ;;  %v1587_v1 = vpop.xlane.xlu0 %1586  ;;  %v1682_v46 = vmul.f32 %v3244_v56, %v3927_v0 }
 0x2a5   : > { %3255 = vrcp.f32 %v1587_v1  ;;  %2930 = vmatprep.mubr.msk.bf16.mxu0 %vm1164_vm2, %v1707_v8  ;;  %v1590_v40 = vpop.xlane.xlu1 %1589  ;;  %v1680_v50 = vmul.f32 %v3246_v28, %v3958_v14 }
 0x2a6   : > { %2931 = vmatmul.mubr.msk.bf16.gmra.mrb[40].mxu0 %vm1164_vm2, %v1708_v22  ;;  %3257 = vrcp.f32 %v1590_v40  ;;  %v1714_v24 = vpack.c.bf16 %v1684_v52, %v1682_v46 }
 0x2a7   : > { %v1713_v19 = vpack.c.bf16 %v1680_v50, %v1678_v48 }
 0x2a8   : > { %v1593_v12 = vpop.xlane.xlu0 %1592  ;;  %v3248_v9 = vpop.eup %3247 }
 0x2a9   : > { %3259 = vrcp.f32 %v1593_v12  ;;  %2954 = vmatprep.mubr.msk.bf16.mxu1 %vm1164_vm2, %v1713_v19  ;;  %v1596_v2 = vpop.xlane.xlu1 %1595  ;;  %v3250_v11 = vpop.eup %3249  ;;  %v1668_v14 = vmul.f32 %v3248_v9, %v3968_v10 }
 0x2aa   : > { %2955 = vmatmul.mubr.msk.bf16.gmra.mrb[40].mxu1 %vm1164_vm2, %v1714_v24  ;;  %3261 = vrcp.f32 %v1596_v2  ;;  %v1666_v58 = vmul.f32 %v3250_v11, %v4253_v32 }
 0x2ab   : > { %v3252_v55 = vpop.eup %3251 }
 0x2ac   : > { %v3254_v39 = vpop.eup %3253  ;;  %v1662_v7 = vmul.f32 %v3252_v55, %v4251_v16  ;;  %v1710_v23 = vpack.c.bf16 %v1668_v14, %v1666_v58 }
 0x2ad   : > { %v1664_v0 = vmul.f32 %v3254_v39, %v4252_v6 }
 0x2af   : > { %v3256_v33 = vpop.eup %3255  ;;  %v1709_v51 = vpack.c.bf16 %v1664_v0, %v1662_v7 }
 0x2b0   : > { %v3258_v47 = vpop.eup %3257  ;;  %v1686_v49 = vmul.f32 %v3256_v33, %v4254_v4 }
 0x2b1   : > { %2934 = vmatprep.mubr.msk.bf16.mxu0 %vm1164_vm2, %v1709_v51  ;;  %v1688_v13 = vmul.f32 %v3258_v47, %v4255_v17 }
 0x2b2   : > { %2935 = vmatmul.mubr.msk.bf16.gmra.mrb[44].mxu0 %vm1164_vm2, %v1710_v23 }
 0x2b3   : > { %v3260_v43 = vpop.eup %3259  ;;  %v1715_v10 = vpack.c.bf16 %v1688_v13, %v1686_v49 }
 0x2b4   : > { %v3262_v36 = vpop.eup %3261  ;;  %v1690_v59 = vmul.f32 %v3260_v43, %v4256_v21 }
 0x2b5   : > { %2958 = vmatprep.mubr.msk.bf16.mxu1 %vm1164_vm2, %v1715_v10  ;;  %v1692_v62 = vmul.f32 %v3262_v36, %v4257_v34 }
 0x2b7   : > { %v1716_v3 = vpack.c.bf16 %v1692_v62, %v1690_v59 }
 0x2b9   : > { %2959 = vmatmul.mubr.msk.bf16.gmra.mrb[44].mxu1 %vm1164_vm2, %v1716_v3 }
 0x338   : > { %v4080_v60 = vpop.f32.mrb[24].mxu0 }
 0x339   : > { %v4082_v20 = vpop.f32.mrb[25].mxu0 }
 0x33a   : > { %v4084_v45 = vpop.f32.mrb[26].mxu0 }
 0x33b   : > { %v4086_v57 = vpop.f32.mrb[27].mxu0 }
 0x33d   : > { %v2904_v63 = vpop.f32.mrb[24].mxu1 }
 0x33e   : > { %2273 = vrot.lane.b32.xlu1 %v2904_v63, %s3271_s24  ;;  %v1940_v18 = vpop.f32.mrb[25].mxu1 }
 0x33f   : > { %2269 = vrot.lane.b32.xlu0 %v1940_v18, %s3271_s24  ;;  %v2905_v27 = vpop.f32.mrb[26].mxu1 }
 0x340   : > { %v1943_v25 = vpop.f32.mrb[27].mxu1 }
 0x342   : > { %2275 = vrot.lane.b32.xlu1 %v2905_v27, %s3271_s24 }
 0x346   : > { %2271 = vrot.lane.b32.xlu1 %v1943_v25, %s3271_s24 }
 0x349   : > { %v4092_v30 = vpop.f32.mrb[28].mxu0 }
 0x34a   : > { %v4094_v54 = vpop.f32.mrb[29].mxu0 }
 0x34b   : > { %v4096_v61 = vpop.f32.mrb[30].mxu0 }
 0x34c   : > { %v4098_v38 = vpop.f32.mrb[31].mxu0 }
 0x34d   : > { %v2908_v5 = vpop.f32.mrb[28].mxu1 }
 0x34e   : > { %2281 = vrot.lane.b32.xlu0 %v2908_v5, %s3271_s24  ;;  %v1956_v37 = vpop.f32.mrb[29].mxu1 }
 0x34f   : > { %v2909_v31 = vpop.f32.mrb[30].mxu1 }
 0x350   : > { %2283 = vrot.lane.b32.xlu1 %v2909_v31, %s3271_s24  ;;  %v1959_v35 = vpop.f32.mrb[31].mxu1 }
 0x352   : > { %2277 = vrot.lane.b32.xlu0 %v1956_v37, %s3271_s24 }
 0x354   : > { %2279 = vrot.lane.b32.xlu1 %v1959_v35, %s3271_s24 }
 0x359   : > { %v4104_v15 = vpop.f32.mrb[32].mxu0 }
 0x35a   : > { %v4106_v44 = vpop.f32.mrb[33].mxu0 }
 0x35b   : > { %v4108_v29 = vpop.f32.mrb[34].mxu0 }
 0x35c   : > { %v4110_v53 = vpop.f32.mrb[35].mxu0 }
 0x35d   : > { %v2912_v26 = vpop.f32.mrb[32].mxu1 }
 0x35e   : > { %2289 = vrot.lane.b32.xlu0 %v2912_v26, %s3271_s24  ;;  %v1972_v41 = vpop.f32.mrb[33].mxu1 }
 0x35f   : > { %v2913_v42 = vpop.f32.mrb[34].mxu1 }
 0x360   : > { %2291 = vrot.lane.b32.xlu1 %v2913_v42, %s3271_s24  ;;  %v1975_v56 = vpop.f32.mrb[35].mxu1 }
 0x362   : > { %2285 = vrot.lane.b32.xlu0 %v1972_v41, %s3271_s24 }
 0x364   : > { %2287 = vrot.lane.b32.xlu1 %v1975_v56, %s3271_s24 }
 0x369   : > { %v2928_v8 = vpop.f32.mrb[36].mxu0 }
 0x36a   : > { %2321 = vrot.lane.b32.xlu0 %v2928_v8, %s3272_s25  ;;  %v2075_v28 = vpop.f32.mrb[37].mxu0 }
 0x36b   : > { %v2929_v1 = vpop.f32.mrb[38].mxu0 }
 0x36c   : > { %2323 = vrot.lane.b32.xlu1 %v2929_v1, %s3272_s25  ;;  %v2078_v22 = vpop.f32.mrb[39].mxu0 }
 0x36d   : > { %v2952_v52 = vpop.f32.mrb[36].mxu1 }
 0x36e   : > { %2369 = vrot.lane.b32.xlu0 %v2952_v52, %s3273_s26  ;;  %v2210_v40 = vpop.f32.mrb[37].mxu1 }
 0x36f   : > { %v2953_v48 = vpop.f32.mrb[38].mxu1 }
 0x370   : > { %2371 = vrot.lane.b32.xlu1 %v2953_v48, %s3273_s26  ;;  %v2213_v50 = vpop.f32.mrb[39].mxu1 }
 0x372   : > { %2317 = vrot.lane.b32.xlu0 %v2075_v28, %s3272_s25 }
 0x374   : > { %2319 = vrot.lane.b32.xlu1 %v2078_v22, %s3272_s25 }
 0x376   : > { %2365 = vrot.lane.b32.xlu0 %v2210_v40, %s3273_s26 }
 0x378   : > { %2367 = vrot.lane.b32.xlu1 %v2213_v50, %s3273_s26 }
 0x379   : > { %v2932_v46 = vpop.f32.mrb[40].mxu0 }
 0x37a   : > { %2329 = vrot.lane.b32.xlu0 %v2932_v46, %s3272_s25  ;;  %v2091_v19 = vpop.f32.mrb[41].mxu0 }
 0x37b   : > { %v2933_v12 = vpop.f32.mrb[42].mxu0 }
 0x37c   : > { %2331 = vrot.lane.b32.xlu1 %v2933_v12, %s3272_s25  ;;  %v2094_v24 = vpop.f32.mrb[43].mxu0 }
 0x37d   : > { %v2956_v9 = vpop.f32.mrb[40].mxu1 }
 0x37e   : > { %2377 = vrot.lane.b32.xlu0 %v2956_v9, %s3273_s26  ;;  %v2226_v2 = vpop.f32.mrb[41].mxu1 }
 0x37f   : > { %v2957_v11 = vpop.f32.mrb[42].mxu1 }
 0x380   : > { %2379 = vrot.lane.b32.xlu1 %v2957_v11, %s3273_s26  ;;  %v2229_v55 = vpop.f32.mrb[43].mxu1 }
 0x382   : > { %2325 = vrot.lane.b32.xlu0 %v2091_v19, %s3272_s25 }
 0x384   : > { %2327 = vrot.lane.b32.xlu1 %v2094_v24, %s3272_s25 }
 0x385   : > { %v2936_v39 = vpop.f32.mrb[44].mxu0 }
 0x386   : > { %2373 = vrot.lane.b32.xlu0 %v2226_v2, %s3273_s26  ;;  %v2107_v14 = vpop.f32.mrb[45].mxu0 }
 0x387   : > { %v2937_v16 = vpop.f32.mrb[46].mxu0 }
 0x388   : > { %2375 = vrot.lane.b32.xlu1 %v2229_v55, %s3273_s26  ;;  %v2110_v7 = vpop.f32.mrb[47].mxu0 }
 0x38a   : > { %2337 = vrot.lane.b32.xlu0 %v2936_v39, %s3272_s25 }
 0x38c   : > { %2339 = vrot.lane.b32.xlu1 %v2937_v16, %s3272_s25  ;;  %v2960_v6 = vpop.f32.mrb[44].mxu1 }
 0x38d   : > { %v2242_v0 = vpop.f32.mrb[45].mxu1 }
 0x38e   : > { %2333 = vrot.lane.b32.xlu0 %v2107_v14, %s3272_s25  ;;  %v2961_v32 = vpop.f32.mrb[46].mxu1 }
 0x38f   : > { %v2245_v58 = vpop.f32.mrb[47].mxu1 }
 0x390   : > { %2335 = vrot.lane.b32.xlu1 %v2110_v7, %s3272_s25 }
 0x392   : > { %2381 = vrot.lane.b32.xlu0 %v2242_v0, %s3273_s26 }
 0x394   : > { %2383 = vrot.lane.b32.xlu1 %v2245_v58, %s3273_s26 }
 0x396   : > { %2385 = vrot.lane.b32.xlu0 %v2960_v6, %s3273_s26 }
 0x398   : > { %2387 = vrot.lane.b32.xlu1 %v2961_v32, %s3273_s26 }
 0x3b0   : > { %v2274_v33 = vpop.permute.xlu1 %2273 }
 0x3b1   : > { %v2270_v47 = vpop.permute.xlu0 %2269  ;;  %v2403_v62 = vsel %vm416_vm0, %v4080_v60, %v2274_v33 }
 0x3b4   : > { %v2276_v51 = vpop.permute.xlu1 %2275 }
 0x3b5   : > { %v2404_v18 = vsel %vm416_vm0, %v4084_v45, %v2276_v51  ;;  %v2401_v45 = vsel %vm416_vm0, %v4082_v20, %v2270_v47 }
 0x3b8   : > { %v2272_v23 = vpop.permute.xlu1 %2271 }
 0x3b9   : > { %v2402_v56 = vsel %vm416_vm0, %v4086_v57, %v2272_v23 }
 0x3c0   : > { %v2282_v4 = vpop.permute.xlu0 %2281 }
 0x3c1   : > { %v2407_v57 = vsel %vm416_vm0, %v4092_v30, %v2282_v4 }
 0x3c2   : > { %v2284_v49 = vpop.permute.xlu1 %2283 }
 0x3c3   : > { %v2408_v19 = vsel %vm416_vm0, %v4096_v61, %v2284_v49 }
 0x3c4   : > { %v2278_v17 = vpop.permute.xlu0 %2277 }
 0x3c5   : > { %v2405_v61 = vsel %vm416_vm0, %v4094_v54, %v2278_v17 }
 0x3c6   : > { %v2280_v13 = vpop.permute.xlu1 %2279 }
 0x3c7   : > { %v2406_v7 = vsel %vm416_vm0, %v4098_v38, %v2280_v13 }
 0x3d0   : > { %v4140_v43 = vpop.permute.xlu0 %2289 }
 0x3d2   : > { %v4142_v10 = vpop.permute.xlu1 %2291 }
 0x3d4   : > { %v4144_v36 = vpop.permute.xlu0 %2285 }
 0x3d5   : > { %v2409_v38 = vsel %vm416_vm0, %v4106_v44, %v4144_v36  ;;  %v2411_v44 = vsel %vm416_vm0, %v4104_v15, %v4140_v43 }
 0x3d6   : > { %v4146_v21 = vpop.permute.xlu1 %2287 }
 0x3d7   : > { %v2410_v13 = vsel %vm416_vm0, %v4110_v53, %v4146_v21 }
 0x3dc   : > { %v2322_v59 = vpop.permute.xlu0 %2321 }
 0x3dd   : > { %v2416_v3 = vsel %vm2413_vm3, %v2403_v62, %v2322_v59 }
 0x3de   : > { %v2324_v34 = vpop.permute.xlu1 %2323 }
 0x3df   : > { %v2417_v25 = vsel %vm2413_vm3, %v2404_v18, %v2324_v34  ;;  %v2412_v18 = vsel %vm416_vm0, %v4108_v29, %v4142_v10 }
 0x3e0   : > { %v2370_v63 = vpop.permute.xlu0 %2369 }
 0x3e1   : > { %v2429_v27 = vsel %vm2426_vm4, %v2416_v3, %v2370_v63 }
 0x3e2   : > { %v2442_v60 = vsel %vm2439_vm5, %v2429_v27, 0.0  ;;  %v2372_v5 = vpop.permute.xlu1 %2371 }
 0x3e3   : > { %2454 = vst [vmem:[%s4155_s30 + $0x10] sm:$0xff] %v2442_v60  ;;  %v2430_v37 = vsel %vm2426_vm4, %v2417_v25, %v2372_v5 }
 0x3e4   : > { %v2443_v31 = vsel %vm2439_vm5, %v2430_v37, 0.0  ;;  %v2318_v35 = vpop.permute.xlu0 %2317 }
 0x3e5   : > { %2455 = vst [vmem:[%s4155_s30 + $0x18] sm:$0xff] %v2443_v31  ;;  %v2414_v41 = vsel %vm2413_vm3, %v2401_v45, %v2318_v35 }
 0x3e6   : > { %v2320_v26 = vpop.permute.xlu1 %2319 }
 0x3e7   : > { %v2415_v28 = vsel %vm2413_vm3, %v2402_v56, %v2320_v26 }
 0x3e8   : > { %v2366_v42 = vpop.permute.xlu0 %2365 }
 0x3e9   : > { %v2427_v8 = vsel %vm2426_vm4, %v2414_v41, %v2366_v42 }
 0x3ea   : > { %v2440_v1 = vsel %vm2439_vm5, %v2427_v8, 0.0  ;;  %v2368_v22 = vpop.permute.xlu1 %2367 }
 0x3eb   : > { %2452 = vst [vmem:[%s4155_s30] sm:$0xff] %v2440_v1  ;;  %v2428_v52 = vsel %vm2426_vm4, %v2415_v28, %v2368_v22 }
 0x3ec   : > { %v2441_v40 = vsel %vm2439_vm5, %v2428_v52, 0.0  ;;  %v2330_v20 = vpop.permute.xlu0 %2329 }
 0x3ed   : > { %2453 = vst [vmem:[%s4155_s30 + $0x8] sm:$0xff] %v2441_v40  ;;  %v2420_v50 = vsel %vm2413_vm3, %v2407_v57, %v2330_v20 }
 0x3ee   : > { %v2332_v48 = vpop.permute.xlu1 %2331 }
 0x3ef   : > { %v2421_v24 = vsel %vm2413_vm3, %v2408_v19, %v2332_v48 }
 0x3f0   : > { %v2378_v46 = vpop.permute.xlu0 %2377 }
 0x3f1   : > { %v2433_v12 = vsel %vm2426_vm4, %v2420_v50, %v2378_v46 }
 0x3f2   : > { %v2446_v9 = vsel %vm2439_vm5, %v2433_v12, 0.0  ;;  %v2380_v2 = vpop.permute.xlu1 %2379 }
 0x3f3   : > { %2458 = vst [vmem:[%s4155_s30 + $0x30] sm:$0xff] %v2446_v9  ;;  %v2434_v11 = vsel %vm2426_vm4, %v2421_v24, %v2380_v2 }
 0x3f4   : > { %v2447_v55 = vsel %vm2439_vm5, %v2434_v11, 0.0  ;;  %v2326_v30 = vpop.permute.xlu0 %2325 }
 0x3f5   : > { %2459 = vst [vmem:[%s4155_s30 + $0x38] sm:$0xff] %v2447_v55  ;;  %v2418_v14 = vsel %vm2413_vm3, %v2405_v61, %v2326_v30 }
 0x3f6   : > { %v2328_v39 = vpop.permute.xlu1 %2327 }
 0x3f7   : > { %v2419_v0 = vsel %vm2413_vm3, %v2406_v7, %v2328_v39 }
 0x3f8   : > { %v2374_v16 = vpop.permute.xlu0 %2373 }
 0x3f9   : > { %v2431_v6 = vsel %vm2426_vm4, %v2418_v14, %v2374_v16 }
 0x3fa   : > { %v2444_v32 = vsel %vm2439_vm5, %v2431_v6, 0.0  ;;  %v2376_v58 = vpop.permute.xlu1 %2375 }
 0x3fb   : > { %2456 = vst [vmem:[%s4155_s30 + $0x20] sm:$0xff] %v2444_v32  ;;  %v2432_v33 = vsel %vm2426_vm4, %v2419_v0, %v2376_v58 }
 0x3fc   : > { %v2445_v51 = vsel %vm2439_vm5, %v2432_v33, 0.0  ;;  %v2338_v54 = vpop.permute.xlu0 %2337 }
 0x3fd   : > { %2457 = vst [vmem:[%s4155_s30 + $0x28] sm:$0xff] %v2445_v51  ;;  %v2424_v63 = vsel %vm2413_vm3, %v2411_v44, %v2338_v54 }
 0x3fe   : > { %v2340_v47 = vpop.permute.xlu1 %2339 }
 0x3ff   : > { %v2425_v25 = vsel %vm2413_vm3, %v2412_v18, %v2340_v47 }
 0x400   : > { %v2334_v23 = vpop.permute.xlu0 %2333 }
 0x401   : > { %v2422_v49 = vsel %vm2413_vm3, %v2409_v38, %v2334_v23 }
 0x402   : > { %v2336_v4 = vpop.permute.xlu1 %2335 }
 0x403   : > { %v2423_v34 = vsel %vm2413_vm3, %v2410_v13, %v2336_v4 }
 0x404   : > { %v2382_v17 = vpop.permute.xlu0 %2381 }
 0x405   : > { %v2435_v59 = vsel %vm2426_vm4, %v2422_v49, %v2382_v17 }
 0x406   : > { %v2448_v62 = vsel %vm2439_vm5, %v2435_v59, 0.0  ;;  %v2384_v3 = vpop.permute.xlu1 %2383 }
 0x407   : > { %2460 = vst [vmem:[%s4155_s30 + $0x40] sm:$0xff] %v2448_v62  ;;  %v2436_v36 = vsel %vm2426_vm4, %v2423_v34, %v2384_v3 }
 0x408   : > { %v2449_v53 = vsel %vm2439_vm5, %v2436_v36, 0.0  ;;  %v2386_v21 = vpop.permute.xlu0 %2385 }
 0x409   : > { %2461 = vst [vmem:[%s4155_s30 + $0x48] sm:$0xff] %v2449_v53  ;;  %v2437_v27 = vsel %vm2426_vm4, %v2424_v63, %v2386_v21 }
 0x40a   : > { %v2450_v60 = vsel %vm2439_vm5, %v2437_v27, 0.0  ;;  %v2388_v15 = vpop.permute.xlu1 %2387 }
 0x40b   : > { %2462 = vst [vmem:[%s4155_s30 + $0x50] sm:$0xff] %v2450_v60  ;;  %v2438_v43 = vsel %vm2426_vm4, %v2425_v25, %v2388_v15 }
 0x40c   : > { %v2451_v5 = vsel %vm2439_vm5, %v2438_v43, 0.0 }
 0x40d   : > { %2463 = vst [vmem:[%s4155_s30 + $0x58] sm:$0xff] %v2451_v5 }
 0x40e PF: > { %s13_s12 = sadd.s32 1, %s3269_s12  }
 0x40f   : > { %p10_p4 = scmp.ge.s32.totalorder %s13_s12, 4  }
 0x411   :  { %12 = sbr.rel (!%p10_p4) target bundleno = 1 (0x1), region = 68 }

</bundles_post_ra>
